<compile_context>
chip_gen: v5e
topology: v5e:2x2
jax: 0.10.0
libtpu: 0.0.40
codegen_flags: <defaults>
</compile_context>

<pallas_src>
import functools

import jax
import jax.numpy as jnp
from jax.experimental import pallas as pl
from jax.experimental.pallas import tpu as pltpu


def basic_block_kernel(
    H, W, Cin, Cout,
    # inputs
    x_ref,        # (1, H+2, W+2, Cin) f32   spatially pre-padded NHWC input
    w1_ref,       # (9, Cin, Cout)     bf16  (BN1 folded in)
    b1_ref,       # (1, Cout)          f32   (BN1 bias)
    w2_ref,       # (9, Cout, Cout)    bf16  (BN2 folded in)
    b2_ref,       # (1, Cout)          f32   (BN2 bias)
    # output
    o_ref,        # (1, Cout, H*W)     f32   lane-dense, natively NCHW
    # scratch
    hpad,         # (H+2, W+2, Cout)   bf16  zero-padded hidden activation
):
    HW = H * W

    # ---- conv1 + bn1 (+bias) + relu: 9 accumulated MXU matmuls over shifted slabs
    acc = jnp.zeros((HW, Cout), jnp.float32)
    for t in range(9):
        dy, dx = divmod(t, 3)
        lhs = x_ref[0, dy:dy + H, dx:dx + W, :].astype(jnp.bfloat16).reshape(HW, Cin)
        acc += jnp.dot(lhs, w1_ref[t], preferred_element_type=jnp.float32)
    h = jnp.maximum(acc + b1_ref[...], 0.0)                     # (HW, Cout) f32

    # ---- pad hidden into bf16 scratch -----------------------------------------
    # Halo strips re-zeroed every step (scratch persists across the parallel grid,
    # so a program_id==0 guard would be wrong on multi-core). Interior write is the
    # single remaining sublane-offset store, now at half the bytes (bf16).
    # TODO(synk): replace with an in-register [0 | h | 0] concatenation / roll-based
    # column shifts once unaligned minor-dim concat lowering is verified on target.
    hpad[0:1, :, :] = jnp.zeros((1, W + 2, Cout), hpad.dtype)
    hpad[H + 1:H + 2, :, :] = jnp.zeros((1, W + 2, Cout), hpad.dtype)
    hpad[1:H + 1, 0:1, :] = jnp.zeros((H, 1, Cout), hpad.dtype)
    hpad[1:H + 1, W + 1:W + 2, :] = jnp.zeros((H, 1, Cout), hpad.dtype)
    hpad[1:H + 1, 1:W + 1, :] = h.astype(hpad.dtype).reshape(H, W, Cout)

    # ---- conv2 + bn2 (+bias): 9 accumulated matmuls from the padded hidden ------
    acc2 = jnp.zeros((HW, Cout), jnp.float32)
    for t in range(9):
        dy, dx = divmod(t, 3)
        lhs = hpad[dy:dy + H, dx:dx + W, :].reshape(HW, Cout)   # already bf16
        acc2 += jnp.dot(lhs, w2_ref[t], preferred_element_type=jnp.float32)

    # ---- residual (f32 identity from the padded input's interior) + relu --------
    ident = x_ref[0, 1:H + 1, 1:W + 1, :].reshape(HW, Cin)      # f32
    y = jnp.maximum(acc2 + b2_ref[...] + ident, 0.0)            # (HW, Cout) f32

    # Single lane-dense store: transpose so the minor dim is H*W (>=128 for real
    # sizes), which also yields NCHW directly.
    o_ref[...] = y.T.reshape(1, Cout, HW).astype(o_ref.dtype)


def basic_block_forward(x_nchw, params, eps=1e-5):
    """Pallas BasicBlock forward. Input and output in PyTorch NCHW layout."""
    B, Cin, H, W = x_nchw.shape
    Cout = params["w1"].shape[0]
    assert Cin == Cout, "identity residual requires in_channels == out_channels"
    # TODO(synk): stride>1 / downsample branch of BasicBlock (spec defaults
    # stride=1, downsample=None) and row-tiling of very large spatial sizes for
    # v7x (2 TensorCores / 64 MiB VMEM) are not implemented.

    # NHWC conversion + spatial zero-padding done once in HBM; the padding folds
    # into the per-step input DMA instead of an in-kernel copy.
    x_nhwc = jnp.transpose(x_nchw, (0, 2, 3, 1)).astype(jnp.float32)
    xpad = jnp.pad(x_nhwc, ((0, 0), (1, 1), (1, 1), (0, 0)))

    def fold_bn(w, gamma, beta, mean, var):
        # inference-mode BN folded into conv weight + bias; fold kept in f32,
        # bf16 cast applied only at the very end.
        scale = gamma / jnp.sqrt(var + eps)                      # (O,)
        wf = w * scale[:, None, None, None]                      # (O, I, 3, 3)
        bias = beta - mean * scale                               # (O,)
        # (O, I, kH, kW) -> (kH, kW, I, O) -> (9, I, O): per-tap (I, O) slabs.
        wk = jnp.transpose(wf, (2, 3, 1, 0)).reshape(9, w.shape[1], w.shape[0])
        return wk.astype(jnp.bfloat16), bias.reshape(1, -1).astype(jnp.float32)

    w1, b1 = fold_bn(params["w1"], params["g1"], params["be1"], params["m1"], params["v1"])
    w2, b2 = fold_bn(params["w2"], params["g2"], params["be2"], params["m2"], params["v2"])

    HW = H * W
    flops = 2 * B * HW * 9 * (Cin * Cout + Cout * Cout)
    bytes_accessed = (4 * xpad.size + 4 * B * HW * Cout          # in/out activations
                      + 2 * (w1.size + w2.size)                  # bf16 weights
                      + 4 * (b1.size + b2.size))

    # Per-step VMEM footprint: double-buffered in/out blocks + resident weights +
    # the bf16 hpad scratch, with generous slack; capped for v7x headroom.
    in_block = (H + 2) * (W + 2) * Cin * 4
    out_block = Cout * HW * 4
    scratch = (H + 2) * (W + 2) * Cout * 2
    weight_bytes = 2 * (w1.size + w2.size) + 4 * (b1.size + b2.size)
    footprint = 2 * (in_block + out_block + weight_bytes) + scratch
    vmem_limit = int(min(48 * 1024 * 1024, max(16 * 1024 * 1024, 4 * footprint)))

    out = pl.pallas_call(
        functools.partial(basic_block_kernel, H, W, Cin, Cout),
        out_shape=jax.ShapeDtypeStruct((B, Cout, HW), jnp.float32),
        grid=(B,),
        in_specs=[
            pl.BlockSpec((1, H + 2, W + 2, Cin), lambda b: (b, 0, 0, 0)),
            pl.BlockSpec((9, Cin, Cout), lambda b: (0, 0, 0)),
            pl.BlockSpec((1, Cout), lambda b: (0, 0)),
            pl.BlockSpec((9, Cout, Cout), lambda b: (0, 0, 0)),
            pl.BlockSpec((1, Cout), lambda b: (0, 0)),
        ],
        out_specs=pl.BlockSpec((1, Cout, HW), lambda b: (b, 0, 0)),
        scratch_shapes=[
            pltpu.VMEM((H + 2, W + 2, Cout), jnp.bfloat16),
        ],
        compiler_params=pltpu.CompilerParams(
            dimension_semantics=("parallel",),
            vmem_limit_bytes=vmem_limit,
        ),
        cost_estimate=pl.CostEstimate(flops=flops, transcendentals=0,
                                      bytes_accessed=bytes_accessed),
    )(xpad, w1, b1, w2, b2)

    return out.reshape(B, Cout, H, W)                            # already NCHW


def reference_forward(x, params, eps=1e-5):
    """Pure-JAX (XLA) reference replicating the PyTorch forward (eval-mode BN)."""
    def conv(v, w):
        return jax.lax.conv_general_dilated(
            v, w, window_strides=(1, 1), padding=[(1, 1), (1, 1)],
            dimension_numbers=("NCHW", "OIHW", "NCHW"))

    def bn(v, g, b, m, var):
        inv = g / jnp.sqrt(var + eps)
        return (v - m[None, :, None, None]) * inv[None, :, None, None] \
            + b[None, :, None, None]

    out = jnp.maximum(
        bn(conv(x, params["w1"]), params["g1"], params["be1"], params["m1"], params["v1"]), 0.0)
    out = bn(conv(out, params["w2"]), params["g2"], params["be2"], params["m2"], params["v2"])
    return jnp.maximum(out + x, 0.0)


def make_params(key, cin, cout):
    """Deterministic synthetic parameters (PyTorch layouts, eval-mode BN stats)."""
    ks = jax.random.split(key, 10)
    return {
        "w1": 0.05 * jax.random.normal(ks[0], (cout, cin, 3, 3), jnp.float32),
        "w2": 0.05 * jax.random.normal(ks[1], (cout, cout, 3, 3), jnp.float32),
        "g1": 1.0 + 0.1 * jax.random.normal(ks[2], (cout,), jnp.float32),
        "be1": 0.1 * jax.random.normal(ks[3], (cout,), jnp.float32),
        "m1": 0.1 * jax.random.normal(ks[4], (cout,), jnp.float32),
        "v1": 1.0 + 0.1 * jnp.abs(jax.random.normal(ks[5], (cout,), jnp.float32)),
        "g2": 1.0 + 0.1 * jax.random.normal(ks[6], (cout,), jnp.float32),
        "be2": 0.1 * jax.random.normal(ks[7], (cout,), jnp.float32),
        "m2": 0.1 * jax.random.normal(ks[8], (cout,), jnp.float32),
        "v2": 1.0 + 0.1 * jnp.abs(jax.random.normal(ks[9], (cout,), jnp.float32)),
    }


if __name__ == "__main__":
    B, C, H, W = 2, 4, 16, 16

    key = jax.random.PRNGKey(0)
    key, kx = jax.random.split(key)
    x = jax.random.normal(kx, (B, C, H, W), dtype=jnp.float32)
    params = make_params(key, C, C)

    out = jax.block_until_ready(basic_block_forward(x, params))
    ref = jax.block_until_ready(reference_forward(x, params))

    assert out.shape == ref.shape == (B, C, H, W), out.shape
    max_err = float(jnp.max(jnp.abs(out - ref)))
    # bf16 MXU operands with f32 accumulation -> loosened tolerance vs f32 reference.
    assert jnp.allclose(out, ref, atol=5e-2, rtol=5e-2), max_err

    print("KERNEL_OK")
</pallas_src>

<mosaic_0001>
module attributes {stable_mosaic.version = 11 : i64} {
  func.func @basic_block_kernel(%arg0: i32, %arg1: memref<1x18x18x4xf32, #tpu.memory_space<vmem>>, %arg2: memref<9x4x4xbf16, #tpu.memory_space<vmem>>, %arg3: memref<1x4xf32, #tpu.memory_space<vmem>>, %arg4: memref<9x4x4xbf16, #tpu.memory_space<vmem>>, %arg5: memref<1x4xf32, #tpu.memory_space<vmem>>, %arg6: memref<1x4x256xf32, #tpu.memory_space<vmem>>, %arg7: memref<18x18x4xbf16, #tpu.memory_space<vmem>>) attributes {dimension_semantics = [#tpu.dimension_semantics<parallel>], iteration_bounds = array<i64: 2>, scalar_prefetch = 0 : i64, scratch_operands = 1 : i64, tpu.core_type = #tpu.core_type<tc>, window_params = [{transform_indices = @transform_0, window_bounds = array<i64: 1, 18, 18, 4>}, {pipeline_mode = #tpu.pipeline_mode<synchronous>, transform_indices = @transform_1, window_bounds = array<i64: 9, 4, 4>}, {pipeline_mode = #tpu.pipeline_mode<synchronous>, transform_indices = @transform_2, window_bounds = array<i64: 1, 4>}, {pipeline_mode = #tpu.pipeline_mode<synchronous>, transform_indices = @transform_3, window_bounds = array<i64: 9, 4, 4>}, {pipeline_mode = #tpu.pipeline_mode<synchronous>, transform_indices = @transform_4, window_bounds = array<i64: 1, 4>}, {transform_indices = @transform_5, window_bounds = array<i64: 1, 4, 256>}]} {
    %cst = arith.constant 0.000000e+00 : f32
    %0 = vector.broadcast %cst : f32 to vector<256x4xf32>
    %c0 = arith.constant 0 : index
    %c0_0 = arith.constant 0 : index
    %c0_1 = arith.constant 0 : index
    %c0_2 = arith.constant 0 : index
    %1 = vector.load %arg1[%c0, %c0_0, %c0_1, %c0_2] : memref<1x18x18x4xf32, #tpu.memory_space<vmem>>, vector<1x16x16x4xf32>
    %2 = vector.shape_cast %1 : vector<1x16x16x4xf32> to vector<16x16x4xf32>
    %3 = arith.truncf %2 : vector<16x16x4xf32> to vector<16x16x4xbf16>
    %4 = vector.shape_cast %3 : vector<16x16x4xbf16> to vector<256x4xbf16>
    %c0_3 = arith.constant 0 : index
    %c0_4 = arith.constant 0 : index
    %c0_5 = arith.constant 0 : index
    %5 = vector.load %arg2[%c0_3, %c0_4, %c0_5] : memref<9x4x4xbf16, #tpu.memory_space<vmem>>, vector<1x4x4xbf16>
    %6 = vector.shape_cast %5 : vector<1x4x4xbf16> to vector<4x4xbf16>
    %cst_6 = arith.constant dense<0.000000e+00> : vector<256x4xf32>
    %7 = tpu.matmul %4, %6, %cst_6 {dimension_numbers = #tpu.dot_dimension_numbers<[1], [0], [0], [1], [0, 0, 1, 1], [], []>} : vector<256x4xbf16>, vector<4x4xbf16>, vector<256x4xf32> -> vector<256x4xf32>
    %8 = arith.addf %0, %7 : vector<256x4xf32>
    %c0_7 = arith.constant 0 : index
    %c0_8 = arith.constant 0 : index
    %c1 = arith.constant 1 : index
    %c0_9 = arith.constant 0 : index
    %9 = vector.load %arg1[%c0_7, %c0_8, %c1, %c0_9] : memref<1x18x18x4xf32, #tpu.memory_space<vmem>>, vector<1x16x16x4xf32>
    %10 = vector.shape_cast %9 : vector<1x16x16x4xf32> to vector<16x16x4xf32>
    %11 = arith.truncf %10 : vector<16x16x4xf32> to vector<16x16x4xbf16>
    %12 = vector.shape_cast %11 : vector<16x16x4xbf16> to vector<256x4xbf16>
    %c1_10 = arith.constant 1 : index
    %c0_11 = arith.constant 0 : index
    %c0_12 = arith.constant 0 : index
    %13 = vector.load %arg2[%c1_10, %c0_11, %c0_12] : memref<9x4x4xbf16, #tpu.memory_space<vmem>>, vector<1x4x4xbf16>
    %14 = vector.shape_cast %13 : vector<1x4x4xbf16> to vector<4x4xbf16>
    %cst_13 = arith.constant dense<0.000000e+00> : vector<256x4xf32>
    %15 = tpu.matmul %12, %14, %cst_13 {dimension_numbers = #tpu.dot_dimension_numbers<[1], [0], [0], [1], [0, 0, 1, 1], [], []>} : vector<256x4xbf16>, vector<4x4xbf16>, vector<256x4xf32> -> vector<256x4xf32>
    %16 = arith.addf %8, %15 : vector<256x4xf32>
    %c0_14 = arith.constant 0 : index
    %c0_15 = arith.constant 0 : index
    %c2 = arith.constant 2 : index
    %c0_16 = arith.constant 0 : index
    %17 = vector.load %arg1[%c0_14, %c0_15, %c2, %c0_16] : memref<1x18x18x4xf32, #tpu.memory_space<vmem>>, vector<1x16x16x4xf32>
    %18 = vector.shape_cast %17 : vector<1x16x16x4xf32> to vector<16x16x4xf32>
    %19 = arith.truncf %18 : vector<16x16x4xf32> to vector<16x16x4xbf16>
    %20 = vector.shape_cast %19 : vector<16x16x4xbf16> to vector<256x4xbf16>
    %c2_17 = arith.constant 2 : index
    %c0_18 = arith.constant 0 : index
    %c0_19 = arith.constant 0 : index
    %21 = vector.load %arg2[%c2_17, %c0_18, %c0_19] : memref<9x4x4xbf16, #tpu.memory_space<vmem>>, vector<1x4x4xbf16>
    %22 = vector.shape_cast %21 : vector<1x4x4xbf16> to vector<4x4xbf16>
    %cst_20 = arith.constant dense<0.000000e+00> : vector<256x4xf32>
    %23 = tpu.matmul %20, %22, %cst_20 {dimension_numbers = #tpu.dot_dimension_numbers<[1], [0], [0], [1], [0, 0, 1, 1], [], []>} : vector<256x4xbf16>, vector<4x4xbf16>, vector<256x4xf32> -> vector<256x4xf32>
    %24 = arith.addf %16, %23 : vector<256x4xf32>
    %c0_21 = arith.constant 0 : index
    %c1_22 = arith.constant 1 : index
    %c0_23 = arith.constant 0 : index
    %c0_24 = arith.constant 0 : index
    %25 = vector.load %arg1[%c0_21, %c1_22, %c0_23, %c0_24] : memref<1x18x18x4xf32, #tpu.memory_space<vmem>>, vector<1x16x16x4xf32>
    %26 = vector.shape_cast %25 : vector<1x16x16x4xf32> to vector<16x16x4xf32>
    %27 = arith.truncf %26 : vector<16x16x4xf32> to vector<16x16x4xbf16>
    %28 = vector.shape_cast %27 : vector<16x16x4xbf16> to vector<256x4xbf16>
    %c3 = arith.constant 3 : index
    %c0_25 = arith.constant 0 : index
    %c0_26 = arith.constant 0 : index
    %29 = vector.load %arg2[%c3, %c0_25, %c0_26] : memref<9x4x4xbf16, #tpu.memory_space<vmem>>, vector<1x4x4xbf16>
    %30 = vector.shape_cast %29 : vector<1x4x4xbf16> to vector<4x4xbf16>
    %cst_27 = arith.constant dense<0.000000e+00> : vector<256x4xf32>
    %31 = tpu.matmul %28, %30, %cst_27 {dimension_numbers = #tpu.dot_dimension_numbers<[1], [0], [0], [1], [0, 0, 1, 1], [], []>} : vector<256x4xbf16>, vector<4x4xbf16>, vector<256x4xf32> -> vector<256x4xf32>
    %32 = arith.addf %24, %31 : vector<256x4xf32>
    %c0_28 = arith.constant 0 : index
    %c1_29 = arith.constant 1 : index
    %c1_30 = arith.constant 1 : index
    %c0_31 = arith.constant 0 : index
    %33 = vector.load %arg1[%c0_28, %c1_29, %c1_30, %c0_31] : memref<1x18x18x4xf32, #tpu.memory_space<vmem>>, vector<1x16x16x4xf32>
    %34 = vector.shape_cast %33 : vector<1x16x16x4xf32> to vector<16x16x4xf32>
    %35 = arith.truncf %34 : vector<16x16x4xf32> to vector<16x16x4xbf16>
    %36 = vector.shape_cast %35 : vector<16x16x4xbf16> to vector<256x4xbf16>
    %c4 = arith.constant 4 : index
    %c0_32 = arith.constant 0 : index
    %c0_33 = arith.constant 0 : index
    %37 = vector.load %arg2[%c4, %c0_32, %c0_33] : memref<9x4x4xbf16, #tpu.memory_space<vmem>>, vector<1x4x4xbf16>
    %38 = vector.shape_cast %37 : vector<1x4x4xbf16> to vector<4x4xbf16>
    %cst_34 = arith.constant dense<0.000000e+00> : vector<256x4xf32>
    %39 = tpu.matmul %36, %38, %cst_34 {dimension_numbers = #tpu.dot_dimension_numbers<[1], [0], [0], [1], [0, 0, 1, 1], [], []>} : vector<256x4xbf16>, vector<4x4xbf16>, vector<256x4xf32> -> vector<256x4xf32>
    %40 = arith.addf %32, %39 : vector<256x4xf32>
    %c0_35 = arith.constant 0 : index
    %c1_36 = arith.constant 1 : index
    %c2_37 = arith.constant 2 : index
    %c0_38 = arith.constant 0 : index
    %41 = vector.load %arg1[%c0_35, %c1_36, %c2_37, %c0_38] : memref<1x18x18x4xf32, #tpu.memory_space<vmem>>, vector<1x16x16x4xf32>
    %42 = vector.shape_cast %41 : vector<1x16x16x4xf32> to vector<16x16x4xf32>
    %43 = arith.truncf %42 : vector<16x16x4xf32> to vector<16x16x4xbf16>
    %44 = vector.shape_cast %43 : vector<16x16x4xbf16> to vector<256x4xbf16>
    %c5 = arith.constant 5 : index
    %c0_39 = arith.constant 0 : index
    %c0_40 = arith.constant 0 : index
    %45 = vector.load %arg2[%c5, %c0_39, %c0_40] : memref<9x4x4xbf16, #tpu.memory_space<vmem>>, vector<1x4x4xbf16>
    %46 = vector.shape_cast %45 : vector<1x4x4xbf16> to vector<4x4xbf16>
    %cst_41 = arith.constant dense<0.000000e+00> : vector<256x4xf32>
    %47 = tpu.matmul %44, %46, %cst_41 {dimension_numbers = #tpu.dot_dimension_numbers<[1], [0], [0], [1], [0, 0, 1, 1], [], []>} : vector<256x4xbf16>, vector<4x4xbf16>, vector<256x4xf32> -> vector<256x4xf32>
    %48 = arith.addf %40, %47 : vector<256x4xf32>
    %c0_42 = arith.constant 0 : index
    %c2_43 = arith.constant 2 : index
    %c0_44 = arith.constant 0 : index
    %c0_45 = arith.constant 0 : index
    %49 = vector.load %arg1[%c0_42, %c2_43, %c0_44, %c0_45] : memref<1x18x18x4xf32, #tpu.memory_space<vmem>>, vector<1x16x16x4xf32>
    %50 = vector.shape_cast %49 : vector<1x16x16x4xf32> to vector<16x16x4xf32>
    %51 = arith.truncf %50 : vector<16x16x4xf32> to vector<16x16x4xbf16>
    %52 = vector.shape_cast %51 : vector<16x16x4xbf16> to vector<256x4xbf16>
    %c6 = arith.constant 6 : index
    %c0_46 = arith.constant 0 : index
    %c0_47 = arith.constant 0 : index
    %53 = vector.load %arg2[%c6, %c0_46, %c0_47] : memref<9x4x4xbf16, #tpu.memory_space<vmem>>, vector<1x4x4xbf16>
    %54 = vector.shape_cast %53 : vector<1x4x4xbf16> to vector<4x4xbf16>
    %cst_48 = arith.constant dense<0.000000e+00> : vector<256x4xf32>
    %55 = tpu.matmul %52, %54, %cst_48 {dimension_numbers = #tpu.dot_dimension_numbers<[1], [0], [0], [1], [0, 0, 1, 1], [], []>} : vector<256x4xbf16>, vector<4x4xbf16>, vector<256x4xf32> -> vector<256x4xf32>
    %56 = arith.addf %48, %55 : vector<256x4xf32>
    %c0_49 = arith.constant 0 : index
    %c2_50 = arith.constant 2 : index
    %c1_51 = arith.constant 1 : index
    %c0_52 = arith.constant 0 : index
    %57 = vector.load %arg1[%c0_49, %c2_50, %c1_51, %c0_52] : memref<1x18x18x4xf32, #tpu.memory_space<vmem>>, vector<1x16x16x4xf32>
    %58 = vector.shape_cast %57 : vector<1x16x16x4xf32> to vector<16x16x4xf32>
    %59 = arith.truncf %58 : vector<16x16x4xf32> to vector<16x16x4xbf16>
    %60 = vector.shape_cast %59 : vector<16x16x4xbf16> to vector<256x4xbf16>
    %c7 = arith.constant 7 : index
    %c0_53 = arith.constant 0 : index
    %c0_54 = arith.constant 0 : index
    %61 = vector.load %arg2[%c7, %c0_53, %c0_54] : memref<9x4x4xbf16, #tpu.memory_space<vmem>>, vector<1x4x4xbf16>
    %62 = vector.shape_cast %61 : vector<1x4x4xbf16> to vector<4x4xbf16>
    %cst_55 = arith.constant dense<0.000000e+00> : vector<256x4xf32>
    %63 = tpu.matmul %60, %62, %cst_55 {dimension_numbers = #tpu.dot_dimension_numbers<[1], [0], [0], [1], [0, 0, 1, 1], [], []>} : vector<256x4xbf16>, vector<4x4xbf16>, vector<256x4xf32> -> vector<256x4xf32>
    %64 = arith.addf %56, %63 : vector<256x4xf32>
    %c0_56 = arith.constant 0 : index
    %c2_57 = arith.constant 2 : index
    %c2_58 = arith.constant 2 : index
    %c0_59 = arith.constant 0 : index
    %65 = vector.load %arg1[%c0_56, %c2_57, %c2_58, %c0_59] : memref<1x18x18x4xf32, #tpu.memory_space<vmem>>, vector<1x16x16x4xf32>
    %66 = vector.shape_cast %65 : vector<1x16x16x4xf32> to vector<16x16x4xf32>
    %67 = arith.truncf %66 : vector<16x16x4xf32> to vector<16x16x4xbf16>
    %68 = vector.shape_cast %67 : vector<16x16x4xbf16> to vector<256x4xbf16>
    %c8 = arith.constant 8 : index
    %c0_60 = arith.constant 0 : index
    %c0_61 = arith.constant 0 : index
    %69 = vector.load %arg2[%c8, %c0_60, %c0_61] : memref<9x4x4xbf16, #tpu.memory_space<vmem>>, vector<1x4x4xbf16>
    %70 = vector.shape_cast %69 : vector<1x4x4xbf16> to vector<4x4xbf16>
    %cst_62 = arith.constant dense<0.000000e+00> : vector<256x4xf32>
    %71 = tpu.matmul %68, %70, %cst_62 {dimension_numbers = #tpu.dot_dimension_numbers<[1], [0], [0], [1], [0, 0, 1, 1], [], []>} : vector<256x4xbf16>, vector<4x4xbf16>, vector<256x4xf32> -> vector<256x4xf32>
    %72 = arith.addf %64, %71 : vector<256x4xf32>
    %c0_63 = arith.constant 0 : index
    %c0_64 = arith.constant 0 : index
    %73 = vector.load %arg3[%c0_63, %c0_64] : memref<1x4xf32, #tpu.memory_space<vmem>>, vector<1x4xf32>
    %74 = vector.broadcast %73 : vector<1x4xf32> to vector<256x4xf32>
    %75 = arith.addf %72, %74 : vector<256x4xf32>
    %cst_65 = arith.constant 0.000000e+00 : f32
    %76 = vector.broadcast %cst_65 : f32 to vector<256x4xf32>
    %77 = arith.maximumf %75, %76 : vector<256x4xf32>
    %cst_66 = arith.constant 0.000000e+00 : bf16
    %78 = vector.broadcast %cst_66 : bf16 to vector<1x18x4xbf16>
    %c0_67 = arith.constant 0 : index
    %c0_68 = arith.constant 0 : index
    %c0_69 = arith.constant 0 : index
    %79 = vector.load %arg7[%c0_67, %c0_68, %c0_69] : memref<18x18x4xbf16, #tpu.memory_space<vmem>>, vector<1x18x4xbf16>
    tpu.vector_store %arg7[%c0_67, %c0_68, %c0_69], %78 {strides = array<i32>} : memref<18x18x4xbf16, #tpu.memory_space<vmem>>, vector<1x18x4xbf16>,
    %cst_70 = arith.constant 0.000000e+00 : bf16
    %80 = vector.broadcast %cst_70 : bf16 to vector<1x18x4xbf16>
    %c17 = arith.constant 17 : index
    %c0_71 = arith.constant 0 : index
    %c0_72 = arith.constant 0 : index
    %81 = vector.load %arg7[%c17, %c0_71, %c0_72] : memref<18x18x4xbf16, #tpu.memory_space<vmem>>, vector<1x18x4xbf16>
    tpu.vector_store %arg7[%c17, %c0_71, %c0_72], %80 {strides = array<i32>} : memref<18x18x4xbf16, #tpu.memory_space<vmem>>, vector<1x18x4xbf16>,
    %cst_73 = arith.constant 0.000000e+00 : bf16
    %82 = vector.broadcast %cst_73 : bf16 to vector<16x1x4xbf16>
    %c1_74 = arith.constant 1 : index
    %c0_75 = arith.constant 0 : index
    %c0_76 = arith.constant 0 : index
    %83 = vector.load %arg7[%c1_74, %c0_75, %c0_76] : memref<18x18x4xbf16, #tpu.memory_space<vmem>>, vector<16x1x4xbf16>
    tpu.vector_store %arg7[%c1_74, %c0_75, %c0_76], %82 {strides = array<i32>} : memref<18x18x4xbf16, #tpu.memory_space<vmem>>, vector<16x1x4xbf16>,
    %cst_77 = arith.constant 0.000000e+00 : bf16
    %84 = vector.broadcast %cst_77 : bf16 to vector<16x1x4xbf16>
    %c1_78 = arith.constant 1 : index
    %c17_79 = arith.constant 17 : index
    %c0_80 = arith.constant 0 : index
    %85 = vector.load %arg7[%c1_78, %c17_79, %c0_80] : memref<18x18x4xbf16, #tpu.memory_space<vmem>>, vector<16x1x4xbf16>
    tpu.vector_store %arg7[%c1_78, %c17_79, %c0_80], %84 {strides = array<i32>} : memref<18x18x4xbf16, #tpu.memory_space<vmem>>, vector<16x1x4xbf16>,
    %86 = arith.truncf %77 : vector<256x4xf32> to vector<256x4xbf16>
    %87 = vector.shape_cast %86 : vector<256x4xbf16> to vector<16x16x4xbf16>
    %c1_81 = arith.constant 1 : index
    %c1_82 = arith.constant 1 : index
    %c0_83 = arith.constant 0 : index
    %88 = vector.load %arg7[%c1_81, %c1_82, %c0_83] : memref<18x18x4xbf16, #tpu.memory_space<vmem>>, vector<16x16x4xbf16>
    tpu.vector_store %arg7[%c1_81, %c1_82, %c0_83], %87 {strides = array<i32>} : memref<18x18x4xbf16, #tpu.memory_space<vmem>>, vector<16x16x4xbf16>,
    %cst_84 = arith.constant 0.000000e+00 : f32
    %89 = vector.broadcast %cst_84 : f32 to vector<256x4xf32>
    %c0_85 = arith.constant 0 : index
    %c0_86 = arith.constant 0 : index
    %c0_87 = arith.constant 0 : index
    %90 = vector.load %arg7[%c0_85, %c0_86, %c0_87] : memref<18x18x4xbf16, #tpu.memory_space<vmem>>, vector<16x16x4xbf16>
    %91 = vector.shape_cast %90 : vector<16x16x4xbf16> to vector<256x4xbf16>
    %c0_88 = arith.constant 0 : index
    %c0_89 = arith.constant 0 : index
    %c0_90 = arith.constant 0 : index
    %92 = vector.load %arg4[%c0_88, %c0_89, %c0_90] : memref<9x4x4xbf16, #tpu.memory_space<vmem>>, vector<1x4x4xbf16>
    %93 = vector.shape_cast %92 : vector<1x4x4xbf16> to vector<4x4xbf16>
    %cst_91 = arith.constant dense<0.000000e+00> : vector<256x4xf32>
    %94 = tpu.matmul %91, %93, %cst_91 {dimension_numbers = #tpu.dot_dimension_numbers<[1], [0], [0], [1], [0, 0, 1, 1], [], []>} : vector<256x4xbf16>, vector<4x4xbf16>, vector<256x4xf32> -> vector<256x4xf32>
    %95 = arith.addf %89, %94 : vector<256x4xf32>
    %c0_92 = arith.constant 0 : index
    %c1_93 = arith.constant 1 : index
    %c0_94 = arith.constant 0 : index
    %96 = vector.load %arg7[%c0_92, %c1_93, %c0_94] : memref<18x18x4xbf16, #tpu.memory_space<vmem>>, vector<16x16x4xbf16>
    %97 = vector.shape_cast %96 : vector<16x16x4xbf16> to vector<256x4xbf16>
    %c1_95 = arith.constant 1 : index
    %c0_96 = arith.constant 0 : index
    %c0_97 = arith.constant 0 : index
    %98 = vector.load %arg4[%c1_95, %c0_96, %c0_97] : memref<9x4x4xbf16, #tpu.memory_space<vmem>>, vector<1x4x4xbf16>
    %99 = vector.shape_cast %98 : vector<1x4x4xbf16> to vector<4x4xbf16>
    %cst_98 = arith.constant dense<0.000000e+00> : vector<256x4xf32>
    %100 = tpu.matmul %97, %99, %cst_98 {dimension_numbers = #tpu.dot_dimension_numbers<[1], [0], [0], [1], [0, 0, 1, 1], [], []>} : vector<256x4xbf16>, vector<4x4xbf16>, vector<256x4xf32> -> vector<256x4xf32>
    %101 = arith.addf %95, %100 : vector<256x4xf32>
    %c0_99 = arith.constant 0 : index
    %c2_100 = arith.constant 2 : index
    %c0_101 = arith.constant 0 : index
    %102 = vector.load %arg7[%c0_99, %c2_100, %c0_101] : memref<18x18x4xbf16, #tpu.memory_space<vmem>>, vector<16x16x4xbf16>
    %103 = vector.shape_cast %102 : vector<16x16x4xbf16> to vector<256x4xbf16>
    %c2_102 = arith.constant 2 : index
    %c0_103 = arith.constant 0 : index
    %c0_104 = arith.constant 0 : index
    %104 = vector.load %arg4[%c2_102, %c0_103, %c0_104] : memref<9x4x4xbf16, #tpu.memory_space<vmem>>, vector<1x4x4xbf16>
    %105 = vector.shape_cast %104 : vector<1x4x4xbf16> to vector<4x4xbf16>
    %cst_105 = arith.constant dense<0.000000e+00> : vector<256x4xf32>
    %106 = tpu.matmul %103, %105, %cst_105 {dimension_numbers = #tpu.dot_dimension_numbers<[1], [0], [0], [1], [0, 0, 1, 1], [], []>} : vector<256x4xbf16>, vector<4x4xbf16>, vector<256x4xf32> -> vector<256x4xf32>
    %107 = arith.addf %101, %106 : vector<256x4xf32>
    %c1_106 = arith.constant 1 : index
    %c0_107 = arith.constant 0 : index
    %c0_108 = arith.constant 0 : index
    %108 = vector.load %arg7[%c1_106, %c0_107, %c0_108] : memref<18x18x4xbf16, #tpu.memory_space<vmem>>, vector<16x16x4xbf16>
    %109 = vector.shape_cast %108 : vector<16x16x4xbf16> to vector<256x4xbf16>
    %c3_109 = arith.constant 3 : index
    %c0_110 = arith.constant 0 : index
    %c0_111 = arith.constant 0 : index
    %110 = vector.load %arg4[%c3_109, %c0_110, %c0_111] : memref<9x4x4xbf16, #tpu.memory_space<vmem>>, vector<1x4x4xbf16>
    %111 = vector.shape_cast %110 : vector<1x4x4xbf16> to vector<4x4xbf16>
    %cst_112 = arith.constant dense<0.000000e+00> : vector<256x4xf32>
    %112 = tpu.matmul %109, %111, %cst_112 {dimension_numbers = #tpu.dot_dimension_numbers<[1], [0], [0], [1], [0, 0, 1, 1], [], []>} : vector<256x4xbf16>, vector<4x4xbf16>, vector<256x4xf32> -> vector<256x4xf32>
    %113 = arith.addf %107, %112 : vector<256x4xf32>
    %c1_113 = arith.constant 1 : index
    %c1_114 = arith.constant 1 : index
    %c0_115 = arith.constant 0 : index
    %114 = vector.load %arg7[%c1_113, %c1_114, %c0_115] : memref<18x18x4xbf16, #tpu.memory_space<vmem>>, vector<16x16x4xbf16>
    %115 = vector.shape_cast %114 : vector<16x16x4xbf16> to vector<256x4xbf16>
    %c4_116 = arith.constant 4 : index
    %c0_117 = arith.constant 0 : index
    %c0_118 = arith.constant 0 : index
    %116 = vector.load %arg4[%c4_116, %c0_117, %c0_118] : memref<9x4x4xbf16, #tpu.memory_space<vmem>>, vector<1x4x4xbf16>
    %117 = vector.shape_cast %116 : vector<1x4x4xbf16> to vector<4x4xbf16>
    %cst_119 = arith.constant dense<0.000000e+00> : vector<256x4xf32>
    %118 = tpu.matmul %115, %117, %cst_119 {dimension_numbers = #tpu.dot_dimension_numbers<[1], [0], [0], [1], [0, 0, 1, 1], [], []>} : vector<256x4xbf16>, vector<4x4xbf16>, vector<256x4xf32> -> vector<256x4xf32>
    %119 = arith.addf %113, %118 : vector<256x4xf32>
    %c1_120 = arith.constant 1 : index
    %c2_121 = arith.constant 2 : index
    %c0_122 = arith.constant 0 : index
    %120 = vector.load %arg7[%c1_120, %c2_121, %c0_122] : memref<18x18x4xbf16, #tpu.memory_space<vmem>>, vector<16x16x4xbf16>
    %121 = vector.shape_cast %120 : vector<16x16x4xbf16> to vector<256x4xbf16>
    %c5_123 = arith.constant 5 : index
    %c0_124 = arith.constant 0 : index
    %c0_125 = arith.constant 0 : index
    %122 = vector.load %arg4[%c5_123, %c0_124, %c0_125] : memref<9x4x4xbf16, #tpu.memory_space<vmem>>, vector<1x4x4xbf16>
    %123 = vector.shape_cast %122 : vector<1x4x4xbf16> to vector<4x4xbf16>
    %cst_126 = arith.constant dense<0.000000e+00> : vector<256x4xf32>
    %124 = tpu.matmul %121, %123, %cst_126 {dimension_numbers = #tpu.dot_dimension_numbers<[1], [0], [0], [1], [0, 0, 1, 1], [], []>} : vector<256x4xbf16>, vector<4x4xbf16>, vector<256x4xf32> -> vector<256x4xf32>
    %125 = arith.addf %119, %124 : vector<256x4xf32>
    %c2_127 = arith.constant 2 : index
    %c0_128 = arith.constant 0 : index
    %c0_129 = arith.constant 0 : index
    %126 = vector.load %arg7[%c2_127, %c0_128, %c0_129] : memref<18x18x4xbf16, #tpu.memory_space<vmem>>, vector<16x16x4xbf16>
    %127 = vector.shape_cast %126 : vector<16x16x4xbf16> to vector<256x4xbf16>
    %c6_130 = arith.constant 6 : index
    %c0_131 = arith.constant 0 : index
    %c0_132 = arith.constant 0 : index
    %128 = vector.load %arg4[%c6_130, %c0_131, %c0_132] : memref<9x4x4xbf16, #tpu.memory_space<vmem>>, vector<1x4x4xbf16>
    %129 = vector.shape_cast %128 : vector<1x4x4xbf16> to vector<4x4xbf16>
    %cst_133 = arith.constant dense<0.000000e+00> : vector<256x4xf32>
    %130 = tpu.matmul %127, %129, %cst_133 {dimension_numbers = #tpu.dot_dimension_numbers<[1], [0], [0], [1], [0, 0, 1, 1], [], []>} : vector<256x4xbf16>, vector<4x4xbf16>, vector<256x4xf32> -> vector<256x4xf32>
    %131 = arith.addf %125, %130 : vector<256x4xf32>
    %c2_134 = arith.constant 2 : index
    %c1_135 = arith.constant 1 : index
    %c0_136 = arith.constant 0 : index
    %132 = vector.load %arg7[%c2_134, %c1_135, %c0_136] : memref<18x18x4xbf16, #tpu.memory_space<vmem>>, vector<16x16x4xbf16>
    %133 = vector.shape_cast %132 : vector<16x16x4xbf16> to vector<256x4xbf16>
    %c7_137 = arith.constant 7 : index
    %c0_138 = arith.constant 0 : index
    %c0_139 = arith.constant 0 : index
    %134 = vector.load %arg4[%c7_137, %c0_138, %c0_139] : memref<9x4x4xbf16, #tpu.memory_space<vmem>>, vector<1x4x4xbf16>
    %135 = vector.shape_cast %134 : vector<1x4x4xbf16> to vector<4x4xbf16>
    %cst_140 = arith.constant dense<0.000000e+00> : vector<256x4xf32>
    %136 = tpu.matmul %133, %135, %cst_140 {dimension_numbers = #tpu.dot_dimension_numbers<[1], [0], [0], [1], [0, 0, 1, 1], [], []>} : vector<256x4xbf16>, vector<4x4xbf16>, vector<256x4xf32> -> vector<256x4xf32>
    %137 = arith.addf %131, %136 : vector<256x4xf32>
    %c2_141 = arith.constant 2 : index
    %c2_142 = arith.constant 2 : index
    %c0_143 = arith.constant 0 : index
    %138 = vector.load %arg7[%c2_141, %c2_142, %c0_143] : memref<18x18x4xbf16, #tpu.memory_space<vmem>>, vector<16x16x4xbf16>
    %139 = vector.shape_cast %138 : vector<16x16x4xbf16> to vector<256x4xbf16>
    %c8_144 = arith.constant 8 : index
    %c0_145 = arith.constant 0 : index
    %c0_146 = arith.constant 0 : index
    %140 = vector.load %arg4[%c8_144, %c0_145, %c0_146] : memref<9x4x4xbf16, #tpu.memory_space<vmem>>, vector<1x4x4xbf16>
    %141 = vector.shape_cast %140 : vector<1x4x4xbf16> to vector<4x4xbf16>
    %cst_147 = arith.constant dense<0.000000e+00> : vector<256x4xf32>
    %142 = tpu.matmul %139, %141, %cst_147 {dimension_numbers = #tpu.dot_dimension_numbers<[1], [0], [0], [1], [0, 0, 1, 1], [], []>} : vector<256x4xbf16>, vector<4x4xbf16>, vector<256x4xf32> -> vector<256x4xf32>
    %143 = arith.addf %137, %142 : vector<256x4xf32>
    %c0_148 = arith.constant 0 : index
    %c1_149 = arith.constant 1 : index
    %c1_150 = arith.constant 1 : index
    %c0_151 = arith.constant 0 : index
    %144 = vector.load %arg1[%c0_148, %c1_149, %c1_150, %c0_151] : memref<1x18x18x4xf32, #tpu.memory_space<vmem>>, vector<1x16x16x4xf32>
    %145 = vector.shape_cast %144 : vector<1x16x16x4xf32> to vector<16x16x4xf32>
    %146 = vector.shape_cast %145 : vector<16x16x4xf32> to vector<256x4xf32>
    %c0_152 = arith.constant 0 : index
    %c0_153 = arith.constant 0 : index
    %147 = vector.load %arg5[%c0_152, %c0_153] : memref<1x4xf32, #tpu.memory_space<vmem>>, vector<1x4xf32>
    %148 = vector.broadcast %147 : vector<1x4xf32> to vector<256x4xf32>
    %149 = arith.addf %143, %148 : vector<256x4xf32>
    %150 = arith.addf %149, %146 : vector<256x4xf32>
    %cst_154 = arith.constant 0.000000e+00 : f32
    %151 = vector.broadcast %cst_154 : f32 to vector<256x4xf32>
    %152 = arith.maximumf %150, %151 : vector<256x4xf32>
    %153 = tpu.transpose %152, [1, 0] : vector<256x4xf32> -> vector<4x256xf32>
    %154 = vector.shape_cast %153 : vector<4x256xf32> to vector<1x4x256xf32>
    %c0_155 = arith.constant 0 : index
    %c0_156 = arith.constant 0 : index
    %c0_157 = arith.constant 0 : index
    %155 = vector.load %arg6[%c0_155, %c0_156, %c0_157] : memref<1x4x256xf32, #tpu.memory_space<vmem>>, vector<1x4x256xf32>
    tpu.vector_store %arg6[%c0_155, %c0_156, %c0_157], %154 {strides = array<i32>} : memref<1x4x256xf32, #tpu.memory_space<vmem>>, vector<1x4x256xf32>,
    return
  }
  func.func @transform_0(%arg0: i32) -> (i32, i32, i32, i32) {
    %c0_i32 = arith.constant 0 : i32
    %c0_i32_0 = arith.constant 0 : i32
    %c0_i32_1 = arith.constant 0 : i32
    %c0_i32_2 = arith.constant 0 : i32
    return %arg0, %c0_i32, %c0_i32_0, %c0_i32_1 : i32, i32, i32, i32
  }
  func.func @transform_1(%arg0: i32) -> (i32, i32, i32) {
    %c0_i32 = arith.constant 0 : i32
    %c0_i32_0 = arith.constant 0 : i32
    %c0_i32_1 = arith.constant 0 : i32
    %c0_i32_2 = arith.constant 0 : i32
    return %c0_i32, %c0_i32_0, %c0_i32_1 : i32, i32, i32
  }
  func.func @transform_2(%arg0: i32) -> (i32, i32) {
    %c0_i32 = arith.constant 0 : i32
    %c0_i32_0 = arith.constant 0 : i32
    %c0_i32_1 = arith.constant 0 : i32
    return %c0_i32, %c0_i32_0 : i32, i32
  }
  func.func @transform_3(%arg0: i32) -> (i32, i32, i32) {
    %c0_i32 = arith.constant 0 : i32
    %c0_i32_0 = arith.constant 0 : i32
    %c0_i32_1 = arith.constant 0 : i32
    %c0_i32_2 = arith.constant 0 : i32
    return %c0_i32, %c0_i32_0, %c0_i32_1 : i32, i32, i32
  }
  func.func @transform_4(%arg0: i32) -> (i32, i32) {
    %c0_i32 = arith.constant 0 : i32
    %c0_i32_0 = arith.constant 0 : i32
    %c0_i32_1 = arith.constant 0 : i32
    return %c0_i32, %c0_i32_0 : i32, i32
  }
  func.func @transform_5(%arg0: i32) -> (i32, i32, i32) {
    %c0_i32 = arith.constant 0 : i32
    %c0_i32_0 = arith.constant 0 : i32
    %c0_i32_1 = arith.constant 0 : i32
    return %arg0, %c0_i32, %c0_i32_0 : i32, i32, i32
  }
}

</mosaic_0001>

<bundles_post_ra>
// kernel: tpu_custom_call.1
= control target key start
LH: loop header
LB: loop body
LE: loop exit
PB: predicated region body
PF: predicated region fallthrough
CT: control target
= control target key end

     0   :  { %10 = vsyncpa [#allocation4], 0  ;;  %s12082_s0 = inlined_call_operand.vmem [shape: f32[2,18,18,4], index: 0, kind: input, shape index: {}]   ;;  %s12083_s1 = inlined_call_operand.vmem [shape: bf16[9,4,4], index: 1, kind: input, shape index: {}]   ;;  %s12084_s2 = inlined_call_operand.vmem [shape: f32[1,4], index: 2, kind: input, shape index: {}]   ;;  %s12085_s3 = inlined_call_operand.vmem [shape: bf16[9,4,4], index: 3, kind: input, shape index: {}]   ;;  %s12086_s4 = inlined_call_operand.vmem [shape: f32[1,4], index: 4, kind: input, shape index: {}]   ;;  %s12087_s5 = inlined_call_operand.hbm [shape: f32[2,4,256], index: 5, kind: output, shape index: {}]  }
   0x1   :  { %12 = vsyncpa [#allocation4 + $0x1], 0  ;;  %s8831_s18 = smov 0   ;;  %s8833_s19 = smov 0  }
   0x2   :  { %s8835_s20 = smov 0   ;;  %s8837_s21 = smov 0  }
   0x3 LB: > { %s8852_s22 = sadd.s32 4294967295, %s8798_s21   ;;  %s7859_s23 = sadd.s32 4294967294, %s8798_s21   ;;  %s8798_s21 = sphi %s8837_s21, %s12332_s21   ;;  %s8794_s20 = sphi %s8835_s20, %s12331_s20   ;;  %s8790_s19 = sphi %s8833_s19, %s12330_s19   ;;  %s8786_s18 = sphi %s8831_s18, %s12329_s18  }
   0x4   : > { %s8856_s24 = sadd.s32 1, %s8798_s21   ;;  %s135_s25 = sadd.s32 1, %s8794_s20 }
   0x5   : > { %s132_s26 = ssub.s32 %s8798_s21, %s8856_s24  ;;  %p145_p0 = scmp.ne.s32.totalorder %s8794_s20, %s8790_s19 }
   0x6   : > { %p133_p1 = scmp.eq.s32.totalorder %s132_s26, 0  ;;  %p146_p2 = scmp.eq.s32.totalorder %s8852_s22, 1 }
   0x7   : > { %p151_p3 = scmp.ne.s32.totalorder %s8790_s19, %s8786_s18  ;;  %p152_p4 = scmp.eq.s32.totalorder %s7859_s23, 1 }
   0x8   : > { %s8867_s27 = scalar_select %p133_p1, %s8794_s20, %s135_s25  }
   0x9   : > { %p8869_p5 = por %p146_p2, %p145_p0  ;;  %p8873_p6 = por %p152_p4, %p151_p3 }
   0xa   : > { %p7862_p7 = scmp.ge.s32.totalorder %s8798_s21, 1  ;;  %p190_p8 = scmp.lt.s32.totalorder %s8798_s21, 3 }
   0xc   : > { %p191_p9 = pnand %p7862_p7, %p190_p8 }
   0xe   : > { %194 = sbr.rel (%p191_p9) target bundleno = 1533 (0x5fd), region = 40 }
  0x13   : > { %v7865_v0 = vld [vmem:[%s12083_s1 + $0x2] sm:$0x3]  ;;  %vm484_vm0 = vcmask 1041408   ;;  %v288_v1 = vld [vmem:[%s12083_s1] sm:$0x3]  ;;  %p218_p10 = scmp.lt.s32.totalorder %s8852_s22, 1 }
  0x14   : > { %v486_v2 = vsel %vm484_vm0, %v7865_v0, 0  ;;  %v706_v3 = vsel %vm484_vm0, %v288_v1, 0  ;;  %v7898_v4 = vld [vmem:[%s12083_s1 + $0x4] sm:$0x3]  ;;  %v7947_v6 = vld [vmem:[%s12083_s1 + $0x6] sm:$0x3] }
  0x15   : > { %495 = vmatpush.bf16.msra.mxu0 %v486_v2  ;;  %8687 = vmatpush.bf16.msra.mxu2 %v486_v2  ;;  %s219_s11 = scalar_select %p218_p10, %s8852_s22, 1  ;;  %v992_v5 = vsel %vm484_vm0, %v7898_v4, 0  ;;  %v7996_v7 = vld [vmem:[%s12083_s1 + $0x8] sm:$0x3]  ;;  %v1311_v8 = vsel %vm484_vm0, %v7947_v6, 0  ;;  %vm435_vm1 = vcmask 31744  }
  0x16   : > { %8688 = vmatpush.bf16.msra.mxu3 %v706_v3  ;;  %715 = vmatpush.bf16.msra.mxu1 %v706_v3  ;;  %v1629_v9 = vsel %vm484_vm0, %v7996_v7, 0  ;;  %vm3093_vm2 = vcmask 27648   ;;  %vm3096_vm3 = vcmask 24576   ;;  %vm3104_vm4 = vsmask.f32 256  ;;  %s215_s8 = sand.u32 1, %s8790_s19  }
  0x17   : > { %s8689_s16 = smul.u32 432, %s219_s11  ;;  %vm9458_vm5 = vmand %vm3096_vm3, %vm3104_vm4  ;;  %vm3154_vm6 = vsmask.f32 7938  ;;  %vm3721_vm8 = vsmask.f32 3328  ;;  %vm4566_vm14 = vcmask 1042432  }
  0x18   : > { %vm9483_vm7 = vmand %vm3096_vm3, %vm3154_vm6  ;;  %vm3722_vm9 = vsmask.f32 7440  ;;  %vm3236_vm12 = vsmask.f32 4368  ;;  %vm4567_vm15 = vcmask 1046532   ;;  %s7863_s9 = sshll.u32 %s215_s8, 3 }
  0x19   : > { %1001 = vmatpush.bf16.msrb.mxu2 %v992_v5  ;;  %1638 = vmatpush.bf16.msrb.mxu0 %v1629_v9  ;;  %s8904_s25 = scalar_lea.vmem %s12082_s0, %s8689_s16  ;;  %vm9489_vm10 = vmor %vm3721_vm8, %vm3722_vm9  ;;  %s8686_s10 = sshll.u32 %s8852_s22, 3 }
  0x1a   : > { %1320 = vmatpush.bf16.msrb.mxu3 %v1311_v8  ;;  %v289_v10 = vld [vmem:[%s8904_s25 + $0x1] sm:$0xff]  ;;  %v290_v11 = vld [vmem:[%s8904_s25 + $0x9] sm:$0xff]  ;;  %v291_v38 = vld [vmem:[%s8904_s25 + $0x19] sm:$0xff]  ;;  %s7795_s13 = scalar_lea.hbm %s12087_s5, %s8686_s10  ;;  %s217_s14 = scalar_lea.vmem [#allocation3], %s7863_s9 }
  0x1b   : > { %v305_v12 = vld [vmem:[%s8904_s25 + $0xc1] sm:$0xff]  ;;  %v321_v13 = vpack.c.bf16 %v289_v10, %v289_v10  ;;  %v322_v14 = vpack.c.bf16 %v290_v11, %v290_v11  ;;  %v306_v15 = vld [vmem:[%s8904_s25 + $0xc9] sm:$0xff]  ;;  %v307_v40 = vld [vmem:[%s8904_s25 + $0xd9] sm:$0xff]  ;;  %v323_v44 = vpack.c.bf16 %v291_v38, %v291_v38  ;;  %s7797_s15 = sshll.u32 %s217_s14, 4  ;;  %s7799_s16 = sshll.u32 %s7795_s13, 4  ;;  %s7798_s15 = int_to_ptr.vmem [resolvable:$true] %s7797_s15  ;;  %s7800_s16 = int_to_ptr.hbm [resolvable:$true] %s7799_s16 }
  0x1c   : > { %v337_v16 = vpack.c.bf16 %v305_v12, %v305_v12  ;;  %v240_v17 = vld [vmem:[%s8904_s25 + $0xc0] sm:$0xff]  ;;  %v241_v18 = vld [vmem:[%s8904_s25 + $0xc8] sm:$0xff]  ;;  %v338_v19 = vpack.c.bf16 %v306_v15, %v306_v15  ;;  %v242_v42 = vld [vmem:[%s8904_s25 + $0xd8] sm:$0xff]  ;;  %v339_v48 = vpack.c.bf16 %v307_v40, %v307_v40  ;;  %s8750_s17 = sshra.s32 %s7800_s16, 4  ;;  %s8756_s30 = scalar_lea.hbm %s12087_s5, 16  ;;  %s8751_s17 = int_to_ptr.hbm [resolvable:$true] %s8750_s17 }
  0x1d   : > { %v272_v20 = vpack.c.bf16 %v240_v17, %v240_v17  ;;  %v273_v21 = vpack.c.bf16 %v241_v18, %v241_v18  ;;  %v224_v22 = vld [vmem:[%s8904_s25] sm:$0xff]  ;;  %v225_v23 = vld [vmem:[%s8904_s25 + $0x8] sm:$0xff]  ;;  %v387_v24 = vunpack.c.l.b16 %v321_v13  ;;  %v388_v25 = vunpack.c.l.b16 %v322_v14  ;;  %v226_v46 = vld [vmem:[%s8904_s25 + $0x18] sm:$0xff]  ;;  %s8752_s22 = scalar_lea.hbm %s8751_s17, 8  ;;  %p8757_p0 = scmp.lt.s32.totalorder %s8751_s17, %s12087_s5 }
  0x1e   : > { %v403_v26 = vunpack.c.l.b16 %v337_v16  ;;  %v256_v27 = vpack.c.bf16 %v224_v22, %v224_v22  ;;  %v404_v28 = vunpack.c.l.b16 %v338_v19  ;;  %v257_v31 = vpack.c.bf16 %v225_v23, %v225_v23  ;;  %v292_v39 = vld [vmem:[%s8904_s25 + $0x21] sm:$0xff]  ;;  %v293_v2 = vld [vmem:[%s8904_s25 + $0x31] sm:$0xff]  ;;  %v294_v3 = vld [vmem:[%s8904_s25 + $0x39] sm:$0xff]  ;;  %p8753_p11 = scmp.ne.s32.totalorder %s8751_s17, %s8752_s22  ;;  %p8758_p1 = scmp.lt.s32.totalorder %s8756_s30, %s8752_s22 }
  0x1f   : > { %v625_v29 = vunpack.c.l.b16 %v272_v20  ;;  %v626_v30 = vunpack.c.l.b16 %v273_v21  ;;  %v419_v32 = vpack.c.b16 %v388_v25, %v387_v24  ;;  %v308_v41 = vld [vmem:[%s8904_s25 + $0xe1] sm:$0xff]  ;;  %v324_v45 = vpack.c.bf16 %v292_v39, %v292_v39  ;;  %v309_v4 = vld [vmem:[%s8904_s25 + $0xf1] sm:$0xff]  ;;  %v310_v5 = vld [vmem:[%s8904_s25 + $0xf9] sm:$0xff] }
  0x20   : > { %v609_v33 = vunpack.c.l.b16 %v256_v27  ;;  %v427_v34 = vpack.c.b16 %v404_v28, %v403_v26  ;;  %v610_v36 = vunpack.c.l.b16 %v257_v31  ;;  %v243_v43 = vld [vmem:[%s8904_s25 + $0xe0] sm:$0xff]  ;;  %v340_v49 = vpack.c.bf16 %v308_v41, %v308_v41  ;;  %v244_v6 = vld [vmem:[%s8904_s25 + $0xf0] sm:$0xff]  ;;  %v245_v7 = vld [vmem:[%s8904_s25 + $0xf8] sm:$0xff]  ;;  %p8754_p12 = pnand %p8753_p11, %p8869_p5  ;;  %p8759_p2 = por %p8758_p1, %p8757_p0 }
  0x21   : > { %v649_v35 = vpack.c.b16 %v626_v30, %v625_v29  ;;  %7866 = vmatmul.msk.bf16.vlgmr.msra.gmra.mxu0 %vm435_vm1, %v419_v32  ;;  %v227_v47 = vld [vmem:[%s8904_s25 + $0x20] sm:$0xff]  ;;  %v274_v50 = vpack.c.bf16 %v242_v42, %v242_v42  ;;  %v275_v51 = vpack.c.bf16 %v243_v43, %v243_v43  ;;  %v258_v52 = vpack.c.bf16 %v226_v46, %v226_v46  ;;  %v228_v10 = vld [vmem:[%s8904_s25 + $0x30] sm:$0xff]  ;;  %v229_v11 = vld [vmem:[%s8904_s25 + $0x38] sm:$0xff] }
  0x22   : > { %7874 = vmatmul.msk.bf16.vlgmr.msra.gmra.mxu2 %vm435_vm1, %v427_v34  ;;  %v641_v37 = vpack.c.b16 %v610_v36, %v609_v33  ;;  %v259_v53 = vpack.c.bf16 %v227_v47, %v227_v47  ;;  %v389_v54 = vunpack.c.l.b16 %v323_v44  ;;  %v390_v55 = vunpack.c.l.b16 %v324_v45  ;;  %v295_v30 = vld [vmem:[%s8904_s25 + $0x49] sm:$0xff]  ;;  %v296_v31 = vld [vmem:[%s8904_s25 + $0x51] sm:$0xff]  ;;  %vm9554_vm11 = vmand %vm3093_vm2, %vm3154_vm6  ;;  %p8755_p13 = pneg %p8754_p12 }
  0x23   : > { %7890 = vmatmul.msk.bf16.vlgmr.msra.gmra.mxu3 %vm435_vm1, %v649_v35  ;;  %v405_v56 = vunpack.c.l.b16 %v339_v48  ;;  %v406_v57 = vunpack.c.l.b16 %v340_v49  ;;  %v627_v58 = vunpack.c.l.b16 %v274_v50  ;;  %v628_v59 = vunpack.c.l.b16 %v275_v51  ;;  %v311_v32 = vld [vmem:[%s8904_s25 + $0x109] sm:$0xff]  ;;  %v312_v33 = vld [vmem:[%s8904_s25 + $0x111] sm:$0xff]  ;;  %vm9601_vm13 = vmor %vm3104_vm4, %vm3236_vm12 }
  0x24   : > { %7882 = vmatmul.msk.bf16.vlgmr.msra.gmra.mxu1 %vm435_vm1, %v641_v37  ;;  %v611_v60 = vunpack.c.l.b16 %v258_v52  ;;  %v612_v61 = vunpack.c.l.b16 %v259_v53  ;;  %v8926_v62 = vpack.c.b16 %v390_v55, %v389_v54  ;;  %v325_v8 = vpack.c.bf16 %v293_v2, %v293_v2  ;;  %v246_v34 = vld [vmem:[%s8904_s25 + $0x108] sm:$0xff]  ;;  %v247_v35 = vld [vmem:[%s8904_s25 + $0x110] sm:$0xff]  ;;  %p8760_p3 = pnand %p8759_p2, %p8755_p13 }
  0x25   : > { %v428_v63 = vpack.c.b16 %v406_v57, %v405_v56  ;;  %v650_v0 = vpack.c.b16 %v628_v59, %v627_v58  ;;  %v326_v9 = vpack.c.bf16 %v294_v3, %v294_v3  ;;  %v341_v12 = vpack.c.bf16 %v309_v4, %v309_v4  ;;  %v230_v38 = vld [vmem:[%s8904_s25 + $0x48] sm:$0xff]  ;;  %v231_v39 = vld [vmem:[%s8904_s25 + $0x50] sm:$0xff]  ;;  %v232_v4 = vld [vmem:[%s8904_s25 + $0x60] sm:$0xff] }
  0x26   : > { %v8928_v1 = vpack.c.b16 %v612_v61, %v611_v60  ;;  %v342_v13 = vpack.c.bf16 %v310_v5, %v310_v5  ;;  %v276_v14 = vpack.c.bf16 %v244_v6, %v244_v6  ;;  %v277_v15 = vpack.c.bf16 %v245_v7, %v245_v7  ;;  %v297_v58 = vld [vmem:[%s8904_s25 + $0x61] sm:$0xff]  ;;  %v298_v59 = vld [vmem:[%s8904_s25 + $0x69] sm:$0xff] }
  0x27   : > { %v260_v16 = vpack.c.bf16 %v228_v10, %v228_v10  ;;  %v261_v17 = vpack.c.bf16 %v229_v11, %v229_v11  ;;  %v391_v18 = vunpack.c.l.b16 %v325_v8  ;;  %v392_v19 = vunpack.c.l.b16 %v326_v9  ;;  %v313_v60 = vld [vmem:[%s8904_s25 + $0x121] sm:$0xff]  ;;  %v314_v61 = vld [vmem:[%s8904_s25 + $0x129] sm:$0xff] }
  0x28   : > { %v407_v20 = vunpack.c.l.b16 %v341_v12  ;;  %v408_v21 = vunpack.c.l.b16 %v342_v13  ;;  %v629_v22 = vunpack.c.l.b16 %v276_v14  ;;  %v630_v23 = vunpack.c.l.b16 %v277_v15  ;;  %v233_v5 = vld [vmem:[%s8904_s25 + $0x68] sm:$0xff] }
  0x29   : > { %v613_v24 = vunpack.c.l.b16 %v260_v16  ;;  %v614_v25 = vunpack.c.l.b16 %v261_v17  ;;  %v8944_v26 = vpack.c.b16 %v392_v19, %v391_v18  ;;  %v327_v36 = vpack.c.bf16 %v295_v30, %v295_v30  ;;  %v250_v30 = vld [vmem:[%s8904_s25 + $0x138] sm:$0xff] }
  0x2a   : > { %v429_v27 = vpack.c.b16 %v408_v21, %v407_v20  ;;  %v651_v28 = vpack.c.b16 %v630_v23, %v629_v22  ;;  %v328_v37 = vpack.c.bf16 %v296_v31, %v296_v31  ;;  %v343_v40 = vpack.c.bf16 %v311_v32, %v311_v32  ;;  %v251_v31 = vld [vmem:[%s8904_s25 + $0x140] sm:$0xff] }
  0x2b   : > { %v8946_v29 = vpack.c.b16 %v614_v25, %v613_v24  ;;  %v344_v41 = vpack.c.bf16 %v312_v33, %v312_v33  ;;  %v278_v42 = vpack.c.bf16 %v246_v34, %v246_v34  ;;  %v279_v43 = vpack.c.bf16 %v247_v35, %v247_v35  ;;  %v299_v24 = vld [vmem:[%s8904_s25 + $0x79] sm:$0xff]  ;;  %v300_v25 = vld [vmem:[%s8904_s25 + $0x81] sm:$0xff] }
  0x2c   : > { %v262_v44 = vpack.c.bf16 %v230_v38, %v230_v38  ;;  %v263_v45 = vpack.c.bf16 %v231_v39, %v231_v39  ;;  %v393_v46 = vunpack.c.l.b16 %v327_v36  ;;  %v394_v47 = vunpack.c.l.b16 %v328_v37  ;;  %v234_v34 = vld [vmem:[%s8904_s25 + $0x78] sm:$0xff]  ;;  %v235_v35 = vld [vmem:[%s8904_s25 + $0x80] sm:$0xff] }
  0x2d   : > { %v409_v48 = vunpack.c.l.b16 %v343_v40  ;;  %v410_v49 = vunpack.c.l.b16 %v344_v41  ;;  %v631_v50 = vunpack.c.l.b16 %v278_v42  ;;  %v632_v51 = vunpack.c.l.b16 %v279_v43 }
  0x2e   : > { %v615_v52 = vunpack.c.l.b16 %v262_v44  ;;  %v616_v53 = vunpack.c.l.b16 %v263_v45  ;;  %v8962_v54 = vpack.c.b16 %v394_v47, %v393_v46  ;;  %v329_v2 = vpack.c.bf16 %v297_v58, %v297_v58  ;;  %v317_v58 = vld [vmem:[%s8904_s25 + $0x151] sm:$0xff] }
  0x2f   : > { %v430_v55 = vpack.c.b16 %v410_v49, %v409_v48  ;;  %v652_v56 = vpack.c.b16 %v632_v51, %v631_v50  ;;  %v330_v3 = vpack.c.bf16 %v298_v59, %v298_v59  ;;  %v345_v6 = vpack.c.bf16 %v313_v60, %v313_v60  ;;  %v318_v59 = vld [vmem:[%s8904_s25 + $0x159] sm:$0xff]  ;;  %v252_v60 = vld [vmem:[%s8904_s25 + $0x150] sm:$0xff] }
  0x30   : > { %v8964_v57 = vpack.c.b16 %v616_v53, %v615_v52  ;;  %v346_v7 = vpack.c.bf16 %v314_v61, %v314_v61  ;;  %v264_v10 = vpack.c.bf16 %v232_v4, %v232_v4  ;;  %v265_v11 = vpack.c.bf16 %v233_v5, %v233_v5  ;;  %v253_v61 = vld [vmem:[%s8904_s25 + $0x158] sm:$0xff] }
  0x31   : > { %7867 = vmatmul.msk.bf16.gmra.mxu0 %vm435_vm1, %v8926_v62  ;;  %v395_v12 = vunpack.c.l.b16 %v329_v2  ;;  %v396_v13 = vunpack.c.l.b16 %v330_v3  ;;  %v411_v14 = vunpack.c.l.b16 %v345_v6  ;;  %v331_v32 = vpack.c.bf16 %v299_v24, %v299_v24  ;;  %v236_v2 = vld [vmem:[%s8904_s25 + $0x90] sm:$0xff]  ;;  %v237_v3 = vld [vmem:[%s8904_s25 + $0x98] sm:$0xff] }
  0x32   : > { %7875 = vmatmul.msk.bf16.gmra.mxu2 %vm435_vm1, %v428_v63  ;;  %v248_v63 = vld [vmem:[%s8904_s25 + $0x120] sm:$0xff]  ;;  %v412_v15 = vunpack.c.l.b16 %v346_v7  ;;  %v617_v18 = vunpack.c.l.b16 %v264_v10  ;;  %v618_v19 = vunpack.c.l.b16 %v265_v11  ;;  %v332_v33 = vpack.c.bf16 %v300_v25, %v300_v25  ;;  %v303_v24 = vld [vmem:[%s8904_s25 + $0xa9] sm:$0xff]  ;;  %v304_v25 = vld [vmem:[%s8904_s25 + $0xb1] sm:$0xff] }
  0x33   : > { %7891 = vmatmul.msk.bf16.gmra.mxu3 %vm435_vm1, %v650_v0  ;;  %v249_v0 = vld [vmem:[%s8904_s25 + $0x128] sm:$0xff]  ;;  %v280_v8 = vpack.c.bf16 %v248_v63, %v248_v63  ;;  %v8980_v20 = vpack.c.b16 %v396_v13, %v395_v12  ;;  %v282_v38 = vpack.c.bf16 %v250_v30, %v250_v30  ;;  %v283_v39 = vpack.c.bf16 %v251_v31, %v251_v31  ;;  %v320_v31 = vld [vmem:[%s8904_s25 + $0x171] sm:$0xff] }
  0x34   : > { %7883 = vmatmul.msk.bf16.gmra.mxu1 %vm435_vm1, %v8928_v1  ;;  %v281_v9 = vpack.c.bf16 %v249_v0, %v249_v0  ;;  %v431_v21 = vpack.c.b16 %v412_v15, %v411_v14  ;;  %v8982_v23 = vpack.c.b16 %v618_v19, %v617_v18  ;;  %v266_v40 = vpack.c.bf16 %v234_v34, %v234_v34  ;;  %v8143_v30 = vld [vmem:[%s12083_s1 + $0xe] sm:$0x3] }
  0x35   : > { %v633_v16 = vunpack.c.l.b16 %v280_v8  ;;  %v267_v41 = vpack.c.bf16 %v235_v35, %v235_v35  ;;  %v397_v42 = vunpack.c.l.b16 %v331_v32  ;;  %v398_v43 = vunpack.c.l.b16 %v332_v33  ;;  %v254_v32 = vld [vmem:[%s8904_s25 + $0x168] sm:$0xff]  ;;  %v255_v33 = vld [vmem:[%s8904_s25 + $0x170] sm:$0xff] }
  0x36   : > { %v634_v17 = vunpack.c.l.b16 %v281_v9  ;;  %v635_v46 = vunpack.c.l.b16 %v282_v38  ;;  %v636_v47 = vunpack.c.l.b16 %v283_v39  ;;  %v619_v48 = vunpack.c.l.b16 %v266_v40  ;;  %v238_v39 = vld [vmem:[%s8904_s25 + $0xa8] sm:$0xff]  ;;  %v239_v40 = vld [vmem:[%s8904_s25 + $0xb0] sm:$0xff] }
  0x37   : > { %v620_v49 = vunpack.c.l.b16 %v267_v41  ;;  %v8998_v50 = vpack.c.b16 %v398_v43, %v397_v42  ;;  %v349_v4 = vpack.c.bf16 %v317_v58, %v317_v58  ;;  %v350_v5 = vpack.c.bf16 %v318_v59, %v318_v59  ;;  %v8192_v58 = vld [vmem:[%s12083_s1 + $0x10] sm:$0x3] }
  0x38   : > { %v653_v22 = vpack.c.b16 %v634_v17, %v633_v16  ;;  %v654_v52 = vpack.c.b16 %v636_v47, %v635_v46  ;;  %v284_v6 = vpack.c.bf16 %v252_v60, %v252_v60  ;;  %v285_v7 = vpack.c.bf16 %v253_v61, %v253_v61 }
  0x39   : > { %v9000_v53 = vpack.c.b16 %v620_v49, %v619_v48  ;;  %v268_v8 = vpack.c.bf16 %v236_v2, %v236_v2  ;;  %v269_v9 = vpack.c.bf16 %v237_v3, %v237_v3  ;;  %v415_v12 = vunpack.c.l.b16 %v349_v4  ;;  %v8045_v49 = vld [vmem:[%s12083_s1 + $0xa] sm:$0x3]  ;;  %v797_v4 = vld [vmem:[%s8904_s25 + $0x2] sm:$0xff] }
  0x3a   : > { %v416_v13 = vunpack.c.l.b16 %v350_v5  ;;  %v637_v14 = vunpack.c.l.b16 %v284_v6  ;;  %v638_v15 = vunpack.c.l.b16 %v285_v7  ;;  %v2584_v35 = vsel %vm484_vm0, %v8143_v30, 0  ;;  %v798_v5 = vld [vmem:[%s8904_s25 + $0xa] sm:$0xff]  ;;  %v8013_v6 = vld [vmem:[%s8904_s25 + $0x1a] sm:$0xff]  ;;  %v8014_v7 = vld [vmem:[%s8904_s25 + $0x22] sm:$0xff] }
  0x3b   : > { %v621_v16 = vunpack.c.l.b16 %v268_v8  ;;  %v622_v17 = vunpack.c.l.b16 %v269_v9  ;;  %2593 = vmatpush.bf16.msra.mxu3 %v2584_v35  ;;  %v352_v41 = vpack.c.bf16 %v320_v31, %v320_v31  ;;  %v286_v42 = vpack.c.bf16 %v254_v32, %v254_v32  ;;  %v8016_v30 = vld [vmem:[%s8904_s25 + $0x3a] sm:$0xff] }
  0x3c   : > { %v433_v19 = vpack.c.b16 %v416_v13, %v415_v12  ;;  %v287_v43 = vpack.c.bf16 %v255_v33, %v255_v33  ;;  %v2902_v59 = vsel %vm484_vm0, %v8192_v58, 0  ;;  %v829_v8 = vpack.c.bf16 %v797_v4, %v797_v4 }
  0x3d   : > { %2911 = vmatpush.bf16.msra.mxu0 %v2902_v59  ;;  %v830_v9 = vpack.c.bf16 %v798_v5, %v798_v5 }
  0x3e   : > { %v895_v12 = vunpack.c.l.b16 %v829_v8  ;;  %v8020_v8 = vld [vmem:[%s8904_s25 + $0x6a] sm:$0xff] }
  0x3f   : > { %v896_v13 = vunpack.c.l.b16 %v830_v9 }
  0x41   : > { %7868 = vmatmul.msk.bf16.gmra.mxu0 %vm435_vm1, %v8944_v26 }
  0x42   : > { %7876 = vmatmul.msk.bf16.gmra.mxu2 %vm435_vm1, %v429_v27  ;;  %v315_v27 = vld [vmem:[%s8904_s25 + $0x139] sm:$0xff] }
  0x43   : > { %7892 = vmatmul.msk.bf16.gmra.mxu3 %vm435_vm1, %v651_v28  ;;  %v316_v28 = vld [vmem:[%s8904_s25 + $0x141] sm:$0xff]  ;;  %v347_v36 = vpack.c.bf16 %v315_v27, %v315_v27  ;;  %v319_v27 = vld [vmem:[%s8904_s25 + $0x169] sm:$0xff] }
  0x44   : > { %7884 = vmatmul.msk.bf16.gmra.mxu1 %vm435_vm1, %v8946_v29  ;;  %v348_v37 = vpack.c.bf16 %v316_v28, %v316_v28  ;;  %v8094_v28 = vld [vmem:[%s12083_s1 + $0xc] sm:$0x3]  ;;  %v351_v38 = vpack.c.bf16 %v319_v27, %v319_v27 }
  0x45   : > { %v413_v44 = vunpack.c.l.b16 %v347_v36  ;;  %v2266_v34 = vsel %vm484_vm0, %v8094_v28, 0  ;;  %v335_v36 = vpack.c.bf16 %v303_v24, %v303_v24  ;;  %v8015_v28 = vld [vmem:[%s8904_s25 + $0x32] sm:$0xff] }
  0x46   : > { %v414_v45 = vunpack.c.l.b16 %v348_v37  ;;  %2275 = vmatpush.bf16.msra.mxu2 %v2266_v34  ;;  %v336_v37 = vpack.c.bf16 %v304_v25, %v304_v25  ;;  %v417_v48 = vunpack.c.l.b16 %v351_v38  ;;  %v1786_v33 = vpack.c.bf16 %v8015_v28, %v8015_v28 }
  0x47   : > { %v401_v46 = vunpack.c.l.b16 %v335_v36  ;;  %v1787_v34 = vpack.c.bf16 %v8016_v30, %v8016_v30 }
  0x48   : > { %v432_v51 = vpack.c.b16 %v414_v45, %v413_v44  ;;  %v270_v44 = vpack.c.bf16 %v238_v39, %v238_v39  ;;  %v271_v45 = vpack.c.bf16 %v239_v40, %v239_v40  ;;  %v402_v47 = vunpack.c.l.b16 %v336_v37 }
  0x49   : > { %v1852_v36 = vunpack.c.l.b16 %v1786_v33  ;;  %v1853_v37 = vunpack.c.l.b16 %v1787_v34  ;;  %v8022_v33 = vld [vmem:[%s8904_s25 + $0x82] sm:$0xff] }
  0x4a   : > { %v623_v60 = vunpack.c.l.b16 %v270_v44  ;;  %v624_v61 = vunpack.c.l.b16 %v271_v45 }
  0x4c   : > { %v9052_v3 = vpack.c.b16 %v624_v61, %v623_v60 }
  0x51   : > { %7869 = vmatmul.msk.bf16.gmra.mxu0 %vm435_vm1, %v8962_v54 }
  0x52   : > { %7877 = vmatmul.msk.bf16.gmra.mxu2 %vm435_vm1, %v430_v55  ;;  %v301_v55 = vld [vmem:[%s8904_s25 + $0x91] sm:$0xff] }
  0x53   : > { %7893 = vmatmul.msk.bf16.gmra.mxu3 %vm435_vm1, %v652_v56  ;;  %v302_v56 = vld [vmem:[%s8904_s25 + $0x99] sm:$0xff]  ;;  %v333_v63 = vpack.c.bf16 %v301_v55, %v301_v55  ;;  %v640_v55 = vunpack.c.l.b16 %v287_v43 }
  0x54   : > { %7885 = vmatmul.msk.bf16.gmra.mxu1 %vm435_vm1, %v8964_v57  ;;  %v334_v0 = vpack.c.bf16 %v302_v56, %v302_v56  ;;  %v1947_v56 = vsel %vm484_vm0, %v8045_v49, 0 }
  0x55   : > { %v399_v10 = vunpack.c.l.b16 %v333_v63  ;;  %1956 = vmatpush.bf16.msrb.mxu1 %v1947_v56  ;;  %v9050_v63 = vpack.c.b16 %v402_v47, %v401_v46  ;;  %v8017_v46 = vld [vmem:[%s8904_s25 + $0x4a] sm:$0xff]  ;;  %v8018_v47 = vld [vmem:[%s8904_s25 + $0x52] sm:$0xff] }
  0x56   : > { %v400_v11 = vunpack.c.l.b16 %v334_v0 }
  0x58   : > { %v9016_v18 = vpack.c.b16 %v400_v11, %v399_v10  ;;  %v1784_v10 = vpack.c.bf16 %v8013_v6, %v8013_v6  ;;  %v1785_v11 = vpack.c.bf16 %v8014_v7, %v8014_v7  ;;  %v8019_v7 = vld [vmem:[%s8904_s25 + $0x62] sm:$0xff] }
  0x61   : > { %7870 = vmatmul.msk.bf16.gmra.mxu0 %vm435_vm1, %v8980_v20 }
  0x62   : > { %7878 = vmatmul.msk.bf16.gmra.mxu2 %vm435_vm1, %v431_v21  ;;  %v655_v21 = vpack.c.b16 %v638_v15, %v637_v14  ;;  %v1850_v14 = vunpack.c.l.b16 %v1784_v10  ;;  %v1851_v15 = vunpack.c.l.b16 %v1785_v11  ;;  %v1790_v11 = vpack.c.bf16 %v8019_v7, %v8019_v7 }
  0x63   : > { %7894 = vmatmul.msk.bf16.gmra.mxu3 %vm435_vm1, %v653_v22  ;;  %v9018_v22 = vpack.c.b16 %v622_v17, %v621_v16  ;;  %v927_v17 = vpack.c.b16 %v896_v13, %v895_v12  ;;  %v1791_v12 = vpack.c.bf16 %v8020_v8, %v8020_v8 }
  0x64   : > { %7886 = vmatmul.msk.bf16.gmra.mxu1 %vm435_vm1, %v8982_v23 }
  0x71   : > { %7871 = vmatmul.msk.bf16.gmra.mxu0 %vm435_vm1, %v8998_v50 }
  0x72   : > { %7879 = vmatmul.msk.bf16.gmra.mxu2 %vm435_vm1, %v432_v51  ;;  %v418_v51 = vunpack.c.l.b16 %v352_v41  ;;  %v1883_v41 = vpack.c.b16 %v1853_v37, %v1852_v36  ;;  %v1793_v37 = vpack.c.bf16 %v8022_v33, %v8022_v33 }
  0x73   : > { %7895 = vmatmul.msk.bf16.gmra.mxu3 %vm435_vm1, %v654_v52  ;;  %v639_v52 = vunpack.c.l.b16 %v286_v42 }
  0x74   : > { %7887 = vmatmul.msk.bf16.gmra.mxu1 %vm435_vm1, %v9000_v53  ;;  %v434_v0 = vpack.c.b16 %v418_v51, %v417_v48  ;;  %v1788_v51 = vpack.c.bf16 %v8017_v46, %v8017_v46 }
  0x75   : > { %v656_v2 = vpack.c.b16 %v640_v55, %v639_v52  ;;  %v1789_v52 = vpack.c.bf16 %v8018_v47, %v8018_v47 }
  0x76   : > { %v1854_v56 = vunpack.c.l.b16 %v1788_v51 }
  0x77   : > { %v1855_v58 = vunpack.c.l.b16 %v1789_v52  ;;  %v8023_v52 = vld [vmem:[%s8904_s25 + $0x92] sm:$0xff] }
  0x81   : > { %7872 = vmatmul.msk.bf16.gmra.mxu0 %vm435_vm1, %v9016_v18 }
  0x82   : > { %7880 = vmatmul.msk.bf16.gmra.mxu2 %vm435_vm1, %v433_v19  ;;  %v1882_v19 = vpack.c.b16 %v1851_v15, %v1850_v14  ;;  %v1856_v14 = vunpack.c.l.b16 %v1790_v11  ;;  %v1857_v15 = vunpack.c.l.b16 %v1791_v12 }
  0x83   : > { %7896 = vmatmul.msk.bf16.gmra.mxu3 %vm435_vm1, %v655_v21 }
  0x84   : > { %7888 = vmatmul.msk.bf16.gmra.mxu1 %vm435_vm1, %v9018_v22 }
  0x91   : > { %7873 = vmatmul.msk.bf16.gmra.mxu0 %vm435_vm1, %v9050_v63 }
  0x92   : > { %7881 = vmatmul.msk.bf16.gmra.mxu2 %vm435_vm1, %v434_v0  ;;  %v1884_v0 = vpack.c.b16 %v1855_v58, %v1854_v56 }
  0x93   : > { %7897 = vmatmul.msk.bf16.gmra.mxu3 %vm435_vm1, %v656_v2 }
  0x94   : > { %7889 = vmatmul.msk.bf16.gmra.mxu1 %vm435_vm1, %v9052_v3 }
  0x9e   : > { %v497_v16 = vpop.f32.mrf.mxu0 }
  0xa1   : > { %v717_v21 = vpop.f32.mrf.mxu1  ;;  %7997 = vmatmul.msk.bf16.vlgmr.msrb.gmra.mxu0 %vm435_vm1, %v8926_v62 }
  0xa2   : > { %v9066_v24 = vadd.f32 %v717_v21, %v497_v16  ;;  %7899 = vmatmul.msk.bf16.vlgmr.msrb.gmra.mxu2 %vm435_vm1, %v927_v17  ;;  %v1885_v21 = vpack.c.b16 %v1857_v15, %v1856_v14  ;;  %v8025_v14 = vld [vmem:[%s8904_s25 + $0xaa] sm:$0xff]  ;;  %v8026_v15 = vld [vmem:[%s8904_s25 + $0xb2] sm:$0xff] }
  0xa3   : > { %7948 = vmatmul.msk.bf16.vlgmr.msrb.gmra.mxu3 %vm435_vm1, %v8928_v1 }
  0xa4   : > { %8046 = vmatmul.msk.bf16.vlgmr.msrb.gmra.mxu1 %vm435_vm1, %v1882_v19 }
  0xa5   : > { %v537_v25 = vpop.f32.mrf.mxu2 }
  0xa6   : > { %v757_v27 = vpop.f32.mrf.mxu3  ;;  %v499_v32 = vpop.f32.mrf.mxu0 }
  0xa7   : > { %v9074_v31 = vadd.f32 %v757_v27, %v537_v25 }
  0xa9   : > { %v719_v35 = vpop.f32.mrf.mxu1 }
  0xaa   : > { %v9076_v62 = vadd.f32 %v719_v35, %v499_v32  ;;  %v8021_v32 = vld [vmem:[%s8904_s25 + $0x7a] sm:$0xff] }
  0xab   : > { %v1792_v36 = vpack.c.bf16 %v8021_v32, %v8021_v32 }
  0xad   : > { %v539_v38 = vpop.f32.mrf.mxu2 }
  0xae   : > { %v759_v1 = vpop.f32.mrf.mxu3  ;;  %v502_v40 = vpop.f32.mrf.mxu0 }
  0xaf   : > { %v9078_v39 = vadd.f32 %v759_v1, %v539_v38  ;;  %v1858_v1 = vunpack.c.l.b16 %v1792_v36 }
  0xb1   : > { %v722_v42 = vpop.f32.mrf.mxu1  ;;  %7998 = vmatmul.msk.bf16.gmra.mxu0 %vm435_vm1, %v8944_v26 }
  0xb2   : > { %v9082_v43 = vadd.f32 %v722_v42, %v502_v40  ;;  %7900 = vmatmul.msk.bf16.gmra.mxu2 %vm435_vm1, %v1882_v19  ;;  %v1859_v40 = vunpack.c.l.b16 %v1793_v37 }
  0xb3   : > { %7949 = vmatmul.msk.bf16.gmra.mxu3 %vm435_vm1, %v8946_v29 }
  0xb4   : > { %8047 = vmatmul.msk.bf16.gmra.mxu1 %vm435_vm1, %v1883_v41 }
  0xb5   : > { %v542_v44 = vpop.f32.mrf.mxu2 }
  0xb6   : > { %v762_v45 = vpop.f32.mrf.mxu3  ;;  %v504_v49 = vpop.f32.mrf.mxu0 }
  0xb7   : > { %v9090_v48 = vadd.f32 %v762_v45, %v542_v44  ;;  %v1886_v45 = vpack.c.b16 %v1859_v40, %v1858_v1  ;;  %v7978_v1 = vld [vmem:[%s8904_s25 + $0xc1] sm:$0xff]  ;;  %v7979_v40 = vld [vmem:[%s8904_s25 + $0xc9] sm:$0xff] }
  0xb9   : > { %v724_v55 = vpop.f32.mrf.mxu1 }
  0xba   : > { %v9092_v26 = vadd.f32 %v724_v55, %v504_v49  ;;  %v8024_v55 = vld [vmem:[%s8904_s25 + $0x9a] sm:$0xff] }
  0xbd   : > { %v544_v59 = vpop.f32.mrf.mxu2 }
  0xbe   : > { %v764_v29 = vpop.f32.mrf.mxu3  ;;  %v507_v61 = vpop.f32.mrf.mxu0 }
  0xbf   : > { %v9094_v60 = vadd.f32 %v764_v29, %v544_v59  ;;  %v1794_v59 = vpack.c.bf16 %v8023_v52, %v8023_v52  ;;  %v1795_v29 = vpack.c.bf16 %v8024_v55, %v8024_v55  ;;  %v8028_v52 = vld [vmem:[%s8904_s25 + $0xca] sm:$0xff] }
  0xc1   : > { %v727_v2 = vpop.f32.mrf.mxu1  ;;  %7999 = vmatmul.msk.bf16.gmra.mxu0 %vm435_vm1, %v8962_v54 }
  0xc2   : > { %v9098_v4 = vadd.f32 %v727_v2, %v507_v61  ;;  %7901 = vmatmul.msk.bf16.gmra.mxu2 %vm435_vm1, %v1883_v41  ;;  %v1861_v2 = vunpack.c.l.b16 %v1795_v29 }
  0xc3   : > { %7950 = vmatmul.msk.bf16.gmra.mxu3 %vm435_vm1, %v8964_v57 }
  0xc4   : > { %8048 = vmatmul.msk.bf16.gmra.mxu1 %vm435_vm1, %v1884_v0 }
  0xc5   : > { %v547_v5 = vpop.f32.mrf.mxu2 }
  0xc6   : > { %v767_v6 = vpop.f32.mrf.mxu3  ;;  %v509_v10 = vpop.f32.mrf.mxu0 }
  0xc7   : > { %v9106_v9 = vadd.f32 %v767_v6, %v547_v5 }
  0xc9   : > { %v729_v13 = vpop.f32.mrf.mxu1 }
  0xca   : > { %v9108_v54 = vadd.f32 %v729_v13, %v509_v10 }
  0xcd   : > { %v549_v16 = vpop.f32.mrf.mxu2 }
  0xce   : > { %v769_v57 = vpop.f32.mrf.mxu3  ;;  %v512_v19 = vpop.f32.mrf.mxu0 }
  0xcf   : > { %v9110_v17 = vadd.f32 %v769_v57, %v549_v16 }
  0xd1   : > { %v732_v25 = vpop.f32.mrf.mxu1  ;;  %8000 = vmatmul.msk.bf16.gmra.mxu0 %vm435_vm1, %v8980_v20 }
  0xd2   : > { %v9114_v27 = vadd.f32 %v732_v25, %v512_v19  ;;  %7902 = vmatmul.msk.bf16.gmra.mxu2 %vm435_vm1, %v1884_v0  ;;  %v1860_v0 = vunpack.c.l.b16 %v1794_v59  ;;  %v1796_v19 = vpack.c.bf16 %v8025_v14, %v8025_v14 }
  0xd3   : > { %7951 = vmatmul.msk.bf16.gmra.mxu3 %vm435_vm1, %v8982_v23 }
  0xd4   : > { %8049 = vmatmul.msk.bf16.gmra.mxu1 %vm435_vm1, %v1885_v21  ;;  %v1887_v8 = vpack.c.b16 %v1861_v2, %v1860_v0 }
  0xd5   : > { %v552_v28 = vpop.f32.mrf.mxu2 }
  0xd6   : > { %v772_v30 = vpop.f32.mrf.mxu3  ;;  %v514_v35 = vpop.f32.mrf.mxu0 }
  0xd7   : > { %v9122_v34 = vadd.f32 %v772_v30, %v552_v28  ;;  %v1862_v28 = vunpack.c.l.b16 %v1796_v19 }
  0xd9   : > { %v734_v38 = vpop.f32.mrf.mxu1 }
  0xda   : > { %v9124_v20 = vadd.f32 %v734_v38, %v514_v35 }
  0xdd   : > { %v554_v41 = vpop.f32.mrf.mxu2 }
  0xde   : > { %v774_v23 = vpop.f32.mrf.mxu3  ;;  %v517_v44 = vpop.f32.mrf.mxu0 }
  0xdf   : > { %v9126_v42 = vadd.f32 %v774_v23, %v554_v41  ;;  %v7929_v41 = vld [vmem:[%s8904_s25 + $0xc0] sm:$0xff]  ;;  %v7930_v23 = vld [vmem:[%s8904_s25 + $0xc8] sm:$0xff] }
  0xe0   : > { %v1163_v59 = vpack.c.bf16 %v7930_v23, %v7930_v23  ;;  %v8029_v23 = vld [vmem:[%s8904_s25 + $0xda] sm:$0xff] }
  0xe1   : > { %v737_v46 = vpop.f32.mrf.mxu1  ;;  %8001 = vmatmul.msk.bf16.gmra.mxu0 %vm435_vm1, %v8998_v50 }
  0xe2   : > { %v9130_v47 = vadd.f32 %v737_v46, %v517_v44  ;;  %7903 = vmatmul.msk.bf16.gmra.mxu2 %vm435_vm1, %v1885_v21  ;;  %v1797_v21 = vpack.c.bf16 %v8026_v15, %v8026_v15  ;;  %v1480_v46 = vpack.c.bf16 %v7978_v1, %v7978_v1 }
  0xe3   : > { %7952 = vmatmul.msk.bf16.gmra.mxu3 %vm435_vm1, %v9000_v53 }
  0xe4   : > { %8050 = vmatmul.msk.bf16.gmra.mxu1 %vm435_vm1, %v1886_v45  ;;  %v1546_v0 = vunpack.c.l.b16 %v1480_v46 }
  0xe5   : > { %v557_v49 = vpop.f32.mrf.mxu2 }
  0xe6   : > { %v777_v51 = vpop.f32.mrf.mxu3  ;;  %v519_v58 = vpop.f32.mrf.mxu0 }
  0xe7   : > { %v9138_v56 = vadd.f32 %v777_v51, %v557_v49  ;;  %v1481_v49 = vpack.c.bf16 %v7979_v40, %v7979_v40  ;;  %v8027_v51 = vld [vmem:[%s8904_s25 + $0xc2] sm:$0xff] }
  0xe8   : > { %v1798_v29 = vpack.c.bf16 %v8027_v51, %v8027_v51 }
  0xe9   : > { %v739_v61 = vpop.f32.mrf.mxu1  ;;  %v1547_v2 = vunpack.c.l.b16 %v1481_v49 }
  0xea   : > { %v9140_v50 = vadd.f32 %v739_v61, %v519_v58  ;;  %v1162_v58 = vpack.c.bf16 %v7929_v41, %v7929_v41  ;;  %v1799_v61 = vpack.c.bf16 %v8028_v52, %v8028_v52 }
  0xeb   : > { %v1571_v14 = vpack.c.b16 %v1547_v2, %v1546_v0 }
  0xed   : > { %v559_v5 = vpop.f32.mrf.mxu2 }
  0xee   : > { %v779_v53 = vpop.f32.mrf.mxu3  ;;  %v522_v7 = vpop.f32.mrf.mxu0 }
  0xef   : > { %v9142_v6 = vadd.f32 %v779_v53, %v559_v5  ;;  %v1228_v53 = vunpack.c.l.b16 %v1162_v58 }
  0xf1   : > { %v742_v10 = vpop.f32.mrf.mxu1  ;;  %8002 = vmatmul.msk.bf16.gmra.mxu0 %vm435_vm1, %v9016_v18 }
  0xf2   : > { %v9146_v11 = vadd.f32 %v742_v10, %v522_v7  ;;  %7904 = vmatmul.msk.bf16.gmra.mxu2 %vm435_vm1, %v1886_v45  ;;  %v1229_v7 = vunpack.c.l.b16 %v1163_v59  ;;  %v1865_v10 = vunpack.c.l.b16 %v1799_v61 }
  0xf3   : > { %7953 = vmatmul.msk.bf16.gmra.mxu3 %vm435_vm1, %v9018_v22  ;;  %v1863_v22 = vunpack.c.l.b16 %v1797_v21 }
  0xf4   : > { %8051 = vmatmul.msk.bf16.gmra.mxu1 %vm435_vm1, %v1887_v8  ;;  %v1253_v19 = vpack.c.b16 %v1229_v7, %v1228_v53 }
  0xf5   : > { %v562_v12 = vpop.f32.mrf.mxu2  ;;  %v1888_v36 = vpack.c.b16 %v1863_v22, %v1862_v28  ;;  %v7980_v22 = vld [vmem:[%s8904_s25 + $0xd9] sm:$0xff] }
  0xf6   : > { %v782_v13 = vpop.f32.mrf.mxu3  ;;  %v524_v57 = vpop.f32.mrf.mxu0  ;;  %v1482_v40 = vpack.c.bf16 %v7980_v22, %v7980_v22  ;;  %v7933_v22 = vld [vmem:[%s8904_s25 + $0xf0] sm:$0xff] }
  0xf7   : > { %v9154_v16 = vadd.f32 %v782_v13, %v562_v12 }
  0xf8   : > { %v1548_v58 = vunpack.c.l.b16 %v1482_v40  ;;  %v8031_v40 = vld [vmem:[%s8904_s25 + $0xf2] sm:$0xff] }
  0xf9   : > { %v744_v18 = vpop.f32.mrf.mxu1 }
  0xfa   : > { %v9156_v25 = vadd.f32 %v744_v18, %v524_v57 }
  0xfd   : > { %v564_v30 = vpop.f32.mrf.mxu2 }
  0xfe   : > { %v784_v32 = vpop.f32.mrf.mxu3  ;;  %v527_v35 = vpop.f32.mrf.mxu0 }
  0xff   : > { %v9158_v33 = vadd.f32 %v784_v32, %v564_v30  ;;  %v7981_v30 = vld [vmem:[%s8904_s25 + $0xe1] sm:$0xff]  ;;  %v7931_v32 = vld [vmem:[%s8904_s25 + $0xd8] sm:$0xff] }
 0x100   : > { %v1483_v41 = vpack.c.bf16 %v7981_v30, %v7981_v30  ;;  %v1164_v49 = vpack.c.bf16 %v7931_v32, %v7931_v32  ;;  %v7934_v30 = vld [vmem:[%s8904_s25 + $0xf8] sm:$0xff] }
 0x101   : > { %v747_v37 = vpop.f32.mrf.mxu1  ;;  %8003 = vmatmul.msk.bf16.gmra.mxu0 %vm435_vm1, %v9050_v63 }
 0x102   : > { %v9162_v38 = vadd.f32 %v747_v37, %v527_v35  ;;  %7905 = vmatmul.msk.bf16.gmra.mxu2 %vm435_vm1, %v1887_v8  ;;  %v1864_v8 = vunpack.c.l.b16 %v1798_v29  ;;  %v7932_v35 = vld [vmem:[%s8904_s25 + $0xe0] sm:$0xff]  ;;  %v1549_v59 = vunpack.c.l.b16 %v1483_v41  ;;  %v1230_v61 = vunpack.c.l.b16 %v1164_v49 }
 0x103   : > { %7954 = vmatmul.msk.bf16.gmra.mxu3 %vm435_vm1, %v9052_v3  ;;  %v1165_v51 = vpack.c.bf16 %v7932_v35, %v7932_v35  ;;  %v8032_v41 = vld [vmem:[%s8904_s25 + $0xfa] sm:$0xff]  ;;  %v1167_v49 = vpack.c.bf16 %v7934_v30, %v7934_v30 }
 0x104   : > { %8052 = vmatmul.msk.bf16.gmra.mxu1 %vm435_vm1, %v1888_v36  ;;  %v1889_v21 = vpack.c.b16 %v1865_v10, %v1864_v8  ;;  %v1572_v8 = vpack.c.b16 %v1549_v59, %v1548_v58 }
 0x105   : > { %v567_v44 = vpop.f32.mrf.mxu2 }
 0x106   : > { %v787_v45 = vpop.f32.mrf.mxu3  ;;  %v529_v55 = vpop.f32.mrf.mxu0 }
 0x107   : > { %v9174_v63 = vadd.f32 %v787_v45, %v567_v44  ;;  %v8030_v44 = vld [vmem:[%s8904_s25 + $0xe2] sm:$0xff] }
 0x108   : > { %v1801_v52 = vpack.c.bf16 %v8030_v44, %v8030_v44 }
 0x109   : > { %v749_v3 = vpop.f32.mrf.mxu1 }
 0x10a   : > { %v9176_v5 = vadd.f32 %v749_v3, %v529_v55  ;;  %v1231_v3 = vunpack.c.l.b16 %v1165_v51  ;;  %v1867_v2 = vunpack.c.l.b16 %v1801_v52  ;;  %v1802_v51 = vpack.c.bf16 %v8031_v40, %v8031_v40  ;;  %v8209_v52 = vld [vmem:[%s12085_s3 + $0x2] sm:$0x3]  ;;  %v7935_v40 = vld [vmem:[%s8904_s25 + $0x108] sm:$0xff] }
 0x10d   : > { %v569_v12 = vpop.f32.mrf.mxu2 }
 0x10e   : > { %v789_v13 = vpop.f32.mrf.mxu3  ;;  %v532_v57 = vpop.f32.mrf.mxu0 }
 0x10f   : > { %v9178_v15 = vadd.f32 %v789_v13, %v569_v12  ;;  %v1254_v13 = vpack.c.b16 %v1231_v3, %v1230_v61  ;;  %v4207_v61 = vsel %vm484_vm0, %v8209_v52, 0 }
 0x110   : > { %4216 = vmatpush.bf16.msra.mxu1 %v4207_v61 }
 0x111   : > { %v752_v18 = vpop.f32.mrf.mxu1  ;;  %8004 = vmatmul.msk.bf16.gmra.mxu0 %vm435_vm1, %v1571_v14 }
 0x112   : > { %v9181_v28 = vadd.f32 %v752_v18, %v532_v57  ;;  %7906 = vmatmul.msk.bf16.gmra.mxu2 %vm435_vm1, %v1888_v36  ;;  %v1800_v36 = vpack.c.bf16 %v8029_v23, %v8029_v23  ;;  %v7983_v18 = vld [vmem:[%s8904_s25 + $0xf9] sm:$0xff] }
 0x113   : > { %7955 = vmatmul.msk.bf16.gmra.mxu3 %vm435_vm1, %v1253_v19  ;;  %v7982_v19 = vld [vmem:[%s8904_s25 + $0xf1] sm:$0xff] }
 0x114   : > { %8053 = vmatmul.msk.bf16.gmra.mxu1 %vm435_vm1, %v1889_v21  ;;  %v1866_v0 = vunpack.c.l.b16 %v1800_v36  ;;  %v1803_v36 = vpack.c.bf16 %v8032_v41, %v8032_v41  ;;  %v7936_v41 = vld [vmem:[%s8904_s25 + $0x110] sm:$0xff] }
 0x115   : > { %v572_v37 = vpop.f32.mrf.mxu2 }
 0x116   : > { %v792_v1 = vpop.f32.mrf.mxu3  ;;  %v534_v46 = vpop.f32.mrf.mxu0  ;;  %v1890_v14 = vpack.c.b16 %v1867_v2, %v1866_v0  ;;  %v1233_v2 = vunpack.c.l.b16 %v1167_v49 }
 0x117   : > { %v9192_v45 = vadd.f32 %v792_v1, %v572_v37  ;;  %v1484_v37 = vpack.c.bf16 %v7982_v19, %v7982_v19  ;;  %v1485_v1 = vpack.c.bf16 %v7983_v18, %v7983_v18 }
 0x119   : > { %v754_v55 = vpop.f32.mrf.mxu1  ;;  %v1551_v58 = vunpack.c.l.b16 %v1485_v1  ;;  %v7985_v1 = vld [vmem:[%s8904_s25 + $0x111] sm:$0xff] }
 0x11a   : > { %v9194_v29 = vadd.f32 %v754_v55, %v534_v46  ;;  %v1166_v46 = vpack.c.bf16 %v7933_v22, %v7933_v22  ;;  %v1550_v55 = vunpack.c.l.b16 %v1484_v37  ;;  %v7984_v37 = vld [vmem:[%s8904_s25 + $0x109] sm:$0xff] }
 0x11b   : > { %v1486_v49 = vpack.c.bf16 %v7984_v37, %v7984_v37 }
 0x11c   : > { %v1232_v0 = vunpack.c.l.b16 %v1166_v46  ;;  %v1573_v19 = vpack.c.b16 %v1551_v58, %v1550_v55  ;;  %v1168_v55 = vpack.c.bf16 %v7935_v40, %v7935_v40  ;;  %v1169_v58 = vpack.c.bf16 %v7936_v41, %v7936_v41 }
 0x11d   : > { %v574_v53 = vpop.f32.mrf.mxu2 }
 0x11e   : > { %v794_v7 = vpop.f32.mrf.mxu3  ;;  %v1640_v12 = vpop.f32.mrf.mxu0  ;;  %v1255_v30 = vpack.c.b16 %v1233_v2, %v1232_v0  ;;  %v1552_v0 = vunpack.c.l.b16 %v1486_v49  ;;  %v7937_v49 = vld [vmem:[%s8904_s25 + $0x120] sm:$0xff] }
 0x11f   : > { %v9196_v10 = vadd.f32 %v794_v7, %v574_v53  ;;  %v1868_v53 = vunpack.c.l.b16 %v1802_v51  ;;  %v1869_v7 = vunpack.c.l.b16 %v1803_v36  ;;  %v8033_v51 = vld [vmem:[%s8904_s25 + $0x10a] sm:$0xff]  ;;  %v8034_v36 = vld [vmem:[%s8904_s25 + $0x112] sm:$0xff] }
 0x120   : > { %v1804_v61 = vpack.c.bf16 %v8033_v51, %v8033_v51 }
 0x121   : > { %8005 = vmatmul.msk.bf16.gmra.mxu0 %vm435_vm1, %v1572_v8  ;;  %v1958_v57 = vpop.f32.mrf.mxu1 }
 0x122   : > { %7907 = vmatmul.msk.bf16.gmra.mxu2 %vm435_vm1, %v1889_v21 }
 0x123   : > { %7956 = vmatmul.msk.bf16.gmra.mxu3 %vm435_vm1, %v1254_v13 }
 0x124   : > { %8054 = vmatmul.msk.bf16.gmra.mxu1 %vm435_vm1, %v1890_v14 }
 0x125   : > { %v1003_v32 = vpop.f32.mrf.mxu2 }
 0x126   : > { %v1322_v35 = vpop.f32.mrf.mxu3  ;;  %v1083_v23 = vadd.f32 %v1003_v32, %v9066_v24  ;;  %v1642_v44 = vpop.f32.mrf.mxu0 }
 0x128   : > { %v1402_v21 = vadd.f32 %v1322_v35, %v1083_v23 }
 0x129   : > { %v1960_v59 = vpop.f32.mrf.mxu1 }
 0x12a   : > { %v1720_v3 = vadd.f32 %v1640_v12, %v1402_v21  ;;  %v1891_v12 = vpack.c.b16 %v1869_v7, %v1868_v53  ;;  %v1487_v21 = vpack.c.bf16 %v7985_v1, %v7985_v1  ;;  %v1234_v7 = vunpack.c.l.b16 %v1168_v55 }
 0x12c   : > { %v9213_v24 = vadd.f32 %v1958_v57, %v1720_v3  ;;  %v1805_v3 = vpack.c.bf16 %v8034_v36, %v8034_v36  ;;  %v1553_v2 = vunpack.c.l.b16 %v1487_v21  ;;  %v7938_v21 = vld [vmem:[%s8904_s25 + $0x128] sm:$0xff] }
 0x12d   : > { %v1005_v8 = vpop.f32.mrf.mxu2 }
 0x12e   : > { %v1324_v13 = vpop.f32.mrf.mxu3  ;;  %v1084_v18 = vadd.f32 %v1005_v8, %v9076_v62  ;;  %v1645_v22 = vpop.f32.mrf.mxu0  ;;  %v1235_v8 = vunpack.c.l.b16 %v1169_v58  ;;  %v8035_v58 = vld [vmem:[%s8904_s25 + $0x122] sm:$0xff] }
 0x130   : > { %v1403_v32 = vadd.f32 %v1324_v13, %v1084_v18  ;;  %v1871_v18 = vunpack.c.l.b16 %v1805_v3  ;;  %v1256_v1 = vpack.c.b16 %v1235_v8, %v1234_v7  ;;  %v1170_v3 = vpack.c.bf16 %v7937_v49, %v7937_v49 }
 0x131   : > { %8006 = vmatmul.msk.bf16.gmra.mxu0 %vm435_vm1, %v1573_v19  ;;  %v1963_v57 = vpop.f32.mrf.mxu1  ;;  %v1870_v19 = vunpack.c.l.b16 %v1804_v61 }
 0x132   : > { %7908 = vmatmul.msk.bf16.gmra.mxu2 %vm435_vm1, %v1890_v14  ;;  %v1721_v35 = vadd.f32 %v1642_v44, %v1403_v32  ;;  %v1574_v32 = vpack.c.b16 %v1553_v2, %v1552_v0  ;;  %v1171_v0 = vpack.c.bf16 %v7938_v21, %v7938_v21  ;;  %v1806_v2 = vpack.c.bf16 %v8035_v58, %v8035_v58 }
 0x133   : > { %7957 = vmatmul.msk.bf16.gmra.mxu3 %vm435_vm1, %v1255_v30  ;;  %v1892_v41 = vpack.c.b16 %v1871_v18, %v1870_v19  ;;  %v1236_v18 = vunpack.c.l.b16 %v1170_v3 }
 0x134   : > { %v9223_v23 = vadd.f32 %v1960_v59, %v1721_v35  ;;  %8055 = vmatmul.msk.bf16.gmra.mxu1 %vm435_vm1, %v1891_v12 }
 0x135   : > { %v1008_v62 = vpop.f32.mrf.mxu2 }
 0x136   : > { %v1327_v46 = vpop.f32.mrf.mxu3  ;;  %v1085_v52 = vadd.f32 %v1008_v62, %v9082_v43  ;;  %v1647_v14 = vpop.f32.mrf.mxu0  ;;  %v7986_v62 = vld [vmem:[%s8904_s25 + $0x121] sm:$0xff] }
 0x138   : > { %v1404_v44 = vadd.f32 %v1327_v46, %v1085_v52  ;;  %v7987_v46 = vld [vmem:[%s8904_s25 + $0x129] sm:$0xff]  ;;  %v1488_v52 = vpack.c.bf16 %v7986_v62, %v7986_v62 }
 0x139   : > { %v1965_v59 = vpop.f32.mrf.mxu1  ;;  %v1489_v55 = vpack.c.bf16 %v7987_v46, %v7987_v46 }
 0x13a   : > { %v1722_v53 = vadd.f32 %v1645_v22, %v1404_v44  ;;  %v8036_v44 = vld [vmem:[%s8904_s25 + $0x12a] sm:$0xff]  ;;  %v1554_v7 = vunpack.c.l.b16 %v1488_v52  ;;  %v7939_v52 = vld [vmem:[%s8904_s25 + $0x138] sm:$0xff] }
 0x13b   : > { %v1555_v8 = vunpack.c.l.b16 %v1489_v55  ;;  %v7940_v55 = vld [vmem:[%s8904_s25 + $0x140] sm:$0xff] }
 0x13c   : > { %v9229_v13 = vadd.f32 %v1963_v57, %v1722_v53  ;;  %v1807_v53 = vpack.c.bf16 %v8036_v44, %v8036_v44 }
 0x13d   : > { %v1010_v43 = vpop.f32.mrf.mxu2 }
 0x13e   : > { %v1329_v30 = vpop.f32.mrf.mxu3  ;;  %v1086_v35 = vadd.f32 %v1010_v43, %v9092_v26  ;;  %v1650_v37 = vpop.f32.mrf.mxu0  ;;  %v1237_v43 = vunpack.c.l.b16 %v1171_v0  ;;  %v8037_v0 = vld [vmem:[%s8904_s25 + $0x13a] sm:$0xff] }
 0x140   : > { %v1405_v40 = vadd.f32 %v1329_v30, %v1086_v35  ;;  %v1873_v35 = vunpack.c.l.b16 %v1807_v53  ;;  %v1257_v46 = vpack.c.b16 %v1237_v43, %v1236_v18  ;;  %v1172_v53 = vpack.c.bf16 %v7939_v52, %v7939_v52 }
 0x141   : > { %8007 = vmatmul.msk.bf16.gmra.mxu0 %vm435_vm1, %v1574_v32  ;;  %v1968_v22 = vpop.f32.mrf.mxu1  ;;  %v1872_v32 = vunpack.c.l.b16 %v1806_v2 }
 0x142   : > { %7909 = vmatmul.msk.bf16.gmra.mxu2 %vm435_vm1, %v1891_v12  ;;  %v1723_v57 = vadd.f32 %v1647_v14, %v1405_v40  ;;  %v1575_v40 = vpack.c.b16 %v1555_v8, %v1554_v7  ;;  %v1173_v7 = vpack.c.bf16 %v7940_v55, %v7940_v55  ;;  %v1808_v8 = vpack.c.bf16 %v8037_v0, %v8037_v0 }
 0x143   : > { %7958 = vmatmul.msk.bf16.gmra.mxu3 %vm435_vm1, %v1256_v1  ;;  %v1893_v21 = vpack.c.b16 %v1873_v35, %v1872_v32  ;;  %v1238_v35 = vunpack.c.l.b16 %v1172_v53 }
 0x144   : > { %v9239_v51 = vadd.f32 %v1965_v59, %v1723_v57  ;;  %8056 = vmatmul.msk.bf16.gmra.mxu1 %vm435_vm1, %v1892_v41 }
 0x145   : > { %v1013_v26 = vpop.f32.mrf.mxu2 }
 0x146   : > { %v1332_v36 = vpop.f32.mrf.mxu3  ;;  %v1087_v61 = vadd.f32 %v1013_v26, %v9098_v4  ;;  %v1652_v12 = vpop.f32.mrf.mxu0  ;;  %v7988_v26 = vld [vmem:[%s8904_s25 + $0x139] sm:$0xff] }
 0x148   : > { %v1406_v14 = vadd.f32 %v1332_v36, %v1087_v61  ;;  %v7989_v36 = vld [vmem:[%s8904_s25 + $0x141] sm:$0xff]  ;;  %v1490_v61 = vpack.c.bf16 %v7988_v26, %v7988_v26 }
 0x149   : > { %v1970_v59 = vpop.f32.mrf.mxu1  ;;  %v1491_v3 = vpack.c.bf16 %v7989_v36, %v7989_v36 }
 0x14a   : > { %v1724_v19 = vadd.f32 %v1650_v37, %v1406_v14  ;;  %v8038_v14 = vld [vmem:[%s8904_s25 + $0x142] sm:$0xff]  ;;  %v1556_v18 = vunpack.c.l.b16 %v1490_v61  ;;  %v7941_v61 = vld [vmem:[%s8904_s25 + $0x150] sm:$0xff] }
 0x14b   : > { %v1557_v43 = vunpack.c.l.b16 %v1491_v3  ;;  %v7942_v3 = vld [vmem:[%s8904_s25 + $0x158] sm:$0xff] }
 0x14c   : > { %v9245_v30 = vadd.f32 %v1968_v22, %v1724_v19  ;;  %v1809_v19 = vpack.c.bf16 %v8038_v14, %v8038_v14 }
 0x14d   : > { %v1015_v4 = vpop.f32.mrf.mxu2 }
 0x14e   : > { %v1334_v1 = vpop.f32.mrf.mxu3  ;;  %v1088_v57 = vadd.f32 %v1015_v4, %v9108_v54  ;;  %v1655_v62 = vpop.f32.mrf.mxu0  ;;  %v1239_v4 = vunpack.c.l.b16 %v1173_v7  ;;  %v8039_v7 = vld [vmem:[%s8904_s25 + $0x152] sm:$0xff] }
 0x150   : > { %v1407_v49 = vadd.f32 %v1334_v1, %v1088_v57  ;;  %v1875_v57 = vunpack.c.l.b16 %v1809_v19  ;;  %v1258_v36 = vpack.c.b16 %v1239_v4, %v1238_v35  ;;  %v1174_v19 = vpack.c.bf16 %v7941_v61, %v7941_v61 }
 0x151   : > { %8008 = vmatmul.msk.bf16.gmra.mxu0 %vm435_vm1, %v1575_v40  ;;  %v1973_v37 = vpop.f32.mrf.mxu1  ;;  %v1874_v40 = vunpack.c.l.b16 %v1808_v8 }
 0x152   : > { %7910 = vmatmul.msk.bf16.gmra.mxu2 %vm435_vm1, %v1892_v41  ;;  %v1725_v22 = vadd.f32 %v1652_v12, %v1407_v49  ;;  %v1576_v49 = vpack.c.b16 %v1557_v43, %v1556_v18  ;;  %v1175_v18 = vpack.c.bf16 %v7942_v3, %v7942_v3  ;;  %v1810_v43 = vpack.c.bf16 %v8039_v7, %v8039_v7 }
 0x153   : > { %7959 = vmatmul.msk.bf16.gmra.mxu3 %vm435_vm1, %v1257_v46  ;;  %v1894_v55 = vpack.c.b16 %v1875_v57, %v1874_v40  ;;  %v1240_v57 = vunpack.c.l.b16 %v1174_v19  ;;  %v8041_v19 = vld [vmem:[%s8904_s25 + $0x16a] sm:$0xff] }
 0x154   : > { %v9255_v58 = vadd.f32 %v1970_v59, %v1725_v22  ;;  %8057 = vmatmul.msk.bf16.gmra.mxu1 %vm435_vm1, %v1893_v21 }
 0x155   : > { %v1018_v54 = vpop.f32.mrf.mxu2 }
 0x156   : > { %v1337_v44 = vpop.f32.mrf.mxu3  ;;  %v1089_v2 = vadd.f32 %v1018_v54, %v9114_v27  ;;  %v1657_v41 = vpop.f32.mrf.mxu0  ;;  %v7990_v54 = vld [vmem:[%s8904_s25 + $0x151] sm:$0xff] }
 0x158   : > { %v1408_v12 = vadd.f32 %v1337_v44, %v1089_v2  ;;  %v7991_v44 = vld [vmem:[%s8904_s25 + $0x159] sm:$0xff]  ;;  %v1492_v2 = vpack.c.bf16 %v7990_v54, %v7990_v54 }
 0x159   : > { %v1975_v59 = vpop.f32.mrf.mxu1  ;;  %v1493_v53 = vpack.c.bf16 %v7991_v44, %v7991_v44 }
 0x15a   : > { %v1726_v32 = vadd.f32 %v1655_v62, %v1408_v12  ;;  %v8040_v12 = vld [vmem:[%s8904_s25 + $0x15a] sm:$0xff]  ;;  %v1558_v35 = vunpack.c.l.b16 %v1492_v2  ;;  %v7943_v2 = vld [vmem:[%s8904_s25 + $0x168] sm:$0xff] }
 0x15b   : > { %v1559_v4 = vunpack.c.l.b16 %v1493_v53  ;;  %v7944_v53 = vld [vmem:[%s8904_s25 + $0x170] sm:$0xff] }
 0x15c   : > { %v9261_v1 = vadd.f32 %v1973_v37, %v1726_v32  ;;  %v1811_v32 = vpack.c.bf16 %v8040_v12, %v8040_v12 }
 0x15d   : > { %v1020_v27 = vpop.f32.mrf.mxu2 }
 0x15e   : > { %v1339_v46 = vpop.f32.mrf.mxu3  ;;  %v1090_v22 = vadd.f32 %v1020_v27, %v9124_v20  ;;  %v1660_v26 = vpop.f32.mrf.mxu0  ;;  %v1241_v27 = vunpack.c.l.b16 %v1175_v18  ;;  %v8042_v18 = vld [vmem:[%s8904_s25 + $0x172] sm:$0xff] }
 0x160   : > { %v1409_v52 = vadd.f32 %v1339_v46, %v1090_v22  ;;  %v1877_v22 = vunpack.c.l.b16 %v1811_v32  ;;  %v1259_v44 = vpack.c.b16 %v1241_v27, %v1240_v57  ;;  %v1177_v32 = vpack.c.bf16 %v7944_v53, %v7944_v53 }
 0x161   : > { %8009 = vmatmul.msk.bf16.gmra.mxu0 %vm435_vm1, %v1576_v49  ;;  %v1978_v62 = vpop.f32.mrf.mxu1  ;;  %v1876_v49 = vunpack.c.l.b16 %v1810_v43 }
 0x162   : > { %7911 = vmatmul.msk.bf16.gmra.mxu2 %vm435_vm1, %v1893_v21  ;;  %v1727_v37 = vadd.f32 %v1657_v41, %v1409_v52  ;;  %v1577_v52 = vpack.c.b16 %v1559_v4, %v1558_v35  ;;  %v1813_v4 = vpack.c.bf16 %v8042_v18, %v8042_v18 }
 0x163   : > { %7960 = vmatmul.msk.bf16.gmra.mxu3 %vm435_vm1, %v1258_v36 }
 0x164   : > { %v9271_v0 = vadd.f32 %v1975_v59, %v1727_v37  ;;  %8058 = vmatmul.msk.bf16.gmra.mxu1 %vm435_vm1, %v1894_v55 }
 0x165   : > { %v1023_v20 = vpop.f32.mrf.mxu2 }
 0x166   : > { %v1342_v14 = vpop.f32.mrf.mxu3  ;;  %v1091_v8 = vadd.f32 %v1023_v20, %v9130_v47  ;;  %v1662_v21 = vpop.f32.mrf.mxu0  ;;  %v7992_v20 = vld [vmem:[%s8904_s25 + $0x169] sm:$0xff] }
 0x167   : > { %v1494_v12 = vpack.c.bf16 %v7992_v20, %v7992_v20 }
 0x168   : > { %v1410_v41 = vadd.f32 %v1342_v14, %v1091_v8  ;;  %v7993_v14 = vld [vmem:[%s8904_s25 + $0x171] sm:$0xff] }
 0x169   : > { %v9277_v59 = vpop.f32.mrf.mxu1  ;;  %v1495_v8 = vpack.c.bf16 %v7993_v14, %v7993_v14 }
 0x16a   : > { %v1728_v40 = vadd.f32 %v1660_v26, %v1410_v41  ;;  %v1895_v26 = vpack.c.b16 %v1877_v22, %v1876_v49 }
 0x16b   : > { %v1561_v57 = vunpack.c.l.b16 %v1495_v8  ;;  %v7945_v8 = vld [vmem:[%s8904_s25 + $0x180] sm:$0xff] }
 0x16c   : > { %v9279_v46 = vadd.f32 %v1978_v62, %v1728_v40  ;;  %v1560_v40 = vunpack.c.l.b16 %v1494_v12  ;;  %v7995_v12 = vld [vmem:[%s8904_s25 + $0x189] sm:$0xff] }
 0x16d   : > { %v1025_v47 = vpop.f32.mrf.mxu2 }
 0x16e   : > { %v1344_v36 = vpop.f32.mrf.mxu3  ;;  %v1092_v37 = vadd.f32 %v1025_v47, %v9140_v50  ;;  %v1665_v54 = vpop.f32.mrf.mxu0  ;;  %v1243_v47 = vunpack.c.l.b16 %v1177_v32  ;;  %v8043_v32 = vld [vmem:[%s8904_s25 + $0x182] sm:$0xff] }
 0x170   : > { %v1411_v61 = vadd.f32 %v1344_v36, %v1092_v37  ;;  %v1879_v37 = vunpack.c.l.b16 %v1813_v4 }
 0x171   : > { %8010 = vmatmul.msk.bf16.gmra.mxu0 %vm435_vm1, %v1577_v52  ;;  %v1983_v62 = vpop.f32.mrf.mxu1 }
 0x172   : > { %7912 = vmatmul.msk.bf16.gmra.mxu2 %vm435_vm1, %v1894_v55  ;;  %v9285_v3 = vadd.f32 %v1662_v21, %v1411_v61  ;;  %v1176_v55 = vpack.c.bf16 %v7943_v2, %v7943_v2  ;;  %v1812_v21 = vpack.c.bf16 %v8041_v19, %v8041_v19  ;;  %v1578_v61 = vpack.c.b16 %v1561_v57, %v1560_v40  ;;  %v7946_v19 = vld [vmem:[%s8904_s25 + $0x188] sm:$0xff] }
 0x173   : > { %7961 = vmatmul.msk.bf16.gmra.mxu3 %vm435_vm1, %v1259_v44  ;;  %v1179_v40 = vpack.c.bf16 %v7946_v19, %v7946_v19 }
 0x174   : > { %8059 = vmatmul.msk.bf16.gmra.mxu1 %vm435_vm1, %v1895_v26  ;;  %v1242_v22 = vunpack.c.l.b16 %v1176_v55  ;;  %v1878_v52 = vunpack.c.l.b16 %v1812_v21  ;;  %v1497_v55 = vpack.c.bf16 %v7995_v12, %v7995_v12 }
 0x175   : > { %v1028_v50 = vpop.f32.mrf.mxu2 }
 0x176   : > { %v1347_v7 = vpop.f32.mrf.mxu3  ;;  %v1093_v41 = vadd.f32 %v1028_v50, %v9146_v11  ;;  %v1667_v43 = vpop.f32.mrf.mxu0  ;;  %v1260_v2 = vpack.c.b16 %v1243_v47, %v1242_v22  ;;  %v1563_v47 = vunpack.c.l.b16 %v1497_v55  ;;  %v8160_v55 = vld [vmem:[%s8904_s25 + $0x32] sm:$0xff] }
 0x178   : > { %v1412_v35 = vadd.f32 %v1347_v7, %v1093_v41  ;;  %v7994_v7 = vld [vmem:[%s8904_s25 + $0x181] sm:$0xff] }
 0x179   : > { %v9295_v27 = vpop.f32.mrf.mxu1  ;;  %v1496_v41 = vpack.c.bf16 %v7994_v7, %v7994_v7 }
 0x17a   : > { %v1730_v49 = vadd.f32 %v1665_v54, %v1412_v35  ;;  %v1896_v54 = vpack.c.b16 %v1879_v37, %v1878_v52  ;;  %v8044_v35 = vld [vmem:[%s8904_s25 + $0x18a] sm:$0xff] }
 0x17b   : > { %v1562_v22 = vunpack.c.l.b16 %v1496_v41  ;;  %v8062_v41 = vld [vmem:[%s8904_s25 + $0x30] sm:$0xff] }
 0x17c   : > { %v9297_v36 = vadd.f32 %v1983_v62, %v1730_v49  ;;  %v1815_v49 = vpack.c.bf16 %v8044_v35, %v8044_v35  ;;  %v8063_v35 = vld [vmem:[%s8904_s25 + $0x38] sm:$0xff] }
 0x17d   : > { %v1030_v11 = vpop.f32.mrf.mxu2  ;;  %v1579_v7 = vpack.c.b16 %v1563_v47, %v1562_v22  ;;  %v2104_v47 = vpack.c.bf16 %v8063_v35, %v8063_v35 }
 0x17e   : > { %v1349_v44 = vpop.f32.mrf.mxu3  ;;  %v1094_v20 = vadd.f32 %v1030_v11, %v9156_v25  ;;  %v1670_v14 = vpop.f32.mrf.mxu0 }
 0x180   : > { %v1413_v53 = vadd.f32 %v1349_v44, %v1094_v20  ;;  %v1245_v44 = vunpack.c.l.b16 %v1179_v40 }
 0x181   : > { %8011 = vmatmul.msk.bf16.gmra.mxu0 %vm435_vm1, %v1578_v61  ;;  %v1988_v62 = vpop.f32.mrf.mxu1 }
 0x182   : > { %7913 = vmatmul.msk.bf16.gmra.mxu2 %vm435_vm1, %v1895_v26  ;;  %v9303_v50 = vadd.f32 %v1667_v43, %v1413_v53  ;;  %v1178_v26 = vpack.c.bf16 %v7945_v8, %v7945_v8  ;;  %v1814_v43 = vpack.c.bf16 %v8043_v32, %v8043_v32  ;;  %v8161_v32 = vld [vmem:[%s8904_s25 + $0x3a] sm:$0xff] }
 0x183   : > { %7962 = vmatmul.msk.bf16.gmra.mxu3 %vm435_vm1, %v1260_v2  ;;  %v1881_v2 = vunpack.c.l.b16 %v1815_v49  ;;  %v2740_v49 = vpack.c.bf16 %v8161_v32, %v8161_v32 }
 0x184   : > { %8060 = vmatmul.msk.bf16.gmra.mxu1 %vm435_vm1, %v1896_v54  ;;  %v1244_v11 = vunpack.c.l.b16 %v1178_v26  ;;  %v1880_v20 = vunpack.c.l.b16 %v1814_v43  ;;  %v8112_v26 = vld [vmem:[%s8904_s25 + $0x39] sm:$0xff]  ;;  %v2739_v43 = vpack.c.bf16 %v8160_v55, %v8160_v55 }
 0x185   : > { %v1033_v25 = vpop.f32.mrf.mxu2 }
 0x186   : > { %v1352_v18 = vpop.f32.mrf.mxu3  ;;  %v1095_v21 = vadd.f32 %v1033_v25, %v9162_v38  ;;  %v1672_v4 = vpop.f32.mrf.mxu0  ;;  %v1261_v19 = vpack.c.b16 %v1245_v44, %v1244_v11  ;;  %v1897_v25 = vpack.c.b16 %v1881_v2, %v1880_v20  ;;  %v2805_v20 = vunpack.c.l.b16 %v2739_v43  ;;  %v8065_v43 = vld [vmem:[%s8904_s25 + $0x50] sm:$0xff] }
 0x187   : > { %v2806_v2 = vunpack.c.l.b16 %v2740_v49  ;;  %v8113_v49 = vld [vmem:[%s8904_s25 + $0x49] sm:$0xff] }
 0x188   : > { %v1414_v57 = vadd.f32 %v1352_v18, %v1095_v21  ;;  %v8111_v21 = vld [vmem:[%s8904_s25 + $0x31] sm:$0xff] }
 0x189   : > { %v9313_v52 = vpop.f32.mrf.mxu1 }
 0x18a   : > { %v1732_v37 = vadd.f32 %v1670_v14, %v1414_v57  ;;  %v2103_v57 = vpack.c.bf16 %v8062_v41, %v8062_v41  ;;  %v2837_v41 = vpack.c.b16 %v2806_v2, %v2805_v20  ;;  %v2106_v2 = vpack.c.bf16 %v8065_v43, %v8065_v43 }
 0x18c   : > { %v9315_v61 = vadd.f32 %v1988_v62, %v1732_v37  ;;  %v2421_v37 = vpack.c.bf16 %v8111_v21, %v8111_v21  ;;  %v2169_v44 = vunpack.c.l.b16 %v2103_v57  ;;  %v8163_v57 = vld [vmem:[%s8904_s25 + $0x52] sm:$0xff] }
 0x18d   : > { %v1035_v38 = vpop.f32.mrf.mxu2 }
 0x18e   : > { %v1354_v53 = vpop.f32.mrf.mxu3  ;;  %v1096_v12 = vadd.f32 %v1035_v38, %v9176_v5  ;;  %v1675_v8 = vpop.f32.mrf.mxu0 }
 0x190   : > { %v1415_v14 = vadd.f32 %v1354_v53, %v1096_v12  ;;  %v2487_v12 = vunpack.c.l.b16 %v2421_v37 }
 0x191   : > { %8012 = vmatmul.msk.bf16.gmra.mxu0 %vm435_vm1, %v1579_v7  ;;  %v1993_v62 = vpop.f32.mrf.mxu1  ;;  %v2170_v7 = vunpack.c.l.b16 %v2104_v47 }
 0x192   : > { %7914 = vmatmul.msk.bf16.gmra.mxu2 %vm435_vm1, %v1896_v54  ;;  %v9321_v18 = vadd.f32 %v1672_v4, %v1415_v14  ;;  %v2422_v4 = vpack.c.bf16 %v8112_v26, %v8112_v26 }
 0x193   : > { %7963 = vmatmul.msk.bf16.gmra.mxu3 %vm435_vm1, %v1261_v19  ;;  %v2201_v35 = vpack.c.b16 %v2170_v7, %v2169_v44 }
 0x194   : > { %8061 = vmatmul.msk.bf16.gmra.mxu1 %vm435_vm1, %v1897_v25  ;;  %v2488_v19 = vunpack.c.l.b16 %v2422_v4 }
 0x195   : > { %v1038_v5 = vpop.f32.mrf.mxu2 }
 0x196   : > { %v1357_v40 = vpop.f32.mrf.mxu3  ;;  %v1097_v22 = vadd.f32 %v1038_v5, %v9181_v28  ;;  %v1677_v54 = vpop.f32.mrf.mxu0  ;;  %v2519_v21 = vpack.c.b16 %v2488_v19, %v2487_v12  ;;  %v8064_v5 = vld [vmem:[%s8904_s25 + $0x48] sm:$0xff] }
 0x197   : > { %v2105_v37 = vpack.c.bf16 %v8064_v5, %v8064_v5 }
 0x198   : > { %v1416_v11 = vadd.f32 %v1357_v40, %v1097_v22  ;;  %v8162_v40 = vld [vmem:[%s8904_s25 + $0x4a] sm:$0xff] }
 0x199   : > { %v9331_v38 = vpop.f32.mrf.mxu1  ;;  %v8114_v22 = vld [vmem:[%s8904_s25 + $0x51] sm:$0xff]  ;;  %v2741_v4 = vpack.c.bf16 %v8162_v40, %v8162_v40 }
 0x19a   : > { %v1734_v53 = vadd.f32 %v1675_v8, %v1416_v11  ;;  %v2742_v11 = vpack.c.bf16 %v8163_v57, %v8163_v57  ;;  %v2424_v7 = vpack.c.bf16 %v8114_v22, %v8114_v22 }
 0x19b   : > { %v2807_v19 = vunpack.c.l.b16 %v2741_v4  ;;  %v8165_v4 = vld [vmem:[%s8904_s25 + $0x6a] sm:$0xff] }
 0x19c   : > { %v9333_v14 = vadd.f32 %v1993_v62, %v1734_v53  ;;  %v2423_v53 = vpack.c.bf16 %v8113_v49, %v8113_v49 }
 0x19d   : > { %v1040_v28 = vpop.f32.mrf.mxu2 }
 0x19e   : > { %v1359_v25 = vpop.f32.mrf.mxu3  ;;  %v1098_v55 = vadd.f32 %v1040_v28, %v9194_v29  ;;  %v1680_v32 = vpop.f32.mrf.mxu0  ;;  %v2808_v28 = vunpack.c.l.b16 %v2742_v11  ;;  %v8067_v11 = vld [vmem:[%s8904_s25 + $0x68] sm:$0xff] }
 0x1a0   : > { %v1417_v8 = vadd.f32 %v1359_v25, %v1098_v55  ;;  %v2172_v55 = vunpack.c.l.b16 %v2106_v2  ;;  %v2838_v40 = vpack.c.b16 %v2808_v28, %v2807_v19  ;;  %v8116_v2 = vld [vmem:[%s8904_s25 + $0x69] sm:$0xff] }
 0x1a1   : > { %8193 = vmatmul.msk.bf16.vlgmr.msra.gmra.mxu0 %vm435_vm1, %v2837_v41  ;;  %v1998_v26 = vpop.f32.mrf.mxu1 }
 0x1a2   : > { %8095 = vmatmul.msk.bf16.vlgmr.msra.gmra.mxu2 %vm435_vm1, %v2201_v35  ;;  %v9339_v62 = vadd.f32 %v1677_v54, %v1417_v8  ;;  %v2171_v54 = vunpack.c.l.b16 %v2105_v37  ;;  %v2489_v35 = vunpack.c.l.b16 %v2423_v53  ;;  %v8164_v37 = vld [vmem:[%s8904_s25 + $0x62] sm:$0xff] }
 0x1a3   : > { %8144 = vmatmul.msk.bf16.vlgmr.msra.gmra.mxu3 %vm435_vm1, %v2519_v21  ;;  %v2490_v21 = vunpack.c.l.b16 %v2424_v7 }
 0x1a4   : > { %v2202_v49 = vpack.c.b16 %v2172_v55, %v2171_v54  ;;  %v2744_v54 = vpack.c.bf16 %v8165_v4, %v8165_v4 }
 0x1a5   : > { %v1043_v29 = vpop.f32.mrf.mxu2  ;;  %v2520_v22 = vpack.c.b16 %v2490_v21, %v2489_v35  ;;  %v2426_v35 = vpack.c.bf16 %v8116_v2, %v8116_v2 }
 0x1a6   : > { %v1362_v47 = vpop.f32.mrf.mxu3  ;;  %v1099_v44 = vadd.f32 %v1043_v29, %v9074_v31  ;;  %v1682_v20 = vpop.f32.mrf.mxu0 }
 0x1a8   : > { %v1418_v12 = vadd.f32 %v1362_v47, %v1099_v44  ;;  %v8066_v47 = vld [vmem:[%s8904_s25 + $0x60] sm:$0xff] }
 0x1a9   : > { %v9348_v25 = vpop.f32.mrf.mxu1  ;;  %v8115_v44 = vld [vmem:[%s8904_s25 + $0x61] sm:$0xff]  ;;  %v2107_v7 = vpack.c.bf16 %v8066_v47, %v8066_v47 }
 0x1aa   : > { %v1736_v41 = vadd.f32 %v1680_v32, %v1418_v12  ;;  %v2743_v12 = vpack.c.bf16 %v8164_v37, %v8164_v37  ;;  %v2425_v55 = vpack.c.bf16 %v8115_v44, %v8115_v44 }
 0x1ac   : > { %v9350_v8 = vadd.f32 %v1998_v26, %v1736_v41  ;;  %v2108_v41 = vpack.c.bf16 %v8067_v11, %v8067_v11 }
 0x1ad   : > { %v1045_v31 = vpop.f32.mrf.mxu2 }
 0x1ae   : > { %v1364_v5 = vpop.f32.mrf.mxu3  ;;  %v1100_v57 = vadd.f32 %v1045_v31, %v9078_v39  ;;  %v1685_v43 = vpop.f32.mrf.mxu0  ;;  %v2809_v31 = vunpack.c.l.b16 %v2743_v12  ;;  %v8166_v12 = vld [vmem:[%s8904_s25 + $0x7a] sm:$0xff] }
 0x1b0   : > { %v1419_v32 = vadd.f32 %v1364_v5, %v1100_v57  ;;  %v2810_v5 = vunpack.c.l.b16 %v2744_v54  ;;  %v8167_v54 = vld [vmem:[%s8904_s25 + $0x82] sm:$0xff] }
 0x1b1   : > { %8194 = vmatmul.msk.bf16.gmra.mxu0 %vm435_vm1, %v2838_v40  ;;  %v2003_v29 = vpop.f32.mrf.mxu1 }
 0x1b2   : > { %8096 = vmatmul.msk.bf16.gmra.mxu2 %vm435_vm1, %v2202_v49  ;;  %v9356_v26 = vadd.f32 %v1682_v20, %v1419_v32  ;;  %v2173_v20 = vunpack.c.l.b16 %v2107_v7  ;;  %v2174_v49 = vunpack.c.l.b16 %v2108_v41  ;;  %v2492_v32 = vunpack.c.l.b16 %v2426_v35  ;;  %v8068_v7 = vld [vmem:[%s8904_s25 + $0x78] sm:$0xff] }
 0x1b3   : > { %8145 = vmatmul.msk.bf16.gmra.mxu3 %vm435_vm1, %v2520_v22  ;;  %v2491_v22 = vunpack.c.l.b16 %v2425_v55  ;;  %v2839_v4 = vpack.c.b16 %v2810_v5, %v2809_v31  ;;  %v8117_v41 = vld [vmem:[%s8904_s25 + $0x79] sm:$0xff]  ;;  %v8118_v55 = vld [vmem:[%s8904_s25 + $0x81] sm:$0xff]  ;;  %v2746_v31 = vpack.c.bf16 %v8167_v54, %v8167_v54 }
 0x1b4   : > { %v2203_v2 = vpack.c.b16 %v2174_v49, %v2173_v20  ;;  %v2745_v20 = vpack.c.bf16 %v8166_v12, %v8166_v12 }
 0x1b5   : > { %v1048_v39 = vpop.f32.mrf.mxu2 }
 0x1b6   : > { %v1367_v53 = vpop.f32.mrf.mxu3  ;;  %v1101_v19 = vadd.f32 %v1048_v39, %v9090_v48  ;;  %v1687_v28 = vpop.f32.mrf.mxu0  ;;  %v2521_v39 = vpack.c.b16 %v2492_v32, %v2491_v22  ;;  %v2427_v22 = vpack.c.bf16 %v8117_v41, %v8117_v41  ;;  %v2428_v32 = vpack.c.bf16 %v8118_v55, %v8118_v55 }
 0x1b8   : > { %v1420_v21 = vadd.f32 %v1367_v53, %v1101_v19  ;;  %v8069_v19 = vld [vmem:[%s8904_s25 + $0x80] sm:$0xff] }
 0x1b9   : > { %v9365_v40 = vpop.f32.mrf.mxu1  ;;  %v2110_v49 = vpack.c.bf16 %v8069_v19, %v8069_v19 }
 0x1ba   : > { %12092 = vst [vmem:[#allocation6_spill] sm:$0xff] %v9365_v40  ;;  %v1738_v57 = vadd.f32 %v1685_v43, %v1420_v21  ;;  %v2109_v21 = vpack.c.bf16 %v8068_v7, %v8068_v7  ;;  %v2494_v40 = vunpack.c.l.b16 %v2428_v32 }
 0x1bc   : > { %v9367_v47 = vadd.f32 %v2003_v29, %v1738_v57 }
 0x1bd   : > { %v1050_v48 = vpop.f32.mrf.mxu2 }
 0x1be   : > { %v1369_v37 = vpop.f32.mrf.mxu3  ;;  %v1102_v11 = vadd.f32 %v1050_v48, %v9094_v60  ;;  %v1690_v44 = vpop.f32.mrf.mxu0 }
 0x1c0   : > { %v1421_v43 = vadd.f32 %v1369_v37, %v1102_v11  ;;  %v2811_v37 = vunpack.c.l.b16 %v2745_v20  ;;  %v8168_v20 = vld [vmem:[%s8904_s25 + $0x92] sm:$0xff] }
 0x1c1   : > { %8195 = vmatmul.msk.bf16.gmra.mxu0 %vm435_vm1, %v2839_v4  ;;  %v2008_v53 = vpop.f32.mrf.mxu1  ;;  %v2812_v4 = vunpack.c.l.b16 %v2746_v31  ;;  %v8169_v31 = vld [vmem:[%s8904_s25 + $0x9a] sm:$0xff] }
 0x1c2   : > { %8097 = vmatmul.msk.bf16.gmra.mxu2 %vm435_vm1, %v2203_v2  ;;  %v9373_v29 = vadd.f32 %v1687_v28, %v1421_v43  ;;  %v2175_v28 = vunpack.c.l.b16 %v2109_v21  ;;  %v2493_v43 = vunpack.c.l.b16 %v2427_v22  ;;  %v8070_v21 = vld [vmem:[%s8904_s25 + $0x90] sm:$0xff]  ;;  %v8120_v22 = vld [vmem:[%s8904_s25 + $0x99] sm:$0xff] }
 0x1c3   : > { %8146 = vmatmul.msk.bf16.gmra.mxu3 %vm435_vm1, %v2521_v39  ;;  %v2176_v39 = vunpack.c.l.b16 %v2110_v49  ;;  %v2840_v54 = vpack.c.b16 %v2812_v4, %v2811_v37  ;;  %v8119_v49 = vld [vmem:[%s8904_s25 + $0x91] sm:$0xff] }
 0x1c5   : > { %v1053_v60 = vpop.f32.mrf.mxu2  ;;  %v2204_v55 = vpack.c.b16 %v2176_v39, %v2175_v28  ;;  %v2748_v28 = vpack.c.bf16 %v8169_v31, %v8169_v31  ;;  %v2429_v39 = vpack.c.bf16 %v8119_v49, %v8119_v49 }
 0x1c6   : > { %v1372_v35 = vpop.f32.mrf.mxu3  ;;  %v1103_v5 = vadd.f32 %v1053_v60, %v9106_v9  ;;  %v1692_v57 = vpop.f32.mrf.mxu0  ;;  %v2522_v60 = vpack.c.b16 %v2494_v40, %v2493_v43  ;;  %v2747_v40 = vpack.c.bf16 %v8168_v20, %v8168_v20  ;;  %v2430_v43 = vpack.c.bf16 %v8120_v22, %v8120_v22 }
 0x1c8   : > { %v1422_v48 = vadd.f32 %v1372_v35, %v1103_v5  ;;  %v8071_v5 = vld [vmem:[%s8904_s25 + $0x98] sm:$0xff] }
 0x1c9   : > { %v9382_v11 = vpop.f32.mrf.mxu1 }
 0x1ca   : > { %12093 = vst [vmem:[#allocation7_spill] sm:$0xff] %v9382_v11  ;;  %v1740_v2 = vadd.f32 %v1690_v44, %v1422_v48  ;;  %v2111_v48 = vpack.c.bf16 %v8070_v21, %v8070_v21  ;;  %v2496_v11 = vunpack.c.l.b16 %v2430_v43 }
 0x1cc   : > { %v9384_v7 = vadd.f32 %v2008_v53, %v1740_v2  ;;  %v2112_v2 = vpack.c.bf16 %v8071_v5, %v8071_v5 }
 0x1cd   : > { %v1055_v9 = vpop.f32.mrf.mxu2 }
 0x1ce   : > { %12094 = vst [vmem:[#allocation8_spill] sm:$0xff] %v9384_v7  ;;  %v1374_v12 = vpop.f32.mrf.mxu3  ;;  %v1104_v19 = vadd.f32 %v1055_v9, %v9110_v17  ;;  %v1695_v41 = vpop.f32.mrf.mxu0 }
 0x1d0   : > { %v1423_v44 = vadd.f32 %v1374_v12, %v1104_v19  ;;  %v2813_v12 = vunpack.c.l.b16 %v2747_v40  ;;  %v8170_v40 = vld [vmem:[%s8904_s25 + $0xaa] sm:$0xff] }
 0x1d1   : > { %8196 = vmatmul.msk.bf16.gmra.mxu0 %vm435_vm1, %v2840_v54  ;;  %v2013_v35 = vpop.f32.mrf.mxu1  ;;  %v2814_v54 = vunpack.c.l.b16 %v2748_v28  ;;  %v8171_v28 = vld [vmem:[%s8904_s25 + $0xb2] sm:$0xff] }
 0x1d2   : > { %8098 = vmatmul.msk.bf16.gmra.mxu2 %vm435_vm1, %v2204_v55  ;;  %v9390_v53 = vadd.f32 %v1692_v57, %v1423_v44  ;;  %v2177_v57 = vunpack.c.l.b16 %v2111_v48  ;;  %v2495_v44 = vunpack.c.l.b16 %v2429_v39  ;;  %v8072_v48 = vld [vmem:[%s8904_s25 + $0xa8] sm:$0xff]  ;;  %v8122_v39 = vld [vmem:[%s8904_s25 + $0xb1] sm:$0xff] }
 0x1d3   : > { %8147 = vmatmul.msk.bf16.gmra.mxu3 %vm435_vm1, %v2522_v60  ;;  %v2178_v60 = vunpack.c.l.b16 %v2112_v2  ;;  %v2841_v31 = vpack.c.b16 %v2814_v54, %v2813_v12  ;;  %v8121_v2 = vld [vmem:[%s8904_s25 + $0xa9] sm:$0xff] }
 0x1d4   : > { %12095 = vst [vmem:[#allocation9_spill] sm:$0xff] %v9390_v53  ;;  %v8137_v53 = vld [vmem:[%s8904_s25 + $0x169] sm:$0xff] }
 0x1d5   : > { %v1058_v17 = vpop.f32.mrf.mxu2  ;;  %v2205_v22 = vpack.c.b16 %v2178_v60, %v2177_v57  ;;  %v2750_v57 = vpack.c.bf16 %v8171_v28, %v8171_v28  ;;  %v2431_v60 = vpack.c.bf16 %v8121_v2, %v8121_v2 }
 0x1d6   : > { %v1377_v32 = vpop.f32.mrf.mxu3  ;;  %v1105_v37 = vadd.f32 %v1058_v17, %v9122_v34  ;;  %v1697_v4 = vpop.f32.mrf.mxu0  ;;  %v2523_v17 = vpack.c.b16 %v2496_v11, %v2495_v44  ;;  %v2749_v11 = vpack.c.bf16 %v8170_v40, %v8170_v40  ;;  %v2432_v44 = vpack.c.bf16 %v8122_v39, %v8122_v39 }
 0x1d8   : > { %v1424_v9 = vadd.f32 %v1377_v32, %v1105_v37  ;;  %v8073_v37 = vld [vmem:[%s8904_s25 + $0xb0] sm:$0xff] }
 0x1d9   : > { %v9399_v19 = vpop.f32.mrf.mxu1 }
 0x1da   : > { %12096 = vst [vmem:[#allocation10_spill] sm:$0xff] %v9399_v19  ;;  %v1742_v55 = vadd.f32 %v1695_v41, %v1424_v9  ;;  %v2113_v9 = vpack.c.bf16 %v8072_v48, %v8072_v48  ;;  %v2498_v19 = vunpack.c.l.b16 %v2432_v44 }
 0x1dc   : > { %v9401_v21 = vadd.f32 %v2013_v35, %v1742_v55  ;;  %v2114_v55 = vpack.c.bf16 %v8073_v37, %v8073_v37 }
 0x1dd   : > { %v1060_v34 = vpop.f32.mrf.mxu2 }
 0x1de   : > { %12097 = vst [vmem:[#allocation11_spill] sm:$0xff] %v9401_v21  ;;  %v1379_v20 = vpop.f32.mrf.mxu3  ;;  %v1106_v5 = vadd.f32 %v1060_v34, %v9126_v42  ;;  %v1700_v49 = vpop.f32.mrf.mxu0 }
 0x1e0   : > { %v1425_v41 = vadd.f32 %v1379_v20, %v1106_v5  ;;  %v2815_v20 = vunpack.c.l.b16 %v2749_v11  ;;  %v8172_v11 = vld [vmem:[%s8904_s25 + $0xc2] sm:$0xff] }
 0x1e1   : > { %8197 = vmatmul.msk.bf16.gmra.mxu0 %vm435_vm1, %v2841_v31  ;;  %v2018_v32 = vpop.f32.mrf.mxu1  ;;  %v2816_v31 = vunpack.c.l.b16 %v2750_v57  ;;  %v8173_v57 = vld [vmem:[%s8904_s25 + $0xca] sm:$0xff] }
 0x1e2   : > { %8099 = vmatmul.msk.bf16.gmra.mxu2 %vm435_vm1, %v2205_v22  ;;  %v9407_v35 = vadd.f32 %v1697_v4, %v1425_v41  ;;  %v2179_v4 = vunpack.c.l.b16 %v2113_v9  ;;  %v2497_v41 = vunpack.c.l.b16 %v2431_v60  ;;  %v8074_v9 = vld [vmem:[%s8904_s25 + $0xc0] sm:$0xff]  ;;  %v8124_v60 = vld [vmem:[%s8904_s25 + $0xc9] sm:$0xff] }
 0x1e3   : > { %8148 = vmatmul.msk.bf16.gmra.mxu3 %vm435_vm1, %v2523_v17  ;;  %v2180_v17 = vunpack.c.l.b16 %v2114_v55  ;;  %v2842_v28 = vpack.c.b16 %v2816_v31, %v2815_v20  ;;  %v8123_v55 = vld [vmem:[%s8904_s25 + $0xc1] sm:$0xff] }
 0x1e4   : > { %12098 = vst [vmem:[#allocation12_spill] sm:$0xff] %v9407_v35 }
 0x1e5   : > { %v1063_v42 = vpop.f32.mrf.mxu2  ;;  %v2206_v39 = vpack.c.b16 %v2180_v17, %v2179_v4  ;;  %v2752_v4 = vpack.c.bf16 %v8173_v57, %v8173_v57  ;;  %v2433_v17 = vpack.c.bf16 %v8123_v55, %v8123_v55 }
 0x1e6   : > { %v1382_v43 = vpop.f32.mrf.mxu3  ;;  %v1107_v12 = vadd.f32 %v1063_v42, %v9138_v56  ;;  %v1702_v54 = vpop.f32.mrf.mxu0  ;;  %v2524_v42 = vpack.c.b16 %v2498_v19, %v2497_v41  ;;  %v2751_v19 = vpack.c.bf16 %v8172_v11, %v8172_v11  ;;  %v2434_v41 = vpack.c.bf16 %v8124_v60, %v8124_v60 }
 0x1e8   : > { %v1426_v34 = vadd.f32 %v1382_v43, %v1107_v12  ;;  %v8075_v12 = vld [vmem:[%s8904_s25 + $0xc8] sm:$0xff] }
 0x1e9   : > { %v9416_v5 = vpop.f32.mrf.mxu1 }
 0x1ea   : > { %12099 = vst [vmem:[#allocation13_spill] sm:$0xff] %v9416_v5  ;;  %v1744_v22 = vadd.f32 %v1700_v49, %v1426_v34  ;;  %v2115_v34 = vpack.c.bf16 %v8074_v9, %v8074_v9 }
 0x1ec   : > { %v9418_v48 = vadd.f32 %v2018_v32, %v1744_v22  ;;  %v2116_v22 = vpack.c.bf16 %v8075_v12, %v8075_v12 }
 0x1ed   : > { %v1065_v56 = vpop.f32.mrf.mxu2 }
 0x1ee   : > { %12100 = vst [vmem:[#allocation14_spill] sm:$0xff] %v9418_v48  ;;  %v1384_v40 = vpop.f32.mrf.mxu3  ;;  %v1108_v37 = vadd.f32 %v1065_v56, %v9142_v6  ;;  %v1705_v2 = vpop.f32.mrf.mxu0  ;;  %v8088_v48 = vld [vmem:[%s8904_s25 + $0x168] sm:$0xff] }
 0x1ef   : > { %v2129_v21 = vpack.c.bf16 %v8088_v48, %v8088_v48 }
 0x1f0   : > { %v1427_v49 = vadd.f32 %v1384_v40, %v1108_v37  ;;  %v2817_v40 = vunpack.c.l.b16 %v2751_v19  ;;  %v8175_v19 = vld [vmem:[%s8904_s25 + $0xe2] sm:$0xff] }
 0x1f1   : > { %8198 = vmatmul.msk.bf16.gmra.mxu0 %vm435_vm1, %v2842_v28  ;;  %v2023_v43 = vpop.f32.mrf.mxu1  ;;  %v2818_v28 = vunpack.c.l.b16 %v2752_v4  ;;  %v8077_v4 = vld [vmem:[%s8904_s25 + $0xe0] sm:$0xff] }
 0x1f2   : > { %8100 = vmatmul.msk.bf16.gmra.mxu2 %vm435_vm1, %v2206_v39  ;;  %v9424_v32 = vadd.f32 %v1702_v54, %v1427_v49  ;;  %v2181_v54 = vunpack.c.l.b16 %v2115_v34  ;;  %v2182_v39 = vunpack.c.l.b16 %v2116_v22  ;;  %v2500_v49 = vunpack.c.l.b16 %v2434_v41  ;;  %v8174_v34 = vld [vmem:[%s8904_s25 + $0xda] sm:$0xff] }
 0x1f3   : > { %8149 = vmatmul.msk.bf16.gmra.mxu3 %vm435_vm1, %v2524_v42  ;;  %v2499_v42 = vunpack.c.l.b16 %v2433_v17  ;;  %v2843_v57 = vpack.c.b16 %v2818_v28, %v2817_v40  ;;  %v8126_v22 = vld [vmem:[%s8904_s25 + $0xe1] sm:$0xff]  ;;  %v2754_v40 = vpack.c.bf16 %v8175_v19, %v8175_v19 }
 0x1f4   : > { %12101 = vst [vmem:[#allocation15_spill] sm:$0xff] %v9424_v32 }
 0x1f5   : > { %v1068_v6 = vpop.f32.mrf.mxu2  ;;  %v2525_v60 = vpack.c.b16 %v2500_v49, %v2499_v42  ;;  %v2436_v49 = vpack.c.bf16 %v8126_v22, %v8126_v22 }
 0x1f6   : > { %v1387_v44 = vpop.f32.mrf.mxu3  ;;  %v1109_v20 = vadd.f32 %v1068_v6, %v9154_v16  ;;  %v1707_v31 = vpop.f32.mrf.mxu0 }
 0x1f8   : > { %v1428_v56 = vadd.f32 %v1387_v44, %v1109_v20  ;;  %v8076_v44 = vld [vmem:[%s8904_s25 + $0xd8] sm:$0xff] }
 0x1f9   : > { %v9433_v5 = vpop.f32.mrf.mxu1  ;;  %v8125_v20 = vld [vmem:[%s8904_s25 + $0xd9] sm:$0xff] }
 0x1fa   : > { %v1746_v37 = vadd.f32 %v1705_v2, %v1428_v56  ;;  %12102 = vst [vmem:[#allocation16_spill] sm:$0xff] %v9433_v5  ;;  %v2207_v2 = vpack.c.b16 %v2182_v39, %v2181_v54  ;;  %v2117_v56 = vpack.c.bf16 %v8076_v44, %v8076_v44  ;;  %v2753_v54 = vpack.c.bf16 %v8174_v34, %v8174_v34 }
 0x1fb   : > { %v2118_v39 = vpack.c.bf16 %v8077_v4, %v8077_v4  ;;  %v2435_v42 = vpack.c.bf16 %v8125_v20, %v8125_v20  ;;  %v8800_v5 = vmov 0  }
 0x1fc   : > { %v9435_v9 = vadd.f32 %v2023_v43, %v1746_v37  ;;  %3094 = vst.msk [vmem:[#allocation2] sm:$0xf] %vm3093_vm2, %v8800_v5 }
 0x1fd   : > { %v1070_v16 = vpop.f32.mrf.mxu2  ;;  %3095 = vst.msk [vmem:[#allocation2 + $0x4] sm:$0xf] %vm3093_vm2, %v8800_v5 }
 0x1fe   : > { %12103 = vst [vmem:[#allocation17_spill] sm:$0xff] %v9435_v9  ;;  %v1389_v11 = vpop.f32.mrf.mxu3  ;;  %v1110_v12 = vadd.f32 %v1070_v16, %v9158_v33  ;;  %v1710_v55 = vpop.f32.mrf.mxu0  ;;  %v2183_v16 = vunpack.c.l.b16 %v2117_v56  ;;  %v8078_v56 = vld [vmem:[%s8904_s25 + $0xf0] sm:$0xff] }
 0x1ff   : > { %3099 = vst.msk [vmem:[#allocation2 + $0xcc] sm:$0xf] %vm3093_vm2, %v8800_v5 }
 0x200   : > { %v1429_v6 = vadd.f32 %v1389_v11, %v1110_v12  ;;  %v2819_v11 = vunpack.c.l.b16 %v2753_v54  ;;  %3097 = vst.msk [vmem:[#allocation2 + $0x8] sm:$0x1] %vm3096_vm3, %v8800_v5 }
 0x201   : > { %8199 = vmatmul.msk.bf16.gmra.mxu0 %vm435_vm1, %v2843_v57  ;;  %v2028_v17 = vpop.f32.mrf.mxu1  ;;  %v2820_v57 = vunpack.c.l.b16 %v2754_v40  ;;  %3100 = vst.msk [vmem:[#allocation2 + $0xd0] sm:$0xf] %vm3093_vm2, %v8800_v5  ;;  %v8079_v40 = vld [vmem:[%s8904_s25 + $0xf8] sm:$0xff] }
 0x202   : > { %8101 = vmatmul.msk.bf16.gmra.mxu2 %vm435_vm1, %v2207_v2  ;;  %v9441_v43 = vadd.f32 %v1707_v31, %v1429_v6  ;;  %v2184_v2 = vunpack.c.l.b16 %v2118_v39  ;;  %v2502_v6 = vunpack.c.l.b16 %v2436_v49  ;;  %3101 = vst.msk [vmem:[#allocation2 + $0xd4] sm:$0x1] %vm3096_vm3, %v8800_v5  ;;  %v2119_v49 = vpack.c.bf16 %v8078_v56, %v8078_v56  ;;  %vm9728_vm3 = vmor %vm4566_vm14, %vm4567_vm15 }
 0x203   : > { %8150 = vmatmul.msk.bf16.gmra.mxu3 %vm435_vm1, %v2525_v60  ;;  %v2501_v60 = vunpack.c.l.b16 %v2435_v42  ;;  %v2844_v19 = vpack.c.b16 %v2820_v57, %v2819_v11  ;;  %v3672_v39 = vld [vmem:[#allocation2] sm:$0xf]  ;;  %v2120_v57 = vpack.c.bf16 %v8079_v40, %v8079_v40 }
 0x204   : > { %12104 = vst [vmem:[#allocation18_spill] sm:$0xff] %v9441_v43  ;;  %v2208_v20 = vpack.c.b16 %v2184_v2, %v2183_v16  ;;  %v3673_v16 = vld [vmem:[#allocation2 + $0x4] sm:$0xf]  ;;  %v3725_v11 = vshrl.u32 %v3672_v39, 16  ;;  %v8128_v2 = vld [vmem:[%s8904_s25 + $0xf9] sm:$0xff] }
 0x205   : > { %v1073_v33 = vpop.f32.mrf.mxu2  ;;  %v2526_v22 = vpack.c.b16 %v2502_v6, %v2501_v60  ;;  %v3728_v60 = vshll.u32 %v3672_v39, 16  ;;  %v3734_v6 = vshll.u32 %v3673_v16, 16  ;;  %v2438_v40 = vpack.c.bf16 %v8128_v2, %v8128_v2 }
 0x206   : > { %v1392_v41 = vpop.f32.mrf.mxu3  ;;  %v1111_v28 = vadd.f32 %v1073_v33, %v9174_v63  ;;  %v1712_v37 = vpop.f32.mrf.mxu0  ;;  %v2185_v39 = vunpack.c.l.b16 %v2119_v49  ;;  %v2186_v43 = vunpack.c.l.b16 %v2120_v57 }
 0x208   : > { %v1430_v31 = vadd.f32 %v1392_v41, %v1111_v28  ;;  %v8176_v28 = vld [vmem:[%s8904_s25 + $0xf2] sm:$0xff] }
 0x209   : > { %v9463_v41 = vpop.f32.mrf.mxu1 }
 0x20a   : > { %v1748_v12 = vadd.f32 %v1710_v55, %v1430_v31  ;;  %12108 = vst [vmem:[#allocation20_spill] sm:$0xff] %v9463_v41  ;;  %v8177_v31 = vld [vmem:[%s8904_s25 + $0xfa] sm:$0xff] }
 0x20c   : > { %v9452_v63 = vadd.f32 %v2028_v17, %v1748_v12  ;;  %v3106_v17 = vld [vmem:[#allocation2 + $0xc] sm:$0x1]  ;;  %v8127_v12 = vld [vmem:[%s8904_s25 + $0xf1] sm:$0xff] }
 0x20d   : > { %v1075_v44 = vpop.f32.mrf.mxu2  ;;  %v3107_v54 = vsel %vm9458_vm5, 0, %v3106_v17  ;;  %v3705_v17 = vld [vmem:[#allocation2 + $0x8] sm:$0x1]  ;;  %v2437_v41 = vpack.c.bf16 %v8127_v12, %v8127_v12 }
 0x20e   : > { %12105 = vst [vmem:[#allocation19_spill] sm:$0xff] %v9452_v63  ;;  %v1394_v34 = vpop.f32.mrf.mxu3  ;;  %v1112_v55 = vadd.f32 %v1075_v44, %v9178_v15  ;;  %v1715_v4 = vpop.f32.mrf.mxu0  ;;  %v3738_v44 = vshrl.u32 %v3673_v16, 16  ;;  %v3744_v63 = vshll.u32 %v3705_v17, 16 }
 0x20f   : > { %3108 = vst [vmem:[#allocation2 + $0xc] sm:$0x1] %v3107_v54 }
 0x210   : > { %v1431_v15 = vadd.f32 %v1394_v34, %v1112_v55  ;;  %v2755_v34 = vpack.c.bf16 %v8176_v28, %v8176_v28  ;;  %v3740_v54 = vrot.slane %v3738_v44, 4  ;;  %v3746_v17 = vrot.slane %v3744_v63, 5 }
 0x211   : > { %8200 = vmatmul.msk.bf16.gmra.mxu0 %vm435_vm1, %v2844_v19  ;;  %v3727_v19 = vrot.slane %v3725_v11, 4  ;;  %v2209_v63 = vpack.c.b16 %v2186_v43, %v2185_v39  ;;  %v8129_v43 = vld [vmem:[%s8904_s25 + $0x109] sm:$0xff] }
 0x212   : > { %8102 = vmatmul.msk.bf16.gmra.mxu2 %vm435_vm1, %v2208_v20  ;;  %v9475_v42 = vadd.f32 %v1712_v37, %v1431_v15  ;;  %v2756_v20 = vpack.c.bf16 %v8177_v31, %v8177_v31  ;;  %v3736_v37 = vrot.slane %v3734_v6, 5  ;;  %v2821_v12 = vunpack.c.l.b16 %v2755_v34  ;;  %v8178_v39 = vld [vmem:[%s8904_s25 + $0x10a] sm:$0xff] }
 0x213   : > { %8151 = vmatmul.msk.bf16.gmra.mxu3 %vm435_vm1, %v2526_v22  ;;  %v3730_v22 = vrot.slane %v3728_v60, 5 }
 0x214   : > { %12109 = vst [vmem:[#allocation21_spill] sm:$0xff] %v9475_v42  ;;  %v3156_v42 = vld [vmem:[#allocation2 + $0x14] sm:$0x1]  ;;  %v3741_v16 = vor.u32 %v3740_v54, %v3736_v37  ;;  %v2822_v2 = vunpack.c.l.b16 %v2756_v20 }
 0x215   : > { %v1078_v5 = vpop.f32.mrf.mxu2  ;;  %v3731_v31 = vor.u32 %v3730_v22, %v3727_v19  ;;  %v3157_v60 = vsel %vm9483_vm7, 0, %v3156_v42  ;;  %v2504_v19 = vunpack.c.l.b16 %v2438_v40  ;;  %v3109_v40 = vld [vmem:[#allocation2 + $0x18] sm:$0x1] }
 0x216   : > { %v1397_v55 = vpop.f32.mrf.mxu3  ;;  %v1113_v56 = vadd.f32 %v1078_v5, %v9192_v45  ;;  %v1717_v15 = vpop.f32.mrf.mxu0  ;;  %3158 = vst [vmem:[#allocation2 + $0x14] sm:$0x1] %v3157_v60  ;;  %v3742_v6 = vrot.slane %v3741_v16, 4  ;;  %v2503_v5 = vunpack.c.l.b16 %v2437_v41  ;;  %v3110_v60 = vsel %vm9458_vm5, 0, %v3109_v40 }
 0x217   : > { %v2033_v45 = vpop.f32.mrf.mxu1  ;;  %v3732_v57 = vrot.slane %v3731_v31, 4  ;;  %3111 = vst [vmem:[#allocation2 + $0x18] sm:$0x1] %v3110_v60  ;;  %v8322_v60 = vld [vmem:[%s12085_s3 + $0x4] sm:$0x3] }
 0x218   : > { %v1432_v11 = vadd.f32 %v1397_v55, %v1113_v56  ;;  %v3747_v34 = vsel %vm9489_vm10, %v3742_v6, %v3746_v17  ;;  %v2845_v56 = vpack.c.b16 %v2822_v2, %v2821_v12  ;;  %v8081_v12 = vld [vmem:[%s8904_s25 + $0x110] sm:$0xff]  ;;  %v2439_v17 = vpack.c.bf16 %v8129_v43, %v8129_v43 }
 0x219   : > { %v3737_v55 = vsel %vm9489_vm10, %v3732_v57, %v3736_v37  ;;  %v4111_v31 = vunpack.c.l.b16 %v3747_v34  ;;  %v2527_v37 = vpack.c.b16 %v2504_v19, %v2503_v5  ;;  %v8179_v2 = vld [vmem:[%s8904_s25 + $0x112] sm:$0xff]  ;;  %v2122_v19 = vpack.c.bf16 %v8081_v12, %v8081_v12 }
 0x21a   : > { %v1750_v44 = vadd.f32 %v1715_v4, %v1432_v11  ;;  %v4110_v20 = vunpack.c.l.b16 %v3737_v55  ;;  %v8130_v57 = vld [vmem:[%s8904_s25 + $0x111] sm:$0xff]  ;;  %v2757_v55 = vpack.c.bf16 %v8178_v39, %v8178_v39  ;;  %v2758_v34 = vpack.c.bf16 %v8179_v2, %v8179_v2 }
 0x21b   : > { %v2505_v40 = vunpack.c.l.b16 %v2439_v17  ;;  %v4780_v39 = vsel %vm484_vm0, %v8322_v60, 0  ;;  %v8180_v60 = vld [vmem:[%s8904_s25 + $0x122] sm:$0xff] }
 0x21c   : > { %v9495_v42 = vadd.f32 %v2033_v45, %v1750_v44  ;;  %v4142_v16 = vpack.c.b16 %v4111_v31, %v4110_v20  ;;  %v8080_v45 = vld [vmem:[%s8904_s25 + $0x108] sm:$0xff]  ;;  %4789 = vmatpush.bf16.msrb.mxu3 %v4780_v39  ;;  %v2759_v39 = vpack.c.bf16 %v8180_v60, %v8180_v60  ;;  %v8085_v60 = vld [vmem:[%s8904_s25 + $0x140] sm:$0xff] }
 0x21d   : > { %v1080_v22 = vpop.f32.mrf.mxu2  ;;  %v2121_v6 = vpack.c.bf16 %v8080_v45, %v8080_v45 }
 0x21e   : > { %12114 = vst [vmem:[#allocation22_spill] sm:$0xff] %v9495_v42  ;;  %v1399_v54 = vpop.f32.mrf.mxu3  ;;  %v1114_v4 = vadd.f32 %v1080_v22, %v9196_v10  ;;  %v2913_v41 = vpop.f32.mrf.mxu0  ;;  %8210 = vmatmul.msk.bf16.vlgmr.msra.gmra.mxu1 %vm435_vm1, %v4142_v16  ;;  %v2823_v16 = vunpack.c.l.b16 %v2757_v55 }
 0x220   : > { %v1433_v11 = vadd.f32 %v1399_v54, %v1114_v4  ;;  %v2440_v54 = vpack.c.bf16 %v8130_v57, %v8130_v57  ;;  %v2187_v4 = vunpack.c.l.b16 %v2121_v6 }
 0x221   : > { %8201 = vmatmul.msk.bf16.gmra.mxu0 %vm435_vm1, %v2845_v56  ;;  %v3159_v56 = vld [vmem:[#allocation2 + $0x20] sm:$0x1] }
 0x222   : > { %8103 = vmatmul.msk.bf16.gmra.mxu2 %vm435_vm1, %v2209_v63  ;;  %v9508_v10 = vadd.f32 %v1717_v15, %v1433_v11  ;;  %v9518_v15 = vld [vmem:[%s12084_s2] ss:$0 sm:$0xff]  ;;  %v3160_v63 = vsel %vm9483_vm7, 0, %v3159_v56  ;;  %v2824_v11 = vunpack.c.l.b16 %v2758_v34  ;;  %v2506_v12 = vunpack.c.l.b16 %v2440_v54  ;;  %v8131_v54 = vld [vmem:[%s8904_s25 + $0x121] sm:$0xff] }
 0x223   : > { %8152 = vmatmul.msk.bf16.gmra.mxu3 %vm435_vm1, %v2527_v37  ;;  %v2188_v37 = vunpack.c.l.b16 %v2122_v19  ;;  %3161 = vst [vmem:[#allocation2 + $0x20] sm:$0x1] %v3160_v63  ;;  %v8082_v34 = vld [vmem:[%s8904_s25 + $0x120] sm:$0xff] }
 0x224   : > { %12115 = vst [vmem:[#allocation23_spill] sm:$0xff] %v9508_v10  ;;  %v2528_v55 = vpack.c.b16 %v2506_v12, %v2505_v40  ;;  %v3112_v56 = vld [vmem:[#allocation2 + $0x24] sm:$0x1]  ;;  %v8339_v40 = vld [vmem:[%s12085_s3 + $0x6] sm:$0x3] }
 0x225   : > { %v2277_v44 = vpop.f32.mrf.mxu2  ;;  %v2210_v17 = vpack.c.b16 %v2188_v37, %v2187_v4  ;;  %v2441_v37 = vpack.c.bf16 %v8131_v54, %v8131_v54  ;;  %v3115_v10 = vld [vmem:[#allocation2 + $0x30] sm:$0x1] }
 0x226   : > { %v2595_v5 = vpop.f32.mrf.mxu3  ;;  %v2357_v20 = vadd.f32 %v2277_v44, %v9213_v24  ;;  %v2915_v22 = vpop.f32.mrf.mxu0  ;;  %v3704_v24 = vld [vmem:[%s12085_s3] sm:$0x3]  ;;  %v2846_v44 = vpack.c.b16 %v2824_v11, %v2823_v16  ;;  %v2123_v16 = vpack.c.bf16 %v8082_v34, %v8082_v34 }
 0x227   : > { %v4427_v43 = vsel %vm484_vm0, %v3704_v24, 0  ;;  %v8132_v24 = vld [vmem:[%s8904_s25 + $0x129] sm:$0xff] }
 0x228   : > { %v2675_v31 = vadd.f32 %v2595_v5, %v2357_v20  ;;  %4436 = vmatpush.bf16.msrb.mxu2 %v4427_v43  ;;  %v8083_v20 = vld [vmem:[%s8904_s25 + $0x128] sm:$0xff]  ;;  %v3113_v43 = vsel %vm9458_vm5, 0, %v3112_v56  ;;  %v2442_v12 = vpack.c.bf16 %v8132_v24, %v8132_v24  ;;  %v9558_v34 = vunpack.c.l.b16 %v2123_v16  ;;  %v8084_v24 = vld [vmem:[%s8904_s25 + $0x138] sm:$0xff] }
 0x229   : > { %3114 = vst [vmem:[#allocation2 + $0x24] sm:$0x1] %v3113_v43  ;;  %v2124_v4 = vpack.c.bf16 %v8083_v20, %v8083_v20  ;;  %v2825_v16 = vunpack.c.l.b16 %v2759_v39  ;;  %v8420_v39 = vld [vmem:[%s12085_s3 + $0x8] sm:$0x3] }
 0x22a   : > { %v2993_v45 = vadd.f32 %v2913_v41, %v2675_v31  ;;  %v9570_v43 = vunpack.c.l.b16 %v2442_v12  ;;  %v9584_v12 = vadd.f32 %v9295_v27, %v9303_v50 }
 0x22c   : > { %v3029_v2 = vadd.f32 %v9518_v15, %v2993_v45  ;;  %v8181_v45 = vld [vmem:[%s8904_s25 + $0x12a] sm:$0xff] }
 0x22d   : > { %v2279_v57 = vpop.f32.mrf.mxu2 }
 0x22e   : > { %v2597_v6 = vpop.f32.mrf.mxu3  ;;  %v3061_v5 = vmax.f32 %v3029_v2, 0.0  ;;  %v2358_v41 = vadd.f32 %v2279_v57, %v9223_v23  ;;  %v9532_v19 = vpop.f32.mrf.mxu0  ;;  %v2760_v2 = vpack.c.bf16 %v8181_v45, %v8181_v45  ;;  %v5066_v57 = vsel %vm484_vm0, %v8339_v40, 0 }
 0x22f   : > { %5075 = vmatpush.bf16.msrb.mxu0 %v5066_v57  ;;  %v9568_v45 = vunpack.c.l.b16 %v2441_v37  ;;  %v9580_v37 = vadd.f32 %v9277_v59, %v9285_v3  ;;  %v5720_v59 = vsel %vm484_vm0, %v8420_v39, 0  ;;  %v8183_v3 = vld [vmem:[%s8904_s25 + $0x142] sm:$0xff] }
 0x230   : > { %v3204_v31 = vpack.c.bf16 %v3061_v5, %v3061_v5  ;;  %v2676_v63 = vadd.f32 %v2597_v6, %v2358_v41  ;;  %v3560_v41 = vld [vmem:[#allocation2 + $0xc] sm:$0xf]  ;;  %5729 = vmatpush.bf16.msrb.mxu1 %v5720_v59  ;;  %v8584_v5 = vld [vmem:[%s12085_s3 + $0x10] sm:$0x3] }
 0x231   : > { %8202 = vmatmul.msk.bf16.gmra.mxu0 %vm435_vm1, %v2846_v44  ;;  %v2529_v27 = vpack.c.b16 %v9570_v43, %v9568_v45  ;;  %v3564_v45 = vld [vmem:[#allocation2 + $0x14] sm:$0x1] }
 0x232   : > { %v3239_v23 = vshrl.u32 %v3204_v31, 16  ;;  %v2994_v11 = vadd.f32 %v2915_v22, %v2676_v63  ;;  %8104 = vmatmul.msk.bf16.gmra.mxu2 %vm435_vm1, %v2210_v17  ;;  %v3242_v22 = vshll.u32 %v3204_v31, 16  ;;  %v9564_v63 = vunpack.c.l.b16 %v2124_v4  ;;  %v8133_v4 = vld [vmem:[%s8904_s25 + $0x139] sm:$0xff] }
 0x233   : > { %8153 = vmatmul.msk.bf16.gmra.mxu3 %vm435_vm1, %v2528_v55 }
 0x234   : > { %v9549_v6 = vrot.slane %v3239_v23, 7  ;;  %v3030_v44 = vadd.f32 %v9518_v15, %v2994_v11  ;;  %v2826_v23 = vunpack.c.l.b16 %v2760_v2  ;;  %v3162_v11 = vld [vmem:[#allocation2 + $0x2c] sm:$0x1]  ;;  %v2125_v2 = vpack.c.bf16 %v8084_v24, %v8084_v24 }
 0x235   : > { %v2282_v17 = vpop.f32.mrf.mxu2 }
 0x236   : > { %v2600_v55 = vpop.f32.mrf.mxu3  ;;  %v3244_v20 = vor.u32 %v3242_v22, %v9549_v6  ;;  %v3062_v54 = vmax.f32 %v3030_v44, 0.0  ;;  %v2359_v56 = vadd.f32 %v2282_v17, %v9229_v13  ;;  %v9562_v31 = vpop.f32.mrf.mxu0  ;;  %v3163_v13 = vsel %vm9483_vm7, 0, %v3162_v11  ;;  %v8134_v44 = vld [vmem:[%s8904_s25 + $0x141] sm:$0xff] }
 0x237   : > { %v8182_v17 = vld [vmem:[%s8904_s25 + $0x13a] sm:$0xff]  ;;  %3164 = vst [vmem:[#allocation2 + $0x2c] sm:$0x1] %v3163_v13  ;;  %v2847_v50 = vpack.c.b16 %v2826_v23, %v2825_v16  ;;  %v2444_v11 = vpack.c.bf16 %v8134_v44, %v8134_v44  ;;  %v9605_v23 = vunpack.c.l.b16 %v2125_v2 }
 0x238   : > { %v3561_v40 = vsel %vm9554_vm11, %v3244_v20, %v3560_v41  ;;  %v3205_v57 = vpack.c.bf16 %v3062_v54, %v3062_v54  ;;  %v2677_v22 = vadd.f32 %v2600_v55, %v2359_v56  ;;  %v2126_v41 = vpack.c.bf16 %v8085_v60, %v8085_v60 }
 0x239   : > { %3562 = vst [vmem:[#allocation2 + $0xc] sm:$0xf] %v3561_v40  ;;  %v2211_v54 = vpack.c.b16 %v9564_v63, %v9558_v34  ;;  %v2443_v56 = vpack.c.bf16 %v8133_v4, %v8133_v4  ;;  %v3245_v34 = vrot.slane %v9549_v6, 4  ;;  %v9616_v59 = vunpack.c.l.b16 %v2444_v11 }
 0x23a   : > { %v3247_v55 = vshrl.u32 %v3205_v57, 16  ;;  %v2995_v20 = vadd.f32 %v9532_v19, %v2677_v22  ;;  %v3250_v60 = vshll.u32 %v3205_v57, 16  ;;  %v2761_v19 = vpack.c.bf16 %v8182_v17, %v8182_v17  ;;  %v8086_v17 = vld [vmem:[%s8904_s25 + $0x150] sm:$0xff] }
 0x23b   : > { %v9607_v57 = vunpack.c.l.b16 %v2126_v41  ;;  %v2762_v22 = vpack.c.bf16 %v8183_v3, %v8183_v3  ;;  %v2127_v2 = vpack.c.bf16 %v8086_v17, %v8086_v17  ;;  %v8135_v41 = vld [vmem:[%s8904_s25 + $0x151] sm:$0xff] }
 0x23c   : > { %v3249_v24 = vrot.slane %v3247_v55, 7  ;;  %v3031_v40 = vadd.f32 %v9518_v15, %v2995_v20  ;;  %v8087_v55 = vld [vmem:[%s8904_s25 + $0x158] sm:$0xff]  ;;  %v9614_v20 = vunpack.c.l.b16 %v2443_v56  ;;  %v9625_v56 = vunpack.c.l.b16 %v2761_v19 }
 0x23d   : > { %v2284_v43 = vpop.f32.mrf.mxu2  ;;  %v2128_v42 = vpack.c.bf16 %v8087_v55, %v8087_v55  ;;  %v9627_v11 = vunpack.c.l.b16 %v2762_v22  ;;  %v8185_v19 = vld [vmem:[%s8904_s25 + $0x15a] sm:$0xff]  ;;  %v9637_v17 = vunpack.c.l.b16 %v2127_v2 }
 0x23e   : > { %v2602_v16 = vpop.f32.mrf.mxu3  ;;  %v3252_v13 = vor.u32 %v3250_v60, %v3249_v24  ;;  %v3254_v4 = vrot.slane %v3249_v24, 4  ;;  %v3063_v44 = vmax.f32 %v3031_v40, 0.0  ;;  %v2360_v6 = vadd.f32 %v2284_v43, %v9239_v51  ;;  %v9610_v39 = vpop.f32.mrf.mxu0 }
 0x23f   : > { %v3116_v43 = vsel %vm9458_vm5, 0, %v3115_v10  ;;  %v9639_v10 = vunpack.c.l.b16 %v2128_v42 }
 0x240   : > { %v3253_v3 = vsel %vm9601_vm13, %v3245_v34, %v3252_v13  ;;  %v3565_v24 = vsel %vm9458_vm5, %v3254_v4, %v3564_v45  ;;  %v3206_v51 = vpack.c.bf16 %v3063_v44, %v3063_v44  ;;  %v2678_v60 = vadd.f32 %v2602_v16, %v2360_v6  ;;  %v3674_v40 = vld [vmem:[#allocation2 + $0xc] sm:$0xf]  ;;  %v8136_v13 = vld [vmem:[%s8904_s25 + $0x159] sm:$0xff]  ;;  %3117 = vst [vmem:[#allocation2 + $0x30] sm:$0x1] %v3116_v43 }
 0x241   : > { %3563 = vst.msk [vmem:[#allocation2 + $0x10] sm:$0xf] %vm3093_vm2, %v3253_v3  ;;  %8203 = vmatmul.msk.bf16.gmra.mxu0 %vm435_vm1, %v2847_v50  ;;  %v3749_v34 = vshrl.u32 %v3674_v40, 16  ;;  %v3752_v4 = vshll.u32 %v3674_v40, 16  ;;  %v2445_v44 = vpack.c.bf16 %v8135_v41, %v8135_v41  ;;  %v8184_v50 = vld [vmem:[%s8904_s25 + $0x152] sm:$0xff]  ;;  %v2764_v40 = vpack.c.bf16 %v8185_v19, %v8185_v19 }
 0x242   : > { %3566 = vst [vmem:[#allocation2 + $0x14] sm:$0x1] %v3565_v24  ;;  %v3256_v45 = vshrl.u32 %v3206_v51, 16  ;;  %v2996_v16 = vadd.f32 %v9562_v31, %v2678_v60  ;;  %8105 = vmatmul.msk.bf16.gmra.mxu2 %vm435_vm1, %v2211_v54  ;;  %v3259_v6 = vshll.u32 %v3206_v51, 16  ;;  %v2446_v24 = vpack.c.bf16 %v8136_v13, %v8136_v13 }
 0x243   : > { %8154 = vmatmul.msk.bf16.gmra.mxu3 %vm435_vm1, %v2529_v27  ;;  %v3751_v22 = vrot.slane %v3749_v34, 4  ;;  %v3754_v31 = vrot.slane %v3752_v4, 5  ;;  %v9646_v54 = vadd.f32 %v9313_v52, %v9321_v18  ;;  %v3567_v27 = vld [vmem:[#allocation2 + $0x18] sm:$0xf]  ;;  %v2763_v2 = vpack.c.bf16 %v8184_v50, %v8184_v50  ;;  %v9656_v52 = vld [vmem:[#allocation2 + $0xc] sm:$0xe] }
 0x244   : > { %v9641_v55 = vrot.slane %v3256_v45, 7  ;;  %v3032_v3 = vadd.f32 %v9518_v15, %v2996_v16  ;;  %v2848_v18 = vpack.c.b16 %v9627_v11, %v9625_v56  ;;  %v9662_v50 = vunpack.c.l.b16 %v2445_v44  ;;  %v3571_v44 = vld [vmem:[#allocation2 + $0x20] sm:$0x1] }
 0x245   : > { %v2287_v41 = vpop.f32.mrf.mxu2  ;;  %v3755_v16 = vor.u32 %v3754_v31, %v3751_v22  ;;  %v9673_v11 = vunpack.c.l.b16 %v2763_v2  ;;  %v9675_v22 = vunpack.c.l.b16 %v2764_v40  ;;  %v3165_v2 = vld [vmem:[#allocation2 + $0x38] sm:$0x1] }
 0x246   : > { %v2605_v60 = vpop.f32.mrf.mxu3  ;;  %v3261_v42 = vor.u32 %v3259_v6, %v9641_v55  ;;  %v3064_v43 = vmax.f32 %v3032_v3, 0.0  ;;  %v2361_v34 = vadd.f32 %v2287_v41, %v9245_v30  ;;  %v9652_v45 = vpop.f32.mrf.mxu0  ;;  %v9668_v41 = vunpack.c.l.b16 %v2446_v24 }
 0x247   : > { %v3262_v31 = vrot.slane %v9641_v55, 4  ;;  %v3166_v55 = vsel %vm9483_vm7, 0, %v3165_v2 }
 0x248   : > { %v3568_v19 = vsel %vm9554_vm11, %v3261_v42, %v3567_v27  ;;  %v3207_v30 = vpack.c.bf16 %v3064_v43, %v3064_v43  ;;  %v2679_v6 = vadd.f32 %v2605_v60, %v2361_v34  ;;  %v9666_v3 = vld [vmem:[#allocation2 + $0x10] sm:$0xf]  ;;  %v3756_v43 = vrot.slane %v3755_v16, 4  ;;  %3167 = vst [vmem:[#allocation2 + $0x38] sm:$0x1] %v3166_v55 }
 0x249   : > { %3569 = vst [vmem:[#allocation2 + $0x18] sm:$0xf] %v3568_v19  ;;  %v9670_v13 = vld [vmem:[#allocation2 + $0x14] sm:$0x1]  ;;  %v3758_v56 = vshll.u32 %v9666_v3, 16  ;;  %v3762_v24 = vshrl.u32 %v9666_v3, 16 }
 0x24a   : > { %v3264_v27 = vshrl.u32 %v3207_v30, 16  ;;  %v2997_v60 = vadd.f32 %v9610_v39, %v2679_v6  ;;  %v3267_v42 = vshll.u32 %v3207_v30, 16  ;;  %v3768_v19 = vshll.u32 %v9670_v13, 16 }
 0x24b   : > { %v3760_v34 = vrot.slane %v3758_v56, 5  ;;  %v3764_v51 = vrot.slane %v3762_v24, 4  ;;  %v4578_v56 = vrot.slane %v9666_v3, 5  ;;  %v4581_v16 = vrot.slane %v9670_v13, 5 }
 0x24c   : > { %v3266_v4 = vrot.slane %v3264_v27, 7  ;;  %v3033_v40 = vadd.f32 %v9518_v15, %v2997_v60  ;;  %v3770_v35 = vrot.slane %v3768_v19, 5 }
 0x24d   : > { %v2289_v9 = vpop.f32.mrf.mxu2  ;;  %v3761_v30 = vsel %vm9489_vm10, %v3756_v43, %v3760_v34  ;;  %v8089_v43 = vld [vmem:[%s8904_s25 + $0x170] sm:$0xff]  ;;  %v3765_v55 = vor.u32 %v3764_v51, %v3760_v34  ;;  %v3118_v51 = vld [vmem:[#allocation2 + $0x3c] sm:$0x1] }
 0x24e   : > { %v2607_v39 = vpop.f32.mrf.mxu3  ;;  %v3269_v27 = vor.u32 %v3267_v42, %v3266_v4  ;;  %v3271_v60 = vrot.slane %v3266_v4, 4  ;;  %v3065_v24 = vmax.f32 %v3033_v40, 0.0  ;;  %v2362_v2 = vadd.f32 %v2289_v9, %v9255_v58  ;;  %v9693_v32 = vpop.f32.mrf.mxu0  ;;  %v8138_v58 = vld [vmem:[%s8904_s25 + $0x171] sm:$0xff] }
 0x24f   : > { %v3766_v48 = vrot.slane %v3765_v55, 4  ;;  %v4112_v9 = vunpack.c.l.b16 %v3761_v30  ;;  %v2130_v19 = vpack.c.bf16 %v8089_v43, %v8089_v43  ;;  %v9717_v30 = vunpack.c.l.b16 %v2129_v21  ;;  %v3574_v55 = vld [vmem:[#allocation2 + $0x24] sm:$0xf] }
 0x250   : > { %v3270_v6 = vsel %vm9601_vm13, %v3262_v31, %v3269_v27  ;;  %v3572_v3 = vsel %vm9458_vm5, %v3271_v60, %v3571_v44  ;;  %v3208_v4 = vpack.c.bf16 %v3065_v24, %v3065_v24  ;;  %v2680_v42 = vadd.f32 %v2607_v39, %v2362_v2  ;;  %v3676_v40 = vld [vmem:[#allocation2 + $0x18] sm:$0xf] }
 0x251   : > { %3570 = vst.msk [vmem:[#allocation2 + $0x1c] sm:$0xf] %vm3093_vm2, %v3270_v6  ;;  %8204 = vmatmul.msk.bf16.gmra.mxu0 %vm435_vm1, %v2848_v18  ;;  %v3773_v34 = vshrl.u32 %v3676_v40, 16  ;;  %v12120_v39 = vpack.c.b16 %v9607_v57, %v9605_v23  ;;  %v12121_v27 = vpack.c.b16 %v9616_v59, %v9614_v20  ;;  %v3119_v18 = vsel %vm9458_vm5, 0, %v3118_v51  ;;  %v8186_v6 = vld [vmem:[%s8904_s25 + $0x16a] sm:$0xff]  ;;  %v8187_v60 = vld [vmem:[%s8904_s25 + $0x172] sm:$0xff] }
 0x252   : > { %3573 = vst [vmem:[#allocation2 + $0x20] sm:$0x1] %v3572_v3  ;;  %v3273_v31 = vshrl.u32 %v3208_v4, 16  ;;  %v2998_v44 = vadd.f32 %v9652_v45, %v2680_v42  ;;  %v3276_v24 = vshll.u32 %v3208_v4, 16  ;;  %v3771_v45 = vsel %vm9489_vm10, %v3766_v48, %v3770_v35 }
 0x253   : > { %8106 = vmatmul.msk.bf16.gmra.mxu2 %vm435_vm1, %v12120_v39  ;;  %8155 = vmatmul.msk.bf16.gmra.mxu3 %vm435_vm1, %v12121_v27  ;;  %3120 = vst [vmem:[#allocation2 + $0x3c] sm:$0x1] %v3119_v18  ;;  %v3775_v23 = vrot.slane %v3773_v34, 4  ;;  %v3776_v57 = vshll.u32 %v3676_v40, 16  ;;  %v4113_v59 = vunpack.c.l.b16 %v3771_v45  ;;  %v2447_v43 = vpack.c.bf16 %v8137_v53, %v8137_v53 }
 0x254   : > { %v9723_v2 = vrot.slane %v3273_v31, 7  ;;  %v3034_v20 = vadd.f32 %v9518_v15, %v2998_v44  ;;  %v12122_v21 = vmov 0  ;;  %v2448_v35 = vpack.c.bf16 %v8138_v58, %v8138_v58 }
 0x255   : > { %v12123_v21 = vsel %vm9728_vm3, 4294967295, %v12122_v21  ;;  %v2292_v3 = vpop.f32.mrf.mxu2  ;;  %v3778_v42 = vrot.slane %v3776_v57, 5  ;;  %v2765_v48 = vpack.c.bf16 %v8186_v6, %v8186_v6  ;;  %v2766_v51 = vpack.c.bf16 %v8187_v60, %v8187_v60 }
 0x256   : > { %12124 = vst [vmem:[#allocation24_spill] sm:$0xff] %v12123_v21  ;;  %v2610_v4 = vpop.f32.mrf.mxu3  ;;  %v3278_v40 = vor.u32 %v3276_v24, %v9723_v2  ;;  %v3066_v34 = vmax.f32 %v3034_v20, 0.0  ;;  %v2363_v31 = vadd.f32 %v2292_v3, %v9261_v1  ;;  %v9734_v44 = vpop.f32.mrf.mxu0  ;;  %v9736_v53 = vunpack.c.l.b16 %v2130_v19 }
 0x257   : > { %v4143_v39 = vpack.c.b16 %v4113_v59, %v4112_v9  ;;  %v3779_v27 = vor.u32 %v3778_v42, %v3775_v23  ;;  %v12125_v18 = vrot.slane %v9656_v52, 9  ;;  %v4580_v58 = vrot.slane %v4578_v56, 4 }
 0x258   : > { %v3575_v6 = vsel %vm9554_vm11, %v3278_v40, %v3574_v55  ;;  %v3209_v60 = vpack.c.bf16 %v3066_v34, %v3066_v34  ;;  %v2681_v24 = vadd.f32 %v2610_v4, %v2363_v31  ;;  %v9746_v57 = vld [vmem:[#allocation2 + $0x1c] sm:$0xf]  ;;  %v9748_v1 = vunpack.c.l.b16 %v2447_v43  ;;  %v3168_v40 = vld [vmem:[#allocation2 + $0x44] sm:$0x1] }
 0x259   : > { %v9742_v45 = vsel %vm9728_vm3, %v12125_v18, %v4578_v56  ;;  %3576 = vst [vmem:[#allocation2 + $0x24] sm:$0xf] %v3575_v6  ;;  %8211 = vmatmul.msk.bf16.gmra.mxu1 %vm435_vm1, %v4143_v39  ;;  %v9751_v9 = vld [vmem:[#allocation2 + $0x20] sm:$0x1]  ;;  %v3782_v52 = vshll.u32 %v9746_v57, 16  ;;  %v9754_v19 = vunpack.c.l.b16 %v2448_v35  ;;  %v9756_v23 = vunpack.c.l.b16 %v2765_v48 }
 0x25a   : > { %v9758_v56 = vunpack.c.l.b16 %v2766_v51  ;;  %v3281_v20 = vshrl.u32 %v3209_v60, 16  ;;  %v2999_v59 = vadd.f32 %v9693_v32, %v2681_v24  ;;  %v3786_v55 = vshrl.u32 %v9746_v57, 16  ;;  %v3578_v39 = vld [vmem:[#allocation2 + $0x2c] sm:$0x1] }
 0x25b   : > { %v3284_v3 = vshll.u32 %v3209_v60, 16  ;;  %v3784_v4 = vrot.slane %v3782_v52, 5  ;;  %v3792_v42 = vshll.u32 %v9751_v9, 16  ;;  %v9769_v35 = vsel %vm9728_vm3, %v4580_v58, %v4581_v16 }
 0x25c   : > { %v3283_v48 = vrot.slane %v3281_v20, 7  ;;  %v3035_v51 = vadd.f32 %v9518_v15, %v2999_v59  ;;  %v3788_v32 = vrot.slane %v3786_v55, 4  ;;  %v3169_v34 = vsel %vm9483_vm7, 0, %v3168_v40  ;;  %v8090_v55 = vld [vmem:[%s8904_s25 + $0x180] sm:$0xff] }
 0x25d   : > { %v3279_v31 = vrot.slane %v9723_v2, 4  ;;  %v2294_v18 = vpop.f32.mrf.mxu2  ;;  %v3780_v60 = vrot.slane %v3779_v27, 4  ;;  %3170 = vst [vmem:[#allocation2 + $0x44] sm:$0x1] %v3169_v34  ;;  %v8091_v2 = vld [vmem:[%s8904_s25 + $0x188] sm:$0xff]  ;;  %v3794_v43 = vrot.slane %v3792_v42, 5  ;;  %v2131_v7 = vpack.c.bf16 %v8090_v55, %v8090_v55 }
 0x25e   : > { %v2612_v6 = vpop.f32.mrf.mxu3  ;;  %v3286_v58 = vor.u32 %v3284_v3, %v3283_v48  ;;  %v3288_v24 = vrot.slane %v3283_v48, 4  ;;  %v3067_v52 = vmax.f32 %v3035_v51, 0.0  ;;  %v2364_v20 = vadd.f32 %v2294_v18, %v9271_v0  ;;  %v9780_v59 = vpop.f32.mrf.mxu0 }
 0x25f   : > { %v3789_v40 = vor.u32 %v3788_v32, %v3784_v4  ;;  %v2132_v27 = vpack.c.bf16 %v8091_v2, %v8091_v2  ;;  %v12126_v0 = vpack.c.b16 %v9675_v22, %v9673_v11  ;;  %v3785_v42 = vsel %vm9489_vm10, %v3780_v60, %v3784_v4  ;;  %v3121_v32 = vld [vmem:[#allocation2 + $0x48] sm:$0x1]  ;;  %v8140_v60 = vld [vmem:[%s8904_s25 + $0x189] sm:$0xff] }
 0x260   : > { %v3287_v34 = vsel %vm9601_vm13, %v3279_v31, %v3286_v58  ;;  %v3579_v13 = vsel %vm9458_vm5, %v3288_v24, %v3578_v39  ;;  %v3210_v16 = vpack.c.bf16 %v3067_v52, %v3067_v52  ;;  %v2682_v3 = vadd.f32 %v2612_v6, %v2364_v20  ;;  %v3678_v48 = vld [vmem:[#allocation2 + $0x24] sm:$0xf] }
 0x261   : > { %3577 = vst.msk [vmem:[#allocation2 + $0x28] sm:$0xf] %vm3093_vm2, %v3287_v34  ;;  %8205 = vmatmul.msk.bf16.gmra.mxu0 %vm435_vm1, %v12126_v0  ;;  %v3790_v51 = vrot.slane %v3789_v40, 4  ;;  %v3797_v31 = vshrl.u32 %v3678_v48, 16  ;;  %v4685_v39 = vunpack.c.l.b16 %v9742_v45  ;;  %v12127_v58 = vpack.c.b16 %v9639_v10, %v9637_v17  ;;  %v8139_v45 = vld [vmem:[%s8904_s25 + $0x181] sm:$0xff]  ;;  %v8189_v0 = vld [vmem:[%s8904_s25 + $0x18a] sm:$0xff] }
 0x262   : > { %3580 = vst [vmem:[#allocation2 + $0x2c] sm:$0x1] %v3579_v13  ;;  %v3290_v18 = vshrl.u32 %v3210_v16, 16  ;;  %v3000_v6 = vadd.f32 %v9734_v44, %v2682_v3  ;;  %v12128_v11 = vpack.c.b16 %v9668_v41, %v9662_v50  ;;  %v3122_v22 = vsel %vm9458_vm5, 0, %v3121_v32  ;;  %v8188_v20 = vld [vmem:[%s8904_s25 + $0x182] sm:$0xff] }
 0x263   : > { %8107 = vmatmul.msk.bf16.gmra.mxu2 %vm435_vm1, %v12127_v58  ;;  %v9807_v4 = vunpack.c.l.b16 %v2131_v7  ;;  %v3795_v44 = vsel %vm9489_vm10, %v3790_v51, %v3794_v43  ;;  %3123 = vst [vmem:[#allocation2 + $0x48] sm:$0x1] %v3122_v22  ;;  %v3799_v17 = vrot.slane %v3797_v31, 4  ;;  %v3800_v10 = vshll.u32 %v3678_v48, 16  ;;  %v3581_v7 = vld [vmem:[#allocation2 + $0x30] sm:$0xf] }
 0x264   : > { %8156 = vmatmul.msk.bf16.gmra.mxu3 %vm435_vm1, %v12128_v11  ;;  %v9813_v13 = vunpack.c.l.b16 %v2132_v27  ;;  %v9815_v24 = vrot.slane %v3290_v18, 7  ;;  %v3293_v50 = vshll.u32 %v3210_v16, 16  ;;  %v3036_v41 = vadd.f32 %v9518_v15, %v3000_v6 }
 0x265   : > { %v4115_v52 = vunpack.c.l.b16 %v3795_v44  ;;  %v2297_v55 = vpop.f32.mrf.mxu2  ;;  %v4114_v40 = vunpack.c.l.b16 %v3785_v42  ;;  %v3802_v34 = vrot.slane %v3800_v10, 5  ;;  %v2449_v3 = vpack.c.bf16 %v8139_v45, %v8139_v45 }
 0x266   : > { %v2615_v2 = vpop.f32.mrf.mxu3  ;;  %v2450_v43 = vpack.c.bf16 %v8140_v60, %v8140_v60  ;;  %v3295_v51 = vor.u32 %v3293_v50, %v9815_v24  ;;  %v3068_v48 = vmax.f32 %v3036_v41, 0.0  ;;  %v2365_v27 = vadd.f32 %v2297_v55, %v9279_v46  ;;  %v9822_v32 = vpop.f32.mrf.mxu0 }
 0x267   : > { %v4686_v16 = vunpack.c.l.b16 %v9769_v35  ;;  %v4144_v31 = vpack.c.b16 %v4115_v52, %v4114_v40  ;;  %v3803_v18 = vor.u32 %v3802_v34, %v3799_v17  ;;  %v2767_v58 = vpack.c.bf16 %v8188_v20, %v8188_v20 }
 0x268   : > { %v3582_v42 = vsel %vm9554_vm11, %v3295_v51, %v3581_v7  ;;  %v3211_v11 = vpack.c.bf16 %v3068_v48, %v3068_v48  ;;  %v2683_v22 = vadd.f32 %v2615_v2, %v2365_v27  ;;  %v9829_v45 = vld [vmem:[#allocation2 + $0x28] sm:$0xf]  ;;  %v2768_v60 = vpack.c.bf16 %v8189_v0, %v8189_v0  ;;  %v3171_v2 = vld [vmem:[#allocation2 + $0x50] sm:$0x1] }
 0x269   : > { %v3296_v46 = vrot.slane %v9815_v24, 4  ;;  %3583 = vst [vmem:[#allocation2 + $0x30] sm:$0xf] %v3582_v42  ;;  %8212 = vmatmul.msk.bf16.gmra.mxu1 %vm435_vm1, %v4144_v31  ;;  %v9833_v35 = vld [vmem:[#allocation2 + $0x2c] sm:$0x1]  ;;  %v3806_v44 = vshll.u32 %v9829_v45, 16  ;;  %v9836_v17 = vunpack.c.l.b16 %v2449_v3  ;;  %v9838_v10 = vunpack.c.l.b16 %v2450_v43 }
 0x26a   : > { %v3298_v50 = vshrl.u32 %v3211_v11, 16  ;;  %v3001_v41 = vadd.f32 %v9780_v59, %v2683_v22  ;;  %v3804_v52 = vrot.slane %v3803_v18, 4  ;;  %v3810_v20 = vshrl.u32 %v9829_v45, 16  ;;  %v3585_v59 = vld [vmem:[#allocation2 + $0x38] sm:$0x1] }
 0x26b   : > { %v3301_v7 = vshll.u32 %v3211_v11, 16  ;;  %v3808_v55 = vrot.slane %v3806_v44, 5  ;;  %v3816_v24 = vshll.u32 %v9833_v35, 16  ;;  %v9843_v40 = vpack.c.b16 %v4686_v16, %v4685_v39 }
 0x26c   : > { %v3300_v34 = vrot.slane %v3298_v50, 7  ;;  %v3037_v0 = vadd.f32 %v9518_v15, %v3001_v41  ;;  %v3812_v3 = vrot.slane %v3810_v20, 4  ;;  %v3172_v43 = vsel %vm9483_vm7, 0, %v3171_v2  ;;  %v8092_v50 = vld [vmem:[%s8904_s25 + $0x198] sm:$0xff]  ;;  %v8093_v41 = vld [vmem:[%s8904_s25 + $0x1a0] sm:$0xff] }
 0x26d   : > { %v2299_v51 = vpop.f32.mrf.mxu2  ;;  %v3809_v27 = vsel %vm9489_vm10, %v3804_v52, %v3808_v55  ;;  %3173 = vst [vmem:[#allocation2 + $0x50] sm:$0x1] %v3172_v43  ;;  %v9852_v16 = vunpack.c.l.b16 %v2767_v58  ;;  %v9854_v31 = vunpack.c.l.b16 %v2768_v60  ;;  %v3818_v52 = vrot.slane %v3816_v24, 5 }
 0x26e   : > { %v2617_v48 = vpop.f32.mrf.mxu3  ;;  %v3303_v18 = vor.u32 %v3301_v7, %v3300_v34  ;;  %v3305_v42 = vrot.slane %v3300_v34, 4  ;;  %v3069_v11 = vmax.f32 %v3037_v0, 0.0  ;;  %v2366_v22 = vadd.f32 %v2299_v51, %v9580_v37  ;;  %v9857_v44 = vpop.f32.mrf.mxu0  ;;  %v8141_v0 = vld [vmem:[%s8904_s25 + $0x199] sm:$0xff] }
 0x26f   : > { %v3813_v20 = vor.u32 %v3812_v3, %v3808_v55  ;;  %v2133_v2 = vpack.c.bf16 %v8092_v50, %v8092_v50  ;;  %v2134_v43 = vpack.c.bf16 %v8093_v41, %v8093_v41  ;;  %v12129_v37 = vpack.c.b16 %v9758_v56, %v9756_v23  ;;  %v3124_v3 = vld [vmem:[#allocation2 + $0x54] sm:$0x1] }
 0x270   : > { %v3304_v58 = vsel %vm9601_vm13, %v3296_v46, %v3303_v18  ;;  %v3586_v60 = vsel %vm9458_vm5, %v3305_v42, %v3585_v59  ;;  %v3212_v7 = vpack.c.bf16 %v3069_v11, %v3069_v11  ;;  %v2684_v39 = vadd.f32 %v2617_v48, %v2366_v22  ;;  %v3680_v34 = vld [vmem:[#allocation2 + $0x30] sm:$0xf]  ;;  %v8142_v42 = vld [vmem:[%s8904_s25 + $0x1a1] sm:$0xff]  ;;  %v9892_v22 = vld [vmem:[#allocation2 + $0x18] sm:$0xe] }
 0x271   : > { %3584 = vst.msk [vmem:[#allocation2 + $0x34] sm:$0xf] %vm3093_vm2, %v3304_v58  ;;  %8206 = vmatmul.msk.bf16.gmra.mxu0 %vm435_vm1, %v12129_v37  ;;  %v3814_v55 = vrot.slane %v3813_v20, 4  ;;  %v4116_v24 = vunpack.c.l.b16 %v3809_v27  ;;  %v2851_v46 = vpack.c.b16 %v9854_v31, %v9852_v16  ;;  %v3821_v59 = vshrl.u32 %v3680_v34, 16  ;;  %v8190_v11 = vld [vmem:[%s8904_s25 + $0x19a] sm:$0xff]  ;;  %v8191_v20 = vld [vmem:[%s8904_s25 + $0x1a2] sm:$0xff] }
 0x272   : > { %3587 = vst [vmem:[#allocation2 + $0x38] sm:$0x1] %v3586_v60  ;;  %v3307_v51 = vshrl.u32 %v3212_v7, 16  ;;  %v3002_v48 = vadd.f32 %v9822_v32, %v2684_v39  ;;  %v12130_v18 = vpack.c.b16 %v9736_v53, %v9717_v30  ;;  %v12131_v23 = vpack.c.b16 %v9754_v19, %v9748_v1 }
 0x273   : > { %v3125_v56 = vsel %vm9458_vm5, 0, %v3124_v3  ;;  %v9884_v27 = vunpack.c.l.b16 %v2133_v2  ;;  %v3819_v32 = vsel %vm9489_vm10, %v3814_v55, %v3818_v52  ;;  %v3823_v30 = vrot.slane %v3821_v59, 4  ;;  %v3588_v2 = vld [vmem:[#allocation2 + $0x3c] sm:$0xf] }
 0x274   : > { %8108 = vmatmul.msk.bf16.gmra.mxu2 %vm435_vm1, %v12130_v18  ;;  %8157 = vmatmul.msk.bf16.gmra.mxu3 %vm435_vm1, %v12131_v23  ;;  %3126 = vst [vmem:[#allocation2 + $0x54] sm:$0x1] %v3125_v56  ;;  %v3824_v53 = vshll.u32 %v3680_v34, 16  ;;  %v9890_v39 = vunpack.c.l.b16 %v2134_v43  ;;  %v9894_v1 = vrot.slane %v3307_v51, 7  ;;  %v3310_v19 = vshll.u32 %v3212_v7, 16 }
 0x275   : > { %v3038_v50 = vadd.f32 %v9518_v15, %v3002_v48  ;;  %v4117_v41 = vunpack.c.l.b16 %v3819_v32  ;;  %v2302_v58 = vpop.f32.mrf.mxu2  ;;  %v2451_v3 = vpack.c.bf16 %v8141_v0, %v8141_v0  ;;  %v2452_v52 = vpack.c.bf16 %v8142_v42, %v8142_v42 }
 0x276   : > { %v2620_v60 = vpop.f32.mrf.mxu3  ;;  %v3826_v37 = vrot.slane %v3824_v53, 5  ;;  %v2769_v55 = vpack.c.bf16 %v8190_v11, %v8190_v11  ;;  %v3312_v34 = vor.u32 %v3310_v19, %v9894_v1  ;;  %v2367_v59 = vadd.f32 %v2302_v58, %v9297_v36  ;;  %v9900_v18 = vpop.f32.mrf.mxu0 }
 0x277   : > { %v3070_v43 = vmax.f32 %v3038_v50, 0.0  ;;  %v8308_v7 = vrot.slane %v9892_v22, 9  ;;  %v4145_v51 = vpack.c.b16 %v4117_v41, %v4116_v24  ;;  %v2770_v23 = vpack.c.bf16 %v8191_v20, %v8191_v20 }
 0x278   : > { %v3827_v48 = vor.u32 %v3826_v37, %v3823_v30  ;;  %v3589_v32 = vsel %vm9554_vm11, %v3312_v34, %v3588_v2  ;;  %v2685_v42 = vadd.f32 %v2620_v60, %v2367_v59  ;;  %v9906_v11 = vld [vmem:[#allocation2 + $0x34] sm:$0xf]  ;;  %v9914_v30 = vunpack.c.l.b16 %v2451_v3  ;;  %v3174_v34 = vld [vmem:[#allocation2 + $0x5c] sm:$0x1]  ;;  %v3592_v3 = vld [vmem:[#allocation2 + $0x44] sm:$0x1] }
 0x279   : > { %v3213_v0 = vpack.c.bf16 %v3070_v43, %v3070_v43  ;;  %3590 = vst [vmem:[#allocation2 + $0x3c] sm:$0xf] %v3589_v32  ;;  %8213 = vmatmul.msk.bf16.gmra.mxu1 %vm435_vm1, %v4145_v51  ;;  %v9911_v36 = vld [vmem:[#allocation2 + $0x38] sm:$0x1]  ;;  %v3830_v24 = vshll.u32 %v9906_v11, 16  ;;  %v9916_v22 = vunpack.c.l.b16 %v2452_v52  ;;  %v9918_v19 = vunpack.c.l.b16 %v2769_v55 }
 0x27a   : > { %v3003_v41 = vadd.f32 %v9857_v44, %v2685_v42  ;;  %v3828_v20 = vrot.slane %v3827_v48, 4  ;;  %v3834_v2 = vshrl.u32 %v9906_v11, 16  ;;  %v3840_v37 = vshll.u32 %v9911_v36, 16  ;;  %v4518_v42 = vld [vmem:[#allocation2] sm:$0xe] }
 0x27b   : > { %v3315_v50 = vshrl.u32 %v3213_v0, 16  ;;  %v3318_v58 = vshll.u32 %v3213_v0, 16  ;;  %v3832_v60 = vrot.slane %v3830_v24, 5  ;;  %v9923_v43 = vunpack.c.l.b16 %v2770_v23  ;;  %v8732_v24 = vld [vmem:[#allocation2 + $0x4] sm:$0xf] }
 0x27c   : > { %v3039_v52 = vadd.f32 %v9518_v15, %v3003_v41  ;;  %v3836_v51 = vrot.slane %v3834_v2, 4  ;;  %v3175_v55 = vsel %vm9483_vm7, 0, %v3174_v34  ;;  %v3313_v44 = vrot.slane %v9894_v1, 4 }
 0x27d   : > { %v3317_v59 = vrot.slane %v3315_v50, 7  ;;  %v2304_v48 = vpop.f32.mrf.mxu2  ;;  %v3833_v0 = vsel %vm9489_vm10, %v3828_v20, %v3832_v60  ;;  %3176 = vst [vmem:[#allocation2 + $0x5c] sm:$0x1] %v3175_v55  ;;  %v4571_v50 = vrot.slane %v8732_v24, 5  ;;  %v3842_v6 = vrot.slane %v3840_v37, 5 }
 0x27e   : > { %v2622_v32 = vpop.f32.mrf.mxu3  ;;  %v3071_v41 = vmax.f32 %v3039_v52, 0.0  ;;  %v2368_v2 = vadd.f32 %v2304_v48, %v9584_v12  ;;  %v9934_v34 = vpop.f32.mrf.mxu0  ;;  %v3837_v1 = vor.u32 %v3836_v51, %v3832_v60  ;;  %v2852_v56 = vpack.c.b16 %v9923_v43, %v9918_v19  ;;  %v3127_v37 = vld [vmem:[#allocation2 + $0x60] sm:$0x1] }
 0x27f   : > { %v3320_v53 = vor.u32 %v3318_v58, %v3317_v59  ;;  %v3322_v15 = vrot.slane %v3317_v59, 4  ;;  %v8306_v20 = vrot.slane %v4518_v42, 9  ;;  %v4118_v60 = vunpack.c.l.b16 %v3833_v0  ;;  %v8733_v0 = vld [vmem:[#allocation2 + $0x8] sm:$0x1] }
 0x280   : > { %v3214_v24 = vpack.c.bf16 %v3071_v41, %v3071_v41  ;;  %v2686_v58 = vadd.f32 %v2622_v32, %v2368_v2  ;;  %v3682_v59 = vld [vmem:[#allocation2 + $0x3c] sm:$0xf]  ;;  %v3838_v12 = vrot.slane %v3837_v1, 4  ;;  %v12132_v51 = vrot.slane %v9746_v57, 5 }
 0x281   : > { %v3321_v55 = vsel %vm9601_vm13, %v3313_v44, %v3320_v53  ;;  %v3593_v23 = vsel %vm9458_vm5, %v3322_v15, %v3592_v3  ;;  %8207 = vmatmul.msk.bf16.gmra.mxu0 %vm435_vm1, %v2851_v46  ;;  %v3845_v52 = vshrl.u32 %v3682_v59, 16  ;;  %v12133_v48 = vpack.c.b16 %v9813_v13, %v9807_v4  ;;  %v3595_v15 = vld [vmem:[#allocation2 + $0x48] sm:$0xf] }
 0x282   : > { %3591 = vst.msk [vmem:[#allocation2 + $0x40] sm:$0xf] %vm3093_vm2, %v3321_v55  ;;  %v4586_v53 = vsel %vm9728_vm3, %v8308_v7, %v12132_v51  ;;  %v3324_v3 = vshrl.u32 %v3214_v24, 16  ;;  %v3004_v44 = vadd.f32 %v9900_v18, %v2686_v58  ;;  %v12134_v16 = vpack.c.b16 %v9838_v10, %v9836_v17  ;;  %v9969_v17 = vld [vmem:[%s12084_s2] ss:$0 sm:$0xff] }
 0x283   : > { %3594 = vst [vmem:[#allocation2 + $0x44] sm:$0x1] %v3593_v23  ;;  %v3128_v31 = vsel %vm9458_vm5, 0, %v3127_v37  ;;  %v4573_v46 = vrot.slane %v4571_v50, 4  ;;  %v3843_v7 = vsel %vm9489_vm10, %v3838_v12, %v3842_v6  ;;  %v3847_v32 = vrot.slane %v3845_v52, 4 }
 0x284   : > { %8109 = vmatmul.msk.bf16.gmra.mxu2 %vm435_vm1, %v12133_v48  ;;  %8158 = vmatmul.msk.bf16.gmra.mxu3 %vm435_vm1, %v12134_v16  ;;  %3129 = vst [vmem:[#allocation2 + $0x60] sm:$0x1] %v3128_v31  ;;  %v3848_v18 = vshll.u32 %v3682_v59, 16  ;;  %v4574_v23 = vrot.slane %v8733_v0, 5  ;;  %v9964_v4 = vrot.slane %v3324_v3, 7  ;;  %v3327_v13 = vshll.u32 %v3214_v24, 16 }
 0x285   : > { %v3040_v10 = vadd.f32 %v9969_v17, %v3004_v44  ;;  %v4119_v42 = vunpack.c.l.b16 %v3843_v7  ;;  %v2307_v41 = vpop.f32.mrf.mxu2  ;;  %v9974_v1 = vsel %vm9728_vm3, %v8306_v20, %v4571_v50  ;;  %v12135_v55 = vmov %v12132_v51 }
 0x286   : > { %v2625_v2 = vpop.f32.mrf.mxu3  ;;  %v3850_v6 = vrot.slane %v3848_v18, 5  ;;  %v4587_v58 = vrot.slane %v12135_v55, 4  ;;  %v4588_v24 = vrot.slane %v9751_v9, 5  ;;  %v3329_v59 = vor.u32 %v3327_v13, %v9964_v4  ;;  %v9981_v52 = vpop.f32.mrf.mxu0  ;;  %v4521_v13 = vld [vmem:[#allocation2 + $0x24] sm:$0xe] }
 0x287   : > { %v3072_v12 = vmax.f32 %v3040_v10, 0.0  ;;  %v2369_v37 = vadd.f32 %v2307_v41, %v9315_v61  ;;  %v9985_v51 = vsel %vm9728_vm3, %v4573_v46, %v4574_v23  ;;  %v4146_v3 = vpack.c.b16 %v4119_v42, %v4118_v60 }
 0x288   : > { %v3851_v44 = vor.u32 %v3850_v6, %v3847_v32  ;;  %v4589_v50 = vsel %vm9728_vm3, %v4587_v58, %v4588_v24  ;;  %v4687_v57 = vunpack.c.l.b16 %v4586_v53  ;;  %v3596_v9 = vsel %vm9554_vm11, %v3329_v59, %v3595_v15  ;;  %v3177_v15 = vld [vmem:[#allocation2 + $0x68] sm:$0x1]  ;;  %v3599_v6 = vld [vmem:[#allocation2 + $0x50] sm:$0x1] }
 0x289   : > { %v3215_v20 = vpack.c.bf16 %v3072_v12, %v3072_v12  ;;  %v2687_v48 = vadd.f32 %v2625_v2, %v2369_v37  ;;  %v9991_v16 = vld [vmem:[#allocation2 + $0x40] sm:$0xf]  ;;  %v4688_v61 = vunpack.c.l.b16 %v4589_v50  ;;  %v3330_v31 = vrot.slane %v9964_v4, 4  ;;  %3597 = vst [vmem:[#allocation2 + $0x48] sm:$0xf] %v3596_v9  ;;  %8214 = vmatmul.msk.bf16.gmra.mxu1 %vm435_vm1, %v4146_v3 }
 0x28a   : > { %v9995_v46 = vld [vmem:[#allocation2 + $0x44] sm:$0x1]  ;;  %v3854_v60 = vshll.u32 %v9991_v16, 16  ;;  %v4683_v7 = vunpack.c.l.b16 %v9974_v1  ;;  %v4684_v53 = vunpack.c.l.b16 %v9985_v51  ;;  %v3852_v0 = vrot.slane %v3851_v44, 4  ;;  %v3180_v1 = vld [vmem:[#allocation2 + $0x74] sm:$0x1] }
 0x28b   : > { %v3332_v32 = vshrl.u32 %v3215_v20, 16  ;;  %v3005_v18 = vadd.f32 %v9934_v34, %v2687_v48  ;;  %v3858_v23 = vshrl.u32 %v9991_v16, 16  ;;  %v3335_v10 = vshll.u32 %v3215_v20, 16 }
 0x28c   : > { %v3856_v4 = vrot.slane %v3854_v60, 5  ;;  %v3864_v42 = vshll.u32 %v9995_v46, 16  ;;  %v10003_v41 = vpack.c.b16 %v4688_v61, %v4687_v57  ;;  %v3178_v24 = vsel %vm9483_vm7, 0, %v3177_v15 }
 0x28d   : > { %v3334_v2 = vrot.slane %v3332_v32, 7  ;;  %v3041_v55 = vadd.f32 %v9969_v17, %v3005_v18  ;;  %v3860_v58 = vrot.slane %v3858_v23, 4  ;;  %v2309_v34 = vpop.f32.mrf.mxu2  ;;  %3179 = vst [vmem:[#allocation2 + $0x68] sm:$0x1] %v3178_v24  ;;  %v8309_v3 = vrot.slane %v4521_v13, 9 }
 0x28e   : > { %v2627_v59 = vpop.f32.mrf.mxu3  ;;  %v3857_v12 = vsel %vm9489_vm10, %v3852_v0, %v3856_v4  ;;  %v3866_v37 = vrot.slane %v3864_v42, 5  ;;  %v4592_v44 = vrot.slane %v9829_v45, 5  ;;  %v2370_v20 = vadd.f32 %v2309_v34, %v9646_v54  ;;  %v2948_v48 = vpop.f32.mrf.mxu0  ;;  %v3130_v42 = vld [vmem:[#allocation2 + $0x6c] sm:$0x1] }
 0x28f   : > { %v3337_v50 = vor.u32 %v3335_v10, %v3334_v2  ;;  %v3339_v57 = vrot.slane %v3334_v2, 4  ;;  %v3073_v9 = vmax.f32 %v3041_v55, 0.0  ;;  %v3861_v61 = vor.u32 %v3860_v58, %v3856_v4  ;;  %v4522_v55 = vld [vmem:[#allocation2 + $0x30] sm:$0xe] }
 0x290   : > { %v4593_v60 = vsel %vm9728_vm3, %v8309_v3, %v4592_v44  ;;  %v4594_v32 = vrot.slane %v4592_v44, 4  ;;  %v4595_v18 = vrot.slane %v9833_v35, 5  ;;  %v2688_v13 = vadd.f32 %v2627_v59, %v2370_v20  ;;  %v3684_v10 = vld [vmem:[#allocation2 + $0x48] sm:$0xf] }
 0x291   : > { %v3338_v0 = vsel %vm9601_vm13, %v3330_v31, %v3337_v50  ;;  %v3600_v23 = vsel %vm9458_vm5, %v3339_v57, %v3599_v6  ;;  %v3216_v45 = vpack.c.bf16 %v3073_v9, %v3073_v9  ;;  %8208 = vmatmul.msk.bf16.gmra.mxu0 %vm435_vm1, %v2852_v56  ;;  %v3862_v54 = vrot.slane %v3861_v61, 4 }
 0x292   : > { %3598 = vst.msk [vmem:[#allocation2 + $0x4c] sm:$0xf] %vm3093_vm2, %v3338_v0  ;;  %v4120_v4 = vunpack.c.l.b16 %v3857_v12  ;;  %v3869_v35 = vshrl.u32 %v3684_v10, 16  ;;  %v4596_v31 = vsel %vm9728_vm3, %v4594_v32, %v4595_v18  ;;  %v3006_v2 = vadd.f32 %v9981_v52, %v2688_v13 }
 0x293   : > { %3601 = vst [vmem:[#allocation2 + $0x50] sm:$0x1] %v3600_v23  ;;  %v3341_v15 = vshrl.u32 %v3216_v45, 16  ;;  %v12136_v6 = vpack.c.b16 %v9890_v39, %v9884_v27  ;;  %v12137_v19 = vpack.c.b16 %v9916_v22, %v9914_v30  ;;  %v3131_v56 = vsel %vm9458_vm5, 0, %v3130_v42  ;;  %v3602_v22 = vld [vmem:[#allocation2 + $0x54] sm:$0xf] }
 0x294   : > { %v4689_v43 = vunpack.c.l.b16 %v4593_v60  ;;  %v3867_v58 = vsel %vm9489_vm10, %v3862_v54, %v3866_v37  ;;  %3132 = vst [vmem:[#allocation2 + $0x6c] sm:$0x1] %v3131_v56  ;;  %v3871_v52 = vrot.slane %v3869_v35, 4  ;;  %v3872_v24 = vshll.u32 %v3684_v10, 16 }
 0x295   : > { %8110 = vmatmul.msk.bf16.gmra.mxu2 %vm435_vm1, %v12136_v6  ;;  %8159 = vmatmul.msk.bf16.gmra.mxu3 %vm435_vm1, %v12137_v19  ;;  %v4690_v34 = vunpack.c.l.b16 %v4596_v31  ;;  %v10039_v27 = vrot.slane %v3341_v15, 7  ;;  %v3344_v39 = vshll.u32 %v3216_v45, 16  ;;  %v3042_v59 = vadd.f32 %v9969_v17, %v3006_v2  ;;  %v2312_v12 = vpop.f32.mrf.mxu2  ;;  %v4523_v6 = vld [vmem:[#allocation2 + $0x3c] sm:$0xe] }
 0x296   : > { %v4121_v30 = vunpack.c.l.b16 %v3867_v58  ;;  %v2630_v3 = vpop.f32.mrf.mxu3  ;;  %v3874_v44 = vrot.slane %v3872_v24, 5  ;;  %v8310_v57 = vrot.slane %v4522_v55, 9  ;;  %v4599_v9 = vrot.slane %v9906_v11, 5  ;;  %v10047_v60 = vpop.f32.mrf.mxu0 }
 0x297   : > { %v10042_v50 = vpack.c.b16 %v4690_v34, %v4689_v43  ;;  %v3346_v37 = vor.u32 %v3344_v39, %v10039_v27  ;;  %v3074_v20 = vmax.f32 %v3042_v59, 0.0  ;;  %v2371_v61 = vadd.f32 %v2312_v12, %v9333_v14 }
 0x298   : > { %v4602_v32 = vrot.slane %v9911_v36, 5  ;;  %v4147_v18 = vpack.c.b16 %v4121_v30, %v4120_v4  ;;  %v3875_v0 = vor.u32 %v3874_v44, %v3871_v52  ;;  %v4600_v23 = vsel %vm9728_vm3, %v8310_v57, %v4599_v9  ;;  %v8638_v57 = vld [vmem:[#allocation2] sm:$0xff] }
 0x299   : > { %v4601_v45 = vrot.slane %v4599_v9, 4  ;;  %v2053_v13 = vadd.f32 %v9331_v38, %v9339_v62  ;;  %v3603_v11 = vsel %vm9554_vm11, %v3346_v37, %v3602_v22  ;;  %v3217_v10 = vpack.c.bf16 %v3074_v20, %v3074_v20  ;;  %v10056_v42 = vld [vmem:[#allocation2 + $0x4c] sm:$0xf] }
 0x29a   : > { %v2689_v54 = vadd.f32 %v2630_v3, %v2371_v61  ;;  %v3347_v14 = vrot.slane %v10039_v27, 4  ;;  %3604 = vst [vmem:[#allocation2 + $0x54] sm:$0xf] %v3603_v11  ;;  %8215 = vmatmul.msk.bf16.gmra.mxu1 %vm435_vm1, %v4147_v18  ;;  %v4715_v36 = vpack.c.b16 %v4684_v53, %v4683_v7  ;;  %v3878_v4 = vshll.u32 %v10056_v42, 16  ;;  %v10067_v31 = vld [vmem:[#allocation2 + $0x50] sm:$0x1] }
 0x29b   : > { %v4603_v38 = vsel %vm9728_vm3, %v4601_v45, %v4602_v32  ;;  %v3349_v62 = vshrl.u32 %v3217_v10, 16  ;;  %v3882_v15 = vshrl.u32 %v10056_v42, 16  ;;  %v4691_v2 = vunpack.c.l.b16 %v4600_v23  ;;  %v3606_v7 = vld [vmem:[#allocation2 + $0x5c] sm:$0x1]  ;;  %v8654_v9 = vld [vmem:[#allocation2 + $0xc] sm:$0xff] }
 0x29c   : > { %v3007_v35 = vadd.f32 %v2948_v48, %v2689_v54  ;;  %v3352_v19 = vshll.u32 %v3217_v10, 16  ;;  %v3876_v56 = vrot.slane %v3875_v0, 4  ;;  %v3880_v43 = vrot.slane %v3878_v4, 5 }
 0x29d   : > { %v4692_v55 = vunpack.c.l.b16 %v4603_v38  ;;  %v3351_v51 = vrot.slane %v3349_v62, 7  ;;  %v3884_v58 = vrot.slane %v3882_v15, 4  ;;  %v3181_v52 = vsel %vm9483_vm7, 0, %v3180_v1  ;;  %v2314_v48 = vpop.f32.mrf.mxu2  ;;  %v3133_v62 = vld [vmem:[#allocation2 + $0x78] sm:$0x1] }
 0x29e   : > { %v3043_v53 = vadd.f32 %v9969_v17, %v3007_v35  ;;  %v2632_v24 = vpop.f32.mrf.mxu3  ;;  %v3888_v34 = vshll.u32 %v10067_v31, 16  ;;  %3182 = vst [vmem:[#allocation2 + $0x74] sm:$0x1] %v3181_v52  ;;  %v8311_v39 = vrot.slane %v4523_v6, 9  ;;  %v4606_v59 = vrot.slane %v9991_v16, 5  ;;  %v10077_v44 = vpop.f32.mrf.mxu0 }
 0x29f   : > { %v10074_v27 = vpack.c.b16 %v4692_v55, %v4691_v2  ;;  %v3354_v30 = vor.u32 %v3352_v19, %v3351_v51  ;;  %v3356_v22 = vrot.slane %v3351_v51, 4  ;;  %v2372_v3 = vadd.f32 %v2314_v48, %v2053_v13  ;;  %v4524_v1 = vld [vmem:[#allocation2 + $0x48] sm:$0xe]  ;;  %v3609_v55 = vld [vmem:[#allocation2 + $0x60] sm:$0xf] }
 0x2a0   : > { %v3075_v12 = vmax.f32 %v3043_v53, 0.0  ;;  %v3881_v37 = vsel %vm9489_vm10, %v3876_v56, %v3880_v43  ;;  %v3885_v20 = vor.u32 %v3884_v58, %v3880_v43  ;;  %v4607_v61 = vsel %vm9728_vm3, %v8311_v39, %v4606_v59 }
 0x2a1   : > { %v4608_v32 = vrot.slane %v4606_v59, 4  ;;  %v3355_v18 = vsel %vm9601_vm13, %v3347_v14, %v3354_v30  ;;  %v3607_v16 = vsel %vm9458_vm5, %v3356_v22, %v3606_v7  ;;  %v2690_v23 = vadd.f32 %v2632_v24, %v2372_v3  ;;  %v3686_v45 = vld [vmem:[#allocation2 + $0x54] sm:$0xf]  ;;  %8404 = vmatmul.msk.bf16.vlgmr.msrb.gmra.mxu0 %vm435_vm1, %v8654_v9 }
 0x2a2   : > { %v3218_v0 = vpack.c.bf16 %v3075_v12, %v3075_v12  ;;  %3605 = vst.msk [vmem:[#allocation2 + $0x58] sm:$0xf] %vm3093_vm2, %v3355_v18  ;;  %v3886_v13 = vrot.slane %v3885_v20, 4  ;;  %v3890_v11 = vrot.slane %v3888_v34, 5  ;;  %v3893_v10 = vshrl.u32 %v3686_v45, 16 }
 0x2a3   : > { %v3896_v54 = vshll.u32 %v3686_v45, 16  ;;  %3608 = vst [vmem:[#allocation2 + $0x5c] sm:$0x1] %v3607_v16  ;;  %v3008_v38 = vadd.f32 %v10047_v60, %v2690_v23  ;;  %v4122_v14 = vunpack.c.l.b16 %v3881_v37  ;;  %v4609_v35 = vrot.slane %v9995_v46, 5  ;;  %v3183_v23 = vld [vmem:[#allocation2 + $0x80] sm:$0x1] }
 0x2a4   : > { %v3358_v4 = vshrl.u32 %v3218_v0, 16  ;;  %v3361_v15 = vshll.u32 %v3218_v0, 16  ;;  %v3891_v2 = vsel %vm9489_vm10, %v3886_v13, %v3890_v11  ;;  %v3134_v6 = vsel %vm9458_vm5, 0, %v3133_v62 }
 0x2a5   : > { %8290 = vmatmul.msk.bf16.vlgmr.msrb.gmra.mxu2 %vm435_vm1, %v8638_v57  ;;  %8323 = vmatmul.msk.bf16.vlgmr.msrb.gmra.mxu3 %vm435_vm1, %v4715_v36  ;;  %v4693_v19 = vunpack.c.l.b16 %v4607_v61  ;;  %v3044_v60 = vadd.f32 %v9969_v17, %v3008_v38  ;;  %v4123_v43 = vunpack.c.l.b16 %v3891_v2  ;;  %3135 = vst [vmem:[#allocation2 + $0x78] sm:$0x1] %v3134_v6  ;;  %v4610_v36 = vsel %vm9728_vm3, %v4608_v32, %v4609_v35  ;;  %v2317_v46 = vpop.f32.mrf.mxu2 }
 0x2a6   : > { %v10097_v56 = vrot.slane %v3358_v4, 7  ;;  %v2635_v51 = vpop.f32.mrf.mxu3  ;;  %v3895_v7 = vrot.slane %v3893_v10, 4  ;;  %v3898_v53 = vrot.slane %v3896_v54, 5  ;;  %v4694_v58 = vunpack.c.l.b16 %v4610_v36  ;;  %v2955_v39 = vpop.f32.mrf.mxu0 }
 0x2a7   : > { %v4613_v52 = vrot.slane %v10056_v42, 5  ;;  %v3076_v24 = vmax.f32 %v3044_v60, 0.0  ;;  %v2373_v34 = vadd.f32 %v2317_v46, %v9350_v8  ;;  %v4148_v59 = vpack.c.b16 %v4123_v43, %v4122_v14 }
 0x2a8   : > { %v3363_v48 = vor.u32 %v3361_v15, %v10097_v56  ;;  %v10105_v30 = vpack.c.b16 %v4694_v58, %v4693_v19  ;;  %v8312_v22 = vrot.slane %v4524_v1, 9  ;;  %v2055_v42 = vadd.f32 %v9348_v25, %v9356_v26 }
 0x2a9   : > { %v3219_v3 = vpack.c.bf16 %v3076_v24, %v3076_v24  ;;  %v2691_v57 = vadd.f32 %v2635_v51, %v2373_v34  ;;  %v10109_v9 = vld [vmem:[#allocation2 + $0x58] sm:$0xf]  ;;  %v4615_v37 = vrot.slane %v4613_v52, 4  ;;  %v3899_v20 = vor.u32 %v3898_v53, %v3895_v7 }
 0x2aa   : > { %v3610_v12 = vsel %vm9554_vm11, %v3363_v48, %v3609_v55  ;;  %8216 = vmatmul.msk.bf16.gmra.mxu1 %vm435_vm1, %v4148_v59  ;;  %v10114_v8 = vld [vmem:[#allocation2 + $0x5c] sm:$0x1]  ;;  %v3902_v61 = vshll.u32 %v10109_v9, 16  ;;  %v3906_v32 = vshrl.u32 %v10109_v9, 16  ;;  %v4614_v45 = vsel %vm9728_vm3, %v8312_v22, %v4613_v52  ;;  %v8639_v48 = vld [vmem:[#allocation2 + $0xc] sm:$0xff] }
 0x2ab   : > { %3611 = vst [vmem:[#allocation2 + $0x60] sm:$0xf] %v3610_v12  ;;  %v3366_v18 = vshrl.u32 %v3219_v3, 16  ;;  %v3009_v16 = vadd.f32 %v10077_v44, %v2691_v57  ;;  %v3912_v0 = vshll.u32 %v10114_v8, 16  ;;  %v3184_v13 = vsel %vm9483_vm7, 0, %v3183_v23 }
 0x2ac   : > { %v3904_v25 = vrot.slane %v3902_v61, 5  ;;  %v3908_v26 = vrot.slane %v3906_v32, 4  ;;  %v4616_v11 = vrot.slane %v10067_v31, 5  ;;  %v3364_v10 = vrot.slane %v10097_v56, 4  ;;  %3185 = vst [vmem:[#allocation2 + $0x80] sm:$0x1] %v3184_v13 }
 0x2ad   : > { %v3368_v54 = vrot.slane %v3366_v18, 7  ;;  %v3369_v4 = vshll.u32 %v3219_v3, 16  ;;  %v3045_v38 = vadd.f32 %v9969_v17, %v3009_v16  ;;  %v3613_v44 = vld [vmem:[#allocation2 + $0x68] sm:$0x1]  ;;  %v2319_v14 = vpop.f32.mrf.mxu2  ;;  %v3900_v35 = vrot.slane %v3899_v20, 4  ;;  %v8655_v56 = vld [vmem:[#allocation2 + $0x18] sm:$0xff] }
 0x2ae   : > { %v2637_v62 = vpop.f32.mrf.mxu3  ;;  %v3909_v15 = vor.u32 %v3908_v26, %v3904_v25  ;;  %v4617_v2 = vsel %vm9728_vm3, %v4615_v37, %v4616_v11  ;;  %v4695_v6 = vunpack.c.l.b16 %v4614_v45  ;;  %v2374_v31 = vadd.f32 %v2319_v14, %v2055_v42  ;;  %v2958_v36 = vpop.f32.mrf.mxu0  ;;  %v4525_v59 = vld [vmem:[#allocation2 + $0x54] sm:$0xe]  ;;  %v3136_v57 = vld [vmem:[#allocation2 + $0x84] sm:$0x1]  ;;  %v3616_v18 = vld [vmem:[#allocation2 + $0x6c] sm:$0xf] }
 0x2af   : > { %v3371_v19 = vor.u32 %v3369_v4, %v3368_v54  ;;  %v3373_v60 = vrot.slane %v3368_v54, 4  ;;  %v3077_v43 = vmax.f32 %v3045_v38, 0.0  ;;  %v3905_v1 = vsel %vm9489_vm10, %v3900_v35, %v3904_v25 }
 0x2b0   : > { %v3910_v55 = vrot.slane %v3909_v15, 4  ;;  %v3914_v46 = vrot.slane %v3912_v0, 5  ;;  %v4696_v51 = vunpack.c.l.b16 %v4617_v2  ;;  %v2692_v52 = vadd.f32 %v2637_v62, %v2374_v31  ;;  %v12138_v62 = vld [vmem:[#allocation6_spill] sm:$0xff] }
 0x2b1   : > { %v3372_v7 = vsel %vm9601_vm13, %v3364_v10, %v3371_v19  ;;  %v3614_v53 = vsel %vm9458_vm5, %v3373_v60, %v3613_v44  ;;  %v3220_v58 = vpack.c.bf16 %v3077_v43, %v3077_v43  ;;  %8405 = vmatmul.msk.bf16.gmra.mxu0 %vm435_vm1, %v8655_v56  ;;  %v4124_v37 = vunpack.c.l.b16 %v3905_v1  ;;  %v10165_v1 = vpop.f32.mrf.mxu1 }
 0x2b2   : > { %3612 = vst.msk [vmem:[#allocation2 + $0x64] sm:$0xf] %vm3093_vm2, %v3372_v7  ;;  %v3915_v24 = vsel %vm9489_vm10, %v3910_v55, %v3914_v46  ;;  %v10139_v34 = vpack.c.b16 %v4696_v51, %v4695_v6  ;;  %v3010_v12 = vadd.f32 %v2955_v39, %v2692_v52  ;;  %v3137_v42 = vsel %vm9458_vm5, 0, %v3136_v57  ;;  %v3186_v7 = vld [vmem:[#allocation2 + $0x8c] sm:$0x1] }
 0x2b3   : > { %3615 = vst [vmem:[#allocation2 + $0x68] sm:$0x1] %v3614_v53  ;;  %v3375_v22 = vshrl.u32 %v3220_v58, 16  ;;  %v4125_v3 = vunpack.c.l.b16 %v3915_v24  ;;  %v3378_v61 = vshll.u32 %v3220_v58, 16  ;;  %v8313_v23 = vrot.slane %v4525_v59, 9 }
 0x2b4   : > { %v3046_v32 = vadd.f32 %v9969_v17, %v3010_v12  ;;  %3138 = vst [vmem:[#allocation2 + $0x84] sm:$0x1] %v3137_v42  ;;  %v4620_v45 = vrot.slane %v10109_v9, 5  ;;  %v4623_v54 = vrot.slane %v10114_v8, 5  ;;  %v2057_v9 = vadd.f32 %v12138_v62, %v9373_v29  ;;  %v3620_v58 = vld [vmem:[#allocation2 + $0x74] sm:$0x1] }
 0x2b5   : > { %8291 = vmatmul.msk.bf16.gmra.mxu2 %vm435_vm1, %v8639_v48  ;;  %8324 = vmatmul.msk.bf16.gmra.mxu3 %vm435_vm1, %v9843_v40  ;;  %v3377_v20 = vrot.slane %v3375_v22, 7  ;;  %v2322_v16 = vpop.f32.mrf.mxu2  ;;  %v4149_v39 = vpack.c.b16 %v4125_v3, %v4124_v37 }
 0x2b6   : > { %v2640_v0 = vpop.f32.mrf.mxu3  ;;  %v3078_v40 = vmax.f32 %v3046_v32, 0.0  ;;  %v2375_v26 = vadd.f32 %v2322_v16, %v9367_v47  ;;  %v2960_v13 = vpop.f32.mrf.mxu0  ;;  %v4621_v11 = vsel %vm9728_vm3, %v8313_v23, %v4620_v45  ;;  %v4622_v10 = vrot.slane %v4620_v45, 4  ;;  %v3688_v47 = vld [vmem:[#allocation2 + $0x60] sm:$0xf] }
 0x2b7   : > { %v3380_v25 = vor.u32 %v3378_v61, %v3377_v20  ;;  %v3381_v4 = vrot.slane %v3377_v20, 4  ;;  %v3917_v19 = vshrl.u32 %v3688_v47, 16  ;;  %v4697_v60 = vunpack.c.l.b16 %v4621_v11  ;;  %v8656_v20 = vld [vmem:[#allocation2 + $0x24] sm:$0xff] }
 0x2b8   : > { %v3221_v44 = vpack.c.bf16 %v3078_v40, %v3078_v40  ;;  %v2693_v14 = vadd.f32 %v2640_v0, %v2375_v26  ;;  %v4624_v15 = vsel %vm9728_vm3, %v4622_v10, %v4623_v54  ;;  %v3920_v31 = vshll.u32 %v3688_v47, 16  ;;  %v4526_v40 = vld [vmem:[#allocation2 + $0x60] sm:$0xe] }
 0x2b9   : > { %v3617_v38 = vsel %vm9554_vm11, %v3380_v25, %v3616_v18  ;;  %v10157_v35 = vld [vmem:[#allocation2 + $0x64] sm:$0xf]  ;;  %v3919_v51 = vrot.slane %v3917_v19, 4  ;;  %v4698_v53 = vunpack.c.l.b16 %v4624_v15  ;;  %v3187_v18 = vsel %vm9483_vm7, 0, %v3186_v7  ;;  %v8640_v25 = vld [vmem:[#allocation2 + $0x18] sm:$0xff]  ;;  %v10190_v15 = vpop.f32.mrf.mxu1 }
 0x2ba   : > { %3618 = vst [vmem:[#allocation2 + $0x6c] sm:$0xf] %v3617_v38  ;;  %8217 = vmatmul.msk.bf16.gmra.mxu1 %vm435_vm1, %v4149_v39  ;;  %v3383_v2 = vshrl.u32 %v3221_v44, 16  ;;  %v3011_v8 = vadd.f32 %v2958_v36, %v2693_v14  ;;  %v10161_v6 = vld [vmem:[#allocation2 + $0x68] sm:$0x1]  ;;  %v3386_v43 = vshll.u32 %v3221_v44, 16 }
 0x2bb   : > { %v3926_v56 = vshll.u32 %v10157_v35, 16  ;;  %v3930_v29 = vshrl.u32 %v10157_v35, 16  ;;  %v3922_v48 = vrot.slane %v3920_v31, 5  ;;  %v3936_v22 = vshll.u32 %v10161_v6, 16  ;;  %3188 = vst [vmem:[#allocation2 + $0x8c] sm:$0x1] %v3187_v18 }
 0x2bc   : > { %v3385_v55 = vrot.slane %v3383_v2, 7  ;;  %v3047_v46 = vadd.f32 %v9969_v17, %v3011_v8  ;;  %v10171_v16 = vpack.c.b16 %v4698_v53, %v4697_v60  ;;  %v4627_v31 = vrot.slane %v10157_v35, 5 }
 0x2bd   : > { %v2324_v36 = vpop.f32.mrf.mxu2  ;;  %v3928_v24 = vrot.slane %v3926_v56, 5  ;;  %v3932_v59 = vrot.slane %v3930_v29, 4  ;;  %v3923_v61 = vor.u32 %v3922_v48, %v3919_v51  ;;  %v3938_v10 = vrot.slane %v3936_v22, 5  ;;  %v12141_v22 = vld [vmem:[#allocation7_spill] sm:$0xff] }
 0x2be   : > { %v2642_v52 = vpop.f32.mrf.mxu3  ;;  %v3388_v12 = vor.u32 %v3386_v43, %v3385_v55  ;;  %v3390_v3 = vrot.slane %v3385_v55, 4  ;;  %v3079_v57 = vmax.f32 %v3047_v46, 0.0  ;;  %v2376_v37 = vadd.f32 %v2324_v36, %v2057_v9  ;;  %v2963_v42 = vpop.f32.mrf.mxu0  ;;  %v12139_v55 = vld [vmem:[#allocation8_spill] sm:$0xff] }
 0x2bf   : > { %v3933_v32 = vor.u32 %v3932_v59, %v3928_v24  ;;  %v3924_v26 = vrot.slane %v3923_v61, 4  ;;  %v8314_v43 = vrot.slane %v4526_v40, 9  ;;  %v4630_v36 = vrot.slane %v10161_v6, 5  ;;  %v12140_v59 = vld [vmem:[#allocation9_spill] sm:$0xff] }
 0x2c0   : > { %v3389_v0 = vsel %vm9601_vm13, %v3381_v4, %v3388_v12  ;;  %v3621_v39 = vsel %vm9458_vm5, %v3390_v3, %v3620_v58  ;;  %v3222_v23 = vpack.c.bf16 %v3079_v57, %v3079_v57  ;;  %v2694_v45 = vadd.f32 %v2642_v52, %v2376_v37  ;;  %v3139_v4 = vld [vmem:[#allocation2 + $0x90] sm:$0x1] }
 0x2c1   : > { %3619 = vst.msk [vmem:[#allocation2 + $0x70] sm:$0xf] %vm3093_vm2, %v3389_v0  ;;  %8406 = vmatmul.msk.bf16.gmra.mxu0 %vm435_vm1, %v8656_v20  ;;  %v3934_v11 = vrot.slane %v3933_v32, 4  ;;  %v3929_v44 = vsel %vm9489_vm10, %v3924_v26, %v3928_v24  ;;  %v3140_v62 = vsel %vm9458_vm5, 0, %v3139_v4  ;;  %v4628_v53 = vsel %vm9728_vm3, %v8314_v43, %v4627_v31  ;;  %v3690_v3 = vld [vmem:[#allocation2 + $0x6c] sm:$0xf] }
 0x2c2   : > { %3622 = vst [vmem:[#allocation2 + $0x74] sm:$0x1] %v3621_v39  ;;  %v3392_v54 = vshrl.u32 %v3222_v23, 16  ;;  %v3012_v38 = vadd.f32 %v2960_v13, %v2694_v45  ;;  %v3395_v47 = vshll.u32 %v3222_v23, 16  ;;  %v4126_v60 = vunpack.c.l.b16 %v3929_v44 }
 0x2c3   : > { %v3939_v14 = vsel %vm9489_vm10, %v3934_v11, %v3938_v10  ;;  %3141 = vst [vmem:[#allocation2 + $0x90] sm:$0x1] %v3140_v62  ;;  %v4629_v58 = vrot.slane %v4627_v31, 4  ;;  %v2059_v12 = vadd.f32 %v12141_v22, %v12140_v59  ;;  %v3941_v32 = vshrl.u32 %v3690_v3, 16  ;;  %v3189_v11 = vld [vmem:[#allocation2 + $0x98] sm:$0x1] }
 0x2c4   : > { %v10188_v9 = vrot.slane %v3392_v54, 7  ;;  %v3048_v13 = vadd.f32 %v9969_v17, %v3012_v38  ;;  %v4127_v2 = vunpack.c.l.b16 %v3939_v14  ;;  %v4699_v18 = vunpack.c.l.b16 %v4628_v53  ;;  %v3627_v54 = vld [vmem:[#allocation2 + $0x80] sm:$0x1]  ;;  %v8641_v53 = vld [vmem:[#allocation2 + $0x24] sm:$0xff] }
 0x2c5   : > { %8292 = vmatmul.msk.bf16.gmra.mxu2 %vm435_vm1, %v8640_v25  ;;  %8325 = vmatmul.msk.bf16.gmra.mxu3 %vm435_vm1, %v10003_v41  ;;  %v3623_v41 = vld [vmem:[#allocation2 + $0x78] sm:$0xf]  ;;  %v2327_v8 = vpop.f32.mrf.mxu2  ;;  %v4631_v37 = vsel %vm9728_vm3, %v4629_v58, %v4630_v36  ;;  %v3944_v39 = vshll.u32 %v3690_v3, 16  ;;  %v3943_v26 = vrot.slane %v3941_v32, 4  ;;  %v3190_v31 = vsel %vm9483_vm7, 0, %v3189_v11 }
 0x2c6   : > { %v2645_v19 = vpop.f32.mrf.mxu3  ;;  %v3397_v56 = vor.u32 %v3395_v47, %v10188_v9  ;;  %v3080_v29 = vmax.f32 %v3048_v13, 0.0  ;;  %v2377_v46 = vadd.f32 %v2327_v8, %v12139_v55  ;;  %v2965_v51 = vpop.f32.mrf.mxu0  ;;  %v4150_v7 = vpack.c.b16 %v4127_v2, %v4126_v60  ;;  %3191 = vst [vmem:[#allocation2 + $0x98] sm:$0x1] %v3190_v31  ;;  %v4527_v58 = vld [vmem:[#allocation2 + $0x6c] sm:$0xe] }
 0x2c7   : > { %v3398_v52 = vrot.slane %v10188_v9, 4  ;;  %v4700_v10 = vunpack.c.l.b16 %v4631_v37  ;;  %v10215_v13 = vpop.f32.mrf.mxu1  ;;  %v3630_v32 = vld [vmem:[#allocation2 + $0x84] sm:$0xf] }
 0x2c8   : > { %v3624_v48 = vsel %vm9554_vm11, %v3397_v56, %v3623_v41  ;;  %v3223_v24 = vpack.c.bf16 %v3080_v29, %v3080_v29  ;;  %v2695_v35 = vadd.f32 %v2645_v19, %v2377_v46  ;;  %v10205_v57 = vld [vmem:[#allocation2 + $0x70] sm:$0xf] }
 0x2c9   : > { %3625 = vst [vmem:[#allocation2 + $0x78] sm:$0xf] %v3624_v48  ;;  %v10209_v61 = vld [vmem:[#allocation2 + $0x74] sm:$0x1]  ;;  %v3950_v23 = vshll.u32 %v10205_v57, 16  ;;  %v3954_v45 = vshrl.u32 %v10205_v57, 16  ;;  %v10219_v56 = vpack.c.b16 %v4700_v10, %v4699_v18 }
 0x2ca   : > { %8218 = vmatmul.msk.bf16.gmra.mxu1 %vm435_vm1, %v4150_v7  ;;  %v3400_v6 = vshrl.u32 %v3223_v24, 16  ;;  %v3013_v20 = vadd.f32 %v2963_v42, %v2695_v35  ;;  %v3403_v0 = vshll.u32 %v3223_v24, 16  ;;  %v3946_v42 = vrot.slane %v3944_v39, 5  ;;  %v8657_v19 = vld [vmem:[#allocation2 + $0x30] sm:$0xff] }
 0x2cb   : > { %v3952_v44 = vrot.slane %v3950_v23, 5  ;;  %v3956_v14 = vrot.slane %v3954_v45, 4  ;;  %v3960_v62 = vshll.u32 %v10209_v61, 16  ;;  %v8315_v39 = vrot.slane %v4527_v58, 9 }
 0x2cc   : > { %v3402_v25 = vrot.slane %v3400_v6, 7  ;;  %v3049_v40 = vadd.f32 %v9969_v17, %v3013_v20  ;;  %v3947_v60 = vor.u32 %v3946_v42, %v3943_v26  ;;  %v4634_v23 = vrot.slane %v10205_v57, 5  ;;  %v12142_v26 = vld [vmem:[#allocation11_spill] sm:$0xff] }
 0x2cd   : > { %v2329_v38 = vpop.f32.mrf.mxu2  ;;  %v3957_v43 = vor.u32 %v3956_v14, %v3952_v44  ;;  %v3962_v24 = vrot.slane %v3960_v62, 5  ;;  %v4637_v42 = vrot.slane %v10209_v61, 5 }
 0x2ce   : > { %v2647_v4 = vpop.f32.mrf.mxu3  ;;  %v3405_v9 = vor.u32 %v3403_v0, %v3402_v25  ;;  %v3407_v47 = vrot.slane %v3402_v25, 4  ;;  %v3081_v2 = vmax.f32 %v3049_v40, 0.0  ;;  %v2378_v41 = vadd.f32 %v2329_v38, %v2059_v12  ;;  %v2968_v8 = vpop.f32.mrf.mxu0 }
 0x2cf   : > { %v3948_v36 = vrot.slane %v3947_v60, 4  ;;  %v3958_v48 = vrot.slane %v3957_v43, 4  ;;  %v4635_v38 = vsel %vm9728_vm3, %v8315_v39, %v4634_v23  ;;  %v8658_v39 = vld [vmem:[#allocation2 + $0x3c] sm:$0xff] }
 0x2d0   : > { %v3406_v29 = vsel %vm9601_vm13, %v3398_v52, %v3405_v9  ;;  %v3628_v55 = vsel %vm9458_vm5, %v3407_v47, %v3627_v54  ;;  %v3224_v46 = vpack.c.bf16 %v3081_v2, %v3081_v2  ;;  %v2696_v7 = vadd.f32 %v2647_v4, %v2378_v41  ;;  %v3142_v52 = vld [vmem:[#allocation2 + $0x9c] sm:$0x1]  ;;  %v12144_v47 = vld [vmem:[#allocation10_spill] sm:$0xff]  ;;  %v3692_v41 = vld [vmem:[#allocation2 + $0x78] sm:$0xf] }
 0x2d1   : > { %3626 = vst.msk [vmem:[#allocation2 + $0x7c] sm:$0xf] %vm3093_vm2, %v3406_v29  ;;  %8407 = vmatmul.msk.bf16.gmra.mxu0 %vm435_vm1, %v8657_v19  ;;  %v3953_v22 = vsel %vm9489_vm10, %v3948_v36, %v3952_v44  ;;  %v3963_v12 = vsel %vm9489_vm10, %v3958_v48, %v3962_v24  ;;  %v3143_v3 = vsel %vm9458_vm5, 0, %v3142_v52  ;;  %v4636_v4 = vrot.slane %v4634_v23, 4  ;;  %v12143_v9 = vld [vmem:[#allocation12_spill] sm:$0xff] }
 0x2d2   : > { %3629 = vst [vmem:[#allocation2 + $0x80] sm:$0x1] %v3628_v55  ;;  %v3409_v35 = vshrl.u32 %v3224_v46, 16  ;;  %v3014_v59 = vadd.f32 %v2965_v51, %v2696_v7  ;;  %v3412_v6 = vshll.u32 %v3224_v46, 16  ;;  %v4129_v20 = vunpack.c.l.b16 %v3963_v12  ;;  %v3634_v52 = vld [vmem:[#allocation2 + $0x8c] sm:$0x1] }
 0x2d3   : > { %3144 = vst [vmem:[#allocation2 + $0x9c] sm:$0x1] %v3143_v3  ;;  %v4128_v0 = vunpack.c.l.b16 %v3953_v22  ;;  %v2061_v2 = vadd.f32 %v12144_v47, %v12143_v9  ;;  %v4638_v60 = vsel %vm9728_vm3, %v4636_v4, %v4637_v42  ;;  %v3965_v29 = vshrl.u32 %v3692_v41, 16  ;;  %v8642_v42 = vld [vmem:[#allocation2 + $0x30] sm:$0xff] }
 0x2d4   : > { %v10236_v37 = vrot.slane %v3409_v35, 7  ;;  %v3050_v51 = vadd.f32 %v9969_v17, %v3014_v59  ;;  %v4701_v55 = vunpack.c.l.b16 %v4635_v38  ;;  %v3968_v7 = vshll.u32 %v3692_v41, 16  ;;  %v3192_v35 = vld [vmem:[#allocation2 + $0xa4] sm:$0x1] }
 0x2d5   : > { %8293 = vmatmul.msk.bf16.gmra.mxu2 %vm435_vm1, %v8641_v53  ;;  %8326 = vmatmul.msk.bf16.gmra.mxu3 %vm435_vm1, %v10042_v50  ;;  %v4151_v54 = vpack.c.b16 %v4129_v20, %v4128_v0  ;;  %v3967_v24 = vrot.slane %v3965_v29, 4  ;;  %v4702_v59 = vunpack.c.l.b16 %v4638_v60 }
 0x2d6   : > { %v2332_v18 = vpop.f32.mrf.mxu2  ;;  %v2650_v50 = vpop.f32.mrf.mxu3  ;;  %v3414_v45 = vor.u32 %v3412_v6, %v10236_v37  ;;  %v3082_v25 = vmax.f32 %v3050_v51, 0.0  ;;  %v3415_v44 = vrot.slane %v10236_v37, 4 }
 0x2d7   : > { %v10241_v40 = vpop.f32.mrf.mxu1  ;;  %v2379_v11 = vadd.f32 %v2332_v18, %v12142_v26  ;;  %v2970_v10 = vpop.f32.mrf.mxu0  ;;  %v10267_v26 = vpack.c.b16 %v4702_v59, %v4701_v55  ;;  %v12145_v59 = vld [vmem:[#allocation14_spill] sm:$0xff] }
 0x2d8   : > { %v3631_v57 = vsel %vm9554_vm11, %v3414_v45, %v3630_v32  ;;  %v3225_v14 = vpack.c.bf16 %v3082_v25, %v3082_v25  ;;  %v10253_v19 = vld [vmem:[#allocation2 + $0x7c] sm:$0xf]  ;;  %v3193_v25 = vsel %vm9483_vm7, 0, %v3192_v35 }
 0x2d9   : > { %v2697_v62 = vadd.f32 %v2650_v50, %v2379_v11  ;;  %3632 = vst [vmem:[#allocation2 + $0x84] sm:$0xf] %v3631_v57  ;;  %v10257_v31 = vld [vmem:[#allocation2 + $0x80] sm:$0x1]  ;;  %v3974_v53 = vshll.u32 %v10253_v19, 16  ;;  %v3978_v58 = vshrl.u32 %v10253_v19, 16 }
 0x2da   : > { %8219 = vmatmul.msk.bf16.gmra.mxu1 %vm435_vm1, %v4151_v54  ;;  %v3417_v61 = vshrl.u32 %v3225_v14, 16  ;;  %v3420_v46 = vshll.u32 %v3225_v14, 16  ;;  %v3984_v6 = vshll.u32 %v10257_v31, 16  ;;  %3194 = vst [vmem:[#allocation2 + $0xa4] sm:$0x1] %v3193_v25 }
 0x2db   : > { %v3015_v43 = vadd.f32 %v2968_v8, %v2697_v62  ;;  %v3970_v8 = vrot.slane %v3968_v7, 5  ;;  %v3976_v3 = vrot.slane %v3974_v53, 5  ;;  %v3980_v37 = vrot.slane %v3978_v58, 4  ;;  %v4528_v57 = vld [vmem:[#allocation2 + $0x78] sm:$0xe] }
 0x2dc   : > { %v3419_v36 = vrot.slane %v3417_v61, 7  ;;  %v3986_v9 = vrot.slane %v3984_v6, 5  ;;  %v8316_v58 = vrot.slane %v4528_v57, 9 }
 0x2dd   : > { %v3051_v48 = vadd.f32 %v9969_v17, %v3015_v43  ;;  %v3971_v23 = vor.u32 %v3970_v8, %v3967_v24  ;;  %v3981_v45 = vor.u32 %v3980_v37, %v3976_v3 }
 0x2de   : > { %v2334_v22 = vpop.f32.mrf.mxu2  ;;  %v2652_v12 = vpop.f32.mrf.mxu3  ;;  %v3422_v51 = vor.u32 %v3420_v46, %v3419_v36  ;;  %v3424_v20 = vrot.slane %v3419_v36, 4  ;;  %v3637_v46 = vld [vmem:[#allocation2 + $0x90] sm:$0xf]  ;;  %v4641_v36 = vrot.slane %v10253_v19, 5 }
 0x2df   : > { %v3083_v32 = vmax.f32 %v3051_v48, 0.0  ;;  %v10263_v18 = vpop.f32.mrf.mxu1  ;;  %v2380_v50 = vadd.f32 %v2334_v22, %v2061_v2  ;;  %v2973_v0 = vpop.f32.mrf.mxu0  ;;  %v3972_v14 = vrot.slane %v3971_v23, 4  ;;  %v3982_v62 = vrot.slane %v3981_v45, 4 }
 0x2e0   : > { %v3423_v11 = vsel %vm9601_vm13, %v3415_v44, %v3422_v51  ;;  %v3635_v54 = vsel %vm9458_vm5, %v3424_v20, %v3634_v52  ;;  %v3145_v44 = vld [vmem:[#allocation2 + $0xa8] sm:$0x1]  ;;  %v4643_v8 = vrot.slane %v4641_v36, 4  ;;  %v12146_v20 = vld [vmem:[#allocation15_spill] sm:$0xff] }
 0x2e1   : > { %v3226_v38 = vpack.c.bf16 %v3083_v32, %v3083_v32  ;;  %v2698_v4 = vadd.f32 %v2652_v12, %v2380_v50  ;;  %3633 = vst.msk [vmem:[#allocation2 + $0x88] sm:$0xf] %vm3093_vm2, %v3423_v11  ;;  %8408 = vmatmul.msk.bf16.gmra.mxu0 %vm435_vm1, %v8658_v39  ;;  %v3977_v41 = vsel %vm9489_vm10, %v3972_v14, %v3976_v3  ;;  %v3146_v61 = vsel %vm9458_vm5, 0, %v3145_v44  ;;  %v12147_v32 = vld [vmem:[#allocation13_spill] sm:$0xff] }
 0x2e2   : > { %3636 = vst [vmem:[#allocation2 + $0x8c] sm:$0x1] %v3635_v54  ;;  %v3987_v60 = vsel %vm9489_vm10, %v3982_v62, %v3986_v9  ;;  %v4130_v53 = vunpack.c.l.b16 %v3977_v41  ;;  %v4644_v3 = vrot.slane %v10257_v31, 5  ;;  %v2063_v50 = vadd.f32 %v12147_v32, %v12146_v20  ;;  %v3694_v39 = vld [vmem:[#allocation2 + $0x84] sm:$0xf] }
 0x2e3   : > { %v3426_v47 = vshrl.u32 %v3226_v38, 16  ;;  %v3016_v2 = vadd.f32 %v2970_v10, %v2698_v4  ;;  %v3429_v29 = vshll.u32 %v3226_v38, 16  ;;  %v4131_v55 = vunpack.c.l.b16 %v3987_v60  ;;  %3147 = vst [vmem:[#allocation2 + $0xa8] sm:$0x1] %v3146_v61  ;;  %v10312_v9 = vld [vmem:[%s12084_s2] ss:$0 sm:$0xff] }
 0x2e4   : > { %v4645_v45 = vsel %vm9728_vm3, %v4643_v8, %v4644_v3  ;;  %v3989_v54 = vshrl.u32 %v3694_v39, 16  ;;  %v3641_v41 = vld [vmem:[#allocation2 + $0x98] sm:$0x1] }
 0x2e5   : > { %8294 = vmatmul.msk.bf16.gmra.mxu2 %vm435_vm1, %v8642_v42  ;;  %8327 = vmatmul.msk.bf16.gmra.mxu3 %vm435_vm1, %v10074_v27  ;;  %v10284_v43 = vrot.slane %v3426_v47, 7  ;;  %v3052_v10 = vadd.f32 %v9969_v17, %v3016_v2  ;;  %v4152_v12 = vpack.c.b16 %v4131_v55, %v4130_v53  ;;  %v4642_v17 = vsel %vm9728_vm3, %v8316_v58, %v4641_v36 }
 0x2e6   : > { %v2337_v7 = vpop.f32.mrf.mxu2  ;;  %v4703_v38 = vunpack.c.l.b16 %v4642_v17  ;;  %v3992_v42 = vshll.u32 %v3694_v39, 16  ;;  %v3991_v2 = vrot.slane %v3989_v54, 4  ;;  %v4704_v44 = vunpack.c.l.b16 %v4645_v45 }
 0x2e7   : > { %v2655_v27 = vpop.f32.mrf.mxu3  ;;  %v3431_v48 = vor.u32 %v3429_v29, %v10284_v43  ;;  %v3084_v24 = vmax.f32 %v3052_v10, 0.0  ;;  %v10289_v35 = vpop.f32.mrf.mxu1  ;;  %v2381_v52 = vadd.f32 %v2337_v7, %v12145_v59  ;;  %v3432_v37 = vrot.slane %v10284_v43, 4 }
 0x2e8   : > { %v2975_v22 = vpop.f32.mrf.mxu0  ;;  %v10301_v23 = vld [vmem:[#allocation2 + $0x88] sm:$0xf]  ;;  %v3994_v43 = vrot.slane %v3992_v42, 5  ;;  %v3644_v42 = vld [vmem:[#allocation2 + $0x9c] sm:$0xf] }
 0x2e9   : > { %v3638_v19 = vsel %vm9554_vm11, %v3431_v48, %v3637_v46  ;;  %v3227_v6 = vpack.c.bf16 %v3084_v24, %v3084_v24  ;;  %v2699_v51 = vadd.f32 %v2655_v27, %v2381_v52  ;;  %v10305_v11 = vld [vmem:[#allocation2 + $0x8c] sm:$0x1]  ;;  %v3998_v57 = vshll.u32 %v10301_v23, 16 }
 0x2ea   : > { %3639 = vst [vmem:[#allocation2 + $0x90] sm:$0xf] %v3638_v19  ;;  %8220 = vmatmul.msk.bf16.gmra.mxu1 %vm435_vm1, %v4152_v12  ;;  %v4002_v14 = vshrl.u32 %v10301_v23, 16  ;;  %v4008_v55 = vshll.u32 %v10305_v11, 16  ;;  %v8659_v48 = vld [vmem:[#allocation2 + $0x48] sm:$0xff]  ;;  %v3995_v24 = vor.u32 %v3994_v43, %v3991_v2  ;;  %v10320_v12 = vpack.c.b16 %v4704_v44, %v4703_v38 }
 0x2eb   : > { %v3434_v31 = vshrl.u32 %v3227_v6, 16  ;;  %v3017_v25 = vadd.f32 %v2973_v0, %v2699_v51  ;;  %v3437_v4 = vshll.u32 %v3227_v6, 16  ;;  %v3195_v0 = vld [vmem:[#allocation2 + $0xb0] sm:$0x1]  ;;  %v4000_v29 = vrot.slane %v3998_v57, 5  ;;  %v8643_v6 = vld [vmem:[#allocation2 + $0x3c] sm:$0xff] }
 0x2ec   : > { %v4004_v10 = vrot.slane %v4002_v14, 4  ;;  %v3196_v52 = vsel %vm9483_vm7, 0, %v3195_v0  ;;  %v3996_v51 = vrot.slane %v3995_v24, 4  ;;  %v4010_v32 = vrot.slane %v4008_v55, 5  ;;  %v12148_v0 = vld [vmem:[#allocation17_spill] sm:$0xff] }
 0x2ed   : > { %v3436_v62 = vrot.slane %v3434_v31, 7  ;;  %v3053_v47 = vadd.f32 %v10312_v9, %v3017_v25  ;;  %3197 = vst [vmem:[#allocation2 + $0xb0] sm:$0x1] %v3196_v52 }
 0x2ee   : > { %v2339_v60 = vpop.f32.mrf.mxu2  ;;  %v4005_v59 = vor.u32 %v4004_v10, %v4000_v29  ;;  %v4001_v45 = vsel %vm9489_vm10, %v3996_v51, %v4000_v29 }
 0x2ef   : > { %v2657_v61 = vpop.f32.mrf.mxu3  ;;  %v3439_v46 = vor.u32 %v3437_v4, %v3436_v62  ;;  %v3441_v7 = vrot.slane %v3436_v62, 4  ;;  %v3085_v27 = vmax.f32 %v3053_v47, 0.0  ;;  %v10316_v53 = vpop.f32.mrf.mxu1  ;;  %v2382_v58 = vadd.f32 %v2339_v60, %v2063_v50 }
 0x2f0   : > { %v2978_v36 = vpop.f32.mrf.mxu0  ;;  %v4006_v20 = vrot.slane %v4005_v59, 4 }
 0x2f1   : > { %v3440_v17 = vsel %vm9601_vm13, %v3432_v37, %v3439_v46  ;;  %v3642_v8 = vsel %vm9458_vm5, %v3441_v7, %v3641_v41  ;;  %v3228_v3 = vpack.c.bf16 %v3085_v27, %v3085_v27  ;;  %v2700_v19 = vadd.f32 %v2657_v61, %v2382_v58  ;;  %8409 = vmatmul.msk.bf16.gmra.mxu0 %vm435_vm1, %v8659_v48  ;;  %v3148_v37 = vld [vmem:[#allocation2 + $0xb4] sm:$0x1]  ;;  %v3696_v10 = vld [vmem:[#allocation2 + $0x90] sm:$0xf]  ;;  %v12149_v46 = vld [vmem:[#allocation18_spill] sm:$0xff] }
 0x2f2   : > { %3640 = vst.msk [vmem:[#allocation2 + $0x94] sm:$0xf] %vm3093_vm2, %v3440_v17  ;;  %v4011_v31 = vsel %vm9489_vm10, %v4006_v20, %v4010_v32  ;;  %v3149_v25 = vsel %vm9458_vm5, 0, %v3148_v37  ;;  %v12150_v7 = vld [vmem:[#allocation16_spill] sm:$0xff]  ;;  %v4013_v59 = vshrl.u32 %v3696_v10, 16  ;;  %v4016_v17 = vshll.u32 %v3696_v10, 16 }
 0x2f3   : > { %3643 = vst [vmem:[#allocation2 + $0x98] sm:$0x1] %v3642_v8  ;;  %v3443_v50 = vshrl.u32 %v3228_v3, 16  ;;  %v3018_v39 = vadd.f32 %v2975_v22, %v2700_v19  ;;  %v3446_v38 = vshll.u32 %v3228_v3, 16  ;;  %v4133_v22 = vunpack.c.l.b16 %v4011_v31  ;;  %v3198_v32 = vld [vmem:[#allocation2 + $0xbc] sm:$0x1] }
 0x2f4   : > { %3150 = vst [vmem:[#allocation2 + $0xb4] sm:$0x1] %v3149_v25  ;;  %v2065_v27 = vadd.f32 %v12150_v7, %v12149_v46  ;;  %v4015_v20 = vrot.slane %v4013_v59, 4 }
 0x2f5   : > { %8295 = vmatmul.msk.bf16.gmra.mxu2 %vm435_vm1, %v8643_v6  ;;  %8328 = vmatmul.msk.bf16.gmra.mxu3 %vm435_vm1, %v10105_v30  ;;  %v3445_v54 = vrot.slane %v3443_v50, 7  ;;  %v3054_v4 = vadd.f32 %v10312_v9, %v3018_v39  ;;  %v4132_v30 = vunpack.c.l.b16 %v4001_v45  ;;  %v3648_v50 = vld [vmem:[#allocation2 + $0xa4] sm:$0x1]  ;;  %v4018_v45 = vrot.slane %v4016_v17, 5 }
 0x2f7   : > { %v2342_v57 = vpop.f32.mrf.mxu2  ;;  %v2660_v14 = vpop.f32.mrf.mxu3  ;;  %v3448_v62 = vor.u32 %v3446_v38, %v3445_v54  ;;  %v3086_v47 = vmax.f32 %v3054_v4, 0.0  ;;  %v4153_v60 = vpack.c.b16 %v4133_v22, %v4132_v30  ;;  %v3449_v52 = vrot.slane %v3445_v54, 4 }
 0x2f8   : > { %v10338_v2 = vpop.f32.mrf.mxu1  ;;  %v2383_v44 = vadd.f32 %v2342_v57, %v12148_v0  ;;  %v2980_v41 = vpop.f32.mrf.mxu0  ;;  %v4019_v30 = vor.u32 %v4018_v45, %v4015_v20 }
 0x2f9   : > { %v3645_v61 = vsel %vm9554_vm11, %v3448_v62, %v3644_v42  ;;  %v3229_v43 = vpack.c.bf16 %v3086_v47, %v3086_v47  ;;  %v10344_v55 = vld [vmem:[#allocation2 + $0x94] sm:$0xf]  ;;  %v3199_v47 = vsel %vm9483_vm7, 0, %v3198_v32 }
 0x2fa   : > { %v2701_v29 = vadd.f32 %v2660_v14, %v2383_v44  ;;  %3646 = vst [vmem:[#allocation2 + $0x9c] sm:$0xf] %v3645_v61  ;;  %8221 = vmatmul.msk.bf16.gmra.mxu1 %vm435_vm1, %v4153_v60  ;;  %v10348_v24 = vld [vmem:[#allocation2 + $0x98] sm:$0x1]  ;;  %v4022_v8 = vshll.u32 %v10344_v55, 16  ;;  %v4026_v3 = vshrl.u32 %v10344_v55, 16 }
 0x2fb   : > { %v3451_v58 = vshrl.u32 %v3229_v43, 16  ;;  %v3454_v6 = vshll.u32 %v3229_v43, 16  ;;  %v4032_v25 = vshll.u32 %v10348_v24, 16  ;;  %v8660_v14 = vld [vmem:[#allocation2 + $0x54] sm:$0xff]  ;;  %v8644_v43 = vld [vmem:[#allocation2 + $0x48] sm:$0xff] }
 0x2fc   : > { %v3019_v48 = vadd.f32 %v2978_v36, %v2701_v29  ;;  %v4024_v36 = vrot.slane %v4022_v8, 5  ;;  %v4028_v31 = vrot.slane %v4026_v3, 4  ;;  %3200 = vst [vmem:[#allocation2 + $0xbc] sm:$0x1] %v3199_v47  ;;  %v4020_v29 = vrot.slane %v4019_v30, 4 }
 0x2fd   : > { %v3453_v19 = vrot.slane %v3451_v58, 7  ;;  %v4034_v46 = vrot.slane %v4032_v25, 5  ;;  %v3151_v58 = vld [vmem:[#allocation2 + $0xc0] sm:$0x1] }
 0x2fe   : > { %v3055_v51 = vadd.f32 %v10312_v9, %v3019_v48  ;;  %v4029_v62 = vor.u32 %v4028_v31, %v4024_v36  ;;  %v4025_v48 = vsel %vm9489_vm10, %v4020_v29, %v4024_v36 }
 0x2ff   : > { %v2344_v39 = vpop.f32.mrf.mxu2  ;;  %v2662_v37 = vpop.f32.mrf.mxu3  ;;  %v3456_v54 = vor.u32 %v3454_v6, %v3453_v19  ;;  %v3458_v38 = vrot.slane %v3453_v19, 4  ;;  %v3651_v19 = vld [vmem:[#allocation2 + $0xa8] sm:$0xf] }
 0x300   : > { %v3087_v4 = vmax.f32 %v3055_v51, 0.0  ;;  %v10354_v22 = vpop.f32.mrf.mxu1  ;;  %v2384_v42 = vadd.f32 %v2344_v39, %v2065_v27  ;;  %v2983_v57 = vpop.f32.mrf.mxu0  ;;  %v4030_v10 = vrot.slane %v4029_v62, 4  ;;  %v12151_v39 = vld [vmem:[#allocation19_spill] sm:$0xff] }
 0x301   : > { %v3457_v0 = vsel %vm9601_vm13, %v3449_v52, %v3456_v54  ;;  %v3649_v44 = vsel %vm9458_vm5, %v3458_v38, %v3648_v50  ;;  %8410 = vmatmul.msk.bf16.gmra.mxu0 %vm435_vm1, %v8660_v14  ;;  %v3152_v52 = vsel %vm9458_vm5, 0, %v3151_v58  ;;  %v3698_v38 = vld [vmem:[#allocation2 + $0x9c] sm:$0xf]  ;;  %v3201_v58 = vld [vmem:[#allocation2 + $0xc8] sm:$0x1] }
 0x302   : > { %v3230_v60 = vpack.c.bf16 %v3087_v4, %v3087_v4  ;;  %v2702_v61 = vadd.f32 %v2662_v37, %v2384_v42  ;;  %3647 = vst.msk [vmem:[#allocation2 + $0xa0] sm:$0xf] %vm3093_vm2, %v3457_v0  ;;  %v4035_v59 = vsel %vm9489_vm10, %v4030_v10, %v4034_v46  ;;  %v12152_v42 = vld [vmem:[#allocation21_spill] sm:$0xff]  ;;  %v12153_v14 = vld [vmem:[#allocation20_spill] sm:$0xff] }
 0x303   : > { %3650 = vst [vmem:[#allocation2 + $0xa4] sm:$0x1] %v3649_v44  ;;  %v2067_v30 = vadd.f32 %v12153_v14, %v12152_v42  ;;  %v4037_v44 = vshrl.u32 %v3698_v38, 16  ;;  %v8645_v42 = vld [vmem:[#allocation2 + $0x54] sm:$0xff] }
 0x304   : > { %v3460_v7 = vshrl.u32 %v3230_v60, 16  ;;  %v3020_v27 = vadd.f32 %v2980_v41, %v2702_v61  ;;  %v3463_v8 = vshll.u32 %v3230_v60, 16  ;;  %v4135_v41 = vunpack.c.l.b16 %v4035_v59  ;;  %3153 = vst [vmem:[#allocation2 + $0xc0] sm:$0x1] %v3152_v52 }
 0x305   : > { %8296 = vmatmul.msk.bf16.gmra.mxu2 %vm435_vm1, %v8644_v43  ;;  %8329 = vmatmul.msk.bf16.gmra.mxu3 %vm435_vm1, %v10139_v34  ;;  %v4134_v34 = vunpack.c.l.b16 %v4025_v48  ;;  %v4040_v61 = vshll.u32 %v3698_v38, 16  ;;  %v3655_v48 = vld [vmem:[#allocation2 + $0xb0] sm:$0x1] }
 0x306   : > { %v3462_v17 = vrot.slane %v3460_v7, 7  ;;  %v3056_v3 = vadd.f32 %v10312_v9, %v3020_v27  ;;  %v4039_v27 = vrot.slane %v4037_v44, 4 }
 0x307   : > { %v2347_v6 = vpop.f32.mrf.mxu2  ;;  %v2665_v51 = vpop.f32.mrf.mxu3  ;;  %v4154_v36 = vpack.c.b16 %v4135_v41, %v4134_v34 }
 0x308   : > { %v3465_v20 = vor.u32 %v3463_v8, %v3462_v17  ;;  %v3088_v32 = vmax.f32 %v3056_v3, 0.0  ;;  %v10374_v50 = vpop.f32.mrf.mxu1  ;;  %v2385_v37 = vadd.f32 %v2347_v6, %v12151_v39  ;;  %v2985_v45 = vpop.f32.mrf.mxu0  ;;  %v3466_v60 = vrot.slane %v3462_v17, 4 }
 0x309   : > { %v10380_v4 = vld [vmem:[#allocation2 + $0xa0] sm:$0xf]  ;;  %v4042_v8 = vrot.slane %v4040_v61, 5 }
 0x30a   : > { %v3652_v31 = vsel %vm9554_vm11, %v3465_v20, %v3651_v19  ;;  %v3231_v25 = vpack.c.bf16 %v3088_v32, %v3088_v32  ;;  %v2703_v54 = vadd.f32 %v2665_v51, %v2385_v37  ;;  %8222 = vmatmul.msk.bf16.gmra.mxu1 %vm435_vm1, %v4154_v36  ;;  %v10384_v0 = vld [vmem:[#allocation2 + $0xa4] sm:$0x1]  ;;  %v4046_v43 = vshll.u32 %v10380_v4, 16 }
 0x30b   : > { %3653 = vst [vmem:[#allocation2 + $0xa8] sm:$0xf] %v3652_v31  ;;  %v4050_v29 = vshrl.u32 %v10380_v4, 16  ;;  %v4056_v41 = vshll.u32 %v10384_v0, 16  ;;  %v8661_v32 = vld [vmem:[#allocation2 + $0x60] sm:$0xff]  ;;  %v4043_v39 = vor.u32 %v4042_v8, %v4039_v27  ;;  %v3202_v36 = vsel %vm9483_vm7, 0, %v3201_v58 }
 0x30c   : > { %v3468_v62 = vshrl.u32 %v3231_v25, 16  ;;  %v3021_v47 = vadd.f32 %v2983_v57, %v2703_v54  ;;  %v3471_v46 = vshll.u32 %v3231_v25, 16  ;;  %v4048_v57 = vrot.slane %v4046_v43, 5  ;;  %3203 = vst [vmem:[#allocation2 + $0xc8] sm:$0x1] %v3202_v36 }
 0x30d   : > { %v4052_v3 = vrot.slane %v4050_v29, 4  ;;  %v4044_v14 = vrot.slane %v4043_v39, 4 }
 0x30e   : > { %v3470_v10 = vrot.slane %v3468_v62, 7  ;;  %v3057_v7 = vadd.f32 %v10312_v9, %v3021_v47  ;;  %v4058_v62 = vrot.slane %v4056_v41, 5 }
 0x30f   : > { %v2349_v59 = vpop.f32.mrf.mxu2  ;;  %v2667_v52 = vpop.f32.mrf.mxu3  ;;  %v4053_v37 = vor.u32 %v4052_v3, %v4048_v57  ;;  %v12154_v3 = vld [vmem:[#allocation22_spill] sm:$0xff] }
 0x310   : > { %v3473_v17 = vor.u32 %v3471_v46, %v3470_v10  ;;  %v3475_v19 = vrot.slane %v3470_v10, 4  ;;  %v3089_v6 = vmax.f32 %v3057_v7, 0.0  ;;  %v10390_v51 = vpop.f32.mrf.mxu1  ;;  %v2386_v34 = vadd.f32 %v2349_v59, %v2067_v30  ;;  %v2988_v20 = vpop.f32.mrf.mxu0 }
 0x311   : > { %8411 = vmatmul.msk.bf16.gmra.mxu0 %vm435_vm1, %v8661_v32  ;;  %v4054_v30 = vrot.slane %v4053_v37, 4 }
 0x312   : > { %v3474_v31 = vsel %vm9601_vm13, %v3466_v60, %v3473_v17  ;;  %v3656_v25 = vsel %vm9458_vm5, %v3475_v19, %v3655_v48  ;;  %v3232_v54 = vpack.c.bf16 %v3089_v6, %v3089_v6  ;;  %v2704_v38 = vadd.f32 %v2667_v52, %v2386_v34  ;;  %v3700_v44 = vld [vmem:[#allocation2 + $0xa8] sm:$0xf] }
 0x313   : > { %3654 = vst.msk [vmem:[#allocation2 + $0xac] sm:$0xf] %vm3093_vm2, %v3474_v31  ;;  %v4049_v60 = vsel %vm9489_vm10, %v4044_v14, %v4048_v57  ;;  %v4059_v61 = vsel %vm9489_vm10, %v4054_v30, %v4058_v62  ;;  %v4061_v43 = vshrl.u32 %v3700_v44, 16  ;;  %v4064_v29 = vshll.u32 %v3700_v44, 16  ;;  %v12155_v14 = vld [vmem:[#allocation23_spill] sm:$0xff] }
 0x314   : > { %3657 = vst [vmem:[#allocation2 + $0xb0] sm:$0x1] %v3656_v25  ;;  %v3477_v28 = vshrl.u32 %v3232_v54, 16  ;;  %v3022_v47 = vadd.f32 %v2985_v45, %v2704_v38  ;;  %v3480_v46 = vshll.u32 %v3232_v54, 16  ;;  %v4137_v27 = vunpack.c.l.b16 %v4059_v61  ;;  %v3658_v45 = vld [vmem:[#allocation2 + $0xb4] sm:$0xf] }
 0x315   : > { %8297 = vmatmul.msk.bf16.gmra.mxu2 %vm435_vm1, %v8645_v42  ;;  %8330 = vmatmul.msk.bf16.gmra.mxu3 %vm435_vm1, %v10171_v16  ;;  %v4136_v59 = vunpack.c.l.b16 %v4049_v60  ;;  %v4063_v19 = vrot.slane %v4061_v43, 4  ;;  %v4066_v6 = vrot.slane %v4064_v29, 5  ;;  %v8453_v42 = vld [vmem:[%s12085_s3 + $0xa] sm:$0x3]  ;;  %v2069_v30 = vadd.f32 %v10165_v1, %v12155_v14  ;;  %v3662_v29 = vld [vmem:[#allocation2 + $0xbc] sm:$0x1] }
 0x316   : > { %v3479_v10 = vrot.slane %v3477_v28, 7  ;;  %v3058_v7 = vadd.f32 %v10312_v9, %v3022_v47  ;;  %v6118_v47 = vsel %vm484_vm0, %v8453_v42, 0 }
 0x317   : > { %v4155_v17 = vpack.c.b16 %v4137_v27, %v4136_v59  ;;  %v4067_v62 = vor.u32 %v4066_v6, %v4063_v19  ;;  %6127 = vmatpush.bf16.msra.mxu2 %v6118_v47 }
 0x318   : > { %v2352_v58 = vpop.f32.mrf.mxu2  ;;  %v2670_v48 = vpop.f32.mrf.mxu3  ;;  %v3482_v52 = vor.u32 %v3480_v46, %v3479_v10  ;;  %v3090_v16 = vmax.f32 %v3058_v7, 0.0  ;;  %v3483_v43 = vrot.slane %v3479_v10, 4 }
 0x319   : > { %v10408_v8 = vpop.f32.mrf.mxu1  ;;  %v2387_v57 = vadd.f32 %v2352_v58, %v12154_v3  ;;  %v2990_v41 = vpop.f32.mrf.mxu0  ;;  %v8662_v3 = vld [vmem:[#allocation2 + $0x6c] sm:$0xff] }
 0x31a   : > { %v3659_v34 = vsel %vm9554_vm11, %v3482_v52, %v3658_v45  ;;  %v3233_v32 = vpack.c.bf16 %v3090_v16, %v3090_v16  ;;  %v10413_v37 = vld [vmem:[#allocation2 + $0xac] sm:$0xf]  ;;  %8223 = vmatmul.msk.bf16.gmra.mxu1 %vm435_vm1, %v4155_v17 }
 0x31b   : > { %v2705_v39 = vadd.f32 %v2670_v48, %v2387_v57  ;;  %3660 = vst [vmem:[#allocation2 + $0xb4] sm:$0xf] %v3659_v34  ;;  %v4070_v36 = vshll.u32 %v10413_v37, 16  ;;  %v10417_v54 = vld [vmem:[#allocation2 + $0xb0] sm:$0x1]  ;;  %v4074_v38 = vshrl.u32 %v10413_v37, 16 }
 0x31c   : > { %v3485_v31 = vshrl.u32 %v3233_v32, 16  ;;  %v3488_v60 = vshll.u32 %v3233_v32, 16  ;;  %v4080_v27 = vshll.u32 %v10417_v54, 16  ;;  %v8470_v16 = vld [vmem:[%s12085_s3 + $0xc] sm:$0x3]  ;;  %v4068_v57 = vrot.slane %v4067_v62, 4 }
 0x31d   : > { %v3023_v25 = vadd.f32 %v2988_v20, %v2705_v39  ;;  %v4072_v28 = vrot.slane %v4070_v36, 5  ;;  %v4076_v20 = vrot.slane %v4074_v38, 4  ;;  %v6405_v17 = vsel %vm484_vm0, %v8470_v16, 0  ;;  %v8646_v39 = vld [vmem:[#allocation2 + $0x60] sm:$0xff] }
 0x31e   : > { %v3487_v44 = vrot.slane %v3485_v31, 7  ;;  %6414 = vmatpush.bf16.msra.mxu3 %v6405_v17 }
 0x31f   : > { %v3059_v61 = vadd.f32 %v10312_v9, %v3023_v25  ;;  %v4077_v10 = vor.u32 %v4076_v20, %v4072_v28  ;;  %v4082_v25 = vrot.slane %v4080_v27, 5 }
 0x320   : > { %v2354_v46 = vpop.f32.mrf.mxu2  ;;  %v2672_v7 = vpop.f32.mrf.mxu3  ;;  %v3490_v45 = vor.u32 %v3488_v60, %v3487_v44  ;;  %v3492_v58 = vrot.slane %v3487_v44, 4 }
 0x321   : > { %v3091_v48 = vmax.f32 %v3059_v61, 0.0  ;;  %v10428_v1 = vpop.f32.mrf.mxu1  ;;  %v2388_v59 = vadd.f32 %v2354_v46, %v2069_v30  ;;  %v10430_v52 = vpop.f32.mrf.mxu0  ;;  %8412 = vmatmul.msk.bf16.gmra.mxu0 %vm435_vm1, %v8662_v3  ;;  %v4078_v31 = vrot.slane %v4077_v10, 4  ;;  %v4073_v30 = vsel %vm9489_vm10, %v4068_v57, %v4072_v28 }
 0x322   : > { %12156 = vst [vmem:[#allocation6_spill] sm:$0xff] %v10430_v52  ;;  %v3491_v19 = vsel %vm9601_vm13, %v3483_v43, %v3490_v45  ;;  %v3663_v6 = vsel %vm9458_vm5, %v3492_v58, %v3662_v29  ;;  %v3702_v36 = vld [vmem:[#allocation2 + $0xb4] sm:$0xf]  ;;  %v3665_v43 = vld [vmem:[#allocation2 + $0xc0] sm:$0xf]  ;;  %v4138_v46 = vunpack.c.l.b16 %v4073_v30 }
 0x323   : > { %v3234_v34 = vpack.c.bf16 %v3091_v48, %v3091_v48  ;;  %v2706_v32 = vadd.f32 %v2672_v7, %v2388_v59  ;;  %3661 = vst.msk [vmem:[#allocation2 + $0xb8] sm:$0xf] %vm3093_vm2, %v3491_v19  ;;  %v4085_v38 = vshrl.u32 %v3702_v36, 16  ;;  %v4088_v62 = vshll.u32 %v3702_v36, 16  ;;  %v8551_v59 = vld [vmem:[%s12085_s3 + $0xe] sm:$0x3] }
 0x324   : > { %3664 = vst [vmem:[#allocation2 + $0xbc] sm:$0x1] %v3663_v6  ;;  %v4083_v47 = vsel %vm9489_vm10, %v4078_v31, %v4082_v25  ;;  %v7059_v16 = vsel %vm484_vm0, %v8551_v59, 0  ;;  %v7457_v25 = vsel %vm484_vm0, %v8584_v5, 0  ;;  %v8666_v52 = vld [vmem:[#allocation2 + $0x9c] sm:$0xff]  ;;  %vm7779_vm0 = vcmask 1043456  }
 0x325   : > { %v3494_v42 = vshrl.u32 %v3234_v34, 16  ;;  %v3024_v14 = vadd.f32 %v2990_v41, %v2706_v32  ;;  %8298 = vmatmul.msk.bf16.gmra.mxu2 %vm435_vm1, %v8646_v39  ;;  %8331 = vmatmul.msk.bf16.gmra.mxu3 %vm435_vm1, %v10219_v56  ;;  %v3497_v60 = vshll.u32 %v3234_v34, 16  ;;  %v4139_v20 = vunpack.c.l.b16 %v4083_v47 }
 0x326   : > { %v4087_v7 = vrot.slane %v4085_v38, 4  ;;  %v4090_v48 = vrot.slane %v4088_v62, 5  ;;  %7068 = vmatpush.bf16.msra.mxu0 %v7059_v16  ;;  %7466 = vmatpush.bf16.msra.mxu1 %v7457_v25  ;;  %v3669_v62 = vld [vmem:[#allocation2 + $0xc8] sm:$0x1] }
 0x327   : > { %v3496_v44 = vrot.slane %v3494_v42, 7  ;;  %v3060_v61 = vadd.f32 %v10312_v9, %v3024_v14  ;;  %v4156_v9 = vpack.c.b16 %v4139_v20, %v4138_v46  ;;  %v10475_v14 = vld [vmem:[#allocation2 + $0x10] sm:$0xf] }
 0x328   : > { %v4438_v29 = vpop.f32.mrf.mxu2  ;;  %v4791_v41 = vpop.f32.mrf.mxu3  ;;  %v4091_v32 = vor.u32 %v4090_v48, %v4087_v7  ;;  %v5247_v59 = vshll.u32 %v10475_v14, 16 }
 0x329   : > { %v3499_v27 = vor.u32 %v3497_v60, %v3496_v44  ;;  %v3092_v45 = vmax.f32 %v3060_v61, 0.0  ;;  %v10450_v56 = vpop.f32.mrf.mxu1  ;;  %v4439_v28 = vadd.f32 %v4438_v29, %v10190_v15  ;;  %v10453_v58 = vpop.f32.mrf.mxu0  ;;  %v3500_v30 = vrot.slane %v3496_v44, 4 }
 0x32a   : > { %12157 = vst [vmem:[#allocation8_spill] sm:$0xff] %v10453_v58  ;;  %v10463_v17 = vld [vmem:[#allocation2 + $0xb8] sm:$0xf]  ;;  %8224 = vmatmul.msk.bf16.gmra.mxu1 %vm435_vm1, %v4156_v9  ;;  %v4092_v7 = vrot.slane %v4091_v32, 4  ;;  %v5251_v44 = vshrl.u32 %v10475_v14, 16  ;;  %v5249_v32 = vrot.slane %v5247_v59, 5 }
 0x32b   : > { %v3666_v3 = vsel %vm9554_vm11, %v3499_v27, %v3665_v43  ;;  %v3235_v57 = vpack.c.bf16 %v3092_v45, %v3092_v45  ;;  %v10461_v10 = vadd.f32 %v4791_v41, %v4439_v28  ;;  %v10466_v15 = vld [vmem:[#allocation2 + $0xbc] sm:$0x1]  ;;  %v4094_v19 = vshll.u32 %v10463_v17, 16  ;;  %v5189_v27 = vld [vmem:[#allocation2 + $0xc] sm:$0xf]  ;;  %v8664_v59 = vld [vmem:[#allocation2 + $0x84] sm:$0xff] }
 0x32c   : > { %3667 = vst [vmem:[#allocation2 + $0xc0] sm:$0xf] %v3666_v3  ;;  %v4098_v6 = vshrl.u32 %v10463_v17, 16  ;;  %v4104_v31 = vshll.u32 %v10466_v15, 16  ;;  %v8663_v45 = vld [vmem:[#allocation2 + $0x78] sm:$0xff]  ;;  %v5238_v63 = vshrl.u32 %v5189_v27, 16 }
 0x32d   : > { %12158 = vst [vmem:[#allocation9_spill] sm:$0xff] %v10461_v10  ;;  %v3502_v34 = vshrl.u32 %v3235_v57, 16  ;;  %v4096_v39 = vrot.slane %v4094_v19, 5  ;;  %v3505_v42 = vshll.u32 %v3235_v57, 16  ;;  %v5253_v5 = vrot.slane %v5251_v44, 4 }
 0x32e   : > { %v4100_v36 = vrot.slane %v4098_v6, 4  ;;  %v4106_v48 = vrot.slane %v4104_v31, 5 }
 0x32f   : > { %v3504_v38 = vrot.slane %v3502_v34, 7  ;;  %v4097_v57 = vsel %vm9489_vm10, %v4092_v7, %v4096_v39  ;;  %v5241_v34 = vshll.u32 %v5189_v27, 16 }
 0x330   : > { %v4440_v47 = vpop.f32.mrf.mxu2  ;;  %v4793_v60 = vpop.f32.mrf.mxu3  ;;  %v4101_v61 = vor.u32 %v4100_v36, %v4096_v39  ;;  %v4140_v6 = vunpack.c.l.b16 %v4097_v57 }
 0x331   : > { %v3507_v20 = vor.u32 %v3505_v42, %v3504_v38  ;;  %v3509_v43 = vrot.slane %v3504_v38, 4  ;;  %v10477_v29 = vpop.f32.mrf.mxu1  ;;  %v4441_v41 = vadd.f32 %v4440_v47, %v10215_v13  ;;  %v10480_v46 = vpop.f32.mrf.mxu0  ;;  %v8647_v13 = vld [vmem:[#allocation2 + $0x6c] sm:$0xff]  ;;  %8413 = vmatmul.msk.bf16.gmra.mxu0 %vm435_vm1, %v8663_v45  ;;  %v5243_v47 = vrot.slane %v5241_v34, 5 }
 0x332   : > { %12159 = vst [vmem:[#allocation7_spill] sm:$0xff] %v10480_v46  ;;  %v4102_v28 = vrot.slane %v4101_v61, 4 }
 0x333   : > { %v3508_v9 = vsel %vm9601_vm13, %v3500_v30, %v3507_v20  ;;  %v3670_v16 = vsel %vm9458_vm5, %v3509_v43, %v3669_v62  ;;  %v10488_v3 = vadd.f32 %v4793_v60, %v4441_v41  ;;  %v10504_v30 = vld [vmem:[#allocation2 + $0x14] sm:$0x1]  ;;  %v5240_v62 = vrot.slane %v5238_v63, 4  ;;  %v10510_v41 = vld [vmem:[#allocation2 + $0x1c] sm:$0xf] }
 0x334   : > { %3668 = vst.msk [vmem:[#allocation2 + $0xc4] sm:$0xf] %vm3093_vm2, %v3508_v9  ;;  %v4107_v19 = vsel %vm9489_vm10, %v4102_v28, %v4106_v48  ;;  %v5257_v61 = vshll.u32 %v10504_v30, 16  ;;  %v5275_v57 = vshrl.u32 %v10510_v41, 16  ;;  %v4648_v63 = vrot.slane %v10301_v23, 5 }
 0x335   : > { %12160 = vst [vmem:[#allocation11_spill] sm:$0xff] %v10488_v3  ;;  %8299 = vmatmul.msk.bf16.gmra.mxu2 %vm435_vm1, %v8647_v13  ;;  %8332 = vmatmul.msk.bf16.gmra.mxu3 %vm435_vm1, %v10267_v26  ;;  %v4141_v33 = vunpack.c.l.b16 %v4107_v19  ;;  %v5254_v26 = vor.u32 %v5253_v5, %v5249_v32  ;;  %v5244_v20 = vor.u32 %v5243_v47, %v5240_v62  ;;  %v5271_v13 = vshll.u32 %v10510_v41, 16 }
 0x336   : > { %3671 = vst [vmem:[#allocation2 + $0xc8] sm:$0x1] %v3670_v16  ;;  %v5192_v16 = vld [vmem:[#allocation2 + $0x18] sm:$0xf] }
 0x337   : > { %v4157_v31 = vpack.c.b16 %v4141_v33, %v4140_v6  ;;  %v5255_v43 = vrot.slane %v5254_v26, 4  ;;  %v5245_v44 = vrot.slane %v5244_v20, 4  ;;  %v8648_v33 = vld [vmem:[#allocation2 + $0x78] sm:$0xff]  ;;  %v5262_v34 = vshrl.u32 %v5192_v16, 16 }
 0x338   : > { %v4443_v39 = vpop.f32.mrf.mxu2  ;;  %v4796_v36 = vpop.f32.mrf.mxu3  ;;  %v5265_v5 = vshll.u32 %v5192_v16, 16  ;;  %v4650_v26 = vrot.slane %v4648_v63, 4 }
 0x339   : > { %v10499_v25 = vpop.f32.mrf.mxu1  ;;  %v4444_v38 = vadd.f32 %v4443_v39, %v10241_v40  ;;  %v10502_v42 = vpop.f32.mrf.mxu0  ;;  %v5259_v40 = vrot.slane %v5257_v61, 5  ;;  %v10530_v39 = vrot.slane %v5271_v13, 5  ;;  %v10532_v61 = vld [vmem:[#allocation2 + $0x20] sm:$0x1] }
 0x33a   : > { %12161 = vst [vmem:[#allocation12_spill] sm:$0xff] %v10502_v42  ;;  %8225 = vmatmul.msk.bf16.gmra.mxu1 %vm435_vm1, %v4157_v31  ;;  %v5281_v13 = vshll.u32 %v10532_v61, 16 }
 0x33b   : > { %v10506_v60 = vadd.f32 %v4796_v36, %v4444_v38  ;;  %v5260_v9 = vsel %vm9489_vm10, %v5255_v43, %v5259_v40  ;;  %v5277_v36 = vrot.slane %v5275_v57, 4  ;;  %v5195_v38 = vld [vmem:[#allocation2 + $0x24] sm:$0xf]  ;;  %v10539_v40 = vld [vmem:[#allocation2 + $0x28] sm:$0xf] }
 0x33c   : > { %v5624_v6 = vunpack.c.l.b16 %v5260_v9  ;;  %v5289_v9 = vshll.u32 %v5195_v38, 16 }
 0x33d   : > { %12162 = vst [vmem:[#allocation10_spill] sm:$0xff] %v10506_v60 }
 0x340   : > { %v4445_v7 = vpop.f32.mrf.mxu2  ;;  %v4798_v27 = vpop.f32.mrf.mxu3 }
 0x341   : > { %v10512_v45 = vpop.f32.mrf.mxu1  ;;  %v4446_v28 = vadd.f32 %v4445_v7, %v10263_v18  ;;  %v10515_v48 = vpop.f32.mrf.mxu0  ;;  %8414 = vmatmul.msk.bf16.gmra.mxu0 %vm435_vm1, %v8664_v59  ;;  %v5250_v18 = vsel %vm9489_vm10, %v5245_v44, %v5249_v32  ;;  %v5264_v7 = vrot.slane %v5262_v34, 4  ;;  %v5278_v59 = vor.u32 %v5277_v36, %v10530_v39 }
 0x342   : > { %12163 = vst [vmem:[#allocation14_spill] sm:$0xff] %v10515_v48  ;;  %v5623_v31 = vunpack.c.l.b16 %v5250_v18  ;;  %v5286_v44 = vshrl.u32 %v5195_v38, 16  ;;  %v5299_v18 = vshrl.u32 %v10539_v40, 16  ;;  %v5291_v36 = vrot.slane %v5289_v9, 5 }
 0x343   : > { %v10521_v19 = vadd.f32 %v4798_v27, %v4446_v28  ;;  %v5267_v27 = vrot.slane %v5265_v5, 5  ;;  %v4651_v28 = vrot.slane %v10305_v11, 5  ;;  %v5279_v34 = vrot.slane %v5278_v59, 4 }
 0x344   : > { %v5655_v20 = vpack.c.b16 %v5624_v6, %v5623_v31  ;;  %v5288_v5 = vrot.slane %v5286_v44, 4 }
 0x345   : > { %12164 = vst [vmem:[#allocation15_spill] sm:$0xff] %v10521_v19  ;;  %8300 = vmatmul.msk.bf16.gmra.mxu2 %vm435_vm1, %v8648_v33  ;;  %8333 = vmatmul.msk.bf16.gmra.mxu3 %vm435_vm1, %v10320_v12  ;;  %v4529_v12 = vld [vmem:[#allocation2 + $0x84] sm:$0xe]  ;;  %v4652_v57 = vsel %vm9728_vm3, %v4650_v26, %v4651_v28  ;;  %v5295_v33 = vshll.u32 %v10539_v40, 16  ;;  %v5268_v6 = vor.u32 %v5267_v27, %v5264_v7  ;;  %v5301_v26 = vrot.slane %v5299_v18, 4 }
 0x346   : > { %v4706_v31 = vunpack.c.l.b16 %v4652_v57  ;;  %v5292_v9 = vor.u32 %v5291_v36, %v5288_v5 }
 0x347   : > { %v5269_v59 = vrot.slane %v5268_v6, 4 }
 0x348   : > { %v4448_v62 = vpop.f32.mrf.mxu2  ;;  %v4801_v47 = vpop.f32.mrf.mxu3 }
 0x349   : > { %v10534_v32 = vpop.f32.mrf.mxu1  ;;  %v4449_v23 = vadd.f32 %v4448_v62, %v10289_v35  ;;  %v10537_v43 = vpop.f32.mrf.mxu0  ;;  %v8317_v35 = vrot.slane %v4529_v12, 9  ;;  %v5274_v6 = vsel %vm9489_vm10, %v5269_v59, %v10530_v39  ;;  %v7182_v39 = vld [vmem:[#allocation2 + $0x18] sm:$0xe] }
 0x34a   : > { %12165 = vst [vmem:[#allocation13_spill] sm:$0xff] %v10537_v43  ;;  %8421 = vmatmul.msk.bf16.vlgmr.msrb.gmra.mxu1 %vm435_vm1, %v5655_v20  ;;  %v10555_v20 = vrot.slane %v5295_v33, 5  ;;  %v8649_v33 = vld [vmem:[#allocation2 + $0x84] sm:$0xff]  ;;  %v4655_v43 = vrot.slane %v10344_v55, 5 }
 0x34b   : > { %v10543_v16 = vadd.f32 %v4801_v47, %v4449_v23  ;;  %v4649_v11 = vsel %vm9728_vm3, %v8317_v35, %v4648_v63  ;;  %v5283_v47 = vrot.slane %v5281_v13, 5  ;;  %v10553_v23 = vld [vmem:[#allocation2 + $0x2c] sm:$0x1]  ;;  %v8665_v63 = vld [vmem:[#allocation2 + $0x90] sm:$0xff] }
 0x34c   : > { %v4705_v27 = vunpack.c.l.b16 %v4649_v11  ;;  %v5198_v35 = vld [vmem:[#allocation2 + $0x30] sm:$0xf]  ;;  %v10564_v13 = vld [vmem:[#allocation2 + $0x34] sm:$0xf]  ;;  %v5302_v11 = vor.u32 %v5301_v26, %v10555_v20 }
 0x34d   : > { %12166 = vst [vmem:[#allocation17_spill] sm:$0xff] %v10543_v16  ;;  %v5284_v44 = vsel %vm9489_vm10, %v5279_v34, %v5283_v47  ;;  %v5310_v34 = vshrl.u32 %v5198_v35, 16  ;;  %v5319_v5 = vshll.u32 %v10564_v13, 16  ;;  %v5323_v55 = vshrl.u32 %v10564_v13, 16  ;;  %v10597_v16 = vld [vmem:[#allocation2 + $0x20] sm:$0x1] }
 0x34e   : > { %v4726_v18 = vpack.c.b16 %v4706_v31, %v4705_v27  ;;  %v5626_v36 = vunpack.c.l.b16 %v5284_v44  ;;  %v4530_v31 = vld [vmem:[#allocation2 + $0x90] sm:$0xe]  ;;  %v5625_v27 = vunpack.c.l.b16 %v5274_v6 }
 0x34f   : > { %v8318_v6 = vrot.slane %v4530_v31, 9  ;;  %v5847_v31 = vld [vmem:[#allocation2 + $0x3c] sm:$0xe] }
 0x350   : > { %v4450_v38 = vpop.f32.mrf.mxu2  ;;  %v4803_v62 = vpop.f32.mrf.mxu3  ;;  %v5656_v48 = vpack.c.b16 %v5626_v36, %v5625_v27  ;;  %v10615_v36 = vld [vmem:[#allocation2 + $0x2c] sm:$0x1]  ;;  %v8441_v60 = vrot.slane %v5847_v31, 9 }
 0x351   : > { %v10557_v12 = vpop.f32.mrf.mxu1  ;;  %v4451_v28 = vadd.f32 %v4450_v38, %v10316_v53  ;;  %v10560_v7 = vpop.f32.mrf.mxu0  ;;  %v5305_v53 = vshll.u32 %v10553_v23, 16  ;;  %8415 = vmatmul.msk.bf16.gmra.mxu0 %vm435_vm1, %v8665_v63  ;;  %v4657_v38 = vrot.slane %v4655_v43, 4  ;;  %v10583_v63 = vrot.slane %v5302_v11, 4 }
 0x352   : > { %12167 = vst [vmem:[#allocation18_spill] sm:$0xff] %v10560_v7  ;;  %v5325_v11 = vrot.slane %v5323_v55, 4  ;;  %v7183_v55 = vld [vmem:[#allocation2 + $0x24] sm:$0xe] }
 0x353   : > { %v10566_v57 = vadd.f32 %v4803_v62, %v4451_v28  ;;  %v10579_v62 = vrot.slane %v5292_v9, 4  ;;  %v10581_v47 = vrot.slane %v5305_v53, 5  ;;  %v4658_v9 = vrot.slane %v10348_v24, 5 }
 0x354   : > { %v10595_v53 = vrot.slane %v5319_v5, 5  ;;  %v4656_v24 = vsel %vm9728_vm3, %v8318_v6, %v4655_v43  ;;  %v10613_v5 = vld [vmem:[#allocation2 + $0x40] sm:$0xf]  ;;  %v8569_v6 = vrot.slane %v7183_v55, 9 }
 0x355   : > { %12168 = vst [vmem:[#allocation16_spill] sm:$0xff] %v10566_v57  ;;  %8301 = vmatmul.msk.bf16.gmra.mxu2 %vm435_vm1, %v8649_v33  ;;  %8334 = vmatmul.msk.bf16.gmra.mxu3 %vm435_vm1, %v4726_v18  ;;  %v5313_v33 = vshll.u32 %v5198_v35, 16  ;;  %v10585_v18 = vld [vmem:[#allocation2 + $0x1c] sm:$0xf]  ;;  %v10593_v57 = vrot.slane %v5310_v34, 4  ;;  %v5298_v34 = vsel %vm9489_vm10, %v10579_v62, %v10555_v20  ;;  %v5308_v20 = vsel %vm9489_vm10, %v10583_v63, %v10581_v47 }
 0x356   : > { %v10599_v35 = vld [vmem:[#allocation2 + $0x28] sm:$0xf]  ;;  %v10625_v62 = vld [vmem:[#allocation2 + $0x38] sm:$0x1]  ;;  %v4707_v46 = vunpack.c.l.b16 %v4656_v24  ;;  %v5937_v47 = vrot.slane %v10613_v5, 5  ;;  %v4662_v24 = vrot.slane %v10380_v4, 5 }
 0x357   : > { %v7255_v27 = vrot.slane %v10599_v35, 5  ;;  %v5329_v31 = vshll.u32 %v10625_v62, 16 }
 0x358   : > { %v4453_v26 = vpop.f32.mrf.mxu2  ;;  %v4806_v28 = vpop.f32.mrf.mxu3 }
 0x359   : > { %v10587_v59 = vpop.f32.mrf.mxu1  ;;  %v4454_v44 = vadd.f32 %v4453_v26, %v10338_v2  ;;  %v10590_v7 = vpop.f32.mrf.mxu0  ;;  %v4659_v2 = vsel %vm9728_vm3, %v4657_v38, %v4658_v9  ;;  %v8568_v26 = vrot.slane %v7182_v39, 9  ;;  %v5315_v39 = vrot.slane %v5313_v33, 5  ;;  %v10628_v9 = vld [vmem:[#allocation2 + $0x44] sm:$0x1] }
 0x35a   : > { %12169 = vst [vmem:[#allocation19_spill] sm:$0xff] %v10590_v7  ;;  %v7248_v7 = vrot.slane %v10585_v18, 5  ;;  %8422 = vmatmul.msk.bf16.gmra.mxu1 %vm435_vm1, %v5656_v48  ;;  %v7251_v48 = vrot.slane %v10597_v16, 5  ;;  %v4708_v43 = vunpack.c.l.b16 %v4659_v2  ;;  %v7256_v55 = vsel %vm9728_vm3, %v8569_v6, %v7255_v27 }
 0x35b   : > { %v10601_v42 = vadd.f32 %v4806_v28, %v4454_v44  ;;  %v5326_v44 = vor.u32 %v5325_v11, %v10595_v53  ;;  %v5940_v10 = vrot.slane %v10628_v9, 5  ;;  %v7362_v4 = vunpack.c.l.b16 %v7256_v55  ;;  %v7184_v55 = vld [vmem:[#allocation2 + $0x30] sm:$0xe] }
 0x35c   : > { %v7249_v38 = vsel %vm9728_vm3, %v8568_v26, %v7248_v7  ;;  %v7250_v28 = vrot.slane %v7248_v7, 4  ;;  %v7257_v26 = vrot.slane %v7255_v27, 4 }
 0x35d   : > { %12170 = vst [vmem:[#allocation21_spill] sm:$0xff] %v10601_v42  ;;  %v7258_v42 = vrot.slane %v10615_v36, 5  ;;  %v7360_v63 = vunpack.c.l.b16 %v7249_v38  ;;  %v5201_v38 = vld [vmem:[#allocation2 + $0x3c] sm:$0xf] }
 0x35e   : > { %v7252_v7 = vsel %vm9728_vm3, %v7250_v28, %v7251_v48  ;;  %v4727_v48 = vpack.c.b16 %v4708_v43, %v4707_v46  ;;  %v5627_v46 = vunpack.c.l.b16 %v5298_v34  ;;  %v10653_v43 = vld [vmem:[#allocation2 + $0x34] sm:$0xf] }
 0x35f   : > { %v7361_v3 = vunpack.c.l.b16 %v7252_v7  ;;  %v7259_v28 = vsel %vm9728_vm3, %v7257_v26, %v7258_v42  ;;  %v5938_v7 = vsel %vm9728_vm3, %v8441_v60, %v5937_v47  ;;  %v5628_v42 = vunpack.c.l.b16 %v5308_v20 }
 0x360   : > { %v4455_v2 = vpop.f32.mrf.mxu2  ;;  %v4808_v19 = vpop.f32.mrf.mxu3  ;;  %v7363_v6 = vunpack.c.l.b16 %v7259_v28  ;;  %v5327_v26 = vrot.slane %v5326_v44, 4  ;;  %v5337_v60 = vshll.u32 %v5201_v38, 16  ;;  %v4664_v20 = vrot.slane %v4662_v24, 4 }
 0x361   : > { %v10634_v58 = vpop.f32.mrf.mxu1  ;;  %v4456_v33 = vadd.f32 %v4455_v2, %v10354_v22  ;;  %v10637_v11 = vpop.f32.mrf.mxu0  ;;  %v8650_v22 = vld [vmem:[#allocation2 + $0x90] sm:$0xff]  ;;  %v5939_v2 = vrot.slane %v5937_v47, 4  ;;  %v10650_v27 = vpack.c.b16 %v7361_v3, %v7360_v63  ;;  %8416 = vmatmul.msk.bf16.gmra.mxu0 %vm435_vm1, %v8666_v52  ;;  %v6029_v47 = vunpack.c.l.b16 %v5938_v7 }
 0x362   : > { %12171 = vst [vmem:[#allocation20_spill] sm:$0xff] %v10634_v58  ;;  %v10660_v34 = vpack.c.b16 %v7363_v6, %v7362_v4  ;;  %v5331_v63 = vrot.slane %v5329_v31, 5  ;;  %v7262_v28 = vrot.slane %v10653_v43, 5  ;;  %v4665_v31 = vrot.slane %v10384_v0, 5 }
 0x363   : > { %12172 = vst [vmem:[#allocation22_spill] sm:$0xff] %v10637_v11  ;;  %v10646_v58 = vadd.f32 %v4808_v19, %v4456_v33  ;;  %v5316_v19 = vor.u32 %v5315_v39, %v10593_v57  ;;  %v5334_v33 = vshrl.u32 %v5201_v38, 16  ;;  %v5941_v3 = vsel %vm9728_vm3, %v5939_v2, %v5940_v10  ;;  %v4531_v11 = vld [vmem:[#allocation2 + $0x9c] sm:$0xe] }
 0x364   : > { %12174 = vst [vmem:[#allocation25_spill] sm:$0xff] %v10650_v27  ;;  %v6030_v52 = vunpack.c.l.b16 %v5941_v3  ;;  %v5343_v57 = vshll.u32 %v10613_v5, 16  ;;  %v5347_v39 = vshrl.u32 %v10613_v5, 16  ;;  %v10681_v5 = vrot.slane %v5337_v60, 5 }
 0x365   : > { %12173 = vst [vmem:[#allocation23_spill] sm:$0xff] %v10646_v58  ;;  %8302 = vmatmul.msk.bf16.gmra.mxu2 %vm435_vm1, %v8650_v22  ;;  %8335 = vmatmul.msk.bf16.gmra.mxu3 %vm435_vm1, %v4727_v48  ;;  %v5657_v48 = vpack.c.b16 %v5628_v42, %v5627_v46  ;;  %v10673_v2 = vrot.slane %v5316_v19, 4  ;;  %v5332_v46 = vsel %vm9489_vm10, %v5327_v26, %v5331_v63  ;;  %v10677_v42 = vld [vmem:[#allocation2 + $0x38] sm:$0x1]  ;;  %v10679_v4 = vrot.slane %v5334_v33, 4 }
 0x366   : > { %12175 = vst [vmem:[#allocation26_spill] sm:$0xff] %v10660_v34  ;;  %v10665_v44 = vpack.c.b16 %v6030_v52, %v6029_v47  ;;  %v5353_v6 = vshll.u32 %v10628_v9, 16  ;;  %v8570_v3 = vrot.slane %v7184_v55, 9  ;;  %v4666_v0 = vsel %vm9728_vm3, %v4664_v20, %v4665_v31  ;;  %v10691_v63 = vld [vmem:[#allocation2 + $0x40] sm:$0xf] }
 0x367   : > { %v7264_v19 = vrot.slane %v7262_v28, 4  ;;  %v10689_v52 = vrot.slane %v5343_v57, 5  ;;  %v5349_v26 = vrot.slane %v5347_v39, 4  ;;  %v7265_v9 = vrot.slane %v10677_v42, 5  ;;  %v5848_v57 = vld [vmem:[#allocation2 + $0x48] sm:$0xe] }
 0x368   : > { %v4458_v22 = vpop.f32.mrf.mxu2  ;;  %v4811_v27 = vpop.f32.mrf.mxu3  ;;  %12176 = vst [vmem:[#allocation27_spill] sm:$0xff] %v10665_v44  ;;  %v7263_v33 = vsel %vm9728_vm3, %v8570_v3, %v7262_v28  ;;  %v4710_v60 = vunpack.c.l.b16 %v4666_v0  ;;  %v5322_v20 = vsel %vm9489_vm10, %v10673_v2, %v10595_v53  ;;  %v10702_v55 = vunpack.c.l.b16 %v5332_v46  ;;  %v10710_v2 = vld [vmem:[#allocation2 + $0x50] sm:$0x1]  ;;  %v7185_v58 = vld [vmem:[#allocation2 + $0x3c] sm:$0xe] }
 0x369   : > { %v10667_v10 = vpop.f32.mrf.mxu1  ;;  %v4459_v38 = vadd.f32 %v4458_v22, %v10374_v50  ;;  %v10670_v7 = vpop.f32.mrf.mxu0  ;;  %v8319_v50 = vrot.slane %v4531_v11, 9  ;;  %v5204_v11 = vld [vmem:[#allocation2 + $0x48] sm:$0xf]  ;;  %v5205_v22 = vld [vmem:[#allocation2 + $0x4c] sm:$0xf]  ;;  %v5340_v28 = vor.u32 %v10681_v5, %v10679_v4  ;;  %v7364_v39 = vunpack.c.l.b16 %v7263_v33 }
 0x36a   : > { %12177 = vst [vmem:[#allocation28_spill] sm:$0xff] %v10667_v10  ;;  %8423 = vmatmul.msk.bf16.gmra.mxu1 %vm435_vm1, %v5657_v48  ;;  %v7266_v48 = vsel %vm9728_vm3, %v7264_v19, %v7265_v9  ;;  %v5350_v0 = vor.u32 %v5349_v26, %v10689_v52  ;;  %v5355_v53 = vrot.slane %v5353_v6, 5  ;;  %v5358_v46 = vshrl.u32 %v5204_v11, 16  ;;  %v10717_v5 = vld [vmem:[#allocation2 + $0x44] sm:$0x1]  ;;  %v8651_v10 = vld [vmem:[#allocation2 + $0x9c] sm:$0xff] }
 0x36b   : > { %12178 = vst [vmem:[#allocation29_spill] sm:$0xff] %v10670_v7  ;;  %v10684_v47 = vadd.f32 %v4811_v27, %v4459_v38  ;;  %v4663_v27 = vsel %vm9728_vm3, %v8319_v50, %v4662_v24  ;;  %v7365_v38 = vunpack.c.l.b16 %v7266_v48  ;;  %v7269_v24 = vrot.slane %v10691_v63, 5 }
 0x36c   : > { %v4709_v50 = vunpack.c.l.b16 %v4663_v27  ;;  %v5361_v4 = vshll.u32 %v5204_v11, 16  ;;  %v5944_v33 = vrot.slane %v5205_v22, 5  ;;  %v8667_v27 = vld [vmem:[#allocation2 + $0xa8] sm:$0xff]  ;;  %v5371_v26 = vshrl.u32 %v5205_v22, 16 }
 0x36d   : > { %12179 = vst [vmem:[#allocation30_spill] sm:$0xff] %v10684_v47  ;;  %v10719_v48 = vpack.c.b16 %v7365_v38, %v7364_v39  ;;  %v5367_v47 = vshll.u32 %v5205_v22, 16  ;;  %v8442_v6 = vrot.slane %v5848_v57, 9  ;;  %v4669_v11 = vrot.slane %v10413_v37, 5 }
 0x36e   : > { %v4728_v7 = vpack.c.b16 %v4710_v60, %v4709_v50  ;;  %v5360_v39 = vrot.slane %v5358_v46, 4  ;;  %v7272_v60 = vrot.slane %v10717_v5, 5  ;;  %v5363_v22 = vrot.slane %v5361_v4, 5 }
 0x36f   : > { %12182 = vst [vmem:[#allocation33_spill] sm:$0xff] %v10719_v48  ;;  %v5945_v57 = vsel %vm9728_vm3, %v8442_v6, %v5944_v33  ;;  %v10733_v50 = vrot.slane %v5367_v47, 5  ;;  %v5629_v46 = vunpack.c.l.b16 %v5322_v20  ;;  %v4671_v48 = vrot.slane %v4669_v11, 4 }
 0x370   : > { %v4460_v31 = vpop.f32.mrf.mxu2  ;;  %v4813_v3 = vpop.f32.mrf.mxu3 }
 0x371   : > { %v10712_v34 = vpop.f32.mrf.mxu1  ;;  %v4461_v19 = vadd.f32 %v4460_v31, %v10390_v51  ;;  %v10715_v9 = vpop.f32.mrf.mxu0  ;;  %v5947_v51 = vrot.slane %v10710_v2, 5  ;;  %v7271_v31 = vrot.slane %v7269_v24, 4  ;;  %8417 = vmatmul.msk.bf16.gmra.mxu0 %vm435_vm1, %v8667_v27  ;;  %v5341_v27 = vrot.slane %v5340_v28, 4 }
 0x372   : > { %12180 = vst [vmem:[#allocation31_spill] sm:$0xff] %v10712_v34  ;;  %v5946_v34 = vrot.slane %v5944_v33, 4  ;;  %v5658_v6 = vpack.c.b16 %v10702_v55, %v5629_v46  ;;  %v5364_v28 = vor.u32 %v5363_v22, %v5360_v39  ;;  %v5377_v55 = vshll.u32 %v10710_v2, 16  ;;  %v5843_v39 = vld [vmem:[#allocation2 + $0xc] sm:$0xe] }
 0x373   : > { %12181 = vst [vmem:[#allocation32_spill] sm:$0xff] %v10715_v9  ;;  %v10721_v44 = vadd.f32 %v4813_v3, %v4461_v19  ;;  %v5351_v9 = vrot.slane %v5350_v0, 4  ;;  %v8571_v3 = vrot.slane %v7185_v58, 9  ;;  %v5373_v19 = vrot.slane %v5371_v26, 4 }
 0x374   : > { %v5948_v38 = vsel %vm9728_vm3, %v5946_v34, %v5947_v51  ;;  %v7273_v0 = vsel %vm9728_vm3, %v7271_v31, %v7272_v60  ;;  %v6031_v34 = vunpack.c.l.b16 %v5945_v57  ;;  %v4532_v51 = vld [vmem:[#allocation2 + $0xa8] sm:$0xe]  ;;  %v5346_v20 = vsel %vm9489_vm10, %v5341_v27, %v10689_v52  ;;  %v6528_v60 = vld [vmem:[#allocation2 + $0x18] sm:$0xf] }
 0x375   : > { %8303 = vmatmul.msk.bf16.gmra.mxu2 %vm435_vm1, %v8651_v10  ;;  %8336 = vmatmul.msk.bf16.gmra.mxu3 %vm435_vm1, %v4728_v7  ;;  %v6032_v37 = vunpack.c.l.b16 %v5948_v38  ;;  %v7270_v10 = vsel %vm9728_vm3, %v8571_v3, %v7269_v24  ;;  %v5356_v33 = vsel %vm9489_vm10, %v5351_v9, %v5355_v53  ;;  %v7367_v58 = vunpack.c.l.b16 %v7273_v0 }
 0x376   : > { %v4672_v24 = vrot.slane %v10417_v54, 5  ;;  %v5374_v31 = vor.u32 %v5373_v19, %v10733_v50  ;;  %v7366_v9 = vunpack.c.l.b16 %v7270_v10  ;;  %v8320_v52 = vrot.slane %v4532_v51, 9 }
 0x377   : > { %v10750_v53 = vpack.c.b16 %v6032_v37, %v6031_v34  ;;  %v5909_v22 = vrot.slane %v10475_v14, 5  ;;  %v10765_v19 = vunpack.c.l.b16 %v5346_v20  ;;  %v5365_v37 = vrot.slane %v5364_v28, 4  ;;  %v10773_v34 = vld [vmem:[#allocation2 + $0x58] sm:$0xf]  ;;  %v5849_v20 = vld [vmem:[#allocation2 + $0x54] sm:$0xe] }
 0x378   : > { %v4463_v7 = vpop.f32.mrf.mxu2  ;;  %v4816_v4 = vpop.f32.mrf.mxu3  ;;  %v4673_v54 = vsel %vm9728_vm3, %v4671_v48, %v4672_v24  ;;  %v10763_v3 = vpack.c.b16 %v7367_v58, %v7366_v9  ;;  %v6577_v0 = vshrl.u32 %v6528_v60, 16  ;;  %v6580_v46 = vshll.u32 %v6528_v60, 16  ;;  %v8652_v48 = vld [vmem:[#allocation2 + $0xa8] sm:$0xff] }
 0x379   : > { %v10741_v47 = vpop.f32.mrf.mxu1  ;;  %v4464_v26 = vadd.f32 %v4463_v7, %v10408_v8  ;;  %v10754_v38 = vpop.f32.mrf.mxu0  ;;  %v10756_v8 = vunpack.c.l.b16 %v5356_v33  ;;  %v4670_v27 = vsel %vm9728_vm3, %v8320_v52, %v4669_v11  ;;  %v5375_v2 = vrot.slane %v5374_v31, 4 }
 0x37a   : > { %12184 = vst [vmem:[#allocation35_spill] sm:$0xff] %v10754_v38  ;;  %8424 = vmatmul.msk.bf16.gmra.mxu1 %vm435_vm1, %v5658_v6  ;;  %v6586_v10 = vshll.u32 %v10585_v18, 16  ;;  %v6590_v7 = vshrl.u32 %v10585_v18, 16  ;;  %v5379_v14 = vrot.slane %v5377_v55, 5  ;;  %v8437_v33 = vrot.slane %v5843_v39, 9  ;;  %v8668_v55 = vld [vmem:[#allocation2 + $0xb4] sm:$0xff] }
 0x37b   : > { %v10752_v57 = vadd.f32 %v4816_v4, %v4464_v26  ;;  %12185 = vst [vmem:[#allocation36_spill] sm:$0xff] %v10763_v3  ;;  %v4712_v4 = vunpack.c.l.b16 %v4673_v54  ;;  %v5370_v6 = vsel %vm9489_vm10, %v5365_v37, %v10733_v50  ;;  %v5911_v11 = vrot.slane %v5909_v22, 4  ;;  %v10789_v39 = vld [vmem:[#allocation2 + $0x5c] sm:$0x1] }
 0x37c   : > { %v5912_v51 = vrot.slane %v10504_v30, 5  ;;  %v5951_v18 = vrot.slane %v10773_v34, 5  ;;  %v4711_v31 = vunpack.c.l.b16 %v4670_v27  ;;  %v6579_v60 = vrot.slane %v6577_v0, 4  ;;  %v10794_v0 = vld [vmem:[#allocation2 + $0x4c] sm:$0xf] }
 0x37d   : > { %12183 = vst [vmem:[#allocation34_spill] sm:$0xff] %v10752_v57  ;;  %v6582_v9 = vrot.slane %v6580_v46, 5  ;;  %v5380_v52 = vsel %vm9489_vm10, %v5375_v2, %v5379_v14  ;;  %v5910_v50 = vsel %vm9728_vm3, %v8437_v33, %v5909_v22  ;;  %v10787_v54 = vrot.slane %v6586_v10, 5  ;;  %v5844_v10 = vld [vmem:[#allocation2 + $0x18] sm:$0xe] }
 0x37e   : > { %v6592_v30 = vrot.slane %v6590_v7, 4  ;;  %v4729_v3 = vpack.c.b16 %v4712_v4, %v4711_v31  ;;  %v8443_v46 = vrot.slane %v5849_v20, 9  ;;  %v4676_v27 = vrot.slane %v10463_v17, 5  ;;  %v11097_v57 = vld [vmem:[#allocation2 + $0x74] sm:$0x1] }
 0x37f   : > { %v10798_v2 = vunpack.c.l.b16 %v5370_v6  ;;  %v5913_v22 = vsel %vm9728_vm3, %v5911_v11, %v5912_v51  ;;  %v5953_v7 = vrot.slane %v5951_v18, 4  ;;  %v6583_v4 = vor.u32 %v6582_v9, %v6579_v60  ;;  %v6531_v11 = vld [vmem:[#allocation2 + $0x24] sm:$0xf] }
 0x380   : > { %v4465_v58 = vpop.f32.mrf.mxu2  ;;  %v4818_v26 = vpop.f32.mrf.mxu3  ;;  %v5952_v33 = vsel %vm9728_vm3, %v8443_v46, %v5951_v18  ;;  %v5954_v17 = vrot.slane %v10789_v39, 5  ;;  %v6596_v6 = vshll.u32 %v10597_v16, 16  ;;  %v7276_v51 = vrot.slane %v10794_v0, 5 }
 0x381   : > { %v10780_v28 = vpop.f32.mrf.mxu1  ;;  %v4466_v24 = vadd.f32 %v4465_v58, %v10428_v1  ;;  %v5916_v1 = vrot.slane %v10510_v41, 5  ;;  %8418 = vmatmul.msk.bf16.gmra.mxu0 %vm435_vm1, %v8668_v55  ;;  %v10802_v14 = vpop.f32.mrf.mxu0  ;;  %v6021_v41 = vunpack.c.l.b16 %v5910_v50  ;;  %v10809_v58 = vunpack.c.l.b16 %v5380_v52 }
 0x382   : > { %12187 = vst [vmem:[#allocation38_spill] sm:$0xff] %v10802_v14  ;;  %v6022_v20 = vunpack.c.l.b16 %v5913_v22  ;;  %v4678_v18 = vrot.slane %v4676_v27, 4  ;;  %v5919_v9 = vrot.slane %v10532_v61, 5  ;;  %v6033_v55 = vunpack.c.l.b16 %v5952_v33  ;;  %v10822_v14 = vld [vmem:[#allocation2 + $0x50] sm:$0x1] }
 0x383   : > { %v10791_v37 = vadd.f32 %v4818_v26, %v4466_v24  ;;  %v6593_v26 = vor.u32 %v6592_v30, %v10787_v54  ;;  %v5918_v24 = vrot.slane %v5916_v1, 4  ;;  %v4533_v30 = vld [vmem:[#allocation2 + $0xb4] sm:$0xe]  ;;  %v6584_v46 = vrot.slane %v6583_v4, 4 }
 0x384   : > { %v7278_v61 = vrot.slane %v7276_v51, 4  ;;  %v6610_v4 = vshll.u32 %v10599_v35, 16 }
 0x385   : > { %12186 = vst [vmem:[#allocation37_spill] sm:$0xff] %v10791_v37  ;;  %8304 = vmatmul.msk.bf16.gmra.mxu2 %vm435_vm1, %v8652_v48  ;;  %8337 = vmatmul.msk.bf16.gmra.mxu3 %vm435_vm1, %v4729_v3  ;;  %v8438_v48 = vrot.slane %v5844_v10, 9  ;;  %v5955_v3 = vsel %vm9728_vm3, %v5953_v7, %v5954_v17  ;;  %v6601_v10 = vshrl.u32 %v6531_v11, 16  ;;  %v4679_v7 = vrot.slane %v10466_v15, 5 }
 0x386   : > { %v6034_v52 = vunpack.c.l.b16 %v5955_v3  ;;  %v6594_v17 = vrot.slane %v6593_v26, 4  ;;  %v5920_v3 = vsel %vm9728_vm3, %v5918_v24, %v5919_v9  ;;  %v6589_v26 = vsel %vm9489_vm10, %v6584_v46, %v10787_v54 }
 0x387   : > { %v5917_v22 = vsel %vm9728_vm3, %v8438_v48, %v5916_v1  ;;  %v12189_v1 = vpack.c.b16 %v10756_v8, %v10765_v19  ;;  %v8321_v48 = vrot.slane %v4533_v30, 9  ;;  %v4680_v15 = vsel %vm9728_vm3, %v4678_v18, %v4679_v7 }
 0x388   : > { %v4468_v31 = vpop.f32.mrf.mxu2  ;;  %v4821_v60 = vpop.f32.mrf.mxu3  ;;  %v10825_v38 = vpack.c.b16 %v6034_v52, %v6033_v55  ;;  %v10844_v24 = vpack.c.b16 %v6022_v20, %v6021_v41  ;;  %v6598_v9 = vrot.slane %v6596_v6, 5  ;;  %v6614_v8 = vshrl.u32 %v10599_v35, 16  ;;  %v10857_v41 = vld [vmem:[#allocation2 + $0x64] sm:$0xf] }
 0x389   : > { %v10817_v50 = vpop.f32.mrf.mxu1  ;;  %v4469_v16 = vadd.f32 %v4468_v31, %v10450_v56  ;;  %v6604_v56 = vshll.u32 %v6531_v11, 16  ;;  %v7186_v31 = vld [vmem:[#allocation2 + $0x48] sm:$0xe]  ;;  %v4677_v19 = vsel %vm9728_vm3, %v8321_v48, %v4676_v27  ;;  %v6023_v55 = vunpack.c.l.b16 %v5917_v22  ;;  %v10851_v54 = vpop.f32.mrf.mxu0 }
 0x38a   : > { %8425 = vmatmul.msk.bf16.gmra.mxu1 %vm435_vm1, %v12189_v1  ;;  %v6024_v18 = vunpack.c.l.b16 %v5920_v3  ;;  %12190 = vst [vmem:[#allocation40_spill] sm:$0xff] %v10851_v54  ;;  %v6599_v30 = vsel %vm9489_vm10, %v6594_v17, %v6598_v9  ;;  %v10855_v46 = vunpack.c.l.b16 %v6589_v26  ;;  %v8572_v6 = vrot.slane %v7186_v31, 9  ;;  %v5850_v3 = vld [vmem:[#allocation2 + $0x60] sm:$0xe]  ;;  %v8653_v54 = vld [vmem:[#allocation2 + $0xb4] sm:$0xff] }
 0x38b   : > { %v10827_v33 = vadd.f32 %v4821_v60, %v4469_v16  ;;  %v7279_v60 = vrot.slane %v10822_v14, 5  ;;  %v4714_v16 = vunpack.c.l.b16 %v4680_v15  ;;  %v6603_v7 = vrot.slane %v6601_v10, 4 }
 0x38c   : > { %v6606_v27 = vrot.slane %v6604_v56, 5  ;;  %v10859_v22 = vrot.slane %v6610_v4, 5  ;;  %v4713_v15 = vunpack.c.l.b16 %v4677_v19  ;;  %v6616_v17 = vrot.slane %v6614_v8, 4  ;;  %v10871_v4 = vld [vmem:[#allocation2 + $0x68] sm:$0x1] }
 0x38d   : > { %12188 = vst [vmem:[#allocation39_spill] sm:$0xff] %v10827_v33  ;;  %v7280_v52 = vsel %vm9728_vm3, %v7278_v61, %v7279_v60  ;;  %v5958_v61 = vrot.slane %v10857_v41, 5  ;;  %v7277_v26 = vsel %vm9728_vm3, %v8572_v6, %v7276_v51  ;;  %v8669_v60 = vld [vmem:[#allocation2 + $0xc0] sm:$0xff]  ;;  %v10867_v31 = vunpack.c.l.b16 %v6599_v30  ;;  %v10876_v8 = vld [vmem:[#allocation2 + $0x58] sm:$0xf] }
 0x38e   : > { %v5391_v10 = vshll.u32 %v10773_v34, 16  ;;  %v5395_v56 = vshrl.u32 %v10773_v34, 16  ;;  %v7369_v9 = vunpack.c.l.b16 %v7280_v52  ;;  %v4730_v33 = vpack.c.b16 %v4714_v16, %v4713_v15  ;;  %v5207_v51 = vld [vmem:[#allocation2 + $0x54] sm:$0xf]  ;;  %v5845_v16 = vld [vmem:[#allocation2 + $0x24] sm:$0xe] }
 0x38f   : > { %v8444_v19 = vrot.slane %v5850_v3, 9  ;;  %v10879_v30 = vpack.c.b16 %v6024_v18, %v6023_v55  ;;  %v6607_v6 = vor.u32 %v6606_v27, %v6603_v7  ;;  %v7368_v34 = vunpack.c.l.b16 %v7277_v26  ;;  %v6534_v18 = vld [vmem:[#allocation2 + $0x30] sm:$0xf] }
 0x390   : > { %v4470_v35 = vpop.f32.mrf.mxu2  ;;  %v4823_v20 = vpop.f32.mrf.mxu3  ;;  %v6617_v52 = vor.u32 %v6616_v17, %v10859_v22  ;;  %v5961_v3 = vrot.slane %v10871_v4, 5  ;;  %v5397_v55 = vrot.slane %v5395_v56, 4  ;;  %v5382_v27 = vshrl.u32 %v5207_v51, 16 }
 0x391   : > { %v10862_v1 = vpop.f32.mrf.mxu1  ;;  %v4471_v48 = vadd.f32 %v4470_v35, %v10477_v29  ;;  %v6620_v29 = vshll.u32 %v10615_v36, 16  ;;  %8419 = vmatmul.msk.bf16.gmra.mxu0 %vm435_vm1, %v8669_v60  ;;  %v5960_v35 = vrot.slane %v5958_v61, 4  ;;  %v5923_v36 = vrot.slane %v10539_v40, 5 }
 0x392   : > { %v10890_v7 = vpack.c.b16 %v7369_v9, %v7368_v34  ;;  %v6608_v60 = vrot.slane %v6607_v6, 4  ;;  %v6628_v37 = vshll.u32 %v6534_v18, 16 }
 0x393   : > { %v10873_v11 = vadd.f32 %v4823_v20, %v4471_v48  ;;  %v5959_v20 = vsel %vm9728_vm3, %v8444_v19, %v5958_v61  ;;  %v10888_v48 = vrot.slane %v5391_v10, 5  ;;  %v6622_v15 = vrot.slane %v6620_v29, 5  ;;  %v10895_v10 = vpop.f32.mrf.mxu0 }
 0x394   : > { %12192 = vst [vmem:[#allocation42_spill] sm:$0xff] %v10890_v7  ;;  %v5962_v17 = vsel %vm9728_vm3, %v5960_v35, %v5961_v3  ;;  %v8439_v61 = vrot.slane %v5845_v16, 9  ;;  %v6035_v19 = vunpack.c.l.b16 %v5959_v20  ;;  %v5925_v34 = vrot.slane %v5923_v36, 4 }
 0x395   : > { %12191 = vst [vmem:[#allocation41_spill] sm:$0xff] %v10873_v11  ;;  %8305 = vmatmul.msk.bf16.gmra.mxu2 %vm435_vm1, %v8653_v54  ;;  %8338 = vmatmul.msk.bf16.gmra.mxu3 %vm435_vm1, %v4730_v33  ;;  %v7283_v54 = vrot.slane %v10876_v8, 5  ;;  %v5385_v33 = vshll.u32 %v5207_v51, 16  ;;  %v6036_v11 = vunpack.c.l.b16 %v5962_v17  ;;  %v6625_v7 = vshrl.u32 %v6534_v18, 16  ;;  %v10900_v51 = vld [vmem:[#allocation2 + $0x5c] sm:$0x1] }
 0x396   : > { %12193 = vst [vmem:[#allocation43_spill] sm:$0xff] %v10895_v10  ;;  %v5398_v29 = vor.u32 %v5397_v55, %v10888_v48  ;;  %v6618_v35 = vrot.slane %v6617_v52, 4  ;;  %v5384_v20 = vrot.slane %v5382_v27, 4  ;;  %v5926_v10 = vrot.slane %v10553_v23, 5 }
 0x397   : > { %v10903_v3 = vpack.c.b16 %v6036_v11, %v6035_v19  ;;  %v7285_v6 = vrot.slane %v7283_v54, 4  ;;  %v5387_v17 = vrot.slane %v5385_v33, 5  ;;  %v5401_v18 = vshll.u32 %v10789_v39, 16 }
 0x398   : > { %v4473_v40 = vpop.f32.mrf.mxu2  ;;  %v4826_v26 = vpop.f32.mrf.mxu3  ;;  %v6613_v52 = vsel %vm9489_vm10, %v6608_v60, %v10859_v22  ;;  %v10918_v11 = vsel %vm9728_vm3, %v8439_v61, %v5923_v36  ;;  %v7286_v55 = vrot.slane %v10900_v51, 5  ;;  %v10923_v23 = vsel %vm9728_vm3, %v5925_v34, %v5926_v10  ;;  %v10940_v61 = vld [vmem:[#allocation2 + $0x70] sm:$0xf] }
 0x399   : > { %v10897_v56 = vpop.f32.mrf.mxu1  ;;  %v4474_v9 = vadd.f32 %v4473_v40, %v10499_v25  ;;  %v12195_v25 = vpack.c.b16 %v10809_v58, %v10798_v2  ;;  %v10925_v27 = vrot.slane %v6625_v7, 4  ;;  %v10927_v2 = vrot.slane %v6628_v37, 5  ;;  %v7187_v58 = vld [vmem:[#allocation2 + $0x54] sm:$0xe]  ;;  %v10967_v7 = vld [vmem:[#allocation2 + $0x64] sm:$0xf] }
 0x39a   : > { %v6634_v39 = vshll.u32 %v10653_v43, 16  ;;  %v6994_v22 = vpack.c.b16 %v10867_v31, %v10855_v46  ;;  %v5399_v33 = vrot.slane %v5398_v29, 4  ;;  %v6623_v36 = vsel %vm9489_vm10, %v6618_v35, %v6622_v15 }
 0x39b   : > { %v10905_v16 = vadd.f32 %v4826_v26, %v4474_v9  ;;  %8426 = vmatmul.msk.bf16.gmra.mxu1 %vm435_vm1, %v12195_v25  ;;  %v7287_v40 = vsel %vm9728_vm3, %v7285_v6, %v7286_v55  ;;  %v5388_v26 = vor.u32 %v5387_v17, %v5384_v20  ;;  %v10936_v60 = vunpack.c.l.b16 %v6613_v52  ;;  %v5210_v6 = vld [vmem:[#allocation2 + $0x60] sm:$0xf]  ;;  %v5851_v17 = vld [vmem:[#allocation2 + $0x6c] sm:$0xe] }
 0x39c   : > { %v6638_v37 = vshrl.u32 %v10653_v43, 16  ;;  %v5403_v9 = vrot.slane %v5401_v18, 5  ;;  %v5965_v31 = vrot.slane %v10940_v61, 5  ;;  %v8573_v15 = vrot.slane %v7187_v58, 9 }
 0x39d   : > { %12194 = vst [vmem:[#allocation44_spill] sm:$0xff] %v10905_v16  ;;  %v10947_v35 = vunpack.c.l.b16 %v6623_v36  ;;  %v10951_v20 = vrot.slane %v6634_v39, 5  ;;  %v5415_v18 = vshll.u32 %v10857_v41, 16  ;;  %v5419_v52 = vshrl.u32 %v10857_v41, 16  ;;  %v8670_v36 = vld [vmem:[#allocation2 + $0x18] sm:$0xff] }
 0x39e   : > { %v5404_v25 = vsel %vm9489_vm10, %v5399_v33, %v5403_v9  ;;  %v7284_v55 = vsel %vm9728_vm3, %v8573_v15, %v7283_v54  ;;  %v6640_v43 = vrot.slane %v6638_v37, 4  ;;  %v10963_v39 = vld [vmem:[#allocation2 + $0x74] sm:$0x1]  ;;  %v7371_v46 = vunpack.c.l.b16 %v7287_v40  ;;  %v6537_v37 = vld [vmem:[#allocation2 + $0x3c] sm:$0xf] }
 0x39f   : > { %v5406_v33 = vshrl.u32 %v5210_v6, 16  ;;  %v6644_v9 = vshll.u32 %v10677_v42, 16  ;;  %v8445_v41 = vrot.slane %v5851_v17, 9  ;;  %v5967_v16 = vrot.slane %v5965_v31, 4 }
 0x3a0   : > { %v4475_v19 = vpop.f32.mrf.mxu2  ;;  %v4828_v10 = vpop.f32.mrf.mxu3  ;;  %v5409_v40 = vshll.u32 %v5210_v6, 16  ;;  %v5421_v42 = vrot.slane %v5419_v52, 4  ;;  %v5930_v17 = vrot.slane %v10564_v13, 5 }
 0x3a1   : > { %v10944_v34 = vpop.f32.mrf.mxu1  ;;  %v4476_v29 = vadd.f32 %v4475_v19, %v10512_v45  ;;  %v10959_v45 = vpop.f32.mrf.mxu0  ;;  %v5389_v19 = vrot.slane %v5388_v26, 4  ;;  %8552 = vmatmul.msk.bf16.vlgmr.msra.gmra.mxu0 %vm435_vm1, %v6994_v22  ;;  %v5636_v26 = vunpack.c.l.b16 %v5404_v25  ;;  %v7370_v22 = vunpack.c.l.b16 %v7284_v55 }
 0x3a2   : > { %12196 = vst [vmem:[#allocation45_spill] sm:$0xff] %v10959_v45  ;;  %v5966_v15 = vsel %vm9728_vm3, %v8445_v41, %v5965_v31  ;;  %v5408_v55 = vrot.slane %v5406_v33, 4  ;;  %v5411_v41 = vrot.slane %v5409_v40, 5 }
 0x3a3   : > { %v10961_v58 = vadd.f32 %v4828_v10, %v4476_v29  ;;  %v5394_v54 = vsel %vm9489_vm10, %v5389_v19, %v10888_v48  ;;  %v10975_v10 = vrot.slane %v5415_v18, 5  ;;  %v5968_v29 = vrot.slane %v10963_v39, 5 }
 0x3a4   : > { %v5635_v19 = vunpack.c.l.b16 %v5394_v54  ;;  %v6649_v18 = vshrl.u32 %v6537_v37, 16  ;;  %v6652_v48 = vshll.u32 %v6537_v37, 16  ;;  %v10992_v54 = vld [vmem:[#allocation2 + $0x68] sm:$0x1]  ;;  %v5425_v37 = vshll.u32 %v10871_v4, 16 }
 0x3a5   : > { %12197 = vst [vmem:[#allocation46_spill] sm:$0xff] %v10961_v58  ;;  %8454 = vmatmul.msk.bf16.vlgmr.msra.gmra.mxu2 %vm435_vm1, %v10844_v24  ;;  %8535 = vmatmul.msk.bf16.vlgmr.msra.gmra.mxu3 %vm435_vm1, %v8670_v36  ;;  %v6641_v24 = vor.u32 %v6640_v43, %v10951_v20  ;;  %v10982_v36 = vpack.c.b16 %v7371_v46, %v7370_v22  ;;  %v5846_v43 = vld [vmem:[#allocation2 + $0x30] sm:$0xe]  ;;  %v6037_v58 = vunpack.c.l.b16 %v5966_v15  ;;  %v12203_v15 = vunpack.c.l.b16 %v10923_v23 }
 0x3a6   : > { %v5969_v52 = vsel %vm9728_vm3, %v5967_v16, %v5968_v29  ;;  %v5661_v46 = vpack.c.b16 %v5636_v26, %v5635_v19  ;;  %v5422_v22 = vor.u32 %v5421_v42, %v10975_v10  ;;  %v6662_v16 = vshrl.u32 %v10691_v63, 16 }
 0x3a7   : > { %12198 = vst [vmem:[#allocation47_spill] sm:$0xff] %v10982_v36  ;;  %v6038_v13 = vunpack.c.l.b16 %v5969_v52  ;;  %v6658_v36 = vshll.u32 %v10691_v63, 16  ;;  %v6995_v26 = vpack.c.b16 %v10947_v35, %v10936_v60  ;;  %v12202_v42 = vunpack.c.l.b16 %v10918_v11 }
 0x3a8   : > { %v4478_v25 = vpop.f32.mrf.mxu2  ;;  %v4831_v6 = vpop.f32.mrf.mxu3  ;;  %v12205_v19 = vor.u32 %v10927_v2, %v10925_v27  ;;  %v7293_v60 = vrot.slane %v10992_v54, 5  ;;  %v5423_v4 = vrot.slane %v5422_v22, 4  ;;  %v11021_v35 = vrot.slane %v6641_v24, 4  ;;  %v11033_v2 = vld [vmem:[#allocation2 + $0x7c] sm:$0xf] }
 0x3a9   : > { %v10987_v45 = vpop.f32.mrf.mxu1  ;;  %v4479_v31 = vadd.f32 %v4478_v25, %v10534_v32  ;;  %v10997_v29 = vpack.c.b16 %v6038_v13, %v6037_v58  ;;  %v12201_v32 = vrot.slane %v10967_v7, 5  ;;  %v11009_v25 = vpack.c.b16 %v12203_v15, %v12202_v42  ;;  %v11011_v63 = vpop.f32.mrf.mxu0 }
 0x3aa   : > { %12204 = vst [vmem:[#allocation50_spill] sm:$0xff] %v11011_v63  ;;  %v5412_v58 = vor.u32 %v5411_v41, %v5408_v55  ;;  %v11016_v52 = vrot.slane %v12205_v19, 4  ;;  %v11027_v23 = vrot.slane %v6649_v18, 4  ;;  %v11031_v55 = vrot.slane %v6658_v36, 5  ;;  %v6540_v18 = vld [vmem:[#allocation2 + $0x48] sm:$0xf] }
 0x3ab   : > { %v10994_v33 = vadd.f32 %v4831_v6, %v4479_v31  ;;  %12200 = vst [vmem:[#allocation49_spill] sm:$0xff] %v10997_v29  ;;  %v7292_v40 = vrot.slane %v12201_v32, 4  ;;  %8427 = vmatmul.msk.bf16.gmra.mxu1 %vm435_vm1, %v5661_v46  ;;  %v8440_v6 = vrot.slane %v5846_v43, 9  ;;  %v11018_v31 = vrot.slane %v6644_v9, 5  ;;  %v7188_v19 = vld [vmem:[#allocation2 + $0x60] sm:$0xe] }
 0x3ac   : > { %v11029_v43 = vrot.slane %v6652_v48, 5  ;;  %v6664_v27 = vrot.slane %v6662_v16, 4  ;;  %v5427_v13 = vrot.slane %v5425_v37, 5  ;;  %v11039_v46 = vrot.slane %v5930_v17, 4  ;;  %v5852_v37 = vld [vmem:[#allocation2 + $0x78] sm:$0xe] }
 0x3ad   : > { %12199 = vst [vmem:[#allocation48_spill] sm:$0xff] %v10994_v33  ;;  %v11025_v11 = vsel %vm9728_vm3, %v8440_v6, %v5930_v17  ;;  %v11037_v9 = vsel %vm9728_vm3, %v7292_v40, %v7293_v60  ;;  %v5972_v48 = vrot.slane %v11033_v2, 5  ;;  %v5413_v16 = vrot.slane %v5412_v58, 4  ;;  %v5213_v6 = vld [vmem:[#allocation2 + $0x6c] sm:$0xf] }
 0x3ae   : > { %v5428_v17 = vsel %vm9489_vm10, %v5423_v4, %v5427_v13  ;;  %v6647_v15 = vsel %vm9489_vm10, %v11021_v35, %v11018_v31  ;;  %v5443_v58 = vshrl.u32 %v10940_v61, 16  ;;  %v6655_v42 = vor.u32 %v11029_v43, %v11027_v23  ;;  %v11064_v4 = vld [vmem:[#allocation2 + $0x80] sm:$0x1] }
 0x3af   : > { %v6665_v40 = vor.u32 %v6664_v27, %v11031_v55  ;;  %v6673_v13 = vshrl.u32 %v6540_v18, 16  ;;  %v5418_v31 = vsel %vm9489_vm10, %v5413_v16, %v10975_v10  ;;  %v6676_v35 = vshll.u32 %v6540_v18, 16 }
 0x3b0   : > { %v4480_v41 = vpop.f32.mrf.mxu2  ;;  %v4833_v24 = vpop.f32.mrf.mxu3  ;;  %v5638_v23 = vunpack.c.l.b16 %v5428_v17  ;;  %v5430_v43 = vshrl.u32 %v5213_v6, 16  ;;  %v5433_v27 = vshll.u32 %v5213_v6, 16  ;;  %v8574_v22 = vrot.slane %v7188_v19, 9 }
 0x3b1   : > { %v11043_v32 = vpop.f32.mrf.mxu1  ;;  %v4481_v36 = vadd.f32 %v4480_v41, %v10557_v12  ;;  %v5439_v12 = vshll.u32 %v10940_v61, 16  ;;  %v8671_v41 = vld [vmem:[#allocation2 + $0x24] sm:$0xff]  ;;  %8553 = vmatmul.msk.bf16.gmra.mxu0 %vm435_vm1, %v6995_v26  ;;  %v11070_v61 = vld [vmem:[#allocation2 + $0x70] sm:$0xf]  ;;  %v5445_v26 = vrot.slane %v5443_v58, 4  ;;  %v5975_v18 = vrot.slane %v11064_v4, 5  ;;  %v11080_v16 = vpop.f32.mrf.mxu0 }
 0x3b2   : > { %12207 = vst [vmem:[#allocation52_spill] sm:$0xff] %v11080_v16  ;;  %v6675_v63 = vrot.slane %v6673_v13, 4  ;;  %v5637_v19 = vunpack.c.l.b16 %v5418_v31  ;;  %v7373_v17 = vunpack.c.l.b16 %v11037_v9  ;;  %v5432_v29 = vrot.slane %v5430_v43, 4 }
 0x3b3   : > { %v11059_v60 = vadd.f32 %v4833_v24, %v4481_v36  ;;  %v8446_v24 = vrot.slane %v5852_v37, 9  ;;  %v5974_v36 = vrot.slane %v5972_v48, 4  ;;  %v11082_v37 = vrot.slane %v6665_v40, 4 }
 0x3b4   : > { %v5662_v33 = vpack.c.b16 %v5638_v23, %v5637_v19  ;;  %v5435_v31 = vrot.slane %v5433_v27, 5  ;;  %v6656_v9 = vrot.slane %v6655_v42, 4  ;;  %v6682_v23 = vshll.u32 %v10794_v0, 16 }
 0x3b5   : > { %12206 = vst [vmem:[#allocation51_spill] sm:$0xff] %v11059_v60  ;;  %8455 = vmatmul.msk.bf16.gmra.mxu2 %vm435_vm1, %v10879_v30  ;;  %8536 = vmatmul.msk.bf16.gmra.mxu3 %vm435_vm1, %v8671_v41  ;;  %v11075_v60 = vrot.slane %v5439_v12, 5  ;;  %v5973_v10 = vsel %vm9728_vm3, %v8446_v24, %v5972_v48  ;;  %v6668_v30 = vshll.u32 %v10717_v5, 16  ;;  %v6678_v12 = vrot.slane %v6676_v35, 5 }
 0x3b6   : > { %v5976_v58 = vsel %vm9728_vm3, %v5974_v36, %v5975_v18  ;;  %v12208_v48 = vrot.slane %v10967_v7, 5  ;;  %v6039_v5 = vunpack.c.l.b16 %v5973_v10  ;;  %v6686_v43 = vshrl.u32 %v10794_v0, 16 }
 0x3b7   : > { %v6040_v13 = vunpack.c.l.b16 %v5976_v58  ;;  %v5446_v35 = vor.u32 %v5445_v26, %v11075_v60  ;;  %v6967_v27 = vunpack.c.l.b16 %v6647_v15  ;;  %v6670_v26 = vrot.slane %v6668_v30, 5 }
 0x3b8   : > { %v4483_v41 = vpop.f32.mrf.mxu2  ;;  %v4836_v6 = vpop.f32.mrf.mxu3  ;;  %v7291_v24 = vsel %vm9728_vm3, %v8574_v22, %v12208_v48  ;;  %v12212_v48 = vrot.slane %v11070_v61, 5  ;;  %v12214_v19 = vrot.slane %v10625_v62, 5  ;;  %v6679_v42 = vor.u32 %v6678_v12, %v6675_v63 }
 0x3b9   : > { %v11092_v16 = vpop.f32.mrf.mxu1  ;;  %v4484_v40 = vadd.f32 %v4483_v41, %v10587_v59  ;;  %v11101_v18 = vpack.c.b16 %v6040_v13, %v6039_v5  ;;  %v7372_v22 = vunpack.c.l.b16 %v7291_v24  ;;  %v5449_v59 = vshll.u32 %v10963_v39, 16 }
 0x3ba   : > { %12209 = vst [vmem:[#allocation53_spill] sm:$0xff] %v11092_v16  ;;  %v7299_v16 = vrot.slane %v12212_v48, 4  ;;  %v7300_v41 = vrot.slane %v11097_v57, 5  ;;  %v6661_v39 = vsel %vm9489_vm10, %v6656_v9, %v11031_v55  ;;  %v12215_v0 = vsel %vm9489_vm10, %v11016_v52, %v10951_v20 }
 0x3bb   : > { %v11099_v36 = vadd.f32 %v4836_v6, %v4484_v40  ;;  %12211 = vst [vmem:[#allocation55_spill] sm:$0xff] %v11101_v18  ;;  %8428 = vmatmul.msk.bf16.gmra.mxu1 %vm435_vm1, %v5662_v33  ;;  %v11109_v10 = vpack.c.b16 %v7373_v17, %v7372_v22  ;;  %v5447_v6 = vrot.slane %v5446_v35, 4  ;;  %v11117_v33 = vsel %vm9728_vm3, %v11039_v46, %v12214_v19  ;;  %v11130_v17 = vld [vmem:[#allocation2 + $0x88] sm:$0xf]  ;;  %v5853_v35 = vld [vmem:[#allocation2 + $0x84] sm:$0xe] }
 0x3bc   : > { %v6966_v15 = vunpack.c.l.b16 %v12215_v0  ;;  %v5436_v30 = vor.u32 %v5435_v31, %v5432_v29  ;;  %v6671_v62 = vsel %vm9489_vm10, %v11082_v37, %v6670_v26  ;;  %v11134_v46 = vsel %vm9728_vm3, %v7299_v16, %v7300_v41  ;;  %v11141_v29 = vpop.f32.mrf.mxu0  ;;  %v12218_v37 = vld [vmem:[#allocation20_spill] sm:$0xff]  ;;  %v8672_v22 = vld [vmem:[#allocation2 + $0x30] sm:$0xff]  ;;  %v11192_v18 = vld [vmem:[#allocation2 + $0x80] sm:$0x1] }
 0x3bd   : > { %12210 = vst [vmem:[#allocation54_spill] sm:$0xff] %v11099_v36  ;;  %v5451_v63 = vrot.slane %v5449_v59, 5  ;;  %v11136_v12 = vrot.slane %v6682_v23, 5  ;;  %v11138_v24 = vrot.slane %v6686_v43, 4  ;;  %v5979_v20 = vrot.slane %v11130_v17, 5 }
 0x3be   : > { %12213 = vst [vmem:[#allocation56_spill] sm:$0xff] %v11109_v10  ;;  %v6996_v5 = vpack.c.b16 %v6967_v27, %v6966_v15  ;;  %v11147_v16 = vunpack.c.l.b16 %v6661_v39  ;;  %v5216_v31 = vld [vmem:[#allocation2 + $0x78] sm:$0xf]  ;;  %v5463_v59 = vshll.u32 %v11033_v2, 16  ;;  %v5467_v9 = vshrl.u32 %v11033_v2, 16 }
 0x3bf   : > { %12216 = vst [vmem:[#allocation57_spill] sm:$0xff] %v11141_v29  ;;  %v5452_v48 = vsel %vm9489_vm10, %v5447_v6, %v5451_v63  ;;  %v11153_v23 = vrot.slane %v6679_v42, 4  ;;  %v7189_v43 = vld [vmem:[#allocation2 + $0x6c] sm:$0xe]  ;;  %v5437_v27 = vrot.slane %v5436_v30, 4  ;;  %v11157_v41 = vunpack.c.l.b16 %v6671_v62 }
 0x3c0   : > { %v4485_v58 = vpop.f32.mrf.mxu2  ;;  %v4838_v55 = vpop.f32.mrf.mxu3  ;;  %v6692_v19 = vshll.u32 %v10822_v14, 16  ;;  %v11160_v39 = vld [vmem:[#allocation2 + $0x8c] sm:$0x1]  ;;  %v6543_v0 = vld [vmem:[#allocation2 + $0x54] sm:$0xf]  ;;  %v5454_v6 = vshrl.u32 %v5216_v31, 16  ;;  %v6689_v15 = vor.u32 %v11138_v24, %v11136_v12  ;;  %v5640_v30 = vunpack.c.l.b16 %v5452_v48 }
 0x3c1   : > { %v11143_v52 = vpop.f32.mrf.mxu1  ;;  %v4486_v40 = vadd.f32 %v4485_v58, %v12218_v37  ;;  %8554 = vmatmul.msk.bf16.gmra.mxu0 %vm435_vm1, %v6996_v5  ;;  %v11165_v2 = vld [vmem:[#allocation2 + $0x7c] sm:$0xf]  ;;  %v8447_v42 = vrot.slane %v5853_v35, 9  ;;  %v5981_v58 = vrot.slane %v5979_v20, 4  ;;  %v5442_v14 = vsel %vm9489_vm10, %v5437_v27, %v11075_v60  ;;  %v12220_v5 = vld [vmem:[#allocation9_spill] sm:$0xff]  ;;  %v12221_v35 = vld [vmem:[#allocation6_spill] sm:$0xff] }
 0x3c2   : > { %12217 = vst [vmem:[#allocation58_spill] sm:$0xff] %v11143_v52  ;;  %v5457_v62 = vshll.u32 %v5216_v31, 16  ;;  %v11173_v63 = vrot.slane %v5463_v59, 5  ;;  %v5469_v37 = vrot.slane %v5467_v9, 4  ;;  %v6697_v13 = vshrl.u32 %v6543_v0, 16  ;;  %v12223_v27 = vld [vmem:[#allocation28_spill] sm:$0xff] }
 0x3c3   : > { %v11155_v26 = vadd.f32 %v4838_v55, %v4486_v40  ;;  %v8575_v55 = vrot.slane %v7189_v43, 9  ;;  %v5980_v24 = vsel %vm9728_vm3, %v8447_v42, %v5979_v20  ;;  %v5982_v40 = vrot.slane %v11160_v39, 5 }
 0x3c4   : > { %v7304_v10 = vrot.slane %v11165_v2, 5  ;;  %v5639_v48 = vunpack.c.l.b16 %v5442_v14  ;;  %v5456_v31 = vrot.slane %v5454_v6, 4  ;;  %v12222_v9 = vrot.slane %v11070_v61, 5 }
 0x3c5   : > { %12219 = vst [vmem:[#allocation20_spill] sm:$0xff] %v11155_v26  ;;  %8456 = vmatmul.msk.bf16.gmra.mxu2 %vm435_vm1, %v11009_v25  ;;  %8537 = vmatmul.msk.bf16.gmra.mxu3 %vm435_vm1, %v8672_v22  ;;  %v5157_v25 = vadd.f32 %v12221_v35, %v12220_v5  ;;  %v6700_v22 = vshll.u32 %v6543_v0, 16  ;;  %v5983_v59 = vsel %vm9728_vm3, %v5981_v58, %v5982_v40  ;;  %v6041_v5 = vunpack.c.l.b16 %v5980_v24  ;;  %v7190_v58 = vld [vmem:[#allocation2 + $0x78] sm:$0xe]  ;;  %v11194_v40 = vpop.f32.mrf.mxu0 }
 0x3c6   : > { %v7298_v20 = vsel %vm9728_vm3, %v8575_v55, %v12222_v9  ;;  %v6042_v35 = vunpack.c.l.b16 %v5983_v59  ;;  %v7375_v0 = vunpack.c.l.b16 %v11134_v46  ;;  %v5663_v36 = vpack.c.b16 %v5640_v30, %v5639_v48 }
 0x3c7   : > { %v5459_v14 = vrot.slane %v5457_v62, 5  ;;  %v5470_v6 = vor.u32 %v5469_v37, %v11173_v63  ;;  %v7306_v24 = vrot.slane %v7304_v10, 4  ;;  %v6699_v46 = vrot.slane %v6697_v13, 4 }
 0x3c8   : > { %v4488_v26 = vpop.f32.mrf.mxu2  ;;  %v4841_v60 = vpop.f32.mrf.mxu3  ;;  %v11198_v55 = vpack.c.b16 %v6042_v35, %v6041_v5  ;;  %v6706_v30 = vshll.u32 %v10876_v8, 16  ;;  %v6710_v62 = vshrl.u32 %v10876_v8, 16  ;;  %v5473_v37 = vshll.u32 %v11064_v4, 16 }
 0x3c9   : > { %v5731_v43 = vpop.f32.mrf.mxu1  ;;  %v4489_v42 = vadd.f32 %v4488_v26, %v12223_v27  ;;  %v7374_v26 = vunpack.c.l.b16 %v7298_v20  ;;  %v8576_v59 = vrot.slane %v7190_v58, 9  ;;  %v12225_v9 = vunpack.c.l.b16 %v11025_v11 }
 0x3ca   : > { %v11189_v29 = vadd.f32 %v5731_v43, %v5157_v25  ;;  %v6702_v25 = vrot.slane %v6700_v22, 5  ;;  %v12226_v20 = vunpack.c.l.b16 %v11117_v33  ;;  %v6685_v8 = vsel %vm9489_vm10, %v11153_v23, %v11136_v12  ;;  %v12228_v33 = vld [vmem:[#allocation8_spill] sm:$0xff]  ;;  %v12229_v23 = vld [vmem:[#allocation31_spill] sm:$0xff] }
 0x3cb   : > { %v11196_v52 = vadd.f32 %v4841_v60, %v4489_v42  ;;  %8429 = vmatmul.msk.bf16.gmra.mxu1 %vm435_vm1, %v5663_v36  ;;  %v11204_v48 = vpack.c.b16 %v7375_v0, %v7374_v26  ;;  %v7307_v60 = vrot.slane %v11192_v18, 5  ;;  %v6997_v36 = vpack.c.b16 %v11157_v41, %v11147_v16  ;;  %v12227_v42 = vld [vmem:[#allocation11_spill] sm:$0xff]  ;;  %v11225_v26 = vld [vmem:[#allocation2 + $0x88] sm:$0xf] }
 0x3cc   : > { %v6056_v43 = vpack.c.b16 %v12226_v20, %v12225_v9  ;;  %v6694_v13 = vrot.slane %v6692_v19, 5  ;;  %v5460_v4 = vor.u32 %v5459_v14, %v5456_v31  ;;  %v5471_v22 = vrot.slane %v5470_v6, 4  ;;  %v7191_v20 = vld [vmem:[#allocation2 + $0x84] sm:$0xe] }
 0x3cd   : > { %12224 = vst [vmem:[#allocation9_spill] sm:$0xff] %v11204_v48  ;;  %v7305_v27 = vsel %vm9728_vm3, %v8576_v59, %v7304_v10  ;;  %v7308_v11 = vsel %vm9728_vm3, %v7306_v24, %v7307_v60  ;;  %v5158_v5 = vadd.f32 %v12228_v33, %v12227_v42  ;;  %v6690_v16 = vrot.slane %v6689_v15, 4  ;;  %v5219_v24 = vld [vmem:[#allocation2 + $0x84] sm:$0xf] }
 0x3ce   : > { %v6703_v41 = vor.u32 %v6702_v25, %v6699_v46  ;;  %v11223_v58 = vrot.slane %v6706_v30, 5  ;;  %v5475_v31 = vrot.slane %v5473_v37, 5  ;;  %v6712_v14 = vrot.slane %v6710_v62, 4  ;;  %v8673_v46 = vld [vmem:[#allocation2 + $0x3c] sm:$0xff] }
 0x3cf   : > { %v7377_v10 = vunpack.c.l.b16 %v7308_v11  ;;  %v5487_v59 = vshll.u32 %v11130_v17, 16  ;;  %v5491_v60 = vshrl.u32 %v11130_v17, 16  ;;  %v7376_v9 = vunpack.c.l.b16 %v7305_v27  ;;  %v11243_v27 = vld [vmem:[#allocation2 + $0x8c] sm:$0x1] }
 0x3d0   : > { %v4490_v35 = vpop.f32.mrf.mxu2  ;;  %v4843_v0 = vpop.f32.mrf.mxu3  ;;  %v5461_v25 = vrot.slane %v5460_v4, 4  ;;  %v5476_v30 = vsel %vm9489_vm10, %v5471_v22, %v5475_v31  ;;  %v7311_v37 = vrot.slane %v11225_v26, 5  ;;  %v6695_v62 = vsel %vm9489_vm10, %v6690_v16, %v6694_v13 }
 0x3d1   : > { %v5733_v12 = vpop.f32.mrf.mxu1  ;;  %v4491_v19 = vadd.f32 %v4490_v35, %v12229_v23  ;;  %8555 = vmatmul.msk.bf16.gmra.mxu0 %vm435_vm1, %v6997_v36  ;;  %v11240_v11 = vunpack.c.l.b16 %v6685_v8  ;;  %v6716_v17 = vshll.u32 %v10900_v51, 16  ;;  %v11245_v42 = vpack.c.b16 %v7377_v10, %v7376_v9  ;;  %v11247_v4 = vpop.f32.mrf.mxu0  ;;  %v12233_v23 = vld [vmem:[#allocation10_spill] sm:$0xff] }
 0x3d2   : > { %v11228_v6 = vadd.f32 %v5733_v12, %v5158_v5  ;;  %12232 = vst [vmem:[#allocation11_spill] sm:$0xff] %v11247_v4  ;;  %v5466_v36 = vsel %vm9489_vm10, %v5461_v25, %v11173_v63  ;;  %v5478_v22 = vshrl.u32 %v5219_v24, 16  ;;  %v5481_v13 = vshll.u32 %v5219_v24, 16 }
 0x3d3   : > { %v11232_v15 = vadd.f32 %v4843_v0, %v4491_v19  ;;  %12231 = vst [vmem:[#allocation28_spill] sm:$0xff] %v11245_v42  ;;  %v6713_v8 = vor.u32 %v6712_v14, %v11223_v58  ;;  %v5642_v33 = vunpack.c.l.b16 %v5476_v30  ;;  %v11255_v51 = vrot.slane %v5487_v59, 5  ;;  %v12234_v19 = vld [vmem:[#allocation7_spill] sm:$0xff]  ;;  %v11312_v42 = vld [vmem:[#allocation2 + $0x98] sm:$0x1] }
 0x3d4   : > { %v5493_v5 = vrot.slane %v5491_v60, 4  ;;  %v8577_v35 = vrot.slane %v7191_v20, 9  ;;  %v11257_v0 = vunpack.c.l.b16 %v6695_v62  ;;  %v11259_v16 = vrot.slane %v6703_v41, 4 }
 0x3d5   : > { %12230 = vst [vmem:[#allocation6_spill] sm:$0xff] %v11232_v15  ;;  %8457 = vmatmul.msk.bf16.gmra.mxu2 %vm435_vm1, %v6056_v43  ;;  %8538 = vmatmul.msk.bf16.gmra.mxu3 %vm435_vm1, %v8673_v46  ;;  %v7313_v43 = vrot.slane %v7311_v37, 4  ;;  %v7314_v12 = vrot.slane %v11243_v27, 5  ;;  %v5159_v31 = vadd.f32 %v12234_v19, %v12233_v23  ;;  %v5641_v24 = vunpack.c.l.b16 %v5466_v36  ;;  %v11278_v23 = vld [vmem:[#allocation2 + $0x60] sm:$0xf] }
 0x3d6   : > { %v11264_v9 = vrot.slane %v6716_v17, 5  ;;  %v7312_v14 = vsel %vm9728_vm3, %v8577_v35, %v7311_v37  ;;  %v5480_v46 = vrot.slane %v5478_v22, 4  ;;  %v11269_v41 = vrot.slane %v6713_v8, 4  ;;  %v5223_v8 = vld [vmem:[#allocation2 + $0x94] sm:$0xf] }
 0x3d7   : > { %v7315_v25 = vsel %vm9728_vm3, %v7313_v43, %v7314_v12  ;;  %v5664_v20 = vpack.c.b16 %v5642_v33, %v5641_v24  ;;  %v5483_v62 = vrot.slane %v5481_v13, 5  ;;  %v5494_v36 = vor.u32 %v5493_v5, %v11255_v51  ;;  %v5854_v12 = vld [vmem:[#allocation2 + $0x90] sm:$0xe]  ;;  %v11290_v5 = vld [vmem:[#allocation2 + $0x94] sm:$0xf] }
 0x3d8   : > { %v4493_v63 = vpop.f32.mrf.mxu2  ;;  %v4846_v10 = vpop.f32.mrf.mxu3  ;;  %v6730_v37 = vshll.u32 %v10967_v7, 16  ;;  %v7378_v35 = vunpack.c.l.b16 %v7312_v14  ;;  %v5497_v22 = vshll.u32 %v11160_v39, 16  ;;  %v6734_v43 = vshrl.u32 %v10967_v7, 16  ;;  %v11298_v39 = vld [vmem:[#allocation2 + $0x98] sm:$0x1] }
 0x3d9   : > { %v5736_v59 = vpop.f32.mrf.mxu1  ;;  %v4494_v60 = vadd.f32 %v4493_v63, %v10741_v47  ;;  %v7379_v47 = vunpack.c.l.b16 %v7315_v25  ;;  %v6998_v13 = vpack.c.b16 %v11257_v0, %v11240_v11  ;;  %v5495_v63 = vrot.slane %v5494_v36, 4  ;;  %v11301_v0 = vpop.f32.mrf.mxu0 }
 0x3da   : > { %v11273_v30 = vadd.f32 %v5736_v59, %v5159_v31  ;;  %v5484_v31 = vor.u32 %v5483_v62, %v5480_v46  ;;  %v6721_v11 = vshrl.u32 %v11278_v23, 16  ;;  %12237 = vst [vmem:[#allocation10_spill] sm:$0xff] %v11301_v0  ;;  %v11304_v24 = vrot.slane %v6730_v37, 5  ;;  %v12239_v46 = vld [vmem:[#allocation12_spill] sm:$0xff]  ;;  %v8674_v0 = vld [vmem:[#allocation2 + $0x48] sm:$0xff] }
 0x3db   : > { %v11276_v17 = vadd.f32 %v4846_v10, %v4494_v60  ;;  %8430 = vmatmul.msk.bf16.gmra.mxu1 %vm435_vm1, %v5664_v20  ;;  %v11292_v19 = vpack.c.b16 %v7379_v47, %v7378_v35  ;;  %v6724_v10 = vshll.u32 %v11278_v23, 16  ;;  %v8448_v14 = vrot.slane %v5854_v12, 9  ;;  %v12238_v60 = vld [vmem:[#allocation15_spill] sm:$0xff] }
 0x3dc   : > { %v5986_v59 = vrot.slane %v5223_v8, 5  ;;  %v5160_v25 = vadd.f32 %v12239_v46, %v12238_v60  ;;  %v5499_v36 = vrot.slane %v5497_v22, 5  ;;  %v11308_v35 = vrot.slane %v6734_v43, 4  ;;  %v7192_v47 = vld [vmem:[#allocation2 + $0x90] sm:$0xe] }
 0x3dd   : > { %12235 = vst [vmem:[#allocation8_spill] sm:$0xff] %v11276_v17  ;;  %v7318_v33 = vrot.slane %v11290_v5, 5  ;;  %v5989_v12 = vrot.slane %v11298_v39, 5  ;;  %v5485_v46 = vrot.slane %v5484_v31, 4  ;;  %v5222_v43 = vld [vmem:[#allocation2 + $0x90] sm:$0xf] }
 0x3de   : > { %12236 = vst [vmem:[#allocation31_spill] sm:$0xff] %v11292_v19  ;;  %v5987_v23 = vsel %vm9728_vm3, %v8448_v14, %v5986_v59  ;;  %v5988_v37 = vrot.slane %v5986_v59, 4  ;;  %v5500_v22 = vsel %vm9489_vm10, %v5495_v63, %v5499_v36  ;;  %v5511_v48 = vshll.u32 %v5223_v8, 16 }
 0x3df   : > { %v8578_v15 = vrot.slane %v7192_v47, 9  ;;  %v6043_v14 = vunpack.c.l.b16 %v5987_v23  ;;  %v7321_v31 = vrot.slane %v11312_v42, 5  ;;  %v6723_v63 = vrot.slane %v6721_v11, 4 }
 0x3e0   : > { %v4495_v20 = vpop.f32.mrf.mxu2  ;;  %v4848_v62 = vpop.f32.mrf.mxu3  ;;  %v5505_v36 = vshll.u32 %v5222_v43, 16 }
 0x3e1   : > { %v5738_v7 = vpop.f32.mrf.mxu1  ;;  %v4496_v19 = vadd.f32 %v4495_v20, %v10780_v28  ;;  %v5515_v28 = vshrl.u32 %v5223_v8, 16  ;;  %v5990_v20 = vsel %vm9728_vm3, %v5988_v37, %v5989_v12  ;;  %8556 = vmatmul.msk.bf16.gmra.mxu0 %vm435_vm1, %v6998_v13  ;;  %v5490_v8 = vsel %vm9489_vm10, %v5485_v46, %v11255_v51 }
 0x3e2   : > { %v11317_v60 = vadd.f32 %v5738_v7, %v5160_v25  ;;  %v6044_v59 = vunpack.c.l.b16 %v5990_v20  ;;  %v7320_v7 = vrot.slane %v7318_v33, 4  ;;  %v12241_v25 = vld [vmem:[#allocation27_spill] sm:$0xff]  ;;  %v5644_v13 = vunpack.c.l.b16 %v5500_v22  ;;  %v11345_v22 = vpop.f32.mrf.mxu0 }
 0x3e3   : > { %v11321_v17 = vadd.f32 %v4848_v62, %v4496_v19  ;;  %v5502_v19 = vshrl.u32 %v5222_v43, 16  ;;  %v7319_v62 = vsel %vm9728_vm3, %v8578_v15, %v7318_v33  ;;  %v11339_v37 = vrot.slane %v5511_v48, 5 }
 0x3e4   : > { %v11335_v47 = vpack.c.b16 %v6044_v59, %v6043_v14  ;;  %v7322_v23 = vsel %vm9728_vm3, %v7320_v7, %v7321_v31  ;;  %v5517_v12 = vrot.slane %v5515_v28, 4  ;;  %v5643_v4 = vunpack.c.l.b16 %v5490_v8  ;;  %v6549_v59 = vld [vmem:[#allocation2 + $0x6c] sm:$0xf] }
 0x3e5   : > { %12240 = vst [vmem:[#allocation7_spill] sm:$0xff] %v11321_v17  ;;  %8458 = vmatmul.msk.bf16.gmra.mxu2 %vm435_vm1, %v12241_v25  ;;  %8539 = vmatmul.msk.bf16.gmra.mxu3 %vm435_vm1, %v8674_v0  ;;  %v6726_v0 = vrot.slane %v6724_v10, 5  ;;  %v7381_v20 = vunpack.c.l.b16 %v7322_v23  ;;  %v12242_v25 = vld [vmem:[#allocation17_spill] sm:$0xff]  ;;  %v12243_v17 = vld [vmem:[#allocation14_spill] sm:$0xff]  ;;  %v6737_v15 = vor.u32 %v11308_v35, %v11304_v24  ;;  %v7380_v33 = vunpack.c.l.b16 %v7319_v62 }
 0x3e6   : > { %v5161_v51 = vadd.f32 %v12243_v17, %v12242_v25  ;;  %v5504_v48 = vrot.slane %v5502_v19, 4  ;;  %v6754_v10 = vshll.u32 %v11070_v61, 16  ;;  %v6758_v28 = vshrl.u32 %v11070_v61, 16 }
 0x3e7   : > { %v5665_v17 = vpack.c.b16 %v5644_v13, %v5643_v4  ;;  %v5507_v31 = vrot.slane %v5505_v36, 5  ;;  %v11352_v8 = vpack.c.b16 %v7381_v20, %v7380_v33  ;;  %v5518_v35 = vor.u32 %v5517_v12, %v11339_v37 }
 0x3e8   : > { %v4498_v46 = vpop.f32.mrf.mxu2  ;;  %v4851_v11 = vpop.f32.mrf.mxu3  ;;  %v6740_v62 = vshll.u32 %v10992_v54, 16  ;;  %v6745_v19 = vshrl.u32 %v6549_v59, 16  ;;  %v6748_v25 = vshll.u32 %v6549_v59, 16  ;;  %v12246_v4 = vsel %vm9489_vm10, %v11259_v16, %v11223_v58 }
 0x3e9   : > { %v5741_v43 = vpop.f32.mrf.mxu1  ;;  %v4499_v14 = vadd.f32 %v4498_v46, %v10817_v50  ;;  %12244 = vst [vmem:[#allocation15_spill] sm:$0xff] %v11352_v8  ;;  %v12245_v50 = vsel %vm9489_vm10, %v11269_v41, %v11264_v9  ;;  %v6972_v13 = vunpack.c.l.b16 %v12246_v4  ;;  %v5521_v36 = vshll.u32 %v11298_v39, 16  ;;  %v12247_v41 = vld [vmem:[#allocation16_spill] sm:$0xff] }
 0x3ea   : > { %v11350_v7 = vadd.f32 %v5741_v43, %v5161_v51  ;;  %v6973_v61 = vunpack.c.l.b16 %v12245_v50  ;;  %v6738_v12 = vrot.slane %v6737_v15, 4  ;;  %v5508_v54 = vor.u32 %v5507_v31, %v5504_v48  ;;  %v5226_v51 = vld [vmem:[#allocation2 + $0xa0] sm:$0xf]  ;;  %v5225_v31 = vld [vmem:[#allocation2 + $0x9c] sm:$0xf] }
 0x3eb   : > { %v11354_v23 = vadd.f32 %v4851_v11, %v4499_v14  ;;  %8431 = vmatmul.msk.bf16.gmra.mxu1 %vm435_vm1, %v5665_v17  ;;  %v6727_v20 = vor.u32 %v6726_v0, %v6723_v63  ;;  %v11370_v46 = vrot.slane %v6754_v10, 5  ;;  %v6760_v11 = vrot.slane %v6758_v28, 4  ;;  %v12248_v43 = vld [vmem:[#allocation13_spill] sm:$0xff] }
 0x3ec   : > { %v5519_v33 = vrot.slane %v5518_v35, 4  ;;  %v6742_v9 = vrot.slane %v6740_v62, 5  ;;  %v5162_v14 = vadd.f32 %v12248_v43, %v12247_v41  ;;  %v6999_v50 = vpack.c.b16 %v6973_v61, %v6972_v13  ;;  %v11380_v62 = vpop.f32.mrf.mxu0  ;;  %v5855_v13 = vld [vmem:[#allocation2 + $0x9c] sm:$0xe] }
 0x3ed   : > { %v6747_v8 = vrot.slane %v6745_v19, 4  ;;  %v6750_v58 = vrot.slane %v6748_v25, 5  ;;  %v5523_v15 = vrot.slane %v5521_v36, 5  ;;  %v5993_v0 = vrot.slane %v5226_v51, 5  ;;  %v8675_v19 = vld [vmem:[#allocation2 + $0x54] sm:$0xff] }
 0x3ee   : > { %v6743_v63 = vsel %vm9489_vm10, %v6738_v12, %v6742_v9  ;;  %v5509_v10 = vrot.slane %v5508_v54, 4  ;;  %v6728_v28 = vrot.slane %v6727_v20, 4  ;;  %v6761_v35 = vor.u32 %v6760_v11, %v11370_v46  ;;  %v11392_v54 = vld [vmem:[#allocation2 + $0xa4] sm:$0x1]  ;;  %v6552_v11 = vld [vmem:[#allocation2 + $0x78] sm:$0xf] }
 0x3ef   : > { %v5535_v25 = vshll.u32 %v5226_v51, 16  ;;  %v5539_v4 = vshrl.u32 %v5226_v51, 16  ;;  %v11390_v12 = vunpack.c.l.b16 %v6743_v63  ;;  %v6751_v20 = vor.u32 %v6750_v58, %v6747_v8  ;;  %v12250_v58 = vld [vmem:[#allocation21_spill] sm:$0xff] }
 0x3f0   : > { %v4500_v59 = vpop.f32.mrf.mxu2  ;;  %v4853_v17 = vpop.f32.mrf.mxu3  ;;  %v6733_v36 = vsel %vm9489_vm10, %v6728_v28, %v11304_v24  ;;  %v5514_v51 = vsel %vm9489_vm10, %v5509_v10, %v11339_v37  ;;  %v5529_v9 = vshll.u32 %v5225_v31, 16  ;;  %v5995_v41 = vrot.slane %v5993_v0, 4 }
 0x3f1   : > { %v5743_v16 = vpop.f32.mrf.mxu1  ;;  %v4501_v39 = vadd.f32 %v4500_v59, %v10862_v1  ;;  %v5524_v1 = vsel %vm9489_vm10, %v5519_v33, %v5523_v15  ;;  %8557 = vmatmul.msk.bf16.gmra.mxu0 %vm435_vm1, %v6999_v50  ;;  %v5526_v33 = vshrl.u32 %v5225_v31, 16  ;;  %v11400_v24 = vrot.slane %v6761_v35, 4 }
 0x3f2   : > { %v11377_v48 = vadd.f32 %v5743_v16, %v5162_v14  ;;  %v5646_v43 = vunpack.c.l.b16 %v5524_v1  ;;  %v6764_v14 = vshll.u32 %v11097_v57, 16  ;;  %v8449_v59 = vrot.slane %v5855_v13, 9  ;;  %v12251_v16 = vld [vmem:[#allocation18_spill] sm:$0xff] }
 0x3f3   : > { %v11382_v61 = vadd.f32 %v4853_v17, %v4501_v39  ;;  %v11403_v8 = vrot.slane %v5535_v25, 5  ;;  %v5541_v17 = vrot.slane %v5539_v4, 4  ;;  %v6769_v50 = vshrl.u32 %v6552_v11, 16 }
 0x3f4   : > { %v5163_v39 = vadd.f32 %v12251_v16, %v12250_v58  ;;  %v5645_v63 = vunpack.c.l.b16 %v5514_v51  ;;  %v6772_v10 = vshll.u32 %v6552_v11, 16  ;;  %v5994_v28 = vsel %vm9728_vm3, %v8449_v59, %v5993_v0 }
 0x3f5   : > { %12249 = vst [vmem:[#allocation12_spill] sm:$0xff] %v11382_v61  ;;  %8459 = vmatmul.msk.bf16.gmra.mxu2 %vm435_vm1, %v10750_v53  ;;  %8540 = vmatmul.msk.bf16.gmra.mxu3 %vm435_vm1, %v8675_v19  ;;  %v5996_v53 = vrot.slane %v11392_v54, 5  ;;  %v5528_v35 = vrot.slane %v5526_v33, 4  ;;  %v5531_v19 = vrot.slane %v5529_v9, 5  ;;  %v6778_v13 = vshll.u32 %v11165_v2, 16 }
 0x3f6   : > { %v5666_v4 = vpack.c.b16 %v5646_v43, %v5645_v63  ;;  %v6782_v58 = vshrl.u32 %v11165_v2, 16  ;;  %v5542_v11 = vor.u32 %v5541_v17, %v11403_v8  ;;  %v6045_v0 = vunpack.c.l.b16 %v5994_v28  ;;  %v5229_v2 = vld [vmem:[#allocation2 + $0xac] sm:$0xf] }
 0x3f7   : > { %v5997_v1 = vsel %vm9728_vm3, %v5995_v41, %v5996_v53  ;;  %v11421_v33 = vrot.slane %v6751_v20, 4  ;;  %v6771_v9 = vrot.slane %v6769_v50, 4  ;;  %v6774_v41 = vrot.slane %v6772_v10, 5  ;;  %v11423_v53 = vpop.f32.mrf.mxu0  ;;  %v12254_v50 = vld [vmem:[#allocation19_spill] sm:$0xff] }
 0x3f8   : > { %v4503_v15 = vpop.f32.mrf.mxu2  ;;  %v4856_v37 = vpop.f32.mrf.mxu3  ;;  %v6046_v59 = vunpack.c.l.b16 %v5997_v1  ;;  %v5532_v43 = vor.u32 %v5531_v19, %v5528_v35  ;;  %v5545_v16 = vshll.u32 %v11392_v54, 16  ;;  %v6784_v17 = vrot.slane %v6782_v58, 4  ;;  %v6555_v54 = vld [vmem:[#allocation2 + $0x84] sm:$0xf]  ;;  %v5228_v35 = vld [vmem:[#allocation2 + $0xa8] sm:$0xf] }
 0x3f9   : > { %v5746_v31 = vpop.f32.mrf.mxu1  ;;  %v4504_v57 = vadd.f32 %v4503_v15, %v10897_v56  ;;  %v6974_v56 = vunpack.c.l.b16 %v6733_v36  ;;  %v5543_v28 = vrot.slane %v5542_v11, 4  ;;  %v5559_v19 = vshll.u32 %v5229_v2, 16 }
 0x3fa   : > { %v11413_v25 = vadd.f32 %v5746_v31, %v5163_v39  ;;  %v6766_v39 = vrot.slane %v6764_v14, 5  ;;  %v11426_v15 = vpack.c.b16 %v6046_v59, %v6045_v0  ;;  %v12253_v14 = vld [vmem:[#allocation23_spill] sm:$0xff]  ;;  %v5563_v1 = vshrl.u32 %v5229_v2, 16  ;;  %v5856_v0 = vld [vmem:[#allocation2 + $0xa8] sm:$0xe] }
 0x3fb   : > { %v11417_v51 = vadd.f32 %v4856_v37, %v4504_v57  ;;  %8432 = vmatmul.msk.bf16.gmra.mxu1 %vm435_vm1, %v5666_v4  ;;  %v11428_v37 = vrot.slane %v6778_v13, 5  ;;  %v7000_v63 = vpack.c.b16 %v11390_v12, %v6974_v56  ;;  %v5164_v10 = vadd.f32 %v12254_v50, %v12253_v14  ;;  %v8676_v50 = vld [vmem:[#allocation2 + $0x60] sm:$0xff] }
 0x3fc   : > { %v6767_v20 = vsel %vm9489_vm10, %v11400_v24, %v6766_v39  ;;  %v6775_v12 = vor.u32 %v6774_v41, %v6771_v9  ;;  %v5533_v58 = vrot.slane %v5532_v43, 4  ;;  %v5547_v11 = vrot.slane %v5545_v16, 5  ;;  %v5230_v41 = vld [vmem:[#allocation2 + $0xb0] sm:$0x1] }
 0x3fd   : > { %12252 = vst [vmem:[#allocation27_spill] sm:$0xff] %v11417_v51  ;;  %v6000_v59 = vrot.slane %v5229_v2, 5  ;;  %v6785_v24 = vor.u32 %v6784_v17, %v11428_v37  ;;  %v6793_v39 = vshrl.u32 %v6555_v54, 16  ;;  %v6796_v36 = vshll.u32 %v6555_v54, 16 }
 0x3fe   : > { %v5538_v9 = vsel %vm9489_vm10, %v5533_v58, %v11403_v8  ;;  %v5550_v43 = vshrl.u32 %v5228_v35, 16  ;;  %v5553_v16 = vshll.u32 %v5228_v35, 16  ;;  %v11452_v2 = vrot.slane %v5559_v19, 5 }
 0x3ff   : > { %v5565_v17 = vrot.slane %v5563_v1, 4  ;;  %v11457_v54 = vunpack.c.l.b16 %v6767_v20  ;;  %v6776_v8 = vrot.slane %v6775_v12, 4  ;;  %v6003_v35 = vrot.slane %v5230_v41, 5  ;;  %v11464_v19 = vpop.f32.mrf.mxu0  ;;  %v12257_v1 = vld [vmem:[#allocation30_spill] sm:$0xff] }
 0x400   : > { %v4505_v31 = vpop.f32.mrf.mxu2  ;;  %v4858_v57 = vpop.f32.mrf.mxu3  ;;  %12256 = vst [vmem:[#allocation14_spill] sm:$0xff] %v11464_v19  ;;  %v6795_v20 = vrot.slane %v6793_v39, 4 }
 0x401   : > { %v5748_v4 = vpop.f32.mrf.mxu1  ;;  %v4506_v13 = vadd.f32 %v4505_v31, %v10944_v34  ;;  %v5548_v34 = vsel %vm9489_vm10, %v5543_v28, %v5547_v11  ;;  %8558 = vmatmul.msk.bf16.gmra.mxu0 %vm435_vm1, %v7000_v63  ;;  %v6788_v31 = vshll.u32 %v11192_v18, 16  ;;  %v6002_v28 = vrot.slane %v6000_v59, 4 }
 0x402   : > { %v11441_v56 = vadd.f32 %v5748_v4, %v5164_v10  ;;  %v8450_v10 = vrot.slane %v5856_v0, 9  ;;  %v6786_v4 = vrot.slane %v6785_v24, 4  ;;  %v5647_v11 = vunpack.c.l.b16 %v5538_v9 }
 0x403   : > { %v11444_v14 = vadd.f32 %v4858_v57, %v4506_v13  ;;  %v5648_v57 = vunpack.c.l.b16 %v5548_v34  ;;  %v11460_v13 = vld [vmem:[#allocation2 + $0xa0] sm:$0xf]  ;;  %v6798_v0 = vrot.slane %v6796_v36, 5  ;;  %v5552_v18 = vrot.slane %v5550_v43, 4 }
 0x404   : > { %v6001_v63 = vsel %vm9728_vm3, %v8450_v10, %v6000_v59  ;;  %v5566_v24 = vor.u32 %v5565_v17, %v11452_v2  ;;  %v6004_v34 = vsel %vm9728_vm3, %v6002_v28, %v6003_v35  ;;  %v7325_v61 = vrot.slane %v11460_v13, 5  ;;  %v12308_v49 = vld [vmem:[#allocation27_spill] sm:$0xff] }
 0x405   : > { %12255 = vst [vmem:[#allocation17_spill] sm:$0xff] %v11444_v14  ;;  %8460 = vmatmul.msk.bf16.gmra.mxu2 %vm435_vm1, %v10825_v38  ;;  %8541 = vmatmul.msk.bf16.gmra.mxu3 %vm435_vm1, %v8676_v50  ;;  %v12258_v38 = vld [vmem:[#allocation22_spill] sm:$0xff]  ;;  %v5555_v14 = vrot.slane %v5553_v16, 5  ;;  %v6047_v10 = vunpack.c.l.b16 %v6001_v63  ;;  %v6048_v19 = vunpack.c.l.b16 %v6004_v34  ;;  %v5667_v39 = vpack.c.b16 %v5648_v57, %v5647_v11  ;;  %v5231_v57 = vld [vmem:[#allocation2 + $0xb4] sm:$0xf] }
 0x406   : > { %v5165_v58 = vadd.f32 %v12258_v38, %v12257_v1  ;;  %v5569_v36 = vshll.u32 %v5230_v41, 16  ;;  %v6790_v9 = vrot.slane %v6788_v31, 5  ;;  %v11475_v38 = vld [vmem:[#allocation2 + $0xa4] sm:$0x1]  ;;  %v6781_v16 = vsel %vm9489_vm10, %v6776_v8, %v11428_v37  ;;  %v5232_v11 = vld [vmem:[#allocation2 + $0xb8] sm:$0xf] }
 0x407   : > { %v11482_v17 = vpack.c.b16 %v6048_v19, %v6047_v10  ;;  %v5556_v41 = vor.u32 %v5555_v14, %v5552_v18  ;;  %v5567_v31 = vrot.slane %v5566_v24, 4  ;;  %v6799_v63 = vor.u32 %v6798_v0, %v6795_v20  ;;  %v11508_v10 = vpop.f32.mrf.mxu0 }
 0x408   : > { %v4508_v12 = vpop.f32.mrf.mxu2  ;;  %v4861_v50 = vpop.f32.mrf.mxu3  ;;  %v6791_v28 = vsel %vm9489_vm10, %v6786_v4, %v6790_v9  ;;  %v7327_v37 = vrot.slane %v7325_v61, 4  ;;  %v7328_v8 = vrot.slane %v11475_v38, 5  ;;  %v5571_v19 = vrot.slane %v5569_v36, 5 }
 0x409   : > { %v5751_v51 = vpop.f32.mrf.mxu1  ;;  %v4509_v59 = vadd.f32 %v4508_v12, %v10987_v45  ;;  %v12261_v45 = vsel %vm9489_vm10, %v11421_v33, %v11370_v46  ;;  %v6802_v46 = vshll.u32 %v11225_v26, 16  ;;  %v12262_v33 = vld [vmem:[#allocation29_spill] sm:$0xff]  ;;  %v11501_v12 = vunpack.c.l.b16 %v6791_v28 }
 0x40a   : > { %v11473_v1 = vadd.f32 %v5751_v51, %v5165_v58  ;;  %v6976_v51 = vunpack.c.l.b16 %v12261_v45  ;;  %v11496_v58 = vunpack.c.l.b16 %v6781_v16  ;;  %v5166_v14 = vadd.f32 %v12262_v33, %v10721_v44  ;;  %v5857_v16 = vld [vmem:[#allocation2 + $0xb4] sm:$0xe] }
 0x40b   : > { %v11477_v43 = vadd.f32 %v4861_v50, %v4509_v59  ;;  %8433 = vmatmul.msk.bf16.gmra.mxu1 %vm435_vm1, %v5667_v39  ;;  %v6806_v4 = vshrl.u32 %v11225_v26, 16  ;;  %v7329_v20 = vsel %vm9728_vm3, %v7327_v37, %v7328_v8  ;;  %v5557_v18 = vrot.slane %v5556_v41, 4  ;;  %v7193_v59 = vld [vmem:[#allocation2 + $0x9c] sm:$0xe] }
 0x40c   : > { %12259 = vst [vmem:[#allocation16_spill] sm:$0xff] %v11473_v1  ;;  %v7001_v35 = vpack.c.b16 %v11457_v54, %v6976_v51  ;;  %v5572_v54 = vsel %vm9489_vm10, %v5567_v31, %v5571_v19  ;;  %v5574_v24 = vshrl.u32 %v5231_v57, 16  ;;  %v5577_v34 = vshll.u32 %v5231_v57, 16  ;;  %v8677_v57 = vld [vmem:[#allocation2 + $0x6c] sm:$0xff] }
 0x40d   : > { %12260 = vst [vmem:[#allocation13_spill] sm:$0xff] %v11477_v43  ;;  %v5583_v36 = vshll.u32 %v5232_v11, 16  ;;  %v5587_v9 = vshrl.u32 %v5232_v11, 16  ;;  %v11511_v26 = vrot.slane %v6799_v63, 4  ;;  %v5562_v51 = vsel %vm9489_vm10, %v5557_v18, %v11452_v2  ;;  %v11591_v43 = vld [vmem:[#allocation2 + $0xc4] sm:$0xf] }
 0x40e   : > { %v11518_v41 = vrot.slane %v6802_v46, 5  ;;  %v6812_v31 = vshll.u32 %v11243_v27, 16  ;;  %v5650_v37 = vunpack.c.l.b16 %v5572_v54  ;;  %v6808_v8 = vrot.slane %v6806_v4, 4  ;;  %v7194_v4 = vld [vmem:[#allocation2 + $0xa8] sm:$0xe] }
 0x40f   : > { %v8579_v63 = vrot.slane %v7193_v59, 9  ;;  %v5576_v19 = vrot.slane %v5574_v24, 4  ;;  %v5579_v33 = vrot.slane %v5577_v34, 5  ;;  %v6007_v2 = vrot.slane %v5232_v11, 5  ;;  %v12266_v34 = vld [vmem:[#allocation32_spill] sm:$0xff] }
 0x410   : > { %v4510_v0 = vpop.f32.mrf.mxu2  ;;  %v4863_v50 = vpop.f32.mrf.mxu3  ;;  %v5649_v27 = vunpack.c.l.b16 %v5562_v51  ;;  %v11531_v46 = vrot.slane %v5583_v36, 5  ;;  %v7383_v24 = vunpack.c.l.b16 %v7329_v20  ;;  %v11543_v36 = vld [vmem:[#allocation2 + $0xb0] sm:$0x1]  ;;  %v12267_v20 = vld [vmem:[#allocation53_spill] sm:$0xff] }
 0x411   : > { %v5753_v39 = vpop.f32.mrf.mxu1  ;;  %v4511_v44 = vadd.f32 %v4510_v0, %v11043_v32  ;;  %v11523_v32 = vld [vmem:[#allocation2 + $0xbc] sm:$0x1]  ;;  %8559 = vmatmul.msk.bf16.gmra.mxu0 %vm435_vm1, %v7001_v35  ;;  %v8451_v0 = vrot.slane %v5857_v16, 9  ;;  %v7326_v35 = vsel %vm9728_vm3, %v8579_v63, %v7325_v61  ;;  %v6009_v54 = vrot.slane %v6007_v2, 4 }
 0x412   : > { %v11513_v45 = vadd.f32 %v5753_v39, %v5166_v14  ;;  %v11526_v14 = vld [vmem:[#allocation2 + $0xac] sm:$0xf]  ;;  %v6010_v11 = vrot.slane %v11523_v32, 5  ;;  %v5668_v39 = vpack.c.b16 %v5650_v37, %v5649_v27  ;;  %v5580_v51 = vor.u32 %v5579_v33, %v5576_v19  ;;  %v11550_v37 = vld [vmem:[#allocation2 + $0xb8] sm:$0xf]  ;;  %v11558_v33 = vpop.f32.mrf.mxu0 }
 0x413   : > { %v11521_v28 = vadd.f32 %v4863_v50, %v4511_v44  ;;  %v5589_v50 = vrot.slane %v5587_v9, 4  ;;  %v6008_v18 = vsel %vm9728_vm3, %v8451_v0, %v6007_v2  ;;  %v6809_v44 = vor.u32 %v6808_v8, %v11518_v41  ;;  %12270 = vst [vmem:[#allocation30_spill] sm:$0xff] %v11558_v33 }
 0x414   : > { %12263 = vst [vmem:[#allocation21_spill] sm:$0xff] %v11513_v45  ;;  %v7332_v9 = vrot.slane %v11526_v14, 5  ;;  %v7382_v63 = vunpack.c.l.b16 %v7326_v35  ;;  %v8580_v0 = vrot.slane %v7194_v4, 9  ;;  %v6049_v8 = vunpack.c.l.b16 %v6008_v18 }
 0x415   : > { %12264 = vst [vmem:[#allocation18_spill] sm:$0xff] %v11521_v28  ;;  %8461 = vmatmul.msk.bf16.gmra.mxu2 %vm435_vm1, %v10903_v3  ;;  %8542 = vmatmul.msk.bf16.gmra.mxu3 %vm435_vm1, %v8677_v57  ;;  %v12265_v3 = vld [vmem:[#allocation34_spill] sm:$0xff]  ;;  %v6011_v57 = vsel %vm9728_vm3, %v6009_v54, %v6010_v11  ;;  %v5593_v1 = vshll.u32 %v11523_v32, 16  ;;  %v7335_v19 = vrot.slane %v11543_v36, 5  ;;  %v11567_v18 = vrot.slane %v6812_v31, 5 }
 0x416   : > { %v5167_v59 = vadd.f32 %v12266_v34, %v12265_v3  ;;  %v5590_v3 = vor.u32 %v5589_v50, %v11531_v46  ;;  %v6050_v27 = vunpack.c.l.b16 %v6011_v57  ;;  %v11555_v28 = vpack.c.b16 %v7383_v24, %v7382_v63  ;;  %v5235_v11 = vld [vmem:[#allocation2 + $0xc4] sm:$0xf]  ;;  %v7195_v32 = vld [vmem:[#allocation2 + $0xb4] sm:$0xe]  ;;  %v5858_v57 = vld [vmem:[#allocation2 + $0xc0] sm:$0xe] }
 0x417   : > { %v7333_v50 = vsel %vm9728_vm3, %v8580_v0, %v7332_v9  ;;  %v7334_v54 = vrot.slane %v7332_v9, 4  ;;  %v7339_v24 = vrot.slane %v11550_v37, 5  ;;  %v12272_v9 = vld [vmem:[#allocation37_spill] sm:$0xff]  ;;  %v12273_v0 = vld [vmem:[#allocation35_spill] sm:$0xff]  ;;  %v11578_v31 = vrot.slane %v6809_v44, 4 }
 0x418   : > { %v4513_v16 = vpop.f32.mrf.mxu2  ;;  %v4866_v61 = vpop.f32.mrf.mxu3  ;;  %12269 = vst [vmem:[#allocation19_spill] sm:$0xff] %v11555_v28  ;;  %v11562_v4 = vpack.c.b16 %v6050_v27, %v6049_v8  ;;  %v8452_v28 = vrot.slane %v5858_v57, 9 }
 0x419   : > { %v5756_v2 = vpop.f32.mrf.mxu1  ;;  %v4514_v45 = vadd.f32 %v4513_v16, %v12267_v20  ;;  %v5581_v16 = vrot.slane %v5580_v51, 4  ;;  %v7336_v63 = vsel %vm9728_vm3, %v7334_v54, %v7335_v19  ;;  %v7384_v20 = vunpack.c.l.b16 %v7333_v50 }
 0x41a   : > { %v11552_v34 = vadd.f32 %v5756_v2, %v5167_v59  ;;  %v7002_v59 = vpack.c.b16 %v11501_v12, %v11496_v58  ;;  %v11580_v2 = vld [vmem:[#allocation2 + $0xc8] sm:$0x1]  ;;  %v7385_v8 = vunpack.c.l.b16 %v7336_v63  ;;  %v5595_v12 = vrot.slane %v5593_v1, 5 }
 0x41b   : > { %v11560_v35 = vadd.f32 %v4866_v61, %v4514_v45  ;;  %8434 = vmatmul.msk.bf16.gmra.mxu1 %vm435_vm1, %v5668_v39  ;;  %v5591_v45 = vrot.slane %v5590_v3, 4  ;;  %v11572_v61 = vld [vmem:[#allocation2 + $0xbc] sm:$0x1]  ;;  %v5168_v39 = vadd.f32 %v12273_v0, %v12272_v9  ;;  %v5586_v58 = vsel %vm9489_vm10, %v5581_v16, %v11531_v46  ;;  %v7196_v9 = vld [vmem:[#allocation2 + $0xc0] sm:$0xe] }
 0x41c   : > { %12268 = vst [vmem:[#allocation23_spill] sm:$0xff] %v11552_v34  ;;  %v6014_v51 = vrot.slane %v5235_v11, 5  ;;  %v8581_v3 = vrot.slane %v7195_v32, 9  ;;  %v11585_v19 = vpack.c.b16 %v7385_v8, %v7384_v20  ;;  %v7341_v54 = vrot.slane %v7339_v24, 4  ;;  %v5234_v16 = vld [vmem:[#allocation2 + $0xc0] sm:$0xf] }
 0x41d   : > { %12271 = vst [vmem:[#allocation22_spill] sm:$0xff] %v11560_v35  ;;  %v7342_v44 = vrot.slane %v11572_v61, 5  ;;  %v12275_v35 = vld [vmem:[#allocation58_spill] sm:$0xff]  ;;  %v5596_v63 = vsel %vm9489_vm10, %v5591_v45, %v5595_v12  ;;  %v6017_v1 = vrot.slane %v11580_v2, 5  ;;  %v8678_v45 = vld [vmem:[#allocation2 + $0x78] sm:$0xff]  ;;  %v5607_v12 = vshll.u32 %v5235_v11, 16 }
 0x41e   : > { %12274 = vst [vmem:[#allocation29_spill] sm:$0xff] %v11585_v19  ;;  %v7340_v46 = vsel %vm9728_vm3, %v8581_v3, %v7339_v24  ;;  %v6015_v57 = vsel %vm9728_vm3, %v8452_v28, %v6014_v51  ;;  %v6016_v20 = vrot.slane %v6014_v51, 4  ;;  %v11604_v19 = vld [vmem:[#allocation2 + $0xc8] sm:$0x1]  ;;  %v8582_v33 = vrot.slane %v7196_v9, 9  ;;  %v11610_v51 = vpop.f32.mrf.mxu0 }
 0x41f   : > { %v7346_v28 = vrot.slane %v11591_v43, 5  ;;  %12278 = vst [vmem:[#allocation53_spill] sm:$0xff] %v11610_v51 }
 0x420   : > { %v4515_v27 = vpop.f32.mrf.mxu2  ;;  %v4868_v34 = vpop.f32.mrf.mxu3  ;;  %v6018_v24 = vsel %vm9728_vm3, %v6016_v20, %v6017_v1  ;;  %v7349_v1 = vrot.slane %v11604_v19, 5  ;;  %v5609_v20 = vrot.slane %v5607_v12, 5  ;;  %v6826_v12 = vshll.u32 %v11290_v5, 16 }
 0x421   : > { %v5758_v0 = vpop.f32.mrf.mxu1  ;;  %v4516_v50 = vadd.f32 %v4515_v27, %v12275_v35  ;;  %v7343_v35 = vsel %vm9728_vm3, %v7341_v54, %v7342_v44  ;;  %v5611_v27 = vshrl.u32 %v5235_v11, 16  ;;  %8560 = vmatmul.msk.bf16.gmra.mxu0 %vm435_vm1, %v7002_v59  ;;  %v12279_v54 = vld [vmem:[#allocation49_spill] sm:$0xff]  ;;  %v5598_v11 = vshrl.u32 %v5234_v16, 16 }
 0x422   : > { %v11596_v32 = vadd.f32 %v5758_v0, %v5168_v39  ;;  %v7386_v39 = vunpack.c.l.b16 %v7340_v46  ;;  %v7387_v3 = vunpack.c.l.b16 %v7343_v35  ;;  %v6051_v44 = vunpack.c.l.b16 %v6015_v57 }
 0x423   : > { %v11602_v8 = vadd.f32 %v4868_v34, %v4516_v50  ;;  %v5652_v34 = vunpack.c.l.b16 %v5596_v63  ;;  %v6052_v9 = vunpack.c.l.b16 %v6018_v24  ;;  %v7347_v59 = vsel %vm9728_vm3, %v8582_v33, %v7346_v28 }
 0x424   : > { %12276 = vst [vmem:[#allocation34_spill] sm:$0xff] %v11596_v32  ;;  %v11615_v0 = vpack.c.b16 %v7387_v3, %v7386_v39  ;;  %v7348_v50 = vrot.slane %v7346_v28, 4  ;;  %v5601_v46 = vshll.u32 %v5234_v16, 16  ;;  %v5613_v35 = vrot.slane %v5611_v27, 4 }
 0x425   : > { %12277 = vst [vmem:[#allocation32_spill] sm:$0xff] %v11602_v8  ;;  %8462 = vmatmul.msk.bf16.gmra.mxu2 %vm435_vm1, %v12279_v54  ;;  %8543 = vmatmul.msk.bf16.gmra.mxu3 %vm435_vm1, %v8678_v45  ;;  %v11620_v32 = vpack.c.b16 %v6052_v9, %v6051_v44  ;;  %v12280_v54 = vld [vmem:[#allocation39_spill] sm:$0xff]  ;;  %v12281_v8 = vld [vmem:[#allocation38_spill] sm:$0xff]  ;;  %v5651_v57 = vunpack.c.l.b16 %v5586_v58  ;;  %v6815_v24 = vsel %vm9489_vm10, %v11578_v31, %v11567_v18  ;;  %v7388_v27 = vunpack.c.l.b16 %v7347_v59 }
 0x426   : > { %v5169_v45 = vadd.f32 %v12281_v8, %v12280_v54  ;;  %v7350_v33 = vsel %vm9728_vm3, %v7348_v50, %v7349_v1  ;;  %v5600_v44 = vrot.slane %v5598_v11, 4  ;;  %v6830_v58 = vshrl.u32 %v11290_v5, 16  ;;  %v6558_v31 = vld [vmem:[#allocation2 + $0x90] sm:$0xf]  ;;  %v11645_v5 = vpop.f32.mrf.mxu0 }
 0x427   : > { %v7389_v3 = vunpack.c.l.b16 %v7350_v33  ;;  %v5669_v8 = vpack.c.b16 %v5652_v34, %v5651_v57  ;;  %v5603_v54 = vrot.slane %v5601_v46, 5  ;;  %v5614_v18 = vor.u32 %v5613_v35, %v5609_v20 }
 0x428   : > { %v6129_v63 = vpop.f32.mrf.mxu2  ;;  %v6416_v51 = vpop.f32.mrf.mxu3  ;;  %v5617_v59 = vshll.u32 %v11580_v2, 16  ;;  %v6981_v34 = vunpack.c.l.b16 %v6815_v24  ;;  %v6817_v11 = vshrl.u32 %v6558_v31, 16  ;;  %v6820_v50 = vshll.u32 %v6558_v31, 16 }
 0x429   : > { %v5761_v39 = vpop.f32.mrf.mxu1  ;;  %v6209_v16 = vadd.f32 %v6129_v63, %v11189_v29  ;;  %v11637_v21 = vpack.c.b16 %v7389_v3, %v7388_v27  ;;  %v6805_v29 = vsel %vm9489_vm10, %v11511_v26, %v11518_v41  ;;  %v5615_v1 = vrot.slane %v5614_v18, 4  ;;  %v12283_v63 = vld [vmem:[#allocation40_spill] sm:$0xff]  ;;  %v12284_v18 = vld [vmem:[#allocation55_spill] sm:$0xff] }
 0x42a   : > { %v11632_v28 = vadd.f32 %v5761_v39, %v5169_v45  ;;  %v6828_v46 = vrot.slane %v6826_v12, 5  ;;  %v6832_v35 = vrot.slane %v6830_v58, 4  ;;  %v12282_v45 = vld [vmem:[#allocation41_spill] sm:$0xff]  ;;  %v5619_v41 = vrot.slane %v5617_v59, 5 }
 0x42b   : > { %v11635_v9 = vadd.f32 %v6416_v51, %v6209_v16  ;;  %8435 = vmatmul.msk.bf16.gmra.mxu1 %vm435_vm1, %v5669_v8  ;;  %v5604_v51 = vor.u32 %v5603_v54, %v5600_v44  ;;  %v5170_v57 = vadd.f32 %v12283_v63, %v12282_v45  ;;  %v6980_v16 = vunpack.c.l.b16 %v6805_v29  ;;  %v8679_v44 = vld [vmem:[#allocation2 + $0x84] sm:$0xff] }
 0x42c   : > { %v6819_v3 = vrot.slane %v6817_v11, 4  ;;  %v6822_v8 = vrot.slane %v6820_v50, 5  ;;  %v5620_v58 = vsel %vm9489_vm10, %v5615_v1, %v5619_v41  ;;  %v6833_v54 = vor.u32 %v6832_v35, %v6828_v46  ;;  %v12285_v50 = vld [vmem:[#allocation44_spill] sm:$0xff] }
 0x42d   : > { %v7003_v24 = vpack.c.b16 %v6981_v34, %v6980_v16  ;;  %v5605_v12 = vrot.slane %v5604_v51, 4  ;;  %v6836_v29 = vshll.u32 %v11312_v42, 16  ;;  %v5654_v59 = vunpack.c.l.b16 %v5620_v58  ;;  %v12286_v51 = vld [vmem:[#allocation43_spill] sm:$0xff] }
 0x42e   : > { %v6823_v34 = vor.u32 %v6822_v8, %v6819_v3  ;;  %v6834_v11 = vrot.slane %v6833_v54, 4  ;;  %v5171_v45 = vadd.f32 %v12286_v51, %v12285_v50  ;;  %v6850_v3 = vshll.u32 %v11460_v13, 16 }
 0x42f   : > { %v6838_v16 = vrot.slane %v6836_v29, 5  ;;  %v6854_v8 = vshrl.u32 %v11460_v13, 16  ;;  %v12288_v29 = vld [vmem:[#allocation45_spill] sm:$0xff] }
 0x430   : > { %v6131_v33 = vpop.f32.mrf.mxu2  ;;  %v6418_v39 = vpop.f32.mrf.mxu3  ;;  %v6852_v54 = vrot.slane %v6850_v3, 5 }
 0x431   : > { %v5763_v27 = vpop.f32.mrf.mxu1  ;;  %v6210_v26 = vadd.f32 %v6131_v33, %v11228_v6  ;;  %8561 = vmatmul.msk.bf16.gmra.mxu0 %vm435_vm1, %v7003_v24  ;;  %v5610_v6 = vsel %vm9489_vm10, %v5605_v12, %v5609_v20  ;;  %v6839_v41 = vsel %vm9489_vm10, %v6834_v11, %v6838_v16  ;;  %v6561_v24 = vld [vmem:[#allocation2 + $0x9c] sm:$0xf] }
 0x432   : > { %v11650_v2 = vadd.f32 %v5763_v27, %v5170_v57  ;;  %v5653_v63 = vunpack.c.l.b16 %v5610_v6  ;;  %v11665_v57 = vpop.f32.mrf.mxu0  ;;  %v6841_v12 = vshrl.u32 %v6561_v24, 16  ;;  %v6844_v58 = vshll.u32 %v6561_v24, 16  ;;  %v12287_v6 = vld [vmem:[#allocation46_spill] sm:$0xff] }
 0x433   : > { %v11652_v31 = vadd.f32 %v6418_v39, %v6210_v26  ;;  %v6824_v26 = vrot.slane %v6823_v34, 4  ;;  %v12290_v24 = vld [vmem:[#allocation50_spill] sm:$0xff] }
 0x434   : > { %v5670_v20 = vpack.c.b16 %v5654_v59, %v5653_v63  ;;  %v5172_v59 = vadd.f32 %v12288_v29, %v12287_v6  ;;  %v6846_v63 = vrot.slane %v6844_v58, 5 }
 0x435   : > { %8463 = vmatmul.msk.bf16.gmra.mxu2 %vm435_vm1, %v12284_v18  ;;  %8544 = vmatmul.msk.bf16.gmra.mxu3 %vm435_vm1, %v8679_v44  ;;  %v6983_v44 = vunpack.c.l.b16 %v6839_v41  ;;  %v6856_v18 = vrot.slane %v6854_v8, 4  ;;  %v12289_v41 = vld [vmem:[#allocation48_spill] sm:$0xff] }
 0x436   : > { %v5173_v3 = vadd.f32 %v12290_v24, %v12289_v41 }
 0x437   : > { %v6857_v16 = vor.u32 %v6856_v18, %v6852_v54 }
 0x438   : > { %v6134_v1 = vpop.f32.mrf.mxu2  ;;  %v6421_v35 = vpop.f32.mrf.mxu3 }
 0x439   : > { %v5766_v33 = vpop.f32.mrf.mxu1  ;;  %v6211_v39 = vadd.f32 %v6134_v1, %v11273_v30  ;;  %v6829_v30 = vsel %vm9489_vm10, %v6824_v26, %v6828_v46  ;;  %v6858_v26 = vrot.slane %v6857_v16, 4  ;;  %v12293_v16 = vld [vmem:[#allocation52_spill] sm:$0xff] }
 0x43a   : > { %v11668_v27 = vadd.f32 %v5766_v33, %v5171_v45  ;;  %v6982_v50 = vunpack.c.l.b16 %v6829_v30  ;;  %v11684_v46 = vpop.f32.mrf.mxu0 }
 0x43b   : > { %v11670_v42 = vadd.f32 %v6421_v35, %v6211_v39  ;;  %8436 = vmatmul.msk.bf16.gmra.mxu1 %vm435_vm1, %v5670_v20  ;;  %v6843_v35 = vrot.slane %v6841_v12, 4  ;;  %v8680_v39 = vld [vmem:[#allocation2 + $0x90] sm:$0xff] }
 0x43c   : > { %v7004_v1 = vpack.c.b16 %v6983_v44, %v6982_v50 }
 0x43d   : > { %v6847_v20 = vor.u32 %v6846_v63, %v6843_v35 }
 0x43f   : > { %v6848_v6 = vrot.slane %v6847_v20, 4 }
 0x440   : > { %v6136_v34 = vpop.f32.mrf.mxu2  ;;  %v6423_v11 = vpop.f32.mrf.mxu3 }
 0x441   : > { %v5768_v51 = vpop.f32.mrf.mxu1  ;;  %v6212_v45 = vadd.f32 %v6136_v34, %v11317_v60  ;;  %8562 = vmatmul.msk.bf16.gmra.mxu0 %vm435_vm1, %v7004_v1  ;;  %v6860_v60 = vshll.u32 %v11475_v38, 16  ;;  %v6564_v38 = vld [vmem:[#allocation2 + $0xa8] sm:$0xf]  ;;  %v6878_v34 = vshrl.u32 %v11526_v14, 16 }
 0x442   : > { %v11682_v13 = vadd.f32 %v5768_v51, %v5172_v59  ;;  %v6874_v59 = vshll.u32 %v11526_v14, 16  ;;  %v11706_v50 = vpop.f32.mrf.mxu0  ;;  %v6868_v1 = vshll.u32 %v6564_v38, 16 }
 0x443   : > { %v11686_v33 = vadd.f32 %v6423_v11, %v6212_v45  ;;  %v6862_v58 = vrot.slane %v6860_v60, 5  ;;  %v12291_v11 = vld [vmem:[#allocation25_spill] sm:$0xff]  ;;  %v6865_v45 = vshrl.u32 %v6564_v38, 16  ;;  %v6880_v63 = vrot.slane %v6878_v34, 4 }
 0x444   : > { %v6876_v35 = vrot.slane %v6874_v59, 5  ;;  %v12294_v59 = vld [vmem:[#allocation54_spill] sm:$0xff]  ;;  %v12295_v34 = vld [vmem:[#allocation57_spill] sm:$0xff] }
 0x445   : > { %8464 = vmatmul.msk.bf16.gmra.mxu2 %vm435_vm1, %v11198_v55  ;;  %8545 = vmatmul.msk.bf16.gmra.mxu3 %vm435_vm1, %v8680_v39  ;;  %v6863_v55 = vsel %vm9489_vm10, %v6858_v26, %v6862_v58  ;;  %v12292_v39 = vld [vmem:[#allocation51_spill] sm:$0xff] }
 0x446   : > { %v6985_v51 = vunpack.c.l.b16 %v6863_v55  ;;  %v5174_v60 = vadd.f32 %v12293_v16, %v12292_v39  ;;  %v6881_v58 = vor.u32 %v6880_v63, %v6876_v35 }
 0x448   : > { %v6139_v8 = vpop.f32.mrf.mxu2  ;;  %v6426_v30 = vpop.f32.mrf.mxu3  ;;  %v6882_v38 = vrot.slane %v6881_v58, 4 }
 0x449   : > { %v5771_v44 = vpop.f32.mrf.mxu1  ;;  %v6213_v12 = vadd.f32 %v6139_v8, %v11350_v7  ;;  %v6853_v7 = vsel %vm9489_vm10, %v6848_v6, %v6852_v54  ;;  %v6884_v6 = vshll.u32 %v11543_v36, 16 }
 0x44a   : > { %v11696_v18 = vadd.f32 %v5771_v44, %v5173_v3  ;;  %v6984_v41 = vunpack.c.l.b16 %v6853_v7  ;;  %v6870_v44 = vrot.slane %v6868_v1, 5 }
 0x44b   : > { %v11698_v29 = vadd.f32 %v6426_v30, %v6213_v12  ;;  %8585 = vmatmul.msk.bf16.vlgmr.msra.gmra.mxu1 %vm435_vm1, %v12291_v11  ;;  %v6867_v30 = vrot.slane %v6865_v45, 4  ;;  %v8681_v12 = vld [vmem:[#allocation2 + $0x9c] sm:$0xff]  ;;  %v5175_v11 = vadd.f32 %v12295_v34, %v12294_v59  ;;  %v6886_v63 = vrot.slane %v6884_v6, 5 }
 0x44c   : > { %v7005_v8 = vpack.c.b16 %v6985_v51, %v6984_v41  ;;  %v6567_v41 = vld [vmem:[#allocation2 + $0xb4] sm:$0xf] }
 0x44d   : > { %v6871_v55 = vor.u32 %v6870_v44, %v6867_v30  ;;  %v6887_v36 = vsel %vm9489_vm10, %v6882_v38, %v6886_v63 }
 0x450   : > { %v6141_v20 = vpop.f32.mrf.mxu2  ;;  %v6428_v26 = vpop.f32.mrf.mxu3 }
 0x451   : > { %v5773_v14 = vpop.f32.mrf.mxu1  ;;  %v6214_v24 = vadd.f32 %v6141_v20, %v11377_v48  ;;  %8563 = vmatmul.msk.bf16.gmra.mxu0 %vm435_vm1, %v7005_v8  ;;  %v11722_v48 = vpop.f32.mrf.mxu0  ;;  %v6902_v20 = vshrl.u32 %v11550_v37, 16  ;;  %v6892_v8 = vshll.u32 %v6567_v41, 16 }
 0x452   : > { %v11713_v3 = vadd.f32 %v5773_v14, %v5174_v60  ;;  %v6898_v60 = vshll.u32 %v11550_v37, 16  ;;  %v6987_v14 = vunpack.c.l.b16 %v6887_v36  ;;  %v12298_v36 = vld [vmem:[#allocation11_spill] sm:$0xff] }
 0x453   : > { %v11715_v54 = vadd.f32 %v6428_v26, %v6214_v24  ;;  %v12296_v26 = vld [vmem:[#allocation26_spill] sm:$0xff]  ;;  %v6889_v24 = vshrl.u32 %v6567_v41, 16  ;;  %v6904_v44 = vrot.slane %v6902_v20, 4 }
 0x454   : > { %v6900_v30 = vrot.slane %v6898_v60, 5  ;;  %v5177_v60 = vadd.f32 %v12298_v36, %v11196_v52 }
 0x455   : > { %8465 = vmatmul.msk.bf16.gmra.mxu2 %vm435_vm1, %v11335_v47  ;;  %8546 = vmatmul.msk.bf16.gmra.mxu3 %vm435_vm1, %v8681_v12  ;;  %v6872_v47 = vrot.slane %v6871_v55, 4  ;;  %v12297_v12 = vld [vmem:[#allocation20_spill] sm:$0xff] }
 0x456   : > { %v5176_v58 = vadd.f32 %v11194_v40, %v12297_v12  ;;  %v6905_v63 = vor.u32 %v6904_v44, %v6900_v30  ;;  %v6908_v40 = vshll.u32 %v11572_v61, 16  ;;  %v12299_v61 = vld [vmem:[#allocation33_spill] sm:$0xff] }
 0x457   : > { %v6570_v44 = vld [vmem:[#allocation2 + $0xc0] sm:$0xf] }
 0x458   : > { %v6144_v7 = vpop.f32.mrf.mxu2  ;;  %v6431_v51 = vpop.f32.mrf.mxu3 }
 0x459   : > { %v5776_v45 = vpop.f32.mrf.mxu1  ;;  %v6215_v1 = vadd.f32 %v6144_v7, %v11413_v25  ;;  %v6877_v25 = vsel %vm9489_vm10, %v6872_v47, %v6876_v35  ;;  %v11742_v59 = vpop.f32.mrf.mxu0  ;;  %v6906_v47 = vrot.slane %v6905_v63, 4  ;;  %v8683_v63 = vld [vmem:[#allocation2 + $0xb4] sm:$0xff] }
 0x45a   : > { %v11727_v39 = vadd.f32 %v5776_v45, %v5175_v11  ;;  %v6986_v55 = vunpack.c.l.b16 %v6877_v25  ;;  %v6891_v45 = vrot.slane %v6889_v24, 4  ;;  %v6922_v24 = vshll.u32 %v11591_v43, 16 }
 0x45b   : > { %v11729_v16 = vadd.f32 %v6431_v51, %v6215_v1  ;;  %8586 = vmatmul.msk.bf16.gmra.mxu1 %vm435_vm1, %v12296_v26  ;;  %v8682_v51 = vld [vmem:[#allocation2 + $0xa8] sm:$0xff]  ;;  %v6894_v1 = vrot.slane %v6892_v8, 5  ;;  %v6910_v26 = vrot.slane %v6908_v40, 5 }
 0x45c   : > { %v7006_v7 = vpack.c.b16 %v6987_v14, %v6986_v55  ;;  %v6924_v55 = vrot.slane %v6922_v24, 5 }
 0x45d   : > { %v6911_v14 = vsel %vm9489_vm10, %v6906_v47, %v6910_v26  ;;  %v12302_v26 = vld [vmem:[#allocation8_spill] sm:$0xff] }
 0x45e   : > { %v6989_v12 = vunpack.c.l.b16 %v6911_v14 }
 0x460   : > { %v6146_v6 = vpop.f32.mrf.mxu2  ;;  %v6433_v11 = vpop.f32.mrf.mxu3 }
 0x461   : > { %v5778_v38 = vpop.f32.mrf.mxu1  ;;  %v6216_v37 = vadd.f32 %v6146_v6, %v11441_v56  ;;  %8564 = vmatmul.msk.bf16.gmra.mxu0 %vm435_vm1, %v7006_v7  ;;  %v6895_v56 = vor.u32 %v6894_v1, %v6891_v45  ;;  %v11761_v8 = vpop.f32.mrf.mxu0  ;;  %v6916_v6 = vshll.u32 %v6570_v44, 16 }
 0x462   : > { %v11744_v34 = vadd.f32 %v5778_v38, %v5176_v58  ;;  %v6913_v58 = vshrl.u32 %v6570_v44, 16 }
 0x463   : > { %v11746_v35 = vadd.f32 %v6433_v11, %v6216_v37  ;;  %v6896_v25 = vrot.slane %v6895_v56, 4  ;;  %v12300_v37 = vld [vmem:[#allocation6_spill] sm:$0xff]  ;;  %v6918_v56 = vrot.slane %v6916_v6, 5 }
 0x464   : > { %v12301_v11 = vld [vmem:[#allocation10_spill] sm:$0xff]  ;;  %v6915_v40 = vrot.slane %v6913_v58, 4  ;;  %v12304_v58 = vld [vmem:[#allocation7_spill] sm:$0xff] }
 0x465   : > { %8466 = vmatmul.msk.bf16.gmra.mxu2 %vm435_vm1, %v11426_v15  ;;  %8547 = vmatmul.msk.bf16.gmra.mxu3 %vm435_vm1, %v8682_v51  ;;  %v6926_v15 = vshrl.u32 %v11591_v43, 16  ;;  %v6901_v52 = vsel %vm9489_vm10, %v6896_v25, %v6900_v30  ;;  %v5178_v7 = vadd.f32 %v12301_v11, %v12300_v37  ;;  %v6932_v30 = vshll.u32 %v11604_v19, 16 }
 0x466   : > { %v6988_v51 = vunpack.c.l.b16 %v6901_v52  ;;  %v5179_v25 = vadd.f32 %v11345_v22, %v12302_v26  ;;  %v5180_v22 = vadd.f32 %v11380_v62, %v12304_v58  ;;  %v12305_v58 = vld [vmem:[#allocation42_spill] sm:$0xff] }
 0x467   : > { %v6928_v38 = vrot.slane %v6926_v15, 4  ;;  %v6934_v24 = vrot.slane %v6932_v30, 5 }
 0x468   : > { %v7007_v1 = vpack.c.b16 %v6989_v12, %v6988_v51  ;;  %v11794_v51 = vld [vmem:[#allocation2 + $0xd0] sm:$0xf] }
 0x469   : > { %v5781_v20 = vpop.f32.mrf.mxu1  ;;  %v6929_v47 = vor.u32 %v6928_v38, %v6924_v55  ;;  %v11776_v36 = vpop.f32.mrf.mxu0 }
 0x46a   : > { %v11755_v41 = vadd.f32 %v5781_v20, %v5177_v60  ;;  %v6919_v60 = vor.u32 %v6918_v56, %v6915_v40  ;;  %v6950_v56 = vshrl.u32 %v11794_v51, 16 }
 0x46b   : > { %8587 = vmatmul.msk.bf16.gmra.mxu1 %vm435_vm1, %v12299_v61  ;;  %v6930_v20 = vrot.slane %v6929_v47, 4 }
 0x46c   : > { %v6920_v61 = vrot.slane %v6919_v60, 4 }
 0x46d   : > { %v6935_v44 = vsel %vm9489_vm10, %v6930_v20, %v6934_v24  ;;  %v6952_v20 = vrot.slane %v6950_v56, 4  ;;  %v5183_v56 = vadd.f32 %v11508_v10, %v12308_v49  ;;  %v12315_v10 = vld [vmem:[#allocation18_spill] sm:$0xff] }
 0x46e   : > { %v6925_v19 = vsel %vm9489_vm10, %v6920_v61, %v6924_v55  ;;  %v6991_v52 = vunpack.c.l.b16 %v6935_v44  ;;  %v6946_v55 = vshll.u32 %v11794_v51, 16 }
 0x46f   : > { %v6990_v6 = vunpack.c.l.b16 %v6925_v19 }
 0x470   : > { %v6948_v60 = vrot.slane %v6946_v55, 5 }
 0x471   : > { %v5783_v45 = vpop.f32.mrf.mxu1  ;;  %8565 = vmatmul.msk.bf16.gmra.mxu0 %vm435_vm1, %v7007_v1  ;;  %v11788_v12 = vpop.f32.mrf.mxu0  ;;  %v7008_v11 = vpack.c.b16 %v6991_v52, %v6990_v6  ;;  %v8684_v1 = vld [vmem:[#allocation2 + $0xc0] sm:$0xff] }
 0x472   : > { %v11769_v43 = vadd.f32 %v5783_v45, %v5178_v7  ;;  %v6573_v7 = vld [vmem:[#allocation2 + $0xcc] sm:$0xf]  ;;  %v11796_v45 = vld [vmem:[#allocation2 + $0xd4] sm:$0x1] }
 0x473   : > { %v6940_v40 = vshll.u32 %v6573_v7, 16  ;;  %v6956_v62 = vshll.u32 %v11796_v45, 16 }
 0x475   : > { %8467 = vmatmul.msk.bf16.gmra.mxu2 %vm435_vm1, %v11482_v17  ;;  %8548 = vmatmul.msk.bf16.gmra.mxu3 %vm435_vm1, %v8683_v63  ;;  %v12303_v17 = vld [vmem:[#allocation36_spill] sm:$0xff]  ;;  %v6937_v63 = vshrl.u32 %v6573_v7, 16  ;;  %v6942_v30 = vrot.slane %v6940_v40, 5  ;;  %v6958_v24 = vrot.slane %v6956_v62, 5 }
 0x477   : > { %v6939_v47 = vrot.slane %v6937_v63, 4  ;;  %v8685_v63 = vld [vmem:[#allocation2 + $0xcc] sm:$0xff] }
 0x479   : > { %v5786_v14 = vpop.f32.mrf.mxu1  ;;  %v6943_v26 = vor.u32 %v6942_v30, %v6939_v47  ;;  %v12309_v30 = vld [vmem:[#allocation47_spill] sm:$0xff] }
 0x47a   : > { %v11780_v15 = vadd.f32 %v5786_v14, %v5179_v25  ;;  %v5181_v25 = vadd.f32 %v11423_v53, %v11354_v23  ;;  %v6953_v14 = vor.u32 %v6952_v20, %v6948_v60  ;;  %v12306_v53 = vld [vmem:[#allocation12_spill] sm:$0xff]  ;;  %v12311_v20 = vld [vmem:[#allocation30_spill] sm:$0xff] }
 0x47b   : > { %8588 = vmatmul.msk.bf16.gmra.mxu1 %vm435_vm1, %v12303_v17  ;;  %v6944_v44 = vrot.slane %v6943_v26, 4  ;;  %v11807_v17 = vpop.f32.mrf.mxu0 }
 0x47c   : > { %v6954_v52 = vrot.slane %v6953_v14, 4 }
 0x481   : > { %v5788_v38 = vpop.f32.mrf.mxu1  ;;  %8566 = vmatmul.msk.bf16.gmra.mxu0 %vm435_vm1, %v7008_v11 }
 0x482   : > { %v11792_v37 = vadd.f32 %v5788_v38, %v5180_v22  ;;  %v6959_v22 = vsel %vm9489_vm10, %v6954_v52, %v6958_v24  ;;  %v12307_v38 = vld [vmem:[#allocation14_spill] sm:$0xff]  ;;  %v12312_v24 = vld [vmem:[#allocation13_spill] sm:$0xff] }
 0x483   : > { %v6993_v23 = vunpack.c.l.b16 %v6959_v22  ;;  %v5182_v11 = vadd.f32 %v12307_v38, %v12306_v53  ;;  %v11821_v55 = vpop.f32.mrf.mxu0 }
 0x485   : > { %8468 = vmatmul.msk.bf16.gmra.mxu2 %vm435_vm1, %v11562_v4  ;;  %8549 = vmatmul.msk.bf16.gmra.mxu3 %vm435_vm1, %v8684_v1  ;;  %v6949_v4 = vsel %vm9489_vm10, %v6944_v44, %v6948_v60  ;;  %v12310_v60 = vld [vmem:[#allocation17_spill] sm:$0xff] }
 0x486   : > { %v6992_v6 = vunpack.c.l.b16 %v6949_v4  ;;  %v5184_v26 = vadd.f32 %v12311_v20, %v12310_v60  ;;  %v12314_v4 = vld [vmem:[#allocation56_spill] sm:$0xff] }
 0x487   : > { %v8601_v60 = vld [vmem:[%s8904_s25 + $0x19] sm:$0xff] }
 0x488   : > { %v7009_v7 = vpack.c.b16 %v6993_v23, %v6992_v6  ;;  %v12316_v23 = vld [vmem:[#allocation22_spill] sm:$0xff]  ;;  %v12319_v20 = vld [vmem:[#allocation28_spill] sm:$0xff] }
 0x489   : > { %v5791_v61 = vpop.f32.mrf.mxu1  ;;  %v5187_v53 = vadd.f32 %v11665_v57, %v12316_v23  ;;  %v11862_v57 = vld [vmem:[%s12086_s4] ss:$0 sm:$0xff] }
 0x48a   : > { %v11809_v19 = vadd.f32 %v5791_v61, %v5181_v25  ;;  %v12313_v61 = vld [vmem:[#allocation53_spill] sm:$0xff] }
 0x48b   : > { %8589 = vmatmul.msk.bf16.gmra.mxu1 %vm435_vm1, %v12305_v58  ;;  %v5186_v58 = vadd.f32 %v11645_v5, %v12315_v10  ;;  %v7150_v5 = vadd.f32 %v11706_v50, %v11635_v9 }
 0x491   : > { %v5793_v1 = vpop.f32.mrf.mxu1  ;;  %8567 = vmatmul.msk.bf16.gmra.mxu0 %vm435_vm1, %v7009_v7  ;;  %v12317_v7 = vld [vmem:[#allocation9_spill] sm:$0xff] }
 0x492   : > { %v11819_v40 = vadd.f32 %v5793_v1, %v5182_v11  ;;  %v12318_v1 = vld [vmem:[#allocation32_spill] sm:$0xff] }
 0x495   : > { %8469 = vmatmul.msk.bf16.gmra.mxu2 %vm435_vm1, %v11620_v32  ;;  %8550 = vmatmul.msk.bf16.gmra.mxu3 %vm435_vm1, %v8685_v63  ;;  %v5185_v32 = vadd.f32 %v12313_v61, %v12312_v24  ;;  %v5188_v63 = vadd.f32 %v11684_v46, %v12318_v1  ;;  %v7151_v24 = vadd.f32 %v11722_v48, %v11652_v31  ;;  %v12320_v1 = vld [vmem:[#allocation31_spill] sm:$0xff] }
 0x499   : > { %v5796_v62 = vpop.f32.mrf.mxu1 }
 0x49a   : > { %v11829_v47 = vadd.f32 %v5796_v62, %v5183_v56 }
 0x49b   : > { %8590 = vmatmul.msk.bf16.gmra.mxu1 %vm435_vm1, %v12309_v30 }
 0x4a1   : > { %v5798_v25 = vpop.f32.mrf.mxu1 }
 0x4a2   : > { %v11835_v14 = vadd.f32 %v5798_v25, %v5184_v26  ;;  %v11868_v25 = vpop.f32.mrf.mxu2 }
 0x4a9   : > { %v5801_v44 = vpop.f32.mrf.mxu1 }
 0x4aa   : > { %v11839_v52 = vadd.f32 %v5801_v44, %v5185_v32  ;;  %v8602_v32 = vld [vmem:[%s8904_s25 + $0x21] sm:$0xff] }
 0x4ab   : > { %8591 = vmatmul.msk.bf16.gmra.mxu1 %vm435_vm1, %v12314_v4  ;;  %v11874_v4 = vpop.f32.mrf.mxu3 }
 0x4b1   : > { %v5803_v22 = vpop.f32.mrf.mxu1 }
 0x4b2   : > { %v11845_v6 = vadd.f32 %v5803_v22, %v5186_v58  ;;  %v11876_v58 = vpop.f32.mrf.mxu0  ;;  %v7152_v22 = vadd.f32 %v11742_v59, %v11670_v42 }
 0x4b9   : > { %v5806_v38 = vpop.f32.mrf.mxu1 }
 0x4ba   : > { %v11849_v11 = vadd.f32 %v5806_v38, %v5187_v53  ;;  %v11880_v53 = vpop.f32.mrf.mxu2  ;;  %v8603_v38 = vld [vmem:[%s8904_s25 + $0x31] sm:$0xff] }
 0x4bb   : > { %8592 = vmatmul.msk.bf16.gmra.mxu1 %vm435_vm1, %v12317_v7 }
 0x4c1   : > { %v5808_v49 = vpop.f32.mrf.mxu1 }
 0x4c2   : > { %v11855_v56 = vadd.f32 %v5808_v49, %v5188_v63  ;;  %v11886_v49 = vpop.f32.mrf.mxu3 }
 0x4c9   : > { %v7468_v62 = vpop.f32.mrf.mxu1 }
 0x4ca   : > { %v7548_v30 = vadd.f32 %v7468_v62, %v7150_v5  ;;  %v7153_v5 = vadd.f32 %v11761_v8, %v11686_v33  ;;  %v11890_v62 = vpop.f32.mrf.mxu0 }
 0x4cb   : > { %8593 = vmatmul.msk.bf16.gmra.mxu1 %vm435_vm1, %v12319_v20  ;;  %v8604_v20 = vld [vmem:[%s8904_s25 + $0x39] sm:$0xff] }
 0x4cc   : > { %v7616_v46 = vadd.f32 %v11862_v57, %v7548_v30 }
 0x4ce   : > { %v7648_v26 = vadd.f32 %v8601_v60, %v7616_v46  ;;  %v11892_v60 = vpop.f32.mrf.mxu2 }
 0x4d0   : > { %v7680_v9 = vmax.f32 %v7648_v26, 0.0 }
 0x4d1   : > { %v7470_v50 = vpop.f32.mrf.mxu1 }
 0x4d2   : > { %v7549_v61 = vadd.f32 %v7470_v50, %v7151_v24  ;;  %7712 = vxpose.xlu0.b32.start [1/16] (narrow) %v7680_v9, 8  ;;  %v7154_v24 = vadd.f32 %v11776_v36, %v11698_v29  ;;  %v11898_v50 = vpop.f32.mrf.mxu3  ;;  %v7155_v29 = vadd.f32 %v11788_v12, %v11715_v54 }
 0x4d4   : > { %v7617_v44 = vadd.f32 %v11862_v57, %v7549_v61  ;;  %v8605_v61 = vld [vmem:[%s8904_s25 + $0x49] sm:$0xff] }
 0x4d6   : > { %v7649_v10 = vadd.f32 %v8602_v32, %v7617_v44  ;;  %v11901_v32 = vpop.f32.mrf.mxu0 }
 0x4d8   : > { %v7681_v23 = vmax.f32 %v7649_v10, 0.0  ;;  %v12321_v10 = vld [vmem:[#allocation15_spill] sm:$0xff] }
 0x4d9   : > { %v7473_v31 = vpop.f32.mrf.mxu1 }
 0x4da   : > { %v7550_v48 = vadd.f32 %v7473_v31, %v7152_v22  ;;  %7713 = vxpose.xlu0.b32.cont [2/16] (narrow) %v7681_v23, 8  ;;  %v6156_v22 = vpop.f32.mrf.mxu2 }
 0x4db   : > { %8594 = vmatmul.msk.bf16.gmra.mxu1 %vm435_vm1, %v12320_v1 }
 0x4dc   : > { %v7618_v7 = vadd.f32 %v11862_v57, %v7550_v48 }
 0x4de   : > { %v7650_v63 = vadd.f32 %v8603_v38, %v7618_v7  ;;  %v11908_v38 = vpop.f32.mrf.mxu3  ;;  %v8606_v7 = vld [vmem:[%s8904_s25 + $0x51] sm:$0xff] }
 0x4e0   : > { %v7682_v42 = vmax.f32 %v7650_v63, 0.0  ;;  %v11912_v63 = vpop.f32.mrf.mxu0 }
 0x4e1   : > { %v7475_v59 = vpop.f32.mrf.mxu1 }
 0x4e2   : > { %v7551_v30 = vadd.f32 %v7475_v59, %v7153_v5  ;;  %7714 = vxpose.xlu0.b32.cont [3/16] (narrow) %v7682_v42, 8  ;;  %v11914_v42 = vpop.f32.mrf.mxu2  ;;  %v7156_v59 = vadd.f32 %v11807_v17, %v11729_v16  ;;  %v7157_v16 = vadd.f32 %v11821_v55, %v11746_v35 }
 0x4e4   : > { %v7619_v46 = vadd.f32 %v11862_v57, %v7551_v30 }
 0x4e6   : > { %v7651_v26 = vadd.f32 %v8604_v20, %v7619_v46  ;;  %v8607_v20 = vld [vmem:[%s8904_s25 + $0x61] sm:$0xff] }
 0x4e8   : > { %v7683_v9 = vmax.f32 %v7651_v26, 0.0  ;;  %v12322_v26 = vld [vmem:[#allocation19_spill] sm:$0xff] }
 0x4e9   : > { %v7478_v33 = vpop.f32.mrf.mxu1 }
 0x4ea   : > { %v7552_v8 = vadd.f32 %v7478_v33, %v7154_v24  ;;  %7715 = vxpose.xlu0.b32.cont [4/16] (narrow) %v7683_v9, 8  ;;  %v6446_v24 = vpop.f32.mrf.mxu3  ;;  %v12323_v33 = vld [vmem:[#allocation16_spill] sm:$0xff] }
 0x4eb   : > { %8595 = vmatmul.msk.bf16.gmra.mxu1 %vm435_vm1, %v12321_v10 }
 0x4ec   : > { %v7620_v44 = vadd.f32 %v11862_v57, %v7552_v8  ;;  %v6217_v8 = vadd.f32 %v11868_v25, %v12323_v33  ;;  %v12324_v25 = vld [vmem:[#allocation21_spill] sm:$0xff] }
 0x4ee   : > { %v7652_v23 = vadd.f32 %v8605_v61, %v7620_v44  ;;  %v11924_v61 = vpop.f32.mrf.mxu0  ;;  %v6161_v44 = vpop.f32.mrf.mxu2 }
 0x4f0   : > { %v7684_v36 = vmax.f32 %v7652_v23, 0.0 }
 0x4f1   : > { %v7480_v31 = vpop.f32.mrf.mxu1 }
 0x4f2   : > { %v7553_v48 = vadd.f32 %v7480_v31, %v7155_v29  ;;  %7716 = vxpose.xlu0.b32.cont [5/16] (narrow) %v7684_v36, 8  ;;  %v8608_v29 = vld [vmem:[%s8904_s25 + $0x69] sm:$0xff]  ;;  %v6504_v36 = vadd.f32 %v11874_v4, %v6217_v8  ;;  %v8609_v4 = vld [vmem:[%s8904_s25 + $0x79] sm:$0xff] }
 0x4f4   : > { %v7621_v1 = vadd.f32 %v11862_v57, %v7553_v48 }
 0x4f6   : > { %v7653_v5 = vadd.f32 %v8606_v7, %v7621_v1  ;;  %v11931_v7 = vpop.f32.mrf.mxu3  ;;  %v6218_v1 = vadd.f32 %v11880_v53, %v12324_v25 }
 0x4f8   : > { %v7685_v30 = vmax.f32 %v7653_v5, 0.0  ;;  %v7158_v5 = vadd.f32 %v11876_v58, %v6504_v36 }
 0x4f9   : > { %v7483_v54 = vpop.f32.mrf.mxu1 }
 0x4fa   : > { %v7554_v12 = vadd.f32 %v7483_v54, %v7156_v59  ;;  %7717 = vxpose.xlu0.b32.cont [6/16] (narrow) %v7685_v30, 8  ;;  %v11936_v59 = vpop.f32.mrf.mxu0  ;;  %v11938_v54 = vpop.f32.mrf.mxu2 }
 0x4fb   : > { %8596 = vmatmul.msk.bf16.gmra.mxu1 %vm435_vm1, %v12322_v26  ;;  %v12326_v26 = vld [vmem:[#allocation23_spill] sm:$0xff] }
 0x4fc   : > { %v7622_v46 = vadd.f32 %v11862_v57, %v7554_v12  ;;  %v6505_v12 = vadd.f32 %v11886_v49, %v6218_v1  ;;  %v6219_v58 = vadd.f32 %v11892_v60, %v12326_v26 }
 0x4fe   : > { %v7654_v9 = vadd.f32 %v8607_v20, %v7622_v46  ;;  %v12325_v46 = vld [vmem:[#allocation29_spill] sm:$0xff]  ;;  %v11948_v8 = vpop.f32.mrf.mxu3  ;;  %v6506_v49 = vadd.f32 %v11898_v50, %v6219_v58 }
 0x500   : > { %v7686_v17 = vmax.f32 %v7654_v9, 0.0  ;;  %v7159_v9 = vadd.f32 %v11890_v62, %v6505_v12  ;;  %v7160_v62 = vadd.f32 %v11901_v32, %v6506_v49  ;;  %v6221_v32 = vadd.f32 %v11914_v42, %v11632_v28 }
 0x501   : > { %v7485_v10 = vpop.f32.mrf.mxu1  ;;  %v7353_v49 = vrot.slane %v11794_v51, 5  ;;  %v6223_v51 = vadd.f32 %v11938_v54, %v11668_v27 }
 0x502   : > { %v7555_v23 = vadd.f32 %v7485_v10, %v7157_v16  ;;  %7718 = vxpose.xlu0.b32.cont [7/16] (narrow) %v7686_v17, 8  ;;  %v8610_v10 = vld [vmem:[%s8904_s25 + $0x81] sm:$0xff]  ;;  %v6166_v36 = vpop.f32.mrf.mxu2  ;;  %v6508_v58 = vadd.f32 %v6446_v24, %v6221_v32  ;;  %v8614_v32 = vld [vmem:[%s8904_s25 + $0xb1] sm:$0xff] }
 0x504   : > { %v7623_v31 = vadd.f32 %v11862_v57, %v7555_v23  ;;  %v11952_v23 = vpop.f32.mrf.mxu0 }
 0x506   : > { %v7655_v48 = vadd.f32 %v8608_v29, %v7623_v31 }
 0x508   : > { %v7687_v35 = vmax.f32 %v7655_v48, 0.0  ;;  %v12327_v48 = vld [vmem:[#allocation34_spill] sm:$0xff] }
 0x509   : > { %v7488_v55 = vpop.f32.mrf.mxu1  ;;  %v6220_v60 = vadd.f32 %v6156_v22, %v12327_v48  ;;  %v8613_v48 = vld [vmem:[%s8904_s25 + $0xa9] sm:$0xff] }
 0x50a   : > { %v7556_v30 = vadd.f32 %v7488_v55, %v7158_v5  ;;  %7719 = vxpose.xlu0.b32.cont [8/16] (narrow) %v7687_v35, 8  ;;  %v11957_v35 = vpop.f32.mrf.mxu3  ;;  %v8611_v55 = vld [vmem:[%s8904_s25 + $0x91] sm:$0xff]  ;;  %v6169_v12 = vpop.f32.mrf.mxu2 }
 0x50b   : > { %8597 = vmatmul.msk.bf16.gmra.mxu1 %vm435_vm1, %v12325_v46  ;;  %v6507_v50 = vadd.f32 %v11908_v38, %v6220_v60  ;;  %v8612_v38 = vld [vmem:[%s8904_s25 + $0x99] sm:$0xff] }
 0x50c   : > { %v7624_v20 = vadd.f32 %v11862_v57, %v7556_v30 }
 0x50e   : > { %v7656_v53 = vadd.f32 %v8609_v4, %v7624_v20  ;;  %v11964_v4 = vpop.f32.mrf.mxu0  ;;  %v7161_v20 = vadd.f32 %v11912_v63, %v6507_v50 }
 0x510   : > { %v7688_v33 = vmax.f32 %v7656_v53, 0.0 }
 0x511   : > { %v7490_v16 = vpop.f32.mrf.mxu1 }
 0x512   : > { %v7557_v17 = vadd.f32 %v7490_v16, %v7159_v9  ;;  %7720 = vxpose.xlu0.b32.cont [9/16] (narrow) %v7688_v33, 8  ;;  %v6456_v33 = vpop.f32.mrf.mxu3  ;;  %v6222_v16 = vadd.f32 %v6161_v44, %v11650_v2  ;;  %v6171_v42 = vpop.f32.mrf.mxu2  ;;  %v7355_v44 = vrot.slane %v7353_v49, 4 }
 0x514   : > { %v7625_v29 = vadd.f32 %v11862_v57, %v7557_v17  ;;  %v6509_v24 = vadd.f32 %v11931_v7, %v6222_v16 }
 0x516   : > { %v7657_v31 = vadd.f32 %v8610_v10, %v7625_v29  ;;  %v11972_v17 = vpop.f32.mrf.mxu0  ;;  %v7162_v10 = vadd.f32 %v11924_v61, %v6508_v58  ;;  %v7356_v61 = vrot.slane %v11796_v45, 5 }
 0x518   : > { %v7689_v25 = vmax.f32 %v7657_v31, 0.0  ;;  %v7197_v31 = vld [vmem:[#allocation2 + $0xcc] sm:$0xe] }
 0x519   : > { %v7493_v1 = vpop.f32.mrf.mxu1  ;;  %v8583_v2 = vrot.slane %v7197_v31, 9 }
 0x51a   : > { %v7558_v5 = vadd.f32 %v7493_v1, %v7160_v62  ;;  %7721 = vxpose.xlu0.b32.cont [10/16] (narrow) %v7689_v25, 8  ;;  %v6458_v25 = vpop.f32.mrf.mxu3  ;;  %v7163_v1 = vadd.f32 %v11936_v59, %v6509_v24  ;;  %v6174_v45 = vpop.f32.mrf.mxu2 }
 0x51b   : > { %8598 = vmatmul.msk.bf16.gmra.mxu1 %vm435_vm1, %v11615_v0  ;;  %v7354_v50 = vsel %vm9728_vm3, %v8583_v2, %v7353_v49 }
 0x51c   : > { %v7626_v30 = vadd.f32 %v11862_v57, %v7558_v5  ;;  %v7390_v54 = vunpack.c.l.b16 %v7354_v50 }
 0x51e   : > { %v7658_v22 = vadd.f32 %v8611_v55, %v7626_v30  ;;  %v7112_v30 = vpop.f32.mrf.mxu0 }
 0x520   : > { %v7690_v46 = vmax.f32 %v7658_v22, 0.0 }
 0x521   : > { %v7495_v53 = vpop.f32.mrf.mxu1 }
 0x522   : > { %v7559_v26 = vadd.f32 %v7495_v53, %v7161_v20  ;;  %7722 = vxpose.xlu0.b32.cont [11/16] (narrow) %v7690_v46, 8  ;;  %v6510_v20 = vadd.f32 %v11948_v8, %v6223_v51  ;;  %v6224_v53 = vadd.f32 %v6166_v36, %v11682_v13  ;;  %v6176_v49 = vpop.f32.mrf.mxu2  ;;  %v6225_v13 = vadd.f32 %v6169_v12, %v11696_v18 }
 0x523   : > { %v6226_v51 = vadd.f32 %v6171_v42, %v11713_v3  ;;  %v8618_v42 = vld [vmem:[%s8904_s25 + $0xe1] sm:$0xff] }
 0x524   : > { %v7627_v9 = vadd.f32 %v11862_v57, %v7559_v26  ;;  %v7164_v26 = vadd.f32 %v11952_v23, %v6510_v20  ;;  %v6512_v2 = vadd.f32 %v6456_v33, %v6225_v13 }
 0x526   : > { %v7659_v0 = vadd.f32 %v8612_v38, %v7627_v9  ;;  %v6461_v9 = vpop.f32.mrf.mxu3  ;;  %v7115_v8 = vpop.f32.mrf.mxu0 }
 0x528   : > { %v7691_v28 = vmax.f32 %v7659_v0, 0.0 }
 0x529   : > { %v7498_v63 = vpop.f32.mrf.mxu1 }
 0x52a   : > { %v7560_v29 = vadd.f32 %v7498_v63, %v7162_v10  ;;  %7723 = vxpose.xlu0.b32.cont [12/16] (narrow) %v7691_v28, 8  ;;  %v8615_v10 = vld [vmem:[%s8904_s25 + $0xc1] sm:$0xff]  ;;  %v6511_v28 = vadd.f32 %v11957_v35, %v6224_v53  ;;  %v6228_v53 = vadd.f32 %v6176_v49, %v11744_v34 }
 0x52b   : > { %8599 = vmatmul.msk.bf16.gmra.mxu1 %vm435_vm1, %v11637_v21  ;;  %v7357_v21 = vsel %vm9728_vm3, %v7355_v44, %v7356_v61 }
 0x52c   : > { %v7628_v60 = vadd.f32 %v11862_v57, %v7560_v29  ;;  %v7391_v59 = vunpack.c.l.b16 %v7357_v21  ;;  %v7165_v23 = vadd.f32 %v11964_v4, %v6511_v28  ;;  %v6227_v21 = vadd.f32 %v6174_v45, %v11727_v39 }
 0x52e   : > { %v7660_v62 = vadd.f32 %v8613_v48, %v7628_v60  ;;  %v7407_v58 = vpack.c.b16 %v7391_v59, %v7390_v54  ;;  %v6463_v24 = vpop.f32.mrf.mxu3  ;;  %v8616_v60 = vld [vmem:[%s8904_s25 + $0xc9] sm:$0xff]  ;;  %v7117_v44 = vpop.f32.mrf.mxu0  ;;  %v6514_v54 = vadd.f32 %v6461_v9, %v6227_v21 }
 0x530   : > { %v7692_v5 = vmax.f32 %v7660_v62, 0.0  ;;  %v6179_v62 = vpop.f32.mrf.mxu2 }
 0x531   : > { %v7500_v55 = vpop.f32.mrf.mxu1  ;;  %v6229_v9 = vadd.f32 %v6179_v62, %v11755_v41  ;;  %v8621_v62 = vld [vmem:[%s8904_s25 + $0x109] sm:$0xff] }
 0x532   : > { %v7561_v22 = vadd.f32 %v7500_v55, %v7163_v1  ;;  %7724 = vxpose.xlu0.b32.cont [13/16] (narrow) %v7692_v5, 8  ;;  %v7166_v1 = vadd.f32 %v11972_v17, %v6512_v2  ;;  %v8617_v5 = vld [vmem:[%s8904_s25 + $0xd9] sm:$0xff]  ;;  %v6513_v55 = vadd.f32 %v6458_v25, %v6226_v51 }
 0x534   : > { %v7629_v27 = vadd.f32 %v11862_v57, %v7561_v22 }
 0x536   : > { %v7661_v46 = vadd.f32 %v8614_v32, %v7629_v27  ;;  %v6466_v50 = vpop.f32.mrf.mxu3  ;;  %v7120_v22 = vpop.f32.mrf.mxu0  ;;  %v7167_v32 = vadd.f32 %v7112_v30, %v6513_v55 }
 0x537   : > { %v6516_v49 = vadd.f32 %v6466_v50, %v6229_v9 }
 0x538   : > { %v7693_v38 = vmax.f32 %v7661_v46, 0.0  ;;  %v6181_v27 = vpop.f32.mrf.mxu2 }
 0x539   : > { %v7503_v0 = vpop.f32.mrf.mxu1  ;;  %v7170_v2 = vadd.f32 %v7120_v22, %v6516_v49  ;;  %v8625_v49 = vld [vmem:[%s8904_s25 + $0x139] sm:$0xff] }
 0x53a   : > { %v7562_v16 = vadd.f32 %v7503_v0, %v7164_v26  ;;  %7725 = vxpose.xlu0.b32.cont [14/16] (narrow) %v7693_v38, 8  ;;  %v7168_v26 = vadd.f32 %v7115_v8, %v6514_v54  ;;  %v8619_v0 = vld [vmem:[%s8904_s25 + $0xf1] sm:$0xff]  ;;  %v8620_v8 = vld [vmem:[%s8904_s25 + $0xf9] sm:$0xff] }
 0x53b   : > { %8600 = vmatmul.msk.bf16.gmra.mxu1 %vm435_vm1, %v7407_v58 }
 0x53c   : > { %v7630_v63 = vadd.f32 %v11862_v57, %v7562_v16  ;;  %v6515_v16 = vadd.f32 %v6463_v24, %v6228_v53  ;;  %v6230_v24 = vadd.f32 %v6181_v27, %v11769_v43 }
 0x53e   : > { %v7662_v29 = vadd.f32 %v8615_v10, %v7630_v63  ;;  %v6468_v25 = vpop.f32.mrf.mxu3  ;;  %v7122_v39 = vpop.f32.mrf.mxu0  ;;  %v7169_v63 = vadd.f32 %v7117_v44, %v6515_v16 }
 0x53f   : > { %v6517_v51 = vadd.f32 %v6468_v25, %v6230_v24 }
 0x540   : > { %v7694_v36 = vmax.f32 %v7662_v29, 0.0  ;;  %v6184_v45 = vpop.f32.mrf.mxu2 }
 0x541   : > { %v7505_v31 = vpop.f32.mrf.mxu1  ;;  %v7171_v55 = vadd.f32 %v7122_v39, %v6517_v51 }
 0x542   : > { %v7563_v48 = vadd.f32 %v7505_v31, %v7165_v23  ;;  %7726 = vxpose.xlu0.b32.cont [15/16] (narrow) %v7694_v36, 8 }
 0x544   : > { %v7631_v35 = vadd.f32 %v11862_v57, %v7563_v48 }
 0x546   : > { %v7663_v61 = vadd.f32 %v8616_v60, %v7631_v35  ;;  %v6471_v13 = vpop.f32.mrf.mxu3  ;;  %v7125_v36 = vpop.f32.mrf.mxu0 }
 0x548   : > { %v7695_v18 = vmax.f32 %v7663_v61, 0.0  ;;  %v6186_v48 = vpop.f32.mrf.mxu2 }
 0x549   : > { %v7508_v12 = vpop.f32.mrf.mxu1  ;;  %v6232_v27 = vadd.f32 %v6186_v48, %v11792_v37 }
 0x54a   : > { %v7564_v4 = vadd.f32 %v7508_v12, %v7166_v1  ;;  %7727 = vxpose.xlu0.b32.end [16/16] (narrow) %v7695_v18, 8 }
 0x54c   : > { %v7632_v7 = vadd.f32 %v11862_v57, %v7564_v4 }
 0x54e   : > { %v7664_v33 = vadd.f32 %v8617_v5, %v7632_v7  ;;  %v6473_v44 = vpop.f32.mrf.mxu3  ;;  %v7127_v18 = vpop.f32.mrf.mxu0  ;;  %v6231_v5 = vadd.f32 %v6184_v45, %v11780_v15 }
 0x54f   : > { %v6519_v25 = vadd.f32 %v6473_v44, %v6232_v27 }
 0x550   : > { %v7696_v20 = vmax.f32 %v7664_v33, 0.0  ;;  %v6189_v4 = vpop.f32.mrf.mxu2  ;;  %v8622_v33 = vld [vmem:[%s8904_s25 + $0x111] sm:$0xff]  ;;  %v6518_v21 = vadd.f32 %v6471_v13, %v6231_v5 }
 0x551   : > { %v7510_v3 = vpop.f32.mrf.mxu1  ;;  %v7173_v39 = vadd.f32 %v7127_v18, %v6519_v25 }
 0x552   : > { %v7565_v17 = vadd.f32 %v7510_v3, %v7167_v32  ;;  %7744 = vxpose.xlu1.b32.start [1/16] (narrow) %v7696_v20, 8 }
 0x554   : > { %v7633_v59 = vadd.f32 %v11862_v57, %v7565_v17  ;;  %v7172_v17 = vadd.f32 %v7125_v36, %v6518_v21 }
 0x556   : > { %v7665_v46 = vadd.f32 %v8618_v42, %v7633_v59  ;;  %v6476_v32 = vpop.f32.mrf.mxu3  ;;  %v7130_v3 = vpop.f32.mrf.mxu0 }
 0x558   : > { %v7697_v38 = vmax.f32 %v7665_v46, 0.0  ;;  %v6191_v54 = vpop.f32.mrf.mxu2  ;;  %v8623_v46 = vld [vmem:[%s8904_s25 + $0x121] sm:$0xff] }
 0x559   : > { %v7513_v58 = vpop.f32.mrf.mxu1 }
 0x55a   : > { %v7566_v30 = vadd.f32 %v7513_v58, %v7168_v26  ;;  %7745 = vxpose.xlu1.b32.cont [2/16] (narrow) %v7697_v38, 8  ;;  %v6233_v58 = vadd.f32 %v6189_v4, %v11809_v19 }
 0x55c   : > { %v7634_v10 = vadd.f32 %v11862_v57, %v7566_v30 }
 0x55e   : > { %v7666_v28 = vadd.f32 %v8619_v0, %v7634_v10  ;;  %v6478_v38 = vpop.f32.mrf.mxu3  ;;  %v7132_v37 = vpop.f32.mrf.mxu0  ;;  %v8624_v10 = vld [vmem:[%s8904_s25 + $0x129] sm:$0xff] }
 0x560   : > { %v7698_v29 = vmax.f32 %v7666_v28, 0.0  ;;  %v6194_v16 = vpop.f32.mrf.mxu2  ;;  %v6520_v28 = vadd.f32 %v6476_v32, %v6233_v58 }
 0x561   : > { %v7515_v23 = vpop.f32.mrf.mxu1 }
 0x562   : > { %v7567_v34 = vadd.f32 %v7515_v23, %v7169_v63  ;;  %7746 = vxpose.xlu1.b32.cont [3/16] (narrow) %v7698_v29, 8  ;;  %v6234_v29 = vadd.f32 %v6191_v54, %v11819_v40  ;;  %v7174_v13 = vadd.f32 %v7130_v3, %v6520_v28 }
 0x564   : > { %v7635_v31 = vadd.f32 %v11862_v57, %v7567_v34  ;;  %v6521_v36 = vadd.f32 %v6478_v38, %v6234_v29 }
 0x566   : > { %v7667_v60 = vadd.f32 %v8620_v8, %v7635_v31  ;;  %v6481_v34 = vpop.f32.mrf.mxu3  ;;  %v7135_v31 = vpop.f32.mrf.mxu0 }
 0x568   : > { %v7699_v35 = vmax.f32 %v7667_v60, 0.0  ;;  %v6196_v60 = vpop.f32.mrf.mxu2 }
 0x569   : > { %v7518_v61 = vpop.f32.mrf.mxu1  ;;  %v6236_v5 = vadd.f32 %v6196_v60, %v11835_v14 }
 0x56a   : > { %v7568_v41 = vadd.f32 %v7518_v61, %v7170_v2  ;;  %7747 = vxpose.xlu1.b32.cont [4/16] (narrow) %v7699_v35, 8  ;;  %v6235_v2 = vadd.f32 %v6194_v16, %v11829_v47  ;;  %v7175_v35 = vadd.f32 %v7132_v37, %v6521_v36  ;;  %v8629_v37 = vld [vmem:[%s8904_s25 + $0x169] sm:$0xff] }
 0x56c   : > { %v7636_v1 = vadd.f32 %v11862_v57, %v7568_v41  ;;  %v6522_v51 = vadd.f32 %v6481_v34, %v6235_v2  ;;  %v8630_v34 = vld [vmem:[%s8904_s25 + $0x171] sm:$0xff] }
 0x56e   : > { %v7668_v12 = vadd.f32 %v8621_v62, %v7636_v1  ;;  %v6483_v44 = vpop.f32.mrf.mxu3  ;;  %v8626_v62 = vld [vmem:[%s8904_s25 + $0x141] sm:$0xff]  ;;  %v7137_v18 = vpop.f32.mrf.mxu0 }
 0x570   : > { %v7700_v7 = vmax.f32 %v7668_v12, 0.0  ;;  %v6199_v4 = vpop.f32.mrf.mxu2 }
 0x571   : > { %v7520_v50 = vpop.f32.mrf.mxu1  ;;  %v6237_v27 = vadd.f32 %v6199_v4, %v11839_v52 }
 0x572   : > { %v7569_v43 = vadd.f32 %v7520_v50, %v7171_v55  ;;  %7748 = vxpose.xlu1.b32.cont [5/16] (narrow) %v7700_v7, 8  ;;  %v7176_v55 = vadd.f32 %v7135_v31, %v6522_v51 }
 0x574   : > { %v7637_v22 = vadd.f32 %v11862_v57, %v7569_v43  ;;  %v8627_v43 = vld [vmem:[%s8904_s25 + $0x151] sm:$0xff] }
 0x576   : > { %v7669_v20 = vadd.f32 %v8622_v33, %v7637_v22  ;;  %v6523_v33 = vadd.f32 %v6483_v44, %v6236_v5  ;;  %v6486_v22 = vpop.f32.mrf.mxu3 }
 0x578   : > { %v7701_v42 = vmax.f32 %v7669_v20, 0.0  ;;  %v7140_v20 = vpop.f32.mrf.mxu0  ;;  %v7177_v3 = vadd.f32 %v7137_v18, %v6523_v33 }
 0x579   : > { %v7523_v59 = vpop.f32.mrf.mxu1 }
 0x57a   : > { %v7570_v15 = vadd.f32 %v7523_v59, %v7172_v17  ;;  %7749 = vxpose.xlu1.b32.cont [6/16] (narrow) %v7701_v42, 8  ;;  %v6201_v42 = vpop.f32.mrf.mxu2  ;;  %v8628_v59 = vld [vmem:[%s8904_s25 + $0x159] sm:$0xff] }
 0x57c   : > { %v7638_v53 = vadd.f32 %v11862_v57, %v7570_v15  ;;  %v6524_v15 = vadd.f32 %v6486_v22, %v6237_v27 }
 0x57e   : > { %v7670_v26 = vadd.f32 %v8623_v46, %v7638_v53  ;;  %v6488_v53 = vpop.f32.mrf.mxu3  ;;  %v7178_v38 = vadd.f32 %v7140_v20, %v6524_v15 }
 0x580   : > { %v7702_v30 = vmax.f32 %v7670_v26, 0.0  ;;  %v6238_v26 = vadd.f32 %v6201_v42, %v11845_v6  ;;  %v7142_v52 = vpop.f32.mrf.mxu0 }
 0x581   : > { %v7525_v45 = vpop.f32.mrf.mxu1 }
 0x582   : > { %v7571_v0 = vadd.f32 %v7525_v45, %v7173_v39  ;;  %7750 = vxpose.xlu1.b32.cont [7/16] (narrow) %v7702_v30, 8  ;;  %v6204_v45 = vpop.f32.mrf.mxu2 }
 0x584   : > { %v7639_v9 = vadd.f32 %v11862_v57, %v7571_v0  ;;  %v6525_v0 = vadd.f32 %v6488_v53, %v6238_v26 }
 0x586   : > { %v7671_v63 = vadd.f32 %v8624_v10, %v7639_v9  ;;  %v6491_v28 = vpop.f32.mrf.mxu3  ;;  %v6239_v9 = vadd.f32 %v6204_v45, %v11849_v11 }
 0x588   : > { %v7703_v23 = vmax.f32 %v7671_v63, 0.0  ;;  %v7179_v63 = vadd.f32 %v7142_v52, %v6525_v0 }
 0x589   : > { %v7528_v8 = vpop.f32.mrf.mxu1 }
 0x58a   : > { %v7572_v19 = vadd.f32 %v7528_v8, %v7174_v13  ;;  %7751 = vxpose.xlu1.b32.cont [8/16] (narrow) %v7703_v23, 8  ;;  %v7145_v23 = vpop.f32.mrf.mxu0  ;;  %v6526_v8 = vadd.f32 %v6491_v28, %v6239_v9 }
 0x58c   : > { %v7640_v48 = vadd.f32 %v11862_v57, %v7572_v19  ;;  %v7180_v31 = vadd.f32 %v7145_v23, %v6526_v8 }
 0x58e   : > { %v7672_v24 = vadd.f32 %v8625_v49, %v7640_v48  ;;  %v6206_v49 = vpop.f32.mrf.mxu2 }
 0x58f   : > { %v6240_v48 = vadd.f32 %v6206_v49, %v11855_v56  ;;  %v8632_v56 = vld [vmem:[%s8904_s25 + $0x189] sm:$0xff] }
 0x590   : > { %v7704_v61 = vmax.f32 %v7672_v24, 0.0  ;;  %v6493_v24 = vpop.f32.mrf.mxu3 }
 0x591   : > { %v7530_v41 = vpop.f32.mrf.mxu1 }
 0x592   : > { %v7573_v40 = vadd.f32 %v7530_v41, %v7175_v35  ;;  %7752 = vxpose.xlu1.b32.cont [9/16] (narrow) %v7704_v61, 8  ;;  %v8631_v35 = vld [vmem:[%s8904_s25 + $0x181] sm:$0xff]  ;;  %v6527_v61 = vadd.f32 %v6493_v24, %v6240_v48  ;;  %s7784_s25 = scalar_lea.sflag [#allocation4], %s215_s8 }
 0x594   : > { %v7641_v1 = vadd.f32 %v11862_v57, %v7573_v40  ;;  %v7147_v40 = vpop.f32.mrf.mxu0 }
 0x596   : > { %v7673_v12 = vadd.f32 %v8626_v62, %v7641_v1  ;;  %v7181_v62 = vadd.f32 %v7147_v40, %v6527_v61 }
 0x598   : > { %v7705_v7 = vmax.f32 %v7673_v12, 0.0 }
 0x599   : > { %v7533_v50 = vpop.f32.mrf.mxu1 }
 0x59a   : > { %v7574_v47 = vadd.f32 %v7533_v50, %v7176_v55  ;;  %7753 = vxpose.xlu1.b32.cont [10/16] (narrow) %v7705_v7, 8  ;;  %v7728_v7 = vpop.trf.xlu0 }
 0x59c   : > { %v7642_v21 = vadd.f32 %v11862_v57, %v7574_v47 }
 0x59e   : > { %v7674_v32 = vadd.f32 %v8627_v43, %v7642_v21 }
 0x5a0   : > { %v7706_v17 = vmax.f32 %v7674_v32, 0.0 }
 0x5a1   : > { %v7535_v54 = vpop.f32.mrf.mxu1 }
 0x5a2   : > { %v7575_v14 = vadd.f32 %v7535_v54, %v7177_v3  ;;  %7754 = vxpose.xlu1.b32.cont [11/16] (narrow) %v7706_v17, 8 }
 0x5a4   : > { %v7643_v46 = vadd.f32 %v11862_v57, %v7575_v14 }
 0x5a6   : > { %v7675_v25 = vadd.f32 %v8628_v59, %v7643_v46 }
 0x5a8   : > { %v7707_v58 = vmax.f32 %v7675_v25, 0.0 }
 0x5a9   : > { %v7538_v39 = vpop.f32.mrf.mxu1 }
 0x5aa   : > { %v7576_v30 = vadd.f32 %v7538_v39, %v7178_v38  ;;  %7755 = vxpose.xlu1.b32.cont [12/16] (narrow) %v7707_v58, 8 }
 0x5ac   : > { %v7644_v16 = vadd.f32 %v11862_v57, %v7576_v30 }
 0x5ae   : > { %v7676_v10 = vadd.f32 %v8629_v37, %v7644_v16 }
 0x5b0   : > { %v7708_v29 = vmax.f32 %v7676_v10, 0.0 }
 0x5b1   : > { %v7540_v13 = vpop.f32.mrf.mxu1 }
 0x5b2   : > { %v7577_v6 = vadd.f32 %v7540_v13, %v7179_v63  ;;  %7756 = vxpose.xlu1.b32.cont [13/16] (narrow) %v7708_v29, 8 }
 0x5b4   : > { %v7645_v19 = vadd.f32 %v11862_v57, %v7577_v6 }
 0x5b6   : > { %v7677_v36 = vadd.f32 %v8630_v34, %v7645_v19 }
 0x5b8   : > { %v7709_v60 = vmax.f32 %v7677_v36, 0.0 }
 0x5b9   : > { %v7543_v11 = vpop.f32.mrf.mxu1 }
 0x5ba   : > { %v7578_v2 = vadd.f32 %v7543_v11, %v7180_v31  ;;  %7757 = vxpose.xlu1.b32.cont [14/16] (narrow) %v7709_v60, 8 }
 0x5bc   : > { %v7646_v41 = vadd.f32 %v11862_v57, %v7578_v2 }
 0x5be   : > { %v7678_v44 = vadd.f32 %v8631_v35, %v7646_v41 }
 0x5c0   : > { %v7710_v51 = vmax.f32 %v7678_v44, 0.0 }
 0x5c1   : > { %v7545_v1 = vpop.f32.mrf.mxu1 }
 0x5c2   : > { %v7579_v18 = vadd.f32 %v7545_v1, %v7181_v62  ;;  %7758 = vxpose.xlu1.b32.cont [15/16] (narrow) %v7710_v51, 8 }
 0x5c4   : > { %v7647_v12 = vadd.f32 %v11862_v57, %v7579_v18 }
 0x5c6   : > { %v7679_v4 = vadd.f32 %v8632_v56, %v7647_v12 }
 0x5c8   : > { %v7711_v5 = vmax.f32 %v7679_v4, 0.0 }
 0x5ca   : > { %7759 = vxpose.xlu1.b32.end [16/16] (narrow) %v7711_v5, 8 }
 0x5f6   : > { %v7760_v55 = vpop.trf.xlu1 }
 0x5f7   : > { %v7778_v50 = vrot.slane %v7760_v55, 4 }
 0x5f9   : > { %v7780_v57 = vsel %vm7779_vm0, %v7728_v7, %v7778_v50 }
 0x5fa   : > { %7782 = vst [vmem:[%s217_s14] sm:$0xff] %v7780_v57 }
 0x5fb   : > { %8763 = shalt.err (!%p8760_p3)
}
 0x5fc   : > { %8690 = dma.vmem_to_hbm [thread:$0]  (%p8869_p5), %s7798_s15, 128, %s7800_s16, %s7784_s25  }
 0x5fd PF: > { %p8696_p4 = scmp.ge.s32.totalorder %s8798_s21, 2  ;;  %s7811_s8 = sand.u32 1, %s8786_s18  }
 0x5fe   : > { %s7812_s9 = scalar_lea.sflag [#allocation4], %s7811_s8 }
 0x5ff   : > { %p8693_p7 = pnand %p8696_p4, %p8873_p6 }
 0x601   : > { %p8694_p8 = pneg %p8693_p7 }
 0x603   : > { %8781 = dma.done.wait (%p8694_p8), %s7812_s9, 128  }
 0x604   : > { %8783 = vsyncadd (%p8694_p8), %s7812_s9, 4294967168  ;;  %p15_p9 = scmp.ge.s32.totalorder %s8856_s24, 4   ;;  %s12329_s18 = smov %s8790_s19 }
 0x605   : > { %s12330_s19 = smov %s8794_s20  ;;  %s12331_s20 = smov %s8867_s27 }
 0x606   : > { %s12332_s21 = smov %s8856_s24  ;;  %17 = sbr.rel (!%p15_p9) target bundleno = 3 (0x3), region = 96 }
 0x60b   :  { %7818 = vsyncpa [#allocation4], 1 }
 0x60c   :  { %7820 = vsyncpa [#allocation4 + $0x1], 1 }

</bundles_post_ra>
